<compile_context>
chip_gen: v6e
topology: v6e:2x2x1
jax: 0.10.0
libtpu: 0.0.40
codegen_flags: <defaults>
</compile_context>

<pallas_src>
import functools

import jax
import jax.numpy as jnp
from jax.experimental import pallas as pl
from jax.experimental.pallas import tpu as pltpu


def _fused_kernel(B, H, W, C, n_valid,
                  x_ref, w1_ref, b1_ref, scale_ref, shift_ref,
                  w2_ref, b2_ref, wfc1_ref, sel_ref, bfc1_ref,
                  wfc2_ref, bfc2_ref,
                  out_ref,
                  pad1_ref, patches1_ref, c1_ref, pad2_ref, patches2_ref):
    """Fused conv1+pool+relu+bn+conv2+relu+fc1+relu+fc2 for B images/step."""
    H2, W2 = H // 2, W // 2
    P = H2 * W2
    i = pl.program_id(0)

    # One-time init: zero the padded scratches (only their 1-pixel borders are
    # ever consumed as zeros -- the interiors are rewritten every step) and
    # seed the fused-fc2 accumulator (the resident output block) with its bias.
    @pl.when(i == 0)
    def _init():
        pad1_ref[...] = jnp.zeros(pad1_ref.shape, jnp.float32)
        pad2_ref[...] = jnp.zeros(pad2_ref.shape, jnp.float32)
        out_ref[...] = bfc2_ref[...]

    # ---- conv1 (3x3, pad=1, C -> 64) as a single im2col matmul ---------------
    pad1_ref[:, 1:H + 1, 1:W + 1, :] = x_ref[...]
    for t in range(9):
        dy, dx = t // 3, t % 3
        patches1_ref[:, t * C:(t + 1) * C] = (
            pad1_ref[:, dy:dy + H, dx:dx + W, :].reshape(B * H * W, C))
    c1_ref[...] = jnp.dot(patches1_ref[...], w1_ref[...],
                          preferred_element_type=jnp.float32) + b1_ref[...]

    # ---- maxpool 2x2 stride 2 (requires even H, W; asserted in the wrapper) --
    # horizontal: even/odd w via stride-2 sublane reads on the flat (b,h,w) axis
    m2 = B * H * W2
    hpool = jnp.maximum(c1_ref[pl.ds(0, m2, stride=2), :],
                        c1_ref[pl.ds(1, m2, stride=2), :])    # (B*H*W2, 64)
    # vertical: pair even/odd h (tile-aligned sublane split, no scratch trip)
    h4 = hpool.reshape(B * H2, 2, W2, 64)
    pooled = jnp.maximum(h4[:, 0], h4[:, 1])                  # (B*H2, W2, 64)
    # ReLU after the pool: relu(max(.)) == max(relu(.)), 4x fewer elements.
    pooled = jnp.maximum(pooled, 0.0)

    # ---- batchnorm (inference; running stats folded to scale/shift in glue) --
    # TODO(synk): training-mode BatchNorm (batch statistics) not implemented.
    # ---- conv2 (3x3, pad=1, 64 -> 32) as a single im2col matmul, then ReLU ----
    pad2_ref[:, 1:H2 + 1, 1:W2 + 1, :] = (
        pooled * scale_ref[...] + shift_ref[...]).reshape(B, H2, W2, 64)
    for t in range(9):
        dy, dx = t // 3, t % 3
        patches2_ref[:, t * 64:(t + 1) * 64] = (
            pad2_ref[:, dy:dy + H2, dx:dx + W2, :].reshape(B * P, 64))
    feat = jnp.dot(patches2_ref[...], w2_ref[...],
                   preferred_element_type=jnp.float32) + b2_ref[...]
    feat = jnp.maximum(feat, 0.0)                             # (B*P, 32)

    # ---- fc1 + ReLU: weighted product, per-image block-sum on the MXU --------
    prod = feat * wfc1_ref[...]                               # (B*P, 32)
    per_img = jnp.dot(sel_ref[...], prod,
                      preferred_element_type=jnp.float32)     # (B, 32), K = B*P
    fc1 = jnp.maximum(jnp.sum(per_img, axis=-1, keepdims=True)
                      + bfc1_ref[...], 0.0)                   # (B, 1)

    # ---- fc2 fused: accumulate this block's contribution into the output -----
    # flatten(start_dim=0) + pad-to-128 + dropout(identity) + fc2 is
    #   out = b_fc2 + sum_n w_fc2[n] * relu(fc1[n])   (n < N; padded n give 0).
    # TODO(synk): nn.Dropout is identity in inference; training-mode RNG skipped.
    gidx = i * B + jax.lax.broadcasted_iota(jnp.int32, (B, 1), 0)
    fc1 = jnp.where(gidx < n_valid, fc1, 0.0)                 # drop batch padding
    out_ref[...] += jnp.sum(wfc2_ref[...] * fc1, axis=0, keepdims=True)


def init_params(key, C, H, W):
    H2, W2 = H // 2, W // 2
    ks = jax.random.split(key, 12)
    p = {}
    p["w_conv1"] = 0.05 * jax.random.normal(ks[0], (64, C, 3, 3), jnp.float32)   # OIHW
    p["b_conv1"] = 0.05 * jax.random.normal(ks[1], (64,), jnp.float32)
    p["w_conv2"] = 0.05 * jax.random.normal(ks[2], (32, 64, 3, 3), jnp.float32)  # OIHW
    p["b_conv2"] = 0.05 * jax.random.normal(ks[3], (32,), jnp.float32)
    p["bn_gamma"] = 1.0 + 0.1 * jax.random.normal(ks[4], (64,), jnp.float32)
    p["bn_beta"] = 0.1 * jax.random.normal(ks[5], (64,), jnp.float32)
    p["bn_mean"] = 0.1 * jax.random.normal(ks[6], (64,), jnp.float32)
    p["bn_var"] = jax.random.uniform(ks[7], (64,), jnp.float32, 0.5, 1.5)
    p["w_fc1"] = 0.01 * jax.random.normal(ks[8], (1, 32 * H2 * W2), jnp.float32)  # (out,in)
    p["b_fc1"] = 0.01 * jax.random.normal(ks[9], (1,), jnp.float32)
    p["w_fc2"] = 0.05 * jax.random.normal(ks[10], (1, 128), jnp.float32)
    p["b_fc2"] = 0.05 * jax.random.normal(ks[11], (1,), jnp.float32)
    return p


def mask_score_forward(x_nchw, params):
    N, C, H, W = x_nchw.shape
    assert H % 2 == 0 and W % 2 == 0, "2x2/2 maxpool layout trick needs even H, W"
    assert 1 <= N <= 128, "fc2 pads the flattened fc1 vector up to length 128"
    H2, W2 = H // 2, W // 2
    P = H2 * W2

    # Images per grid step: B == N (single grid step) for small batches,
    # otherwise a multiple of 8 so every sublane-facing BlockSpec dim is aligned.
    B = N if N <= 8 else 8
    NB = (N + B - 1) // B
    Npad = NB * B

    x = jnp.transpose(x_nchw, (0, 2, 3, 1))                      # NCHW -> NHWC
    if Npad != N:
        x = jnp.pad(x, ((0, Npad - N), (0, 0), (0, 0), (0, 0)))

    # --- parameter re-layout glue (runs once in XLA) ---
    # conv weights concatenated for im2col: row order is (dy, dx, cin).
    w1 = jnp.transpose(params["w_conv1"], (2, 3, 1, 0)).reshape(9 * C, 64)
    b1 = params["b_conv1"].reshape(1, 64)
    w2 = jnp.transpose(params["w_conv2"], (2, 3, 1, 0)).reshape(9 * 64, 32)
    b2 = params["b_conv2"].reshape(1, 32)
    eps = 1e-5
    scale_v = params["bn_gamma"] * jax.lax.rsqrt(params["bn_var"] + eps)
    shift_v = params["bn_beta"] - params["bn_mean"] * scale_v
    scale = scale_v.reshape(1, 64)
    shift = shift_v.reshape(1, 64)
    # fc1: PyTorch flatten order is (c, h, w); kernel flatten order is (h, w, c).
    wfc1 = params["w_fc1"].reshape(32, H2, W2).transpose(1, 2, 0).reshape(P, 32)
    wfc1_t = jnp.tile(wfc1, (B, 1))                              # (B*P, 32)
    # selection matrix: sums the P rows belonging to each image (MXU block-sum).
    sel = (jnp.arange(B)[:, None]
           == (jnp.arange(B * P) // P)[None, :]).astype(jnp.float32)
    bfc1 = params["b_fc1"].reshape(1, 1)
    wfc2 = params["w_fc2"].reshape(128)[:Npad].reshape(Npad, 1)  # per-image fc2 weight
    bfc2 = params["b_fc2"].reshape(1, 1)

    kern = functools.partial(_fused_kernel, B, H, W, C, N)
    grid_spec = pltpu.PrefetchScalarGridSpec(
        num_scalar_prefetch=0,
        grid=(NB,),
        in_specs=[
            pl.BlockSpec((B, H, W, C), lambda i: (i, 0, 0, 0)),      # x (NHWC)
            pl.BlockSpec((9 * C, 64), lambda i: (0, 0)),             # conv1 w (im2col)
            pl.BlockSpec((1, 64), lambda i: (0, 0)),                 # conv1 b
            pl.BlockSpec((1, 64), lambda i: (0, 0)),                 # bn scale
            pl.BlockSpec((1, 64), lambda i: (0, 0)),                 # bn shift
            pl.BlockSpec((9 * 64, 32), lambda i: (0, 0)),            # conv2 w (im2col)
            pl.BlockSpec((1, 32), lambda i: (0, 0)),                 # conv2 b
            pl.BlockSpec((B * P, 32), lambda i: (0, 0)),             # fc1 w (tiled)
            pl.BlockSpec((B, B * P), lambda i: (0, 0)),              # per-image sum sel
            pl.BlockSpec((1, 1), lambda i: (0, 0)),                  # fc1 b
            pl.BlockSpec((B, 1), lambda i: (i, 0)),                  # fc2 w slice
            pl.BlockSpec((1, 1), lambda i: (0, 0)),                  # fc2 b
        ],
        out_specs=pl.BlockSpec((1, 1), lambda i: (0, 0)),
        scratch_shapes=[
            pltpu.VMEM((B, H + 2, W + 2, C), jnp.float32),           # padded conv1 input
            pltpu.VMEM((B * H * W, 9 * C), jnp.float32),             # conv1 im2col patches
            pltpu.VMEM((B * H * W, 64), jnp.float32),                # conv1 output (pre-relu)
            pltpu.VMEM((B, H2 + 2, W2 + 2, 64), jnp.float32),        # padded conv2 input
            pltpu.VMEM((B * P, 9 * 64), jnp.float32),                # conv2 im2col patches
        ],
    )
    out = pl.pallas_call(
        kern,
        out_shape=jax.ShapeDtypeStruct((1, 1), jnp.float32),
        grid_spec=grid_spec,
        # The batch axis must stay "arbitrary": the one-time padded-scratch init
        # and the fused fc1->fc2 accumulation into the resident output block are
        # cross-step.  With B == N (the common case, incl. this test) the grid
        # is a single step, so megacore sharding of this axis would be moot.
        compiler_params=pltpu.CompilerParams(
            dimension_semantics=("arbitrary",)),
    )(x, w1, b1, scale, shift, w2, b2, wfc1_t, sel, bfc1, wfc2, bfc2)
    return out.reshape(1)                                        # matches PyTorch (1,)


if __name__ == "__main__":
    key = jax.random.PRNGKey(0)
    k_x, k_p = jax.random.split(key)
    N, C, H, W = 2, 4, 16, 16
    x = jax.random.normal(k_x, (N, C, H, W), jnp.float32)
    params = init_params(k_p, C, H, W)

    out = mask_score_forward(x, params)
    jax.block_until_ready(out)
    assert out.shape == (1,)
    assert bool(jnp.all(jnp.isfinite(out)))
    print("KERNEL_OK")
</pallas_src>

<mosaic_0001>
module attributes {stable_mosaic.version = 11 : i64} {
  func.func @_fused_kernel(%arg0: i32, %arg1: memref<2x16x16x4xf32, #tpu.memory_space<vmem>>, %arg2: memref<36x64xf32, #tpu.memory_space<vmem>>, %arg3: memref<1x64xf32, #tpu.memory_space<vmem>>, %arg4: memref<1x64xf32, #tpu.memory_space<vmem>>, %arg5: memref<1x64xf32, #tpu.memory_space<vmem>>, %arg6: memref<576x32xf32, #tpu.memory_space<vmem>>, %arg7: memref<1x32xf32, #tpu.memory_space<vmem>>, %arg8: memref<128x32xf32, #tpu.memory_space<vmem>>, %arg9: memref<2x128xf32, #tpu.memory_space<vmem>>, %arg10: memref<1x1xf32, #tpu.memory_space<vmem>>, %arg11: memref<2x1xf32, #tpu.memory_space<vmem>>, %arg12: memref<1x1xf32, #tpu.memory_space<vmem>>, %arg13: memref<1x1xf32, #tpu.memory_space<vmem>>, %arg14: memref<2x18x18x4xf32, #tpu.memory_space<vmem>>, %arg15: memref<512x36xf32, #tpu.memory_space<vmem>>, %arg16: memref<512x64xf32, #tpu.memory_space<vmem>>, %arg17: memref<2x10x10x64xf32, #tpu.memory_space<vmem>>, %arg18: memref<128x576xf32, #tpu.memory_space<vmem>>) attributes {dimension_semantics = [#tpu.dimension_semantics<arbitrary>], iteration_bounds = array<i64: 1>, scalar_prefetch = 0 : i64, scratch_operands = 5 : i64, tpu.core_type = #tpu.core_type<tc>, window_params = [{transform_indices = @transform_0, window_bounds = array<i64: 2, 16, 16, 4>}, {pipeline_mode = #tpu.pipeline_mode<synchronous>, transform_indices = @transform_1, window_bounds = array<i64: 36, 64>}, {pipeline_mode = #tpu.pipeline_mode<synchronous>, transform_indices = @transform_2, window_bounds = array<i64: 1, 64>}, {pipeline_mode = #tpu.pipeline_mode<synchronous>, transform_indices = @transform_3, window_bounds = array<i64: 1, 64>}, {pipeline_mode = #tpu.pipeline_mode<synchronous>, transform_indices = @transform_4, window_bounds = array<i64: 1, 64>}, {pipeline_mode = #tpu.pipeline_mode<synchronous>, transform_indices = @transform_5, window_bounds = array<i64: 576, 32>}, {pipeline_mode = #tpu.pipeline_mode<synchronous>, transform_indices = @transform_6, window_bounds = array<i64: 1, 32>}, {pipeline_mode = #tpu.pipeline_mode<synchronous>, transform_indices = @transform_7, window_bounds = array<i64: 128, 32>}, {pipeline_mode = #tpu.pipeline_mode<synchronous>, transform_indices = @transform_8, window_bounds = array<i64: 2, 128>}, {pipeline_mode = #tpu.pipeline_mode<synchronous>, transform_indices = @transform_9, window_bounds = array<i64: 1, 1>}, {transform_indices = @transform_10, window_bounds = array<i64: 2, 1>}, {pipeline_mode = #tpu.pipeline_mode<synchronous>, transform_indices = @transform_11, window_bounds = array<i64: 1, 1>}, {pipeline_mode = #tpu.pipeline_mode<synchronous>, transform_indices = @transform_12, window_bounds = array<i64: 1, 1>}]} {
    %c0_i32 = arith.constant 0 : i32
    %0 = arith.cmpi eq, %arg0, %c0_i32 : i32
    %1 = arith.extui %0 : i1 to i32
    %c0_i32_0 = arith.constant 0 : i32
    %2 = arith.cmpi ne, %1, %c0_i32_0 : i32
    scf.if %2 {
      %cst_145 = arith.constant 0.000000e+00 : f32
      %121 = vector.broadcast %cst_145 : f32 to vector<2x18x18x4xf32>
      %c0_146 = arith.constant 0 : index
      %c0_147 = arith.constant 0 : index
      %c0_148 = arith.constant 0 : index
      %c0_149 = arith.constant 0 : index
      %122 = vector.load %arg14[%c0_146, %c0_147, %c0_148, %c0_149] : memref<2x18x18x4xf32, #tpu.memory_space<vmem>>, vector<2x18x18x4xf32>
      tpu.vector_store %arg14[%c0_146, %c0_147, %c0_148, %c0_149], %121 {strides = array<i32>} : memref<2x18x18x4xf32, #tpu.memory_space<vmem>>, vector<2x18x18x4xf32>,
      %cst_150 = arith.constant 0.000000e+00 : f32
      %123 = vector.broadcast %cst_150 : f32 to vector<2x10x10x64xf32>
      %c0_151 = arith.constant 0 : index
      %c0_152 = arith.constant 0 : index
      %c0_153 = arith.constant 0 : index
      %c0_154 = arith.constant 0 : index
      %124 = vector.load %arg17[%c0_151, %c0_152, %c0_153, %c0_154] : memref<2x10x10x64xf32, #tpu.memory_space<vmem>>, vector<2x10x10x64xf32>
      tpu.vector_store %arg17[%c0_151, %c0_152, %c0_153, %c0_154], %123 {strides = array<i32>} : memref<2x10x10x64xf32, #tpu.memory_space<vmem>>, vector<2x10x10x64xf32>,
      %c0_155 = arith.constant 0 : index
      %c0_156 = arith.constant 0 : index
      %125 = vector.load %arg12[%c0_155, %c0_156] : memref<1x1xf32, #tpu.memory_space<vmem>>, vector<1x1xf32>
      %c0_157 = arith.constant 0 : index
      %c0_158 = arith.constant 0 : index
      %126 = vector.load %arg13[%c0_157, %c0_158] : memref<1x1xf32, #tpu.memory_space<vmem>>, vector<1x1xf32>
      tpu.vector_store %arg13[%c0_157, %c0_158], %125 {strides = array<i32>} : memref<1x1xf32, #tpu.memory_space<vmem>>, vector<1x1xf32>,
    } else {
    }
    %c0 = arith.constant 0 : index
    %c0_1 = arith.constant 0 : index
    %c0_2 = arith.constant 0 : index
    %c0_3 = arith.constant 0 : index
    %3 = vector.load %arg1[%c0, %c0_1, %c0_2, %c0_3] : memref<2x16x16x4xf32, #tpu.memory_space<vmem>>, vector<2x16x16x4xf32>
    %c0_4 = arith.constant 0 : index
    %c1 = arith.constant 1 : index
    %c1_5 = arith.constant 1 : index
    %c0_6 = arith.constant 0 : index
    %4 = vector.load %arg14[%c0_4, %c1, %c1_5, %c0_6] : memref<2x18x18x4xf32, #tpu.memory_space<vmem>>, vector<2x16x16x4xf32>
    tpu.vector_store %arg14[%c0_4, %c1, %c1_5, %c0_6], %3 {strides = array<i32>} : memref<2x18x18x4xf32, #tpu.memory_space<vmem>>, vector<2x16x16x4xf32>,
    %c0_7 = arith.constant 0 : index
    %c0_8 = arith.constant 0 : index
    %c0_9 = arith.constant 0 : index
    %c0_10 = arith.constant 0 : index
    %5 = vector.load %arg14[%c0_7, %c0_8, %c0_9, %c0_10] : memref<2x18x18x4xf32, #tpu.memory_space<vmem>>, vector<2x16x16x4xf32>
    %6 = vector.shape_cast %5 : vector<2x16x16x4xf32> to vector<512x4xf32>
    %c0_11 = arith.constant 0 : index
    %c0_12 = arith.constant 0 : index
    %7 = vector.load %arg15[%c0_11, %c0_12] : memref<512x36xf32, #tpu.memory_space<vmem>>, vector<512x4xf32>
    tpu.vector_store %arg15[%c0_11, %c0_12], %6 {strides = array<i32>} : memref<512x36xf32, #tpu.memory_space<vmem>>, vector<512x4xf32>,
    %c0_13 = arith.constant 0 : index
    %c0_14 = arith.constant 0 : index
    %c1_15 = arith.constant 1 : index
    %c0_16 = arith.constant 0 : index
    %8 = vector.load %arg14[%c0_13, %c0_14, %c1_15, %c0_16] : memref<2x18x18x4xf32, #tpu.memory_space<vmem>>, vector<2x16x16x4xf32>
    %9 = vector.shape_cast %8 : vector<2x16x16x4xf32> to vector<512x4xf32>
    %c0_17 = arith.constant 0 : index
    %c4 = arith.constant 4 : index
    %10 = vector.load %arg15[%c0_17, %c4] : memref<512x36xf32, #tpu.memory_space<vmem>>, vector<512x4xf32>
    tpu.vector_store %arg15[%c0_17, %c4], %9 {strides = array<i32>} : memref<512x36xf32, #tpu.memory_space<vmem>>, vector<512x4xf32>,
    %c0_18 = arith.constant 0 : index
    %c0_19 = arith.constant 0 : index
    %c2 = arith.constant 2 : index
    %c0_20 = arith.constant 0 : index
    %11 = vector.load %arg14[%c0_18, %c0_19, %c2, %c0_20] : memref<2x18x18x4xf32, #tpu.memory_space<vmem>>, vector<2x16x16x4xf32>
    %12 = vector.shape_cast %11 : vector<2x16x16x4xf32> to vector<512x4xf32>
    %c0_21 = arith.constant 0 : index
    %c8 = arith.constant 8 : index
    %13 = vector.load %arg15[%c0_21, %c8] : memref<512x36xf32, #tpu.memory_space<vmem>>, vector<512x4xf32>
    tpu.vector_store %arg15[%c0_21, %c8], %12 {strides = array<i32>} : memref<512x36xf32, #tpu.memory_space<vmem>>, vector<512x4xf32>,
    %c0_22 = arith.constant 0 : index
    %c1_23 = arith.constant 1 : index
    %c0_24 = arith.constant 0 : index
    %c0_25 = arith.constant 0 : index
    %14 = vector.load %arg14[%c0_22, %c1_23, %c0_24, %c0_25] : memref<2x18x18x4xf32, #tpu.memory_space<vmem>>, vector<2x16x16x4xf32>
    %15 = vector.shape_cast %14 : vector<2x16x16x4xf32> to vector<512x4xf32>
    %c0_26 = arith.constant 0 : index
    %c12 = arith.constant 12 : index
    %16 = vector.load %arg15[%c0_26, %c12] : memref<512x36xf32, #tpu.memory_space<vmem>>, vector<512x4xf32>
    tpu.vector_store %arg15[%c0_26, %c12], %15 {strides = array<i32>} : memref<512x36xf32, #tpu.memory_space<vmem>>, vector<512x4xf32>,
    %c0_27 = arith.constant 0 : index
    %c1_28 = arith.constant 1 : index
    %c1_29 = arith.constant 1 : index
    %c0_30 = arith.constant 0 : index
    %17 = vector.load %arg14[%c0_27, %c1_28, %c1_29, %c0_30] : memref<2x18x18x4xf32, #tpu.memory_space<vmem>>, vector<2x16x16x4xf32>
    %18 = vector.shape_cast %17 : vector<2x16x16x4xf32> to vector<512x4xf32>
    %c0_31 = arith.constant 0 : index
    %c16 = arith.constant 16 : index
    %19 = vector.load %arg15[%c0_31, %c16] : memref<512x36xf32, #tpu.memory_space<vmem>>, vector<512x4xf32>
    tpu.vector_store %arg15[%c0_31, %c16], %18 {strides = array<i32>} : memref<512x36xf32, #tpu.memory_space<vmem>>, vector<512x4xf32>,
    %c0_32 = arith.constant 0 : index
    %c1_33 = arith.constant 1 : index
    %c2_34 = arith.constant 2 : index
    %c0_35 = arith.constant 0 : index
    %20 = vector.load %arg14[%c0_32, %c1_33, %c2_34, %c0_35] : memref<2x18x18x4xf32, #tpu.memory_space<vmem>>, vector<2x16x16x4xf32>
    %21 = vector.shape_cast %20 : vector<2x16x16x4xf32> to vector<512x4xf32>
    %c0_36 = arith.constant 0 : index
    %c20 = arith.constant 20 : index
    %22 = vector.load %arg15[%c0_36, %c20] : memref<512x36xf32, #tpu.memory_space<vmem>>, vector<512x4xf32>
    tpu.vector_store %arg15[%c0_36, %c20], %21 {strides = array<i32>} : memref<512x36xf32, #tpu.memory_space<vmem>>, vector<512x4xf32>,
    %c0_37 = arith.constant 0 : index
    %c2_38 = arith.constant 2 : index
    %c0_39 = arith.constant 0 : index
    %c0_40 = arith.constant 0 : index
    %23 = vector.load %arg14[%c0_37, %c2_38, %c0_39, %c0_40] : memref<2x18x18x4xf32, #tpu.memory_space<vmem>>, vector<2x16x16x4xf32>
    %24 = vector.shape_cast %23 : vector<2x16x16x4xf32> to vector<512x4xf32>
    %c0_41 = arith.constant 0 : index
    %c24 = arith.constant 24 : index
    %25 = vector.load %arg15[%c0_41, %c24] : memref<512x36xf32, #tpu.memory_space<vmem>>, vector<512x4xf32>
    tpu.vector_store %arg15[%c0_41, %c24], %24 {strides = array<i32>} : memref<512x36xf32, #tpu.memory_space<vmem>>, vector<512x4xf32>,
    %c0_42 = arith.constant 0 : index
    %c2_43 = arith.constant 2 : index
    %c1_44 = arith.constant 1 : index
    %c0_45 = arith.constant 0 : index
    %26 = vector.load %arg14[%c0_42, %c2_43, %c1_44, %c0_45] : memref<2x18x18x4xf32, #tpu.memory_space<vmem>>, vector<2x16x16x4xf32>
    %27 = vector.shape_cast %26 : vector<2x16x16x4xf32> to vector<512x4xf32>
    %c0_46 = arith.constant 0 : index
    %c28 = arith.constant 28 : index
    %28 = vector.load %arg15[%c0_46, %c28] : memref<512x36xf32, #tpu.memory_space<vmem>>, vector<512x4xf32>
    tpu.vector_store %arg15[%c0_46, %c28], %27 {strides = array<i32>} : memref<512x36xf32, #tpu.memory_space<vmem>>, vector<512x4xf32>,
    %c0_47 = arith.constant 0 : index
    %c2_48 = arith.constant 2 : index
    %c2_49 = arith.constant 2 : index
    %c0_50 = arith.constant 0 : index
    %29 = vector.load %arg14[%c0_47, %c2_48, %c2_49, %c0_50] : memref<2x18x18x4xf32, #tpu.memory_space<vmem>>, vector<2x16x16x4xf32>
    %30 = vector.shape_cast %29 : vector<2x16x16x4xf32> to vector<512x4xf32>
    %c0_51 = arith.constant 0 : index
    %c32 = arith.constant 32 : index
    %31 = vector.load %arg15[%c0_51, %c32] : memref<512x36xf32, #tpu.memory_space<vmem>>, vector<512x4xf32>
    tpu.vector_store %arg15[%c0_51, %c32], %30 {strides = array<i32>} : memref<512x36xf32, #tpu.memory_space<vmem>>, vector<512x4xf32>,
    %c0_52 = arith.constant 0 : index
    %c0_53 = arith.constant 0 : index
    %32 = vector.load %arg15[%c0_52, %c0_53] : memref<512x36xf32, #tpu.memory_space<vmem>>, vector<512x36xf32>
    %c0_54 = arith.constant 0 : index
    %c0_55 = arith.constant 0 : index
    %33 = vector.load %arg2[%c0_54, %c0_55] : memref<36x64xf32, #tpu.memory_space<vmem>>, vector<36x64xf32>
    %cst = arith.constant dense<0.000000e+00> : vector<512x64xf32>
    %34 = tpu.matmul %32, %33, %cst {dimension_numbers = #tpu.dot_dimension_numbers<[1], [0], [0], [1], [0, 0, 1, 1], [], []>} : vector<512x36xf32>, vector<36x64xf32>, vector<512x64xf32> -> vector<512x64xf32>
    %c0_56 = arith.constant 0 : index
    %c0_57 = arith.constant 0 : index
    %35 = vector.load %arg3[%c0_56, %c0_57] : memref<1x64xf32, #tpu.memory_space<vmem>>, vector<1x64xf32>
    %36 = vector.broadcast %35 : vector<1x64xf32> to vector<512x64xf32>
    %37 = arith.addf %34, %36 : vector<512x64xf32>
    %c0_58 = arith.constant 0 : index
    %c0_59 = arith.constant 0 : index
    %38 = vector.load %arg16[%c0_58, %c0_59] : memref<512x64xf32, #tpu.memory_space<vmem>>, vector<512x64xf32>
    tpu.vector_store %arg16[%c0_58, %c0_59], %37 {strides = array<i32>} : memref<512x64xf32, #tpu.memory_space<vmem>>, vector<512x64xf32>,
    %c0_60 = arith.constant 0 : index
    %c0_61 = arith.constant 0 : index
    %39 = tpu.strided_load %arg16[%c0_60, %c0_61] {strides = array<i32: 2, 1>} : memref<512x64xf32, #tpu.memory_space<vmem>>, vector<256x64xf32>
    %c1_62 = arith.constant 1 : index
    %c0_63 = arith.constant 0 : index
    %40 = tpu.strided_load %arg16[%c1_62, %c0_63] {strides = array<i32: 2, 1>} : memref<512x64xf32, #tpu.memory_space<vmem>>, vector<256x64xf32>
    %41 = arith.maximumf %39, %40 : vector<256x64xf32>
    %42 = vector.shape_cast %41 : vector<256x64xf32> to vector<16x2x8x64xf32>
    %43 = vector.extract_strided_slice %42 {offsets = [0, 0, 0, 0], sizes = [16, 1, 8, 64], strides = [1, 1, 1, 1]} : vector<16x2x8x64xf32> to vector<16x1x8x64xf32>
    %44 = vector.shape_cast %43 : vector<16x1x8x64xf32> to vector<16x8x64xf32>
    %45 = vector.extract_strided_slice %42 {offsets = [0, 1, 0, 0], sizes = [16, 1, 8, 64], strides = [1, 1, 1, 1]} : vector<16x2x8x64xf32> to vector<16x1x8x64xf32>
    %46 = vector.shape_cast %45 : vector<16x1x8x64xf32> to vector<16x8x64xf32>
    %47 = arith.maximumf %44, %46 : vector<16x8x64xf32>
    %cst_64 = arith.constant 0.000000e+00 : f32
    %48 = vector.broadcast %cst_64 : f32 to vector<16x8x64xf32>
    %49 = arith.maximumf %47, %48 : vector<16x8x64xf32>
    %c0_65 = arith.constant 0 : index
    %c0_66 = arith.constant 0 : index
    %50 = vector.load %arg4[%c0_65, %c0_66] : memref<1x64xf32, #tpu.memory_space<vmem>>, vector<1x64xf32>
    %51 = vector.shape_cast %50 : vector<1x64xf32> to vector<1x1x64xf32>
    %52 = vector.broadcast %51 : vector<1x1x64xf32> to vector<16x8x64xf32>
    %53 = arith.mulf %49, %52 : vector<16x8x64xf32>
    %c0_67 = arith.constant 0 : index
    %c0_68 = arith.constant 0 : index
    %54 = vector.load %arg5[%c0_67, %c0_68] : memref<1x64xf32, #tpu.memory_space<vmem>>, vector<1x64xf32>
    %55 = vector.shape_cast %54 : vector<1x64xf32> to vector<1x1x64xf32>
    %56 = vector.broadcast %55 : vector<1x1x64xf32> to vector<16x8x64xf32>
    %57 = arith.addf %53, %56 : vector<16x8x64xf32>
    %58 = vector.shape_cast %57 : vector<16x8x64xf32> to vector<2x8x8x64xf32>
    %c0_69 = arith.constant 0 : index
    %c1_70 = arith.constant 1 : index
    %c1_71 = arith.constant 1 : index
    %c0_72 = arith.constant 0 : index
    %59 = vector.load %arg17[%c0_69, %c1_70, %c1_71, %c0_72] : memref<2x10x10x64xf32, #tpu.memory_space<vmem>>, vector<2x8x8x64xf32>
    tpu.vector_store %arg17[%c0_69, %c1_70, %c1_71, %c0_72], %58 {strides = array<i32>} : memref<2x10x10x64xf32, #tpu.memory_space<vmem>>, vector<2x8x8x64xf32>,
    %c0_73 = arith.constant 0 : index
    %c0_74 = arith.constant 0 : index
    %c0_75 = arith.constant 0 : index
    %c0_76 = arith.constant 0 : index
    %60 = vector.load %arg17[%c0_73, %c0_74, %c0_75, %c0_76] : memref<2x10x10x64xf32, #tpu.memory_space<vmem>>, vector<2x8x8x64xf32>
    %61 = vector.shape_cast %60 : vector<2x8x8x64xf32> to vector<128x64xf32>
    %c0_77 = arith.constant 0 : index
    %c0_78 = arith.constant 0 : index
    %62 = vector.load %arg18[%c0_77, %c0_78] : memref<128x576xf32, #tpu.memory_space<vmem>>, vector<128x64xf32>
    tpu.vector_store %arg18[%c0_77, %c0_78], %61 {strides = array<i32>} : memref<128x576xf32, #tpu.memory_space<vmem>>, vector<128x64xf32>,
    %c0_79 = arith.constant 0 : index
    %c0_80 = arith.constant 0 : index
    %c1_81 = arith.constant 1 : index
    %c0_82 = arith.constant 0 : index
    %63 = vector.load %arg17[%c0_79, %c0_80, %c1_81, %c0_82] : memref<2x10x10x64xf32, #tpu.memory_space<vmem>>, vector<2x8x8x64xf32>
    %64 = vector.shape_cast %63 : vector<2x8x8x64xf32> to vector<128x64xf32>
    %c0_83 = arith.constant 0 : index
    %c64 = arith.constant 64 : index
    %65 = vector.load %arg18[%c0_83, %c64] : memref<128x576xf32, #tpu.memory_space<vmem>>, vector<128x64xf32>
    tpu.vector_store %arg18[%c0_83, %c64], %64 {strides = array<i32>} : memref<128x576xf32, #tpu.memory_space<vmem>>, vector<128x64xf32>,
    %c0_84 = arith.constant 0 : index
    %c0_85 = arith.constant 0 : index
    %c2_86 = arith.constant 2 : index
    %c0_87 = arith.constant 0 : index
    %66 = vector.load %arg17[%c0_84, %c0_85, %c2_86, %c0_87] : memref<2x10x10x64xf32, #tpu.memory_space<vmem>>, vector<2x8x8x64xf32>
    %67 = vector.shape_cast %66 : vector<2x8x8x64xf32> to vector<128x64xf32>
    %c0_88 = arith.constant 0 : index
    %c128 = arith.constant 128 : index
    %68 = vector.load %arg18[%c0_88, %c128] : memref<128x576xf32, #tpu.memory_space<vmem>>, vector<128x64xf32>
    tpu.vector_store %arg18[%c0_88, %c128], %67 {strides = array<i32>} : memref<128x576xf32, #tpu.memory_space<vmem>>, vector<128x64xf32>,
    %c0_89 = arith.constant 0 : index
    %c1_90 = arith.constant 1 : index
    %c0_91 = arith.constant 0 : index
    %c0_92 = arith.constant 0 : index
    %69 = vector.load %arg17[%c0_89, %c1_90, %c0_91, %c0_92] : memref<2x10x10x64xf32, #tpu.memory_space<vmem>>, vector<2x8x8x64xf32>
    %70 = vector.shape_cast %69 : vector<2x8x8x64xf32> to vector<128x64xf32>
    %c0_93 = arith.constant 0 : index
    %c192 = arith.constant 192 : index
    %71 = vector.load %arg18[%c0_93, %c192] : memref<128x576xf32, #tpu.memory_space<vmem>>, vector<128x64xf32>
    tpu.vector_store %arg18[%c0_93, %c192], %70 {strides = array<i32>} : memref<128x576xf32, #tpu.memory_space<vmem>>, vector<128x64xf32>,
    %c0_94 = arith.constant 0 : index
    %c1_95 = arith.constant 1 : index
    %c1_96 = arith.constant 1 : index
    %c0_97 = arith.constant 0 : index
    %72 = vector.load %arg17[%c0_94, %c1_95, %c1_96, %c0_97] : memref<2x10x10x64xf32, #tpu.memory_space<vmem>>, vector<2x8x8x64xf32>
    %73 = vector.shape_cast %72 : vector<2x8x8x64xf32> to vector<128x64xf32>
    %c0_98 = arith.constant 0 : index
    %c256 = arith.constant 256 : index
    %74 = vector.load %arg18[%c0_98, %c256] : memref<128x576xf32, #tpu.memory_space<vmem>>, vector<128x64xf32>
    tpu.vector_store %arg18[%c0_98, %c256], %73 {strides = array<i32>} : memref<128x576xf32, #tpu.memory_space<vmem>>, vector<128x64xf32>,
    %c0_99 = arith.constant 0 : index
    %c1_100 = arith.constant 1 : index
    %c2_101 = arith.constant 2 : index
    %c0_102 = arith.constant 0 : index
    %75 = vector.load %arg17[%c0_99, %c1_100, %c2_101, %c0_102] : memref<2x10x10x64xf32, #tpu.memory_space<vmem>>, vector<2x8x8x64xf32>
    %76 = vector.shape_cast %75 : vector<2x8x8x64xf32> to vector<128x64xf32>
    %c0_103 = arith.constant 0 : index
    %c320 = arith.constant 320 : index
    %77 = vector.load %arg18[%c0_103, %c320] : memref<128x576xf32, #tpu.memory_space<vmem>>, vector<128x64xf32>
    tpu.vector_store %arg18[%c0_103, %c320], %76 {strides = array<i32>} : memref<128x576xf32, #tpu.memory_space<vmem>>, vector<128x64xf32>,
    %c0_104 = arith.constant 0 : index
    %c2_105 = arith.constant 2 : index
    %c0_106 = arith.constant 0 : index
    %c0_107 = arith.constant 0 : index
    %78 = vector.load %arg17[%c0_104, %c2_105, %c0_106, %c0_107] : memref<2x10x10x64xf32, #tpu.memory_space<vmem>>, vector<2x8x8x64xf32>
    %79 = vector.shape_cast %78 : vector<2x8x8x64xf32> to vector<128x64xf32>
    %c0_108 = arith.constant 0 : index
    %c384 = arith.constant 384 : index
    %80 = vector.load %arg18[%c0_108, %c384] : memref<128x576xf32, #tpu.memory_space<vmem>>, vector<128x64xf32>
    tpu.vector_store %arg18[%c0_108, %c384], %79 {strides = array<i32>} : memref<128x576xf32, #tpu.memory_space<vmem>>, vector<128x64xf32>,
    %c0_109 = arith.constant 0 : index
    %c2_110 = arith.constant 2 : index
    %c1_111 = arith.constant 1 : index
    %c0_112 = arith.constant 0 : index
    %81 = vector.load %arg17[%c0_109, %c2_110, %c1_111, %c0_112] : memref<2x10x10x64xf32, #tpu.memory_space<vmem>>, vector<2x8x8x64xf32>
    %82 = vector.shape_cast %81 : vector<2x8x8x64xf32> to vector<128x64xf32>
    %c0_113 = arith.constant 0 : index
    %c448 = arith.constant 448 : index
    %83 = vector.load %arg18[%c0_113, %c448] : memref<128x576xf32, #tpu.memory_space<vmem>>, vector<128x64xf32>
    tpu.vector_store %arg18[%c0_113, %c448], %82 {strides = array<i32>} : memref<128x576xf32, #tpu.memory_space<vmem>>, vector<128x64xf32>,
    %c0_114 = arith.constant 0 : index
    %c2_115 = arith.constant 2 : index
    %c2_116 = arith.constant 2 : index
    %c0_117 = arith.constant 0 : index
    %84 = vector.load %arg17[%c0_114, %c2_115, %c2_116, %c0_117] : memref<2x10x10x64xf32, #tpu.memory_space<vmem>>, vector<2x8x8x64xf32>
    %85 = vector.shape_cast %84 : vector<2x8x8x64xf32> to vector<128x64xf32>
    %c0_118 = arith.constant 0 : index
    %c512 = arith.constant 512 : index
    %86 = vector.load %arg18[%c0_118, %c512] : memref<128x576xf32, #tpu.memory_space<vmem>>, vector<128x64xf32>
    tpu.vector_store %arg18[%c0_118, %c512], %85 {strides = array<i32>} : memref<128x576xf32, #tpu.memory_space<vmem>>, vector<128x64xf32>,
    %c0_119 = arith.constant 0 : index
    %c0_120 = arith.constant 0 : index
    %87 = vector.load %arg18[%c0_119, %c0_120] : memref<128x576xf32, #tpu.memory_space<vmem>>, vector<128x576xf32>
    %c0_121 = arith.constant 0 : index
    %c0_122 = arith.constant 0 : index
    %88 = vector.load %arg6[%c0_121, %c0_122] : memref<576x32xf32, #tpu.memory_space<vmem>>, vector<576x32xf32>
    %cst_123 = arith.constant dense<0.000000e+00> : vector<128x32xf32>
    %89 = tpu.matmul %87, %88, %cst_123 {dimension_numbers = #tpu.dot_dimension_numbers<[1], [0], [0], [1], [0, 0, 1, 1], [], []>} : vector<128x576xf32>, vector<576x32xf32>, vector<128x32xf32> -> vector<128x32xf32>
    %c0_124 = arith.constant 0 : index
    %c0_125 = arith.constant 0 : index
    %90 = vector.load %arg7[%c0_124, %c0_125] : memref<1x32xf32, #tpu.memory_space<vmem>>, vector<1x32xf32>
    %91 = vector.broadcast %90 : vector<1x32xf32> to vector<128x32xf32>
    %92 = arith.addf %89, %91 : vector<128x32xf32>
    %cst_126 = arith.constant 0.000000e+00 : f32
    %93 = vector.broadcast %cst_126 : f32 to vector<128x32xf32>
    %94 = arith.maximumf %92, %93 : vector<128x32xf32>
    %c0_127 = arith.constant 0 : index
    %c0_128 = arith.constant 0 : index
    %95 = vector.load %arg8[%c0_127, %c0_128] : memref<128x32xf32, #tpu.memory_space<vmem>>, vector<128x32xf32>
    %96 = arith.mulf %94, %95 : vector<128x32xf32>
    %c0_129 = arith.constant 0 : index
    %c0_130 = arith.constant 0 : index
    %97 = vector.load %arg9[%c0_129, %c0_130] : memref<2x128xf32, #tpu.memory_space<vmem>>, vector<2x128xf32>
    %cst_131 = arith.constant dense<0.000000e+00> : vector<2x32xf32>
    %98 = tpu.matmul %97, %96, %cst_131 {dimension_numbers = #tpu.dot_dimension_numbers<[1], [0], [0], [1], [0, 0, 1, 1], [], []>} : vector<2x128xf32>, vector<128x32xf32>, vector<2x32xf32> -> vector<2x32xf32>
    %cst_132 = arith.constant dense<0.000000e+00> : vector<2xf32>
    %99 = vector.multi_reduction <add>, %98, %cst_132 [1] : vector<2x32xf32> to vector<2xf32>
    %100 = vector.shape_cast %99 : vector<2xf32> to vector<2x1xf32>
    %c0_133 = arith.constant 0 : index
    %c0_134 = arith.constant 0 : index
    %101 = vector.load %arg10[%c0_133, %c0_134] : memref<1x1xf32, #tpu.memory_space<vmem>>, vector<1x1xf32>
    %102 = vector.broadcast %101 : vector<1x1xf32> to vector<2x1xf32>
    %103 = arith.addf %100, %102 : vector<2x1xf32>
    %cst_135 = arith.constant 0.000000e+00 : f32
    %104 = vector.broadcast %cst_135 : f32 to vector<2x1xf32>
    %105 = arith.maximumf %103, %104 : vector<2x1xf32>
    %c2_i32 = arith.constant 2 : i32
    %106 = arith.muli %arg0, %c2_i32 : i32
    %107 = tpu.iota {dimensions = array<i32: 0>} : vector<2x1xi32>
    %108 = vector.broadcast %106 : i32 to vector<2x1xi32>
    %109 = arith.addi %108, %107 : vector<2x1xi32>
    %c2_i32_136 = arith.constant 2 : i32
    %110 = vector.broadcast %c2_i32_136 : i32 to vector<2x1xi32>
    %111 = arith.cmpi slt, %109, %110 : vector<2x1xi32>
    %cst_137 = arith.constant 0.000000e+00 : f32
    %112 = vector.broadcast %cst_137 : f32 to vector<2x1xf32>
    %113 = arith.select %111, %105, %112 : vector<2x1xi1>, vector<2x1xf32>
    %c0_138 = arith.constant 0 : index
    %c0_139 = arith.constant 0 : index
    %114 = vector.load %arg13[%c0_138, %c0_139] : memref<1x1xf32, #tpu.memory_space<vmem>>, vector<1x1xf32>
    %c0_140 = arith.constant 0 : index
    %c0_141 = arith.constant 0 : index
    %115 = vector.load %arg11[%c0_140, %c0_141] : memref<2x1xf32, #tpu.memory_space<vmem>>, vector<2x1xf32>
    %116 = arith.mulf %115, %113 : vector<2x1xf32>
    %cst_142 = arith.constant dense<0.000000e+00> : vector<1xf32>
    %117 = vector.multi_reduction <add>, %116, %cst_142 [0] : vector<2x1xf32> to vector<1xf32>
    %118 = vector.shape_cast %117 : vector<1xf32> to vector<1x1xf32>
    %119 = arith.addf %114, %118 : vector<1x1xf32>
    %c0_143 = arith.constant 0 : index
    %c0_144 = arith.constant 0 : index
    %120 = vector.load %arg13[%c0_143, %c0_144] : memref<1x1xf32, #tpu.memory_space<vmem>>, vector<1x1xf32>
    tpu.vector_store %arg13[%c0_143, %c0_144], %119 {strides = array<i32>} : memref<1x1xf32, #tpu.memory_space<vmem>>, vector<1x1xf32>,
    return
  }
  func.func @transform_0(%arg0: i32) -> (i32, i32, i32, i32) {
    %c0_i32 = arith.constant 0 : i32
    %c0_i32_0 = arith.constant 0 : i32
    %c0_i32_1 = arith.constant 0 : i32
    %c0_i32_2 = arith.constant 0 : i32
    return %arg0, %c0_i32, %c0_i32_0, %c0_i32_1 : i32, i32, i32, i32
  }
  func.func @transform_1(%arg0: i32) -> (i32, i32) {
    %c0_i32 = arith.constant 0 : i32
    %c0_i32_0 = arith.constant 0 : i32
    %c0_i32_1 = arith.constant 0 : i32
    return %c0_i32, %c0_i32_0 : i32, i32
  }
  func.func @transform_2(%arg0: i32) -> (i32, i32) {
    %c0_i32 = arith.constant 0 : i32
    %c0_i32_0 = arith.constant 0 : i32
    %c0_i32_1 = arith.constant 0 : i32
    return %c0_i32, %c0_i32_0 : i32, i32
  }
  func.func @transform_3(%arg0: i32) -> (i32, i32) {
    %c0_i32 = arith.constant 0 : i32
    %c0_i32_0 = arith.constant 0 : i32
    %c0_i32_1 = arith.constant 0 : i32
    return %c0_i32, %c0_i32_0 : i32, i32
  }
  func.func @transform_4(%arg0: i32) -> (i32, i32) {
    %c0_i32 = arith.constant 0 : i32
    %c0_i32_0 = arith.constant 0 : i32
    %c0_i32_1 = arith.constant 0 : i32
    return %c0_i32, %c0_i32_0 : i32, i32
  }
  func.func @transform_5(%arg0: i32) -> (i32, i32) {
    %c0_i32 = arith.constant 0 : i32
    %c0_i32_0 = arith.constant 0 : i32
    %c0_i32_1 = arith.constant 0 : i32
    return %c0_i32, %c0_i32_0 : i32, i32
  }
  func.func @transform_6(%arg0: i32) -> (i32, i32) {
    %c0_i32 = arith.constant 0 : i32
    %c0_i32_0 = arith.constant 0 : i32
    %c0_i32_1 = arith.constant 0 : i32
    return %c0_i32, %c0_i32_0 : i32, i32
  }
  func.func @transform_7(%arg0: i32) -> (i32, i32) {
    %c0_i32 = arith.constant 0 : i32
    %c0_i32_0 = arith.constant 0 : i32
    %c0_i32_1 = arith.constant 0 : i32
    return %c0_i32, %c0_i32_0 : i32, i32
  }
  func.func @transform_8(%arg0: i32) -> (i32, i32) {
    %c0_i32 = arith.constant 0 : i32
    %c0_i32_0 = arith.constant 0 : i32
    %c0_i32_1 = arith.constant 0 : i32
    return %c0_i32, %c0_i32_0 : i32, i32
  }
  func.func @transform_9(%arg0: i32) -> (i32, i32) {
    %c0_i32 = arith.constant 0 : i32
    %c0_i32_0 = arith.constant 0 : i32
    %c0_i32_1 = arith.constant 0 : i32
    return %c0_i32, %c0_i32_0 : i32, i32
  }
  func.func @transform_10(%arg0: i32) -> (i32, i32) {
    %c0_i32 = arith.constant 0 : i32
    %c0_i32_0 = arith.constant 0 : i32
    return %arg0, %c0_i32 : i32, i32
  }
  func.func @transform_11(%arg0: i32) -> (i32, i32) {
    %c0_i32 = arith.constant 0 : i32
    %c0_i32_0 = arith.constant 0 : i32
    %c0_i32_1 = arith.constant 0 : i32
    return %c0_i32, %c0_i32_0 : i32, i32
  }
  func.func @transform_12(%arg0: i32) -> (i32, i32) {
    %c0_i32 = arith.constant 0 : i32
    %c0_i32_0 = arith.constant 0 : i32
    %c0_i32_1 = arith.constant 0 : i32
    return %c0_i32, %c0_i32_0 : i32, i32
  }
}

</mosaic_0001>

<bundles_post_ra>
// kernel: tpu_custom_call.1
= control target key start
LH: loop header
LB: loop body
LE: loop exit
PB: predicated region body
PF: predicated region fallthrough
CT: control target
= control target key end

     0   :  { %s9557_s0 = inlined_call_operand.vmem [shape: f32[2,16,16,4], index: 0, kind: input, shape index: {}]   ;;  %s9558_s1 = inlined_call_operand.vmem [shape: f32[36,64], index: 1, kind: input, shape index: {}]   ;;  %s9559_s2 = inlined_call_operand.vmem [shape: f32[1,64], index: 2, kind: input, shape index: {}]   ;;  %s9560_s3 = inlined_call_operand.vmem [shape: f32[1,64], index: 3, kind: input, shape index: {}]   ;;  %s9561_s4 = inlined_call_operand.vmem [shape: f32[1,64], index: 4, kind: input, shape index: {}]   ;;  %s9562_s5 = inlined_call_operand.vmem [shape: f32[576,32], index: 5, kind: input, shape index: {}]   ;;  %s9563_s6 = inlined_call_operand.vmem [shape: f32[1,32], index: 6, kind: input, shape index: {}]   ;;  %s9564_s7 = inlined_call_operand.vmem [shape: f32[128,32], index: 7, kind: input, shape index: {}]   ;;  %s9565_s8 = inlined_call_operand.vmem [shape: f32[2,128], index: 8, kind: input, shape index: {}]   ;;  %s9566_s9 = inlined_call_operand.<no memory space> [shape: f32[1,1], index: 9, kind: input, shape index: {}]   ;;  %s9567_s10 = inlined_call_operand.vmem [shape: f32[2,1], index: 10, kind: input, shape index: {}]   ;;  %s9568_s12 = inlined_call_operand.hbm [shape: f32[1,1], index: 12, kind: output, shape index: {}]   ;;  %s9569_s11 = inlined_call_operand.<no memory space> [shape: f32[1,1], index: 11, kind: input, shape index: {}]  }
   0x1   :  { %v17_v0 = vstv %s9566_s9  ;;  %v19_v1 = vstv %s9569_s11 }
   0x2   :  { %18 = vst [vmem:[#allocation7] sm:$0x1] %v17_v0  ;;  %20 = vst [vmem:[#allocation8] sm:$0x1] %v19_v1 }
   0x3   :  { %vm50_vm0 = vcmask 31744   ;;  %v6542_v2 = vld [vmem:[%s9557_s0] sm:$0xff]  ;;  %vm53_vm1 = vcmask 25600   ;;  %v6547_v3 = vld [vmem:[%s9557_s0 + $0x8] sm:$0xff]  ;;  %v9570_v4 = vmov 0.0   ;;  %v207_v5 = vld [vmem:[%s9557_s0 + $0x10] sm:$0xff] }
   0x4   :  { %51 = vst.msk [vmem:[#allocation2] sm:$0xff] %vm50_vm0, %v9570_v4  ;;  %52 = vst.msk [vmem:[#allocation2 + $0x8] sm:$0xff] %vm50_vm0, %v9570_v4  ;;  %v208_v6 = vld [vmem:[%s9557_s0 + $0x18] sm:$0xff]  ;;  %v209_v7 = vld [vmem:[%s9557_s0 + $0x20] sm:$0xff]  ;;  %s6457_s13 = smov 4  }
   0x5   :  { %55 = vst.msk [vmem:[#allocation2 + $0x18] sm:$0xff] %vm50_vm0, %v9570_v4  ;;  %56 = vst.msk [vmem:[#allocation2 + $0x20] sm:$0xff] %vm50_vm0, %v9570_v4  ;;  %v210_v8 = vld [vmem:[%s9557_s0 + $0x28] sm:$0xff]  ;;  %v211_v9 = vld [vmem:[%s9557_s0 + $0x30] sm:$0xff] }
   0x6   :  { %58 = vst.msk [vmem:[#allocation2 + $0x30] sm:$0xff] %vm50_vm0, %v9570_v4  ;;  %59 = vst.msk [vmem:[#allocation2 + $0x38] sm:$0xff] %vm50_vm0, %v9570_v4  ;;  %v212_v10 = vld [vmem:[%s9557_s0 + $0x38] sm:$0xff]  ;;  %v213_v11 = vld [vmem:[%s9557_s0 + $0x40] sm:$0xff] }
   0x7   :  { %61 = vst.msk [vmem:[#allocation2 + $0x48] sm:$0xff] %vm50_vm0, %v9570_v4  ;;  %62 = vst.msk [vmem:[#allocation2 + $0x50] sm:$0xff] %vm50_vm0, %v9570_v4  ;;  %v214_v12 = vld [vmem:[%s9557_s0 + $0x48] sm:$0xff]  ;;  %v215_v13 = vld [vmem:[%s9557_s0 + $0x50] sm:$0xff] }
   0x8   :  { %64 = vst.msk [vmem:[#allocation2 + $0x60] sm:$0xff] %vm50_vm0, %v9570_v4  ;;  %65 = vst.msk [vmem:[#allocation2 + $0x68] sm:$0xff] %vm50_vm0, %v9570_v4  ;;  %v216_v14 = vld [vmem:[%s9557_s0 + $0x58] sm:$0xff]  ;;  %v217_v15 = vld [vmem:[%s9557_s0 + $0x60] sm:$0xff] }
   0x9   :  { %67 = vst.msk [vmem:[#allocation2 + $0x78] sm:$0xff] %vm50_vm0, %v9570_v4  ;;  %68 = vst.msk [vmem:[#allocation2 + $0x80] sm:$0xff] %vm50_vm0, %v9570_v4  ;;  %v218_v16 = vld [vmem:[%s9557_s0 + $0x68] sm:$0xff]  ;;  %v219_v17 = vld [vmem:[%s9557_s0 + $0x70] sm:$0xff] }
   0xa   :  { %70 = vst.msk [vmem:[#allocation2 + $0x90] sm:$0xff] %vm50_vm0, %v9570_v4  ;;  %71 = vst.msk [vmem:[#allocation2 + $0x98] sm:$0xff] %vm50_vm0, %v9570_v4  ;;  %v220_v18 = vld [vmem:[%s9557_s0 + $0x78] sm:$0xff]  ;;  %v221_v19 = vld [vmem:[%s9557_s0 + $0x80] sm:$0xff] }
   0xb   :  { %73 = vst.msk [vmem:[#allocation2 + $0xa8] sm:$0xff] %vm50_vm0, %v9570_v4  ;;  %74 = vst.msk [vmem:[#allocation2 + $0xb0] sm:$0xff] %vm50_vm0, %v9570_v4  ;;  %v222_v20 = vld [vmem:[%s9557_s0 + $0x88] sm:$0xff]  ;;  %v223_v21 = vld [vmem:[%s9557_s0 + $0x90] sm:$0xff] }
   0xc   :  { %76 = vst.msk [vmem:[#allocation2 + $0xc0] sm:$0xff] %vm50_vm0, %v9570_v4  ;;  %77 = vst.msk [vmem:[#allocation2 + $0xc8] sm:$0xff] %vm50_vm0, %v9570_v4  ;;  %v224_v22 = vld [vmem:[%s9557_s0 + $0x98] sm:$0xff]  ;;  %v225_v23 = vld [vmem:[%s9557_s0 + $0xa0] sm:$0xff] }
   0xd   :  { %79 = vst.msk [vmem:[#allocation2 + $0xd8] sm:$0xff] %vm50_vm0, %v9570_v4  ;;  %80 = vst.msk [vmem:[#allocation2 + $0xe0] sm:$0xff] %vm50_vm0, %v9570_v4  ;;  %v226_v24 = vld [vmem:[%s9557_s0 + $0xa8] sm:$0xff]  ;;  %v227_v25 = vld [vmem:[%s9557_s0 + $0xb0] sm:$0xff] }
   0xe   :  { %82 = vst.msk [vmem:[#allocation2 + $0xf0] sm:$0xff] %vm50_vm0, %v9570_v4  ;;  %83 = vst.msk [vmem:[#allocation2 + $0xf8] sm:$0xff] %vm50_vm0, %v9570_v4  ;;  %v463_v26 = vld [vmem:[#allocation2 + $0x1] sm:$0xff]  ;;  %v228_v27 = vld [vmem:[%s9557_s0 + $0xb8] sm:$0xff] }
   0xf   :  { %85 = vst.msk [vmem:[#allocation2 + $0x108] sm:$0xff] %vm50_vm0, %v9570_v4  ;;  %86 = vst.msk [vmem:[#allocation2 + $0x110] sm:$0xff] %vm50_vm0, %v9570_v4  ;;  %591 = vrot.lane.b32.xlu0 %v463_v26, %s6457_s13  ;;  %v229_v34 = vld [vmem:[%s9557_s0 + $0xc0] sm:$0xff]  ;;  %v230_v35 = vld [vmem:[%s9557_s0 + $0xc8] sm:$0xff] }
  0x10   :  { %88 = vst.msk [vmem:[#allocation2 + $0x120] sm:$0xff] %vm50_vm0, %v9570_v4  ;;  %89 = vst.msk [vmem:[#allocation2 + $0x128] sm:$0xff] %vm50_vm0, %v9570_v4  ;;  %v231_v36 = vld [vmem:[%s9557_s0 + $0xd0] sm:$0xff]  ;;  %v232_v37 = vld [vmem:[%s9557_s0 + $0xd8] sm:$0xff] }
  0x11   :  { %91 = vst.msk [vmem:[#allocation2 + $0x138] sm:$0xff] %vm50_vm0, %v9570_v4  ;;  %92 = vst.msk [vmem:[#allocation2 + $0x140] sm:$0xff] %vm50_vm0, %v9570_v4  ;;  %v233_v38 = vld [vmem:[%s9557_s0 + $0xe0] sm:$0xff]  ;;  %v234_v39 = vld [vmem:[%s9557_s0 + $0xe8] sm:$0xff] }
  0x12   :  { %94 = vst.msk [vmem:[#allocation2 + $0x150] sm:$0xff] %vm50_vm0, %v9570_v4  ;;  %95 = vst.msk [vmem:[#allocation2 + $0x158] sm:$0xff] %vm50_vm0, %v9570_v4  ;;  %v237_v41 = vld [vmem:[%s9557_s0 + $0x100] sm:$0xff]  ;;  %v238_v43 = vld [vmem:[%s9557_s0 + $0x108] sm:$0xff] }
  0x13   :  { %97 = vst.msk [vmem:[#allocation2 + $0x168] sm:$0xff] %vm50_vm0, %v9570_v4  ;;  %98 = vst.msk [vmem:[#allocation2 + $0x170] sm:$0xff] %vm50_vm0, %v9570_v4  ;;  %v239_v44 = vld [vmem:[%s9557_s0 + $0x110] sm:$0xff]  ;;  %v240_v45 = vld [vmem:[%s9557_s0 + $0x118] sm:$0xff] }
  0x14   :  { %100 = vst.msk [vmem:[#allocation2 + $0x180] sm:$0xff] %vm50_vm0, %v9570_v4  ;;  %101 = vst.msk [vmem:[#allocation2 + $0x188] sm:$0xff] %vm50_vm0, %v9570_v4  ;;  %v241_v47 = vld [vmem:[%s9557_s0 + $0x120] sm:$0xff]  ;;  %v242_v48 = vld [vmem:[%s9557_s0 + $0x128] sm:$0xff] }
  0x15   :  { %103 = vst.msk [vmem:[#allocation2 + $0x198] sm:$0xff] %vm50_vm0, %v9570_v4  ;;  %104 = vst.msk [vmem:[#allocation2 + $0x1a0] sm:$0xff] %vm50_vm0, %v9570_v4  ;;  %v243_v49 = vld [vmem:[%s9557_s0 + $0x130] sm:$0xff]  ;;  %v244_v50 = vld [vmem:[%s9557_s0 + $0x138] sm:$0xff] }
  0x16   :  { %106 = vst.msk [vmem:[#allocation2 + $0x1b0] sm:$0xff] %vm50_vm0, %v9570_v4  ;;  %107 = vst.msk [vmem:[#allocation2 + $0x1b8] sm:$0xff] %vm50_vm0, %v9570_v4  ;;  %v245_v51 = vld [vmem:[%s9557_s0 + $0x140] sm:$0xff]  ;;  %v246_v52 = vld [vmem:[%s9557_s0 + $0x148] sm:$0xff] }
  0x17   :  { %109 = vst.msk [vmem:[#allocation2 + $0x1c8] sm:$0xff] %vm50_vm0, %v9570_v4  ;;  %110 = vst.msk [vmem:[#allocation2 + $0x1d0] sm:$0xff] %vm50_vm0, %v9570_v4  ;;  %v247_v53 = vld [vmem:[%s9557_s0 + $0x150] sm:$0xff]  ;;  %v248_v54 = vld [vmem:[%s9557_s0 + $0x158] sm:$0xff] }
  0x18   :  { %112 = vst.msk [vmem:[#allocation2 + $0x1e0] sm:$0xff] %vm50_vm0, %v9570_v4  ;;  %113 = vst.msk [vmem:[#allocation2 + $0x1e8] sm:$0xff] %vm50_vm0, %v9570_v4  ;;  %v249_v55 = vld [vmem:[%s9557_s0 + $0x160] sm:$0xff]  ;;  %v336_v1 = vld [vmem:[#allocation2 + $0x8] sm:$0xff] }
  0x19   :  { %115 = vst.msk [vmem:[#allocation2 + $0x1f8] sm:$0xff] %vm50_vm0, %v9570_v4  ;;  %116 = vst.msk [vmem:[#allocation2 + $0x200] sm:$0xff] %vm50_vm0, %v9570_v4  ;;  %v335_v63 = vld [vmem:[#allocation2] sm:$0xff] }
  0x1a   :  { %118 = vst.msk [vmem:[#allocation2 + $0x210] sm:$0xff] %vm50_vm0, %v9570_v4  ;;  %119 = vst.msk [vmem:[#allocation2 + $0x218] sm:$0xff] %vm50_vm0, %v9570_v4 }
  0x1b   :  { %121 = vst.msk [vmem:[#allocation2 + $0x228] sm:$0xff] %vm50_vm0, %v9570_v4  ;;  %122 = vst.msk [vmem:[#allocation2 + $0x230] sm:$0xff] %vm50_vm0, %v9570_v4 }
  0x1c   :  { %124 = vst.msk [vmem:[#allocation2 + $0x240] sm:$0xff] %vm50_vm0, %v9570_v4  ;;  %125 = vst.msk [vmem:[#allocation2 + $0x248] sm:$0xff] %vm50_vm0, %v9570_v4 }
  0x1d   :  { %127 = vst.msk [vmem:[#allocation2 + $0x258] sm:$0xff] %vm50_vm0, %v9570_v4  ;;  %128 = vst.msk [vmem:[#allocation2 + $0x260] sm:$0xff] %vm50_vm0, %v9570_v4 }
  0x1e   :  { %130 = vst.msk [vmem:[#allocation2 + $0x270] sm:$0xff] %vm50_vm0, %v9570_v4  ;;  %131 = vst.msk [vmem:[#allocation2 + $0x278] sm:$0xff] %vm50_vm0, %v9570_v4 }
  0x1f   :  { %133 = vst.msk [vmem:[#allocation2 + $0x288] sm:$0xff] %vm50_vm0, %v9570_v4  ;;  %134 = vst.msk [vmem:[#allocation2 + $0x290] sm:$0xff] %vm50_vm0, %v9570_v4 }
  0x20   :  { %136 = vst.msk [vmem:[#allocation2 + $0x2a0] sm:$0xff] %vm50_vm0, %v9570_v4  ;;  %137 = vst.msk [vmem:[#allocation2 + $0x2a8] sm:$0xff] %vm50_vm0, %v9570_v4 }
  0x21   :  { %139 = vst.msk [vmem:[#allocation2 + $0x2b8] sm:$0xff] %vm50_vm0, %v9570_v4  ;;  %140 = vst.msk [vmem:[#allocation2 + $0x2c0] sm:$0xff] %vm50_vm0, %v9570_v4 }
  0x22   :  { %142 = vst.msk [vmem:[#allocation2 + $0x2d0] sm:$0xff] %vm50_vm0, %v9570_v4  ;;  %143 = vst.msk [vmem:[#allocation2 + $0x2d8] sm:$0xff] %vm50_vm0, %v9570_v4 }
  0x23   :  { %145 = vst.msk [vmem:[#allocation2 + $0x2e8] sm:$0xff] %vm50_vm0, %v9570_v4  ;;  %146 = vst.msk [vmem:[#allocation2 + $0x2f0] sm:$0xff] %vm50_vm0, %v9570_v4 }
  0x24   :  { %148 = vst.msk [vmem:[#allocation2 + $0x300] sm:$0xff] %vm50_vm0, %v9570_v4  ;;  %149 = vst.msk [vmem:[#allocation2 + $0x308] sm:$0xff] %vm50_vm0, %v9570_v4 }
  0x25   :  { %151 = vst.msk [vmem:[#allocation2 + $0x318] sm:$0xff] %vm50_vm0, %v9570_v4  ;;  %152 = vst.msk [vmem:[#allocation2 + $0x320] sm:$0xff] %vm50_vm0, %v9570_v4 }
  0x26   :  { %154 = vst.msk [vmem:[#allocation2 + $0x330] sm:$0xff] %vm50_vm0, %v9570_v4  ;;  %155 = vst.msk [vmem:[#allocation2 + $0x338] sm:$0xff] %vm50_vm0, %v9570_v4 }
  0x27   :  { %157 = vst.msk [vmem:[#allocation2 + $0x348] sm:$0xff] %vm50_vm0, %v9570_v4  ;;  %158 = vst.msk [vmem:[#allocation2 + $0x350] sm:$0xff] %vm50_vm0, %v9570_v4 }
  0x28   :  { %54 = vst.msk [vmem:[#allocation2 + $0x10] sm:$0x3] %vm53_vm1, %v9570_v4  ;;  %57 = vst.msk [vmem:[#allocation2 + $0x28] sm:$0x3] %vm53_vm1, %v9570_v4 }
  0x29   :  { %60 = vst.msk [vmem:[#allocation2 + $0x40] sm:$0x3] %vm53_vm1, %v9570_v4  ;;  %63 = vst.msk [vmem:[#allocation2 + $0x58] sm:$0x3] %vm53_vm1, %v9570_v4 }
  0x2a   :  { %66 = vst.msk [vmem:[#allocation2 + $0x70] sm:$0x3] %vm53_vm1, %v9570_v4  ;;  %69 = vst.msk [vmem:[#allocation2 + $0x88] sm:$0x3] %vm53_vm1, %v9570_v4 }
  0x2b   :  { %72 = vst.msk [vmem:[#allocation2 + $0xa0] sm:$0x3] %vm53_vm1, %v9570_v4  ;;  %75 = vst.msk [vmem:[#allocation2 + $0xb8] sm:$0x3] %vm53_vm1, %v9570_v4 }
  0x2c   :  { %78 = vst.msk [vmem:[#allocation2 + $0xd0] sm:$0x3] %vm53_vm1, %v9570_v4  ;;  %81 = vst.msk [vmem:[#allocation2 + $0xe8] sm:$0x3] %vm53_vm1, %v9570_v4 }
  0x2d   :  { %84 = vst.msk [vmem:[#allocation2 + $0x100] sm:$0x3] %vm53_vm1, %v9570_v4  ;;  %87 = vst.msk [vmem:[#allocation2 + $0x118] sm:$0x3] %vm53_vm1, %v9570_v4 }
  0x2e   :  { %90 = vst.msk [vmem:[#allocation2 + $0x130] sm:$0x3] %vm53_vm1, %v9570_v4  ;;  %93 = vst.msk [vmem:[#allocation2 + $0x148] sm:$0x3] %vm53_vm1, %v9570_v4 }
  0x2f   :  { %96 = vst.msk [vmem:[#allocation2 + $0x160] sm:$0x3] %vm53_vm1, %v9570_v4  ;;  %99 = vst.msk [vmem:[#allocation2 + $0x178] sm:$0x3] %vm53_vm1, %v9570_v4  ;;  %v464_v29 = vld [vmem:[#allocation2 + $0x9] sm:$0xff] }
  0x30   :  { %102 = vst.msk [vmem:[#allocation2 + $0x190] sm:$0x3] %vm53_vm1, %v9570_v4  ;;  %105 = vst.msk [vmem:[#allocation2 + $0x1a8] sm:$0x3] %vm53_vm1, %v9570_v4  ;;  %593 = vrot.lane.b32.xlu0 %v464_v29, %s6457_s13 }
  0x31   :  { %108 = vst.msk [vmem:[#allocation2 + $0x1c0] sm:$0x3] %vm53_vm1, %v9570_v4  ;;  %111 = vst.msk [vmem:[#allocation2 + $0x1d8] sm:$0x3] %vm53_vm1, %v9570_v4 }
  0x32   :  { %114 = vst.msk [vmem:[#allocation2 + $0x1f0] sm:$0x3] %vm53_vm1, %v9570_v4  ;;  %117 = vst.msk [vmem:[#allocation2 + $0x208] sm:$0x3] %vm53_vm1, %v9570_v4 }
  0x33   :  { %120 = vst.msk [vmem:[#allocation2 + $0x220] sm:$0x3] %vm53_vm1, %v9570_v4  ;;  %123 = vst.msk [vmem:[#allocation2 + $0x238] sm:$0x3] %vm53_vm1, %v9570_v4 }
  0x34   :  { %126 = vst.msk [vmem:[#allocation2 + $0x250] sm:$0x3] %vm53_vm1, %v9570_v4  ;;  %129 = vst.msk [vmem:[#allocation2 + $0x268] sm:$0x3] %vm53_vm1, %v9570_v4 }
  0x35   :  { %132 = vst.msk [vmem:[#allocation2 + $0x280] sm:$0x3] %vm53_vm1, %v9570_v4  ;;  %135 = vst.msk [vmem:[#allocation2 + $0x298] sm:$0x3] %vm53_vm1, %v9570_v4 }
  0x36   :  { %138 = vst.msk [vmem:[#allocation2 + $0x2b0] sm:$0x3] %vm53_vm1, %v9570_v4  ;;  %141 = vst.msk [vmem:[#allocation2 + $0x2c8] sm:$0x3] %vm53_vm1, %v9570_v4 }
  0x37   :  { %144 = vst.msk [vmem:[#allocation2 + $0x2e0] sm:$0x3] %vm53_vm1, %v9570_v4  ;;  %147 = vst.msk [vmem:[#allocation2 + $0x2f8] sm:$0x3] %vm53_vm1, %v9570_v4 }
  0x38   :  { %150 = vst.msk [vmem:[#allocation2 + $0x310] sm:$0x3] %vm53_vm1, %v9570_v4  ;;  %153 = vst.msk [vmem:[#allocation2 + $0x328] sm:$0x3] %vm53_vm1, %v9570_v4 }
  0x39   :  { %156 = vst.msk [vmem:[#allocation2 + $0x340] sm:$0x3] %vm53_vm1, %v9570_v4  ;;  %159 = vst.msk [vmem:[#allocation2 + $0x358] sm:$0x3] %vm53_vm1, %v9570_v4 }
  0x3a   :  { %271 = vst.msk [vmem:[#allocation2 + $0x19] sm:$0xff] %vm50_vm0, %v6542_v2  ;;  %272 = vst.msk [vmem:[#allocation2 + $0x21] sm:$0xff] %vm50_vm0, %v6547_v3 }
  0x3b   :  { %273 = vst.msk [vmem:[#allocation2 + $0x31] sm:$0xff] %vm50_vm0, %v207_v5  ;;  %274 = vst.msk [vmem:[#allocation2 + $0x39] sm:$0xff] %vm50_vm0, %v208_v6 }
  0x3c   :  { %275 = vst.msk [vmem:[#allocation2 + $0x49] sm:$0xff] %vm50_vm0, %v209_v7  ;;  %276 = vst.msk [vmem:[#allocation2 + $0x51] sm:$0xff] %vm50_vm0, %v210_v8 }
  0x3d   :  { %277 = vst.msk [vmem:[#allocation2 + $0x61] sm:$0xff] %vm50_vm0, %v211_v9  ;;  %278 = vst.msk [vmem:[#allocation2 + $0x69] sm:$0xff] %vm50_vm0, %v212_v10 }
  0x3e   :  { %279 = vst.msk [vmem:[#allocation2 + $0x79] sm:$0xff] %vm50_vm0, %v213_v11  ;;  %280 = vst.msk [vmem:[#allocation2 + $0x81] sm:$0xff] %vm50_vm0, %v214_v12 }
  0x3f   :  { %281 = vst.msk [vmem:[#allocation2 + $0x91] sm:$0xff] %vm50_vm0, %v215_v13  ;;  %282 = vst.msk [vmem:[#allocation2 + $0x99] sm:$0xff] %vm50_vm0, %v216_v14 }
  0x40   :  { %283 = vst.msk [vmem:[#allocation2 + $0xa9] sm:$0xff] %vm50_vm0, %v217_v15  ;;  %284 = vst.msk [vmem:[#allocation2 + $0xb1] sm:$0xff] %vm50_vm0, %v218_v16 }
  0x41   :  { %285 = vst.msk [vmem:[#allocation2 + $0xc1] sm:$0xff] %vm50_vm0, %v219_v17  ;;  %286 = vst.msk [vmem:[#allocation2 + $0xc9] sm:$0xff] %vm50_vm0, %v220_v18  ;;  %v6857_v28 = vld [vmem:[#allocation2 + $0x19] sm:$0xff]  ;;  %v6862_v30 = vld [vmem:[#allocation2 + $0x21] sm:$0xff] }
  0x42   :  { %287 = vst.msk [vmem:[#allocation2 + $0xd9] sm:$0xff] %vm50_vm0, %v221_v19  ;;  %288 = vst.msk [vmem:[#allocation2 + $0xe1] sm:$0xff] %vm50_vm0, %v222_v20  ;;  %595 = vrot.lane.b32.xlu1 %v6857_v28, %s6457_s13  ;;  %v6867_v31 = vld [vmem:[#allocation2 + $0x31] sm:$0xff]  ;;  %v6869_v32 = vld [vmem:[#allocation2 + $0x39] sm:$0xff] }
  0x43   :  { %289 = vst.msk [vmem:[#allocation2 + $0xf1] sm:$0xff] %vm50_vm0, %v223_v21  ;;  %290 = vst.msk [vmem:[#allocation2 + $0xf9] sm:$0xff] %vm50_vm0, %v224_v22  ;;  %v6871_v33 = vld [vmem:[#allocation2 + $0x49] sm:$0xff]  ;;  %599 = vrot.lane.b32.xlu0 %v6867_v31, %s6457_s13  ;;  %v6898_v40 = vld [vmem:[#allocation2 + $0x51] sm:$0xff] }
  0x44   :  { %291 = vst.msk [vmem:[#allocation2 + $0x109] sm:$0xff] %vm50_vm0, %v225_v23  ;;  %292 = vst.msk [vmem:[#allocation2 + $0x111] sm:$0xff] %vm50_vm0, %v226_v24  ;;  %v6906_v42 = vld [vmem:[#allocation2 + $0x61] sm:$0xff]  ;;  %v6920_v46 = vld [vmem:[#allocation2 + $0x69] sm:$0xff] }
  0x45   :  { %293 = vst.msk [vmem:[#allocation2 + $0x121] sm:$0xff] %vm50_vm0, %v227_v25  ;;  %294 = vst.msk [vmem:[#allocation2 + $0x129] sm:$0xff] %vm50_vm0, %v228_v27  ;;  %v6963_v56 = vld [vmem:[#allocation2 + $0x18] sm:$0xff]  ;;  %v6973_v58 = vld [vmem:[#allocation2 + $0x81] sm:$0xff] }
  0x46   :  { %597 = vrot.lane.b32.xlu1 %v6862_v30, %s6457_s13  ;;  %295 = vst.msk [vmem:[#allocation2 + $0x139] sm:$0xff] %vm50_vm0, %v229_v34  ;;  %296 = vst.msk [vmem:[#allocation2 + $0x141] sm:$0xff] %vm50_vm0, %v230_v35  ;;  %v6971_v57 = vld [vmem:[#allocation2 + $0x79] sm:$0xff]  ;;  %v6983_v60 = vld [vmem:[#allocation2 + $0x91] sm:$0xff] }
  0x47   :  { %297 = vst.msk [vmem:[#allocation2 + $0x151] sm:$0xff] %vm50_vm0, %v231_v36  ;;  %298 = vst.msk [vmem:[#allocation2 + $0x159] sm:$0xff] %vm50_vm0, %v232_v37  ;;  %603 = vrot.lane.b32.xlu0 %v6871_v33, %s6457_s13  ;;  %v6975_v59 = vld [vmem:[#allocation2 + $0x20] sm:$0xff]  ;;  %v6987_v62 = vld [vmem:[#allocation2 + $0x30] sm:$0xff] }
  0x48   :  { %299 = vst.msk [vmem:[#allocation2 + $0x169] sm:$0xff] %vm50_vm0, %v233_v38  ;;  %300 = vst.msk [vmem:[#allocation2 + $0x171] sm:$0xff] %vm50_vm0, %v234_v39  ;;  %v6985_v61 = vld [vmem:[#allocation2 + $0x99] sm:$0xff]  ;;  %v6996_v2 = vld [vmem:[#allocation2 + $0x48] sm:$0xff] }
  0x49   :  { %303 = vst.msk [vmem:[#allocation2 + $0x1c9] sm:$0xff] %vm50_vm0, %v237_v41  ;;  %304 = vst.msk [vmem:[#allocation2 + $0x1d1] sm:$0xff] %vm50_vm0, %v238_v43  ;;  %v6992_v0 = vld [vmem:[#allocation2 + $0x38] sm:$0xff]  ;;  %v477_v3 = vld [vmem:[#allocation2 + $0xa9] sm:$0xff] }
  0x4a   :  { %601 = vrot.lane.b32.xlu1 %v6869_v32, %s6457_s13  ;;  %305 = vst.msk [vmem:[#allocation2 + $0x1e1] sm:$0xff] %vm50_vm0, %v239_v44  ;;  %306 = vst.msk [vmem:[#allocation2 + $0x1e9] sm:$0xff] %vm50_vm0, %v240_v45  ;;  %v7005_v5 = vld [vmem:[#allocation2 + $0x50] sm:$0xff]  ;;  %v7007_v6 = vld [vmem:[#allocation2 + $0x60] sm:$0xff] }
  0x4b   :  { %307 = vst.msk [vmem:[#allocation2 + $0x1f9] sm:$0xff] %vm50_vm0, %v241_v47  ;;  %308 = vst.msk [vmem:[#allocation2 + $0x201] sm:$0xff] %vm50_vm0, %v242_v48  ;;  %607 = vrot.lane.b32.xlu0 %v6906_v42, %s6457_s13  ;;  %v478_v7 = vld [vmem:[#allocation2 + $0xb1] sm:$0xff]  ;;  %v7013_v8 = vld [vmem:[#allocation2 + $0x68] sm:$0xff] }
  0x4c   :  { %309 = vst.msk [vmem:[#allocation2 + $0x211] sm:$0xff] %vm50_vm0, %v243_v49  ;;  %310 = vst.msk [vmem:[#allocation2 + $0x219] sm:$0xff] %vm50_vm0, %v244_v50  ;;  %v7015_v9 = vld [vmem:[#allocation2 + $0x78] sm:$0xff]  ;;  %v479_v10 = vld [vmem:[#allocation2 + $0xc1] sm:$0xff] }
  0x4d   :  { %311 = vst.msk [vmem:[#allocation2 + $0x229] sm:$0xff] %vm50_vm0, %v245_v51  ;;  %312 = vst.msk [vmem:[#allocation2 + $0x231] sm:$0xff] %vm50_vm0, %v246_v52  ;;  %v7021_v11 = vld [vmem:[#allocation2 + $0x80] sm:$0xff]  ;;  %v7023_v12 = vld [vmem:[#allocation2 + $0x90] sm:$0xff] }
  0x4e   :  { %605 = vrot.lane.b32.xlu1 %v6898_v40, %s6457_s13  ;;  %313 = vst.msk [vmem:[#allocation2 + $0x241] sm:$0xff] %vm50_vm0, %v247_v53  ;;  %314 = vst.msk [vmem:[#allocation2 + $0x249] sm:$0xff] %vm50_vm0, %v248_v54  ;;  %v7025_v13 = vld [vmem:[#allocation2 + $0x98] sm:$0xff]  ;;  %v7034_v14 = vld [vmem:[#allocation2 + $0xa8] sm:$0xff] }
  0x4f   :  { %315 = vst.msk [vmem:[#allocation2 + $0x259] sm:$0xff] %vm50_vm0, %v249_v55  ;;  %401 = vst.msk [vmem:[#allocation3 + $0x10] sm:$0xff] %vm50_vm0, %v6963_v56  ;;  %611 = vrot.lane.b32.xlu0 %v6971_v57, %s6457_s13  ;;  %v7036_v15 = vld [vmem:[#allocation2 + $0xb0] sm:$0xff]  ;;  %v7038_v16 = vld [vmem:[#allocation2 + $0xc0] sm:$0xff] }
  0x50   :  { %402 = vst.msk [vmem:[#allocation3 + $0x18] sm:$0xff] %vm50_vm0, %v6975_v59  ;;  %399 = vst.msk [vmem:[#allocation3] sm:$0xff] %vm50_vm0, %v335_v63  ;;  %v7047_v17 = vld [vmem:[#allocation2 + $0xc8] sm:$0xff]  ;;  %v7049_v18 = vld [vmem:[#allocation2 + $0xd8] sm:$0xff] }
  0x51   :  { %403 = vst.msk [vmem:[#allocation3 + $0x20] sm:$0xff] %vm50_vm0, %v6987_v62  ;;  %400 = vst.msk [vmem:[#allocation3 + $0x8] sm:$0xff] %vm50_vm0, %v336_v1  ;;  %v7051_v19 = vld [vmem:[#allocation2 + $0xe0] sm:$0xff]  ;;  %v480_v20 = vld [vmem:[#allocation2 + $0xc9] sm:$0xff] }
  0x52   :  { %609 = vrot.lane.b32.xlu1 %v6920_v46, %s6457_s13  ;;  %404 = vst.msk [vmem:[#allocation3 + $0x28] sm:$0xff] %vm50_vm0, %v6992_v0  ;;  %405 = vst.msk [vmem:[#allocation3 + $0x30] sm:$0xff] %vm50_vm0, %v6996_v2  ;;  %v7059_v21 = vld [vmem:[#allocation2 + $0xf0] sm:$0xff]  ;;  %v7061_v22 = vld [vmem:[#allocation2 + $0xf8] sm:$0xff] }
  0x53   :  { %615 = vrot.lane.b32.xlu0 %v6983_v60, %s6457_s13  ;;  %406 = vst.msk [vmem:[#allocation3 + $0x38] sm:$0xff] %vm50_vm0, %v7005_v5  ;;  %407 = vst.msk [vmem:[#allocation3 + $0x40] sm:$0xff] %vm50_vm0, %v7007_v6  ;;  %v7067_v23 = vld [vmem:[#allocation2 + $0x108] sm:$0xff]  ;;  %v7069_v24 = vld [vmem:[#allocation2 + $0x110] sm:$0xff] }
  0x54   :  { %408 = vst.msk [vmem:[#allocation3 + $0x48] sm:$0xff] %vm50_vm0, %v7013_v8  ;;  %409 = vst.msk [vmem:[#allocation3 + $0x50] sm:$0xff] %vm50_vm0, %v7015_v9 }
  0x55   :  { %410 = vst.msk [vmem:[#allocation3 + $0x58] sm:$0xff] %vm50_vm0, %v7021_v11  ;;  %411 = vst.msk [vmem:[#allocation3 + $0x60] sm:$0xff] %vm50_vm0, %v7023_v12 }
  0x56   :  { %613 = vrot.lane.b32.xlu1 %v6973_v58, %s6457_s13  ;;  %412 = vst.msk [vmem:[#allocation3 + $0x68] sm:$0xff] %vm50_vm0, %v7025_v13  ;;  %413 = vst.msk [vmem:[#allocation3 + $0x70] sm:$0xff] %vm50_vm0, %v7034_v14 }
  0x57   :  { %619 = vrot.lane.b32.xlu0 %v477_v3, %s6457_s13  ;;  %414 = vst.msk [vmem:[#allocation3 + $0x78] sm:$0xff] %vm50_vm0, %v7036_v15  ;;  %415 = vst.msk [vmem:[#allocation3 + $0x80] sm:$0xff] %vm50_vm0, %v7038_v16 }
  0x58   :  { %416 = vst.msk [vmem:[#allocation3 + $0x88] sm:$0xff] %vm50_vm0, %v7047_v17  ;;  %417 = vst.msk [vmem:[#allocation3 + $0x90] sm:$0xff] %vm50_vm0, %v7049_v18 }
  0x59   :  { %418 = vst.msk [vmem:[#allocation3 + $0x98] sm:$0xff] %vm50_vm0, %v7051_v19  ;;  %419 = vst.msk [vmem:[#allocation3 + $0xa0] sm:$0xff] %vm50_vm0, %v7059_v21 }
  0x5a   :  { %617 = vrot.lane.b32.xlu1 %v6985_v61, %s6457_s13  ;;  %420 = vst.msk [vmem:[#allocation3 + $0xa8] sm:$0xff] %vm50_vm0, %v7061_v22 }
  0x5e   :  { %621 = vrot.lane.b32.xlu1 %v478_v7, %s6457_s13 }
  0x5f   :  { %21 = vsyncpa [#allocation10], 0  ;;  %623 = vrot.lane.b32.xlu0 %v479_v10, %s6457_s13  ;;  %421 = vst.msk [vmem:[#allocation3 + $0xb0] sm:$0xff] %vm50_vm0, %v7067_v23  ;;  %v481_v25 = vld [vmem:[#allocation2 + $0xd9] sm:$0xff]  ;;  %v482_v27 = vld [vmem:[#allocation2 + $0xe1] sm:$0xff]  ;;  %s6458_s14 = smov 8  }
  0x60   :  { %422 = vst.msk [vmem:[#allocation3 + $0xb8] sm:$0xff] %vm50_vm0, %v7069_v24  ;;  %v359_v26 = vld [vmem:[#allocation2 + $0x120] sm:$0xff]  ;;  %v360_v29 = vld [vmem:[#allocation2 + $0x128] sm:$0xff]  ;;  %v483_v34 = vld [vmem:[#allocation2 + $0xf1] sm:$0xff]  ;;  %s6459_s15 = smov 12   ;;  %s6460_s16 = smov 16  }
  0x61   :  { %423 = vst.msk [vmem:[#allocation3 + $0xc0] sm:$0xff] %vm50_vm0, %v359_v26  ;;  %424 = vst.msk [vmem:[#allocation3 + $0xc8] sm:$0xff] %vm50_vm0, %v360_v29  ;;  %v361_v35 = vld [vmem:[#allocation2 + $0x138] sm:$0xff]  ;;  %v362_v37 = vld [vmem:[#allocation2 + $0x140] sm:$0xff]  ;;  %s6461_s17 = smov 20   ;;  %s6462_s18 = smov 24  }
  0x62   :  { %625 = vrot.lane.b32.xlu1 %v480_v20, %s6457_s13  ;;  %v484_v36 = vld [vmem:[#allocation2 + $0xf9] sm:$0xff]  ;;  %425 = vst.msk [vmem:[#allocation3 + $0xd0] sm:$0xff] %vm50_vm0, %v361_v35  ;;  %426 = vst.msk [vmem:[#allocation3 + $0xd8] sm:$0xff] %vm50_vm0, %v362_v37  ;;  %v485_v38 = vld [vmem:[#allocation2 + $0x109] sm:$0xff]  ;;  %vm783_vm2 = vcmask 64544   ;;  %vm3813_vm3 = vcmask 1043456  }
  0x63   :  { %627 = vrot.lane.b32.xlu0 %v481_v25, %s6457_s13  ;;  %v363_v39 = vld [vmem:[#allocation2 + $0x150] sm:$0xff]  ;;  %v364_v43 = vld [vmem:[#allocation2 + $0x158] sm:$0xff]  ;;  %v487_v44 = vld [vmem:[#allocation2 + $0x121] sm:$0xff]  ;;  %s6463_s23 = smov 28   ;;  %s6464_s11 = smov 32   ;;  %vm1168_vm4 = vcmask 97344  }
  0x64   :  { %v486_v41 = vld [vmem:[#allocation2 + $0x111] sm:$0xff]  ;;  %427 = vst.msk [vmem:[#allocation3 + $0xe0] sm:$0xff] %vm50_vm0, %v363_v39  ;;  %428 = vst.msk [vmem:[#allocation3 + $0xe8] sm:$0xff] %vm50_vm0, %v364_v43  ;;  %v365_v45 = vld [vmem:[#allocation2 + $0x168] sm:$0xff]  ;;  %vm1553_vm5 = vcmask 130144   ;;  %vm1938_vm6 = vcmask 162944  }
  0x65   :  { %v488_v47 = vld [vmem:[#allocation2 + $0x129] sm:$0xff]  ;;  %429 = vst.msk [vmem:[#allocation3 + $0xf0] sm:$0xff] %vm50_vm0, %v365_v45  ;;  %v489_v49 = vld [vmem:[#allocation2 + $0x139] sm:$0xff]  ;;  %v490_v51 = vld [vmem:[#allocation2 + $0x141] sm:$0xff]  ;;  %vm2323_vm7 = vcmask 195744   ;;  %vm2709_vm8 = vcmask 228544  }
  0x66   :  { %629 = vrot.lane.b32.xlu1 %v482_v27, %s6457_s13  ;;  %v366_v48 = vld [vmem:[#allocation2 + $0x170] sm:$0xff]  ;;  %v368_v52 = vld [vmem:[#allocation2 + $0x1b8] sm:$0xff]  ;;  %v369_v54 = vld [vmem:[#allocation2 + $0x1c8] sm:$0xff]  ;;  %vm3094_vm9 = vcmask 261344   ;;  %vm3479_vm10 = vcmask 294144   ;;  %vm3620_vm11 = vcmask 293888  }
  0x67   :  { %631 = vrot.lane.b32.xlu0 %v483_v34, %s6457_s13  ;;  %430 = vst.msk [vmem:[#allocation3 + $0xf8] sm:$0xff] %vm50_vm0, %v366_v48  ;;  %v367_v50 = vld [vmem:[#allocation2 + $0x1b0] sm:$0xff]  ;;  %432 = vst.msk [vmem:[#allocation3 + $0x108] sm:$0xff] %vm50_vm0, %v368_v52  ;;  %v492_v55 = vld [vmem:[#allocation2 + $0x159] sm:$0xff]  ;;  %vm160_vm12 = vcmask 523264   ;;  %vm162_vm13 = vcmask 517120  }
  0x68   :  { %431 = vst.msk [vmem:[#allocation3 + $0x100] sm:$0xff] %vm50_vm0, %v367_v50  ;;  %v491_v53 = vld [vmem:[#allocation2 + $0x151] sm:$0xff]  ;;  %433 = vst.msk [vmem:[#allocation3 + $0x110] sm:$0xff] %vm50_vm0, %v369_v54  ;;  %v493_v1 = vld [vmem:[#allocation2 + $0x169] sm:$0xff]  ;;  %s6465_s28 = smov 64   ;;  %vm4633_vm14 = vcmask 1048064  }
  0x69   :  { %v370_v63 = vld [vmem:[#allocation2 + $0x1d0] sm:$0xff]  ;;  %v371_v3 = vld [vmem:[#allocation2 + $0x1e0] sm:$0xff]  ;;  %v372_v10 = vld [vmem:[#allocation2 + $0x1e8] sm:$0xff]  ;;  %161 = vst.msk [vmem:[#allocation5] sm:$0xff] %vm160_vm12, %v9570_v4  ;;  %vm6466_vm15 = vmmov 0   ;;  %vm203_vm1 = vcmask 0  }
  0x6a   :  { %633 = vrot.lane.b32.xlu1 %v484_v36, %s6457_s13  ;;  %434 = vst.msk [vmem:[#allocation3 + $0x118] sm:$0xff] %vm50_vm0, %v370_v63  ;;  %v494_v7 = vld [vmem:[#allocation2 + $0x171] sm:$0xff]  ;;  %435 = vst.msk [vmem:[#allocation3 + $0x120] sm:$0xff] %vm50_vm0, %v371_v3  ;;  %v496_v26 = vld [vmem:[#allocation2 + $0x1b9] sm:$0xff] }
  0x6b   :  { %635 = vrot.lane.b32.xlu0 %v485_v38, %s6457_s13  ;;  %436 = vst.msk [vmem:[#allocation3 + $0x128] sm:$0xff] %vm50_vm0, %v372_v10  ;;  %v495_v20 = vld [vmem:[#allocation2 + $0x1b1] sm:$0xff]  ;;  %v374_v27 = vld [vmem:[#allocation2 + $0x200] sm:$0xff]  ;;  %v497_v29 = vld [vmem:[#allocation2 + $0x1c9] sm:$0xff] }
  0x6c   :  { %v373_v25 = vld [vmem:[#allocation2 + $0x1f8] sm:$0xff]  ;;  %438 = vst.msk [vmem:[#allocation3 + $0x138] sm:$0xff] %vm50_vm0, %v374_v27  ;;  %v375_v34 = vld [vmem:[#allocation2 + $0x210] sm:$0xff]  ;;  %v499_v37 = vld [vmem:[#allocation2 + $0x1e1] sm:$0xff] }
  0x6d   :  { %437 = vst.msk [vmem:[#allocation3 + $0x130] sm:$0xff] %vm50_vm0, %v373_v25  ;;  %v498_v35 = vld [vmem:[#allocation2 + $0x1d1] sm:$0xff]  ;;  %439 = vst.msk [vmem:[#allocation3 + $0x140] sm:$0xff] %vm50_vm0, %v375_v34  ;;  %v377_v38 = vld [vmem:[#allocation2 + $0x228] sm:$0xff] }
  0x6e   :  { %637 = vrot.lane.b32.xlu1 %v486_v41, %s6457_s13  ;;  %v376_v36 = vld [vmem:[#allocation2 + $0x218] sm:$0xff]  ;;  %v500_v39 = vld [vmem:[#allocation2 + $0x1e9] sm:$0xff]  ;;  %441 = vst.msk [vmem:[#allocation3 + $0x150] sm:$0xff] %vm50_vm0, %v377_v38  ;;  %v502_v45 = vld [vmem:[#allocation2 + $0x201] sm:$0xff] }
  0x6f   :  { %639 = vrot.lane.b32.xlu0 %v487_v44, %s6457_s13  ;;  %440 = vst.msk [vmem:[#allocation3 + $0x148] sm:$0xff] %vm50_vm0, %v376_v36  ;;  %v378_v41 = vld [vmem:[#allocation2 + $0x230] sm:$0xff]  ;;  %v501_v43 = vld [vmem:[#allocation2 + $0x1f9] sm:$0xff]  ;;  %v848_v63 = vld [vmem:[#allocation2 + $0x2] sm:$0xff] }
  0x70   :  { %442 = vst.msk [vmem:[#allocation3 + $0x158] sm:$0xff] %vm50_vm0, %v378_v41  ;;  %v379_v44 = vld [vmem:[#allocation2 + $0x240] sm:$0xff]  ;;  %v503_v48 = vld [vmem:[#allocation2 + $0x211] sm:$0xff]  ;;  %v508_v54 = vld [vmem:[#allocation2 + $0x249] sm:$0xff] }
  0x71   :  { %443 = vst.msk [vmem:[#allocation3 + $0x160] sm:$0xff] %vm50_vm0, %v379_v44  ;;  %v504_v50 = vld [vmem:[#allocation2 + $0x219] sm:$0xff]  ;;  %v506_v52 = vld [vmem:[#allocation2 + $0x231] sm:$0xff]  ;;  %v3609_v27 = vld [vmem:[%s9558_s1 + $0x8] sm:$0xff] }
  0x72   :  { %641 = vrot.lane.b32.xlu1 %v488_v47, %s6457_s13  ;;  %v380_v47 = vld [vmem:[#allocation2 + $0x248] sm:$0xff]  ;;  %v2003_v3 = vld [vmem:[#allocation2 + $0x1a] sm:$0xff]  ;;  %164 = vst.msk [vmem:[#allocation5 + $0x10] sm:$0xff] %vm160_vm12, %v9570_v4  ;;  %166 = vst.msk [vmem:[#allocation5 + $0x20] sm:$0xff] %vm160_vm12, %v9570_v4 }
  0x73   :  { %643 = vrot.lane.b32.xlu0 %v489_v49, %s6457_s13  ;;  %444 = vst.msk [vmem:[#allocation3 + $0x168] sm:$0xff] %vm50_vm0, %v380_v47  ;;  %v381_v49 = vld [vmem:[#allocation2 + $0x258] sm:$0xff] }
  0x74   :  { %445 = vst.msk [vmem:[#allocation3 + $0x170] sm:$0xff] %vm50_vm0, %v381_v49  ;;  %v3160_v36 = vld [vmem:[#allocation2 + $0x3a] sm:$0xff] }
  0x75   :  { %168 = vst.msk [vmem:[#allocation5 + $0x30] sm:$0xff] %vm160_vm12, %v9570_v4  ;;  %170 = vst.msk [vmem:[#allocation5 + $0x40] sm:$0xff] %vm160_vm12, %v9570_v4 }
  0x76   :  { %645 = vrot.lane.b32.xlu1 %v490_v51, %s6457_s13  ;;  %v505_v51 = vld [vmem:[#allocation2 + $0x229] sm:$0xff]  ;;  %172 = vst.msk [vmem:[#allocation5 + $0x50] sm:$0xff] %vm160_vm12, %v9570_v4  ;;  %174 = vst.msk [vmem:[#allocation5 + $0x60] sm:$0xff] %vm160_vm12, %v9570_v4 }
  0x77   :  { %647 = vrot.lane.b32.xlu0 %v491_v53, %s6457_s13  ;;  %v507_v53 = vld [vmem:[#allocation2 + $0x241] sm:$0xff]  ;;  %176 = vst.msk [vmem:[#allocation5 + $0x70] sm:$0xff] %vm160_vm12, %v9570_v4  ;;  %178 = vst.msk [vmem:[#allocation5 + $0x80] sm:$0xff] %vm160_vm12, %v9570_v4 }
  0x78   :  { %180 = vst.msk [vmem:[#allocation5 + $0x90] sm:$0xff] %vm160_vm12, %v9570_v4  ;;  %182 = vst.msk [vmem:[#allocation5 + $0xa0] sm:$0xff] %vm160_vm12, %v9570_v4 }
  0x79   :  { %184 = vst.msk [vmem:[#allocation5 + $0xb0] sm:$0xff] %vm160_vm12, %v9570_v4  ;;  %186 = vst.msk [vmem:[#allocation5 + $0xc0] sm:$0xff] %vm160_vm12, %v9570_v4 }
  0x7a   :  { %649 = vrot.lane.b32.xlu1 %v492_v55, %s6457_s13  ;;  %v509_v55 = vld [vmem:[#allocation2 + $0x259] sm:$0xff]  ;;  %188 = vst.msk [vmem:[#allocation5 + $0xd0] sm:$0xff] %vm160_vm12, %v9570_v4  ;;  %190 = vst.msk [vmem:[#allocation5 + $0xe0] sm:$0xff] %vm160_vm12, %v9570_v4 }
  0x7b   :  { %651 = vrot.lane.b32.xlu0 %v493_v1, %s6457_s13  ;;  %v849_v1 = vld [vmem:[#allocation2 + $0xa] sm:$0xff]  ;;  %192 = vst.msk [vmem:[#allocation5 + $0xf0] sm:$0xff] %vm160_vm12, %v9570_v4  ;;  %194 = vst.msk [vmem:[#allocation5 + $0x100] sm:$0xff] %vm160_vm12, %v9570_v4 }
  0x7c   :  { %196 = vst.msk [vmem:[#allocation5 + $0x110] sm:$0xff] %vm160_vm12, %v9570_v4  ;;  %198 = vst.msk [vmem:[#allocation5 + $0x120] sm:$0xff] %vm160_vm12, %v9570_v4 }
  0x7d   :  { %200 = vst.msk [vmem:[#allocation5 + $0x130] sm:$0xff] %vm160_vm12, %v9570_v4 }
  0x7e   :  { %653 = vrot.lane.b32.xlu1 %v494_v7, %s6457_s13  ;;  %v2004_v7 = vld [vmem:[#allocation2 + $0x22] sm:$0xff]  ;;  %165 = vst.msk [vmem:[#allocation5 + $0x18] sm:$0x3] %vm162_vm13, %v9570_v4  ;;  %163 = vst.msk [vmem:[#allocation5 + $0x8] sm:$0x3] %vm162_vm13, %v9570_v4 }
  0x7f   :  { %655 = vrot.lane.b32.xlu0 %v495_v20, %s6457_s13  ;;  %v3611_v20 = vld [vmem:[%s9558_s1 + $0x18] sm:$0xff]  ;;  %167 = vst.msk [vmem:[#allocation5 + $0x28] sm:$0x3] %vm162_vm13, %v9570_v4  ;;  %169 = vst.msk [vmem:[#allocation5 + $0x38] sm:$0x3] %vm162_vm13, %v9570_v4 }
  0x80   :  { %171 = vst.msk [vmem:[#allocation5 + $0x48] sm:$0x3] %vm162_vm13, %v9570_v4  ;;  %173 = vst.msk [vmem:[#allocation5 + $0x58] sm:$0x3] %vm162_vm13, %v9570_v4 }
  0x81   :  { %175 = vst.msk [vmem:[#allocation5 + $0x68] sm:$0x3] %vm162_vm13, %v9570_v4  ;;  %177 = vst.msk [vmem:[#allocation5 + $0x78] sm:$0x3] %vm162_vm13, %v9570_v4 }
  0x82   :  { %657 = vrot.lane.b32.xlu1 %v496_v26, %s6457_s13  ;;  %179 = vst.msk [vmem:[#allocation5 + $0x88] sm:$0x3] %vm162_vm13, %v9570_v4  ;;  %181 = vst.msk [vmem:[#allocation5 + $0x98] sm:$0x3] %vm162_vm13, %v9570_v4 }
  0x83   :  { %659 = vrot.lane.b32.xlu0 %v497_v29, %s6457_s13  ;;  %v3608_v29 = vld [vmem:[%s9558_s1] sm:$0xff]  ;;  %183 = vst.msk [vmem:[#allocation5 + $0xa8] sm:$0x3] %vm162_vm13, %v9570_v4  ;;  %185 = vst.msk [vmem:[#allocation5 + $0xb8] sm:$0x3] %vm162_vm13, %v9570_v4 }
  0x84   :  { %187 = vst.msk [vmem:[#allocation5 + $0xc8] sm:$0x3] %vm162_vm13, %v9570_v4  ;;  %189 = vst.msk [vmem:[#allocation5 + $0xd8] sm:$0x3] %vm162_vm13, %v9570_v4 }
  0x85   :  { %191 = vst.msk [vmem:[#allocation5 + $0xe8] sm:$0x3] %vm162_vm13, %v9570_v4  ;;  %193 = vst.msk [vmem:[#allocation5 + $0xf8] sm:$0x3] %vm162_vm13, %v9570_v4 }
  0x86   :  { %661 = vrot.lane.b32.xlu1 %v498_v35, %s6457_s13  ;;  %195 = vst.msk [vmem:[#allocation5 + $0x108] sm:$0x3] %vm162_vm13, %v9570_v4  ;;  %197 = vst.msk [vmem:[#allocation5 + $0x118] sm:$0x3] %vm162_vm13, %v9570_v4 }
  0x87   :  { %663 = vrot.lane.b32.xlu0 %v499_v37, %s6457_s13  ;;  %199 = vst.msk [vmem:[#allocation5 + $0x128] sm:$0x3] %vm162_vm13, %v9570_v4  ;;  %201 = vst.msk [vmem:[#allocation5 + $0x138] sm:$0x3] %vm162_vm13, %v9570_v4 }
  0x8a   :  { %665 = vrot.lane.b32.xlu1 %v500_v39, %s6457_s13 }
  0x8b   :  { %667 = vrot.lane.b32.xlu0 %v501_v43, %s6457_s13 }
  0x8e   :  { %669 = vrot.lane.b32.xlu1 %v502_v45, %s6457_s13 }
  0x8f   :  { %671 = vrot.lane.b32.xlu0 %v503_v48, %s6457_s13 }
  0x92   :  { %673 = vrot.lane.b32.xlu1 %v504_v50, %s6457_s13 }
  0x93   :  { %675 = vrot.lane.b32.xlu0 %v505_v51, %s6457_s13 }
  0x96   :  { %677 = vrot.lane.b32.xlu1 %v506_v52, %s6457_s13  ;;  %v3162_v52 = vld [vmem:[#allocation2 + $0x52] sm:$0xff] }
  0x97   :  { %679 = vrot.lane.b32.xlu0 %v507_v53, %s6457_s13 }
  0x9a   :  { %681 = vrot.lane.b32.xlu1 %v508_v54, %s6457_s13 }
  0x9b   :  { %683 = vrot.lane.b32.xlu0 %v509_v55, %s6457_s13 }
  0x9e   :  { %976 = vrot.lane.b32.xlu1 %v848_v63, %s6458_s14 }
  0x9f   :  { %978 = vrot.lane.b32.xlu0 %v849_v1, %s6458_s14 }
  0xa2   :  { %1361 = vrot.lane.b32.xlu1 %v6963_v56, %s6459_s15 }
  0xa3   :  { %1363 = vrot.lane.b32.xlu0 %v6975_v59, %s6459_s15 }
  0xa6   :  { %1746 = vrot.lane.b32.xlu1 %v6857_v28, %s6460_s16  ;;  %v592_v28 = vpop.permute.xlu0 %591 }
  0xa7   :  { %1748 = vrot.lane.b32.xlu0 %v6862_v30, %s6460_s16  ;;  %784 = vst.msk [vmem:[#allocation3] sm:$0xff] %vm783_vm2, %v592_v28  ;;  %v3612_v30 = vld [vmem:[%s9558_s1 + $0x20] sm:$0xf] }
  0xa8   :  { %6232 = vmatprep.subr.msk.mxu0 %vm3813_vm3, %v3612_v30 }
  0xa9   :  { %6233 = vmatpush3.msk.msra.mxu0 %vm3813_vm3, %v3612_v30  ;;  %vm5851_vm3 = vcmask 1024  }
  0xaa   :  { %2131 = vrot.lane.b32.xlu1 %v2003_v3, %s6461_s17  ;;  %v594_v59 = vpop.permute.xlu0 %593  ;;  %6234 = vmatprep.subr.mxu0 %v3611_v20 }
  0xab   :  { %980 = vrot.lane.b32.xlu0 %v2003_v3, %s6458_s14  ;;  %785 = vst.msk [vmem:[#allocation3 + $0x8] sm:$0xff] %vm783_vm2, %v594_v59  ;;  %6235 = vmatpush3.msra.mxu0 %v3611_v20 }
  0xae   :  { %2133 = vrot.lane.b32.xlu1 %v2004_v7, %s6461_s17 }
  0xaf   :  { %2517 = vrot.lane.b32.xlu0 %v6987_v62, %s6462_s18 }
  0xb2   :  { %982 = vrot.lane.b32.xlu1 %v2004_v7, %s6458_s14 }
  0xb3   :  { %1365 = vrot.lane.b32.xlu0 %v6987_v62, %s6459_s15  ;;  %v3610_v62 = vld [vmem:[%s9558_s1 + $0x10] sm:$0xff] }
  0xb4   :  { %v596_v56 = vpop.permute.xlu1 %595  ;;  %6236 = vmatprep.subr.mxu0 %v3610_v62 }
  0xb5   :  { %786 = vst.msk [vmem:[#allocation3 + $0x10] sm:$0xff] %vm783_vm2, %v596_v56  ;;  %v600_v25 = vpop.permute.xlu0 %599  ;;  %6237 = vmatpush3.msra.mxu0 %v3610_v62 }
  0xb6   :  { %2519 = vrot.lane.b32.xlu1 %v6992_v0, %s6462_s18  ;;  %788 = vst.msk [vmem:[#allocation3 + $0x20] sm:$0xff] %vm783_vm2, %v600_v25  ;;  %6238 = vmatprep.subr.mxu0 %v3609_v27 }
  0xb7   :  { %2902 = vrot.lane.b32.xlu0 %v6867_v31, %s6463_s23  ;;  %6239 = vmatpush3.msra.mxu0 %v3609_v27 }
  0xb8   :  { %v598_v10 = vpop.permute.xlu1 %597  ;;  %6240 = vmatprep.subr.mxu0 %v3608_v29 }
  0xb9   :  { %787 = vst.msk [vmem:[#allocation3 + $0x18] sm:$0xff] %vm783_vm2, %v598_v10  ;;  %v604_v34 = vpop.permute.xlu0 %603  ;;  %6241 = vmatpush3.msra.mxu0 %v3608_v29  ;;  %v3164_v10 = vld [vmem:[#allocation2 + $0x6a] sm:$0xff] }
  0xba   :  { %1367 = vrot.lane.b32.xlu1 %v6992_v0, %s6459_s15  ;;  %v3159_v0 = vld [vmem:[#allocation2 + $0x32] sm:$0xff]  ;;  %790 = vst.msk [vmem:[#allocation3 + $0x30] sm:$0xff] %vm783_vm2, %v604_v34 }
  0xbb   :  { %1750 = vrot.lane.b32.xlu0 %v6867_v31, %s6460_s16 }
  0xbc   :  { %v602_v26 = vpop.permute.xlu1 %601 }
  0xbd   :  { %789 = vst.msk [vmem:[#allocation3 + $0x28] sm:$0xff] %vm783_vm2, %v602_v26  ;;  %v608_v31 = vpop.permute.xlu0 %607 }
  0xbe   :  { %2904 = vrot.lane.b32.xlu1 %v6869_v32, %s6463_s23  ;;  %792 = vst.msk [vmem:[#allocation3 + $0x40] sm:$0xff] %vm783_vm2, %v608_v31 }
  0xbf   :  { %3287 = vrot.lane.b32.xlu0 %v3159_v0, %s6464_s11 }
  0xc0   :  { %v606_v35 = vpop.permute.xlu1 %605 }
  0xc1   :  { %791 = vst.msk [vmem:[#allocation3 + $0x38] sm:$0xff] %vm783_vm2, %v606_v35  ;;  %v612_v38 = vpop.permute.xlu0 %611  ;;  %v3165_v35 = vld [vmem:[#allocation2 + $0x7a] sm:$0xff] }
  0xc2   :  { %1752 = vrot.lane.b32.xlu1 %v6869_v32, %s6460_s16  ;;  %794 = vst.msk [vmem:[#allocation3 + $0x50] sm:$0xff] %vm783_vm2, %v612_v38 }
  0xc3   :  { %2135 = vrot.lane.b32.xlu0 %v3159_v0, %s6461_s17 }
  0xc4   :  { %v610_v37 = vpop.permute.xlu1 %609 }
  0xc5   :  { %793 = vst.msk [vmem:[#allocation3 + $0x48] sm:$0xff] %vm783_vm2, %v610_v37  ;;  %v616_v32 = vpop.permute.xlu0 %615  ;;  %v3166_v37 = vld [vmem:[#allocation2 + $0x82] sm:$0xff] }
  0xc6   :  { %3289 = vrot.lane.b32.xlu1 %v3160_v36, %s6464_s11  ;;  %796 = vst.msk [vmem:[#allocation3 + $0x60] sm:$0xff] %vm783_vm2, %v616_v32 }
  0xc7   :  { %984 = vrot.lane.b32.xlu0 %v3159_v0, %s6458_s14 }
  0xc8   :  { %v614_v39 = vpop.permute.xlu1 %613 }
  0xc9   :  { %795 = vst.msk [vmem:[#allocation3 + $0x58] sm:$0xff] %vm783_vm2, %v614_v39  ;;  %v620_v43 = vpop.permute.xlu0 %619 }
  0xca   :  { %2137 = vrot.lane.b32.xlu1 %v3160_v36, %s6461_s17  ;;  %798 = vst.msk [vmem:[#allocation3 + $0x70] sm:$0xff] %vm783_vm2, %v620_v43 }
  0xcb   :  { %2521 = vrot.lane.b32.xlu0 %v6996_v2, %s6462_s18 }
  0xcc   :  { %v618_v41 = vpop.permute.xlu1 %617 }
  0xcd   :  { %797 = vst.msk [vmem:[#allocation3 + $0x68] sm:$0xff] %vm783_vm2, %v618_v41 }
  0xce   :  { %986 = vrot.lane.b32.xlu1 %v3160_v36, %s6458_s14 }
  0xcf   :  { %1369 = vrot.lane.b32.xlu0 %v6996_v2, %s6459_s15  ;;  %v3161_v2 = vld [vmem:[#allocation2 + $0x4a] sm:$0xff] }
  0xd0   :  { %v622_v44 = vpop.permute.xlu1 %621 }
  0xd1   :  { %799 = vst.msk [vmem:[#allocation3 + $0x78] sm:$0xff] %vm783_vm2, %v622_v44  ;;  %v624_v45 = vpop.permute.xlu0 %623 }
  0xd2   :  { %2523 = vrot.lane.b32.xlu1 %v7005_v5, %s6462_s18  ;;  %800 = vst.msk [vmem:[#allocation3 + $0x80] sm:$0xff] %vm783_vm2, %v624_v45 }
  0xd3   :  { %2906 = vrot.lane.b32.xlu0 %v6871_v33, %s6463_s23 }
  0xd4   :  { %v626_v47 = vpop.permute.xlu1 %625 }
  0xd5   :  { %801 = vst.msk [vmem:[#allocation3 + $0x88] sm:$0xff] %vm783_vm2, %v626_v47  ;;  %v628_v48 = vpop.permute.xlu0 %627 }
  0xd6   :  { %1371 = vrot.lane.b32.xlu1 %v7005_v5, %s6459_s15  ;;  %802 = vst.msk [vmem:[#allocation3 + $0x90] sm:$0xff] %vm783_vm2, %v628_v48  ;;  %v3167_v48 = vld [vmem:[#allocation2 + $0x92] sm:$0xff] }
  0xd7   :  { %1754 = vrot.lane.b32.xlu0 %v6871_v33, %s6460_s16 }
  0xd8   :  { %v630_v49 = vpop.permute.xlu1 %629 }
  0xd9   :  { %803 = vst.msk [vmem:[#allocation3 + $0x98] sm:$0xff] %vm783_vm2, %v630_v49  ;;  %v632_v50 = vpop.permute.xlu0 %631 }
  0xda   :  { %2908 = vrot.lane.b32.xlu1 %v6898_v40, %s6463_s23  ;;  %804 = vst.msk [vmem:[#allocation3 + $0xa0] sm:$0xff] %vm783_vm2, %v632_v50 }
  0xdb   :  { %3291 = vrot.lane.b32.xlu0 %v3161_v2, %s6464_s11 }
  0xdc   :  { %v634_v51 = vpop.permute.xlu1 %633 }
  0xdd   :  { %805 = vst.msk [vmem:[#allocation3 + $0xa8] sm:$0xff] %vm783_vm2, %v634_v51  ;;  %v636_v5 = vpop.permute.xlu0 %635  ;;  %v3168_v51 = vld [vmem:[#allocation2 + $0x9a] sm:$0xff] }
  0xde   :  { %1756 = vrot.lane.b32.xlu1 %v6898_v40, %s6460_s16  ;;  %806 = vst.msk [vmem:[#allocation3 + $0xb0] sm:$0xff] %vm783_vm2, %v636_v5 }
  0xdf   :  { %2139 = vrot.lane.b32.xlu0 %v3161_v2, %s6461_s17 }
  0xe0   :  { %v638_v33 = vpop.permute.xlu1 %637 }
  0xe1   :  { %807 = vst.msk [vmem:[#allocation3 + $0xb8] sm:$0xff] %vm783_vm2, %v638_v33  ;;  %v640_v53 = vpop.permute.xlu0 %639 }
  0xe2   :  { %3293 = vrot.lane.b32.xlu1 %v3162_v52, %s6464_s11  ;;  %808 = vst.msk [vmem:[#allocation3 + $0xc0] sm:$0xff] %vm783_vm2, %v640_v53 }
  0xe3   :  { %988 = vrot.lane.b32.xlu0 %v3161_v2, %s6458_s14  ;;  %v1629_v2 = vld [vmem:[#allocation2 + $0x99] sm:$0xff] }
  0xe4   :  { %v642_v54 = vpop.permute.xlu1 %641 }
  0xe5   :  { %809 = vst.msk [vmem:[#allocation3 + $0xc8] sm:$0xff] %vm783_vm2, %v642_v54  ;;  %v644_v40 = vpop.permute.xlu0 %643 }
  0xe6   :  { %2141 = vrot.lane.b32.xlu1 %v3162_v52, %s6461_s17  ;;  %810 = vst.msk [vmem:[#allocation3 + $0xd0] sm:$0xff] %vm783_vm2, %v644_v40 }
  0xe7   :  { %2525 = vrot.lane.b32.xlu0 %v7007_v6, %s6462_s18 }
  0xe8   :  { %v646_v55 = vpop.permute.xlu1 %645 }
  0xe9   :  { %811 = vst.msk [vmem:[#allocation3 + $0xd8] sm:$0xff] %vm783_vm2, %v646_v55  ;;  %v648_v63 = vpop.permute.xlu0 %647 }
  0xea   :  { %990 = vrot.lane.b32.xlu1 %v3162_v52, %s6458_s14  ;;  %812 = vst.msk [vmem:[#allocation3 + $0xe0] sm:$0xff] %vm783_vm2, %v648_v63  ;;  %v2784_v63 = vld [vmem:[#allocation2 + $0xa9] sm:$0xff] }
  0xeb   :  { %1373 = vrot.lane.b32.xlu0 %v7007_v6, %s6459_s15  ;;  %v3163_v6 = vld [vmem:[#allocation2 + $0x62] sm:$0xff] }
  0xec   :  { %v650_v1 = vpop.permute.xlu1 %649 }
  0xed   :  { %813 = vst.msk [vmem:[#allocation3 + $0xe8] sm:$0xff] %vm783_vm2, %v650_v1  ;;  %v652_v3 = vpop.permute.xlu0 %651 }
  0xee   :  { %2527 = vrot.lane.b32.xlu1 %v7013_v8, %s6462_s18  ;;  %814 = vst.msk [vmem:[#allocation3 + $0xf0] sm:$0xff] %vm783_vm2, %v652_v3 }
  0xef   :  { %2910 = vrot.lane.b32.xlu0 %v6906_v42, %s6463_s23 }
  0xf0   :  { %v654_v7 = vpop.permute.xlu1 %653 }
  0xf1   :  { %815 = vst.msk [vmem:[#allocation3 + $0xf8] sm:$0xff] %vm783_vm2, %v654_v7  ;;  %v656_v28 = vpop.permute.xlu0 %655 }
  0xf2   :  { %1375 = vrot.lane.b32.xlu1 %v7013_v8, %s6459_s15  ;;  %816 = vst.msk [vmem:[#allocation3 + $0x100] sm:$0xff] %vm783_vm2, %v656_v28  ;;  %v2785_v28 = vld [vmem:[#allocation2 + $0xb1] sm:$0xff] }
  0xf3   :  { %1758 = vrot.lane.b32.xlu0 %v6906_v42, %s6460_s16 }
  0xf4   :  { %v658_v56 = vpop.permute.xlu1 %657 }
  0xf5   :  { %817 = vst.msk [vmem:[#allocation3 + $0x108] sm:$0xff] %vm783_vm2, %v658_v56  ;;  %v660_v30 = vpop.permute.xlu0 %659  ;;  %v3169_v56 = vld [vmem:[#allocation2 + $0xaa] sm:$0xff] }
  0xf6   :  { %2912 = vrot.lane.b32.xlu1 %v6920_v46, %s6463_s23  ;;  %818 = vst.msk [vmem:[#allocation3 + $0x110] sm:$0xff] %vm783_vm2, %v660_v30 }
  0xf7   :  { %3295 = vrot.lane.b32.xlu0 %v3163_v6, %s6464_s11 }
  0xf8   :  { %v662_v59 = vpop.permute.xlu1 %661 }
  0xf9   :  { %819 = vst.msk [vmem:[#allocation3 + $0x118] sm:$0xff] %vm783_vm2, %v662_v59  ;;  %v664_v8 = vpop.permute.xlu0 %663  ;;  %v3170_v59 = vld [vmem:[#allocation2 + $0xb2] sm:$0xff] }
  0xfa   :  { %1760 = vrot.lane.b32.xlu1 %v6920_v46, %s6460_s16  ;;  %820 = vst.msk [vmem:[#allocation3 + $0x120] sm:$0xff] %vm783_vm2, %v664_v8 }
  0xfb   :  { %2143 = vrot.lane.b32.xlu0 %v3163_v6, %s6461_s17 }
  0xfc   :  { %v666_v42 = vpop.permute.xlu1 %665 }
  0xfd   :  { %821 = vst.msk [vmem:[#allocation3 + $0x128] sm:$0xff] %vm783_vm2, %v666_v42  ;;  %v668_v20 = vpop.permute.xlu0 %667 }
  0xfe   :  { %3297 = vrot.lane.b32.xlu1 %v3164_v10, %s6464_s11  ;;  %822 = vst.msk [vmem:[#allocation3 + $0x130] sm:$0xff] %vm783_vm2, %v668_v20 }
  0xff   :  { %992 = vrot.lane.b32.xlu0 %v3163_v6, %s6458_s14 }
 0x100   :  { %v670_v62 = vpop.permute.xlu1 %669 }
 0x101   :  { %823 = vst.msk [vmem:[#allocation3 + $0x138] sm:$0xff] %vm783_vm2, %v670_v62  ;;  %v672_v46 = vpop.permute.xlu0 %671 }
 0x102   :  { %2145 = vrot.lane.b32.xlu1 %v3164_v10, %s6461_s17  ;;  %824 = vst.msk [vmem:[#allocation3 + $0x140] sm:$0xff] %vm783_vm2, %v672_v46 }
 0x103   :  { %2529 = vrot.lane.b32.xlu0 %v7015_v9, %s6462_s18 }
 0x104   :  { %v674_v25 = vpop.permute.xlu1 %673 }
 0x105   :  { %825 = vst.msk [vmem:[#allocation3 + $0x148] sm:$0xff] %vm783_vm2, %v674_v25  ;;  %v676_v26 = vpop.permute.xlu0 %675 }
 0x106   :  { %994 = vrot.lane.b32.xlu1 %v3164_v10, %s6458_s14  ;;  %826 = vst.msk [vmem:[#allocation3 + $0x150] sm:$0xff] %vm783_vm2, %v676_v26 }
 0x107   :  { %1377 = vrot.lane.b32.xlu0 %v7015_v9, %s6459_s15 }
 0x108   :  { %v678_v27 = vpop.permute.xlu1 %677 }
 0x109   :  { %827 = vst.msk [vmem:[#allocation3 + $0x158] sm:$0xff] %vm783_vm2, %v678_v27  ;;  %v680_v0 = vpop.permute.xlu0 %679 }
 0x10a   :  { %2531 = vrot.lane.b32.xlu1 %v7021_v11, %s6462_s18  ;;  %828 = vst.msk [vmem:[#allocation3 + $0x160] sm:$0xff] %vm783_vm2, %v680_v0  ;;  %v2786_v0 = vld [vmem:[#allocation2 + $0xc1] sm:$0xff] }
 0x10b   :  { %2914 = vrot.lane.b32.xlu0 %v6971_v57, %s6463_s23 }
 0x10c   :  { %v682_v29 = vpop.permute.xlu1 %681 }
 0x10d   :  { %829 = vst.msk [vmem:[#allocation3 + $0x168] sm:$0xff] %vm783_vm2, %v682_v29  ;;  %v684_v34 = vpop.permute.xlu0 %683 }
 0x10e   :  { %1379 = vrot.lane.b32.xlu1 %v7021_v11, %s6459_s15  ;;  %830 = vst.msk [vmem:[#allocation3 + $0x170] sm:$0xff] %vm783_vm2, %v684_v34 }
 0x10f   :  { %1762 = vrot.lane.b32.xlu0 %v6971_v57, %s6460_s16 }
 0x110   :  { %v977_v9 = vpop.permute.xlu1 %976 }
 0x111   :  { %1169 = vst.msk [vmem:[#allocation3] sm:$0xff] %vm1168_vm4, %v977_v9  ;;  %v979_v31 = vpop.permute.xlu0 %978 }
 0x112   :  { %2916 = vrot.lane.b32.xlu1 %v6973_v58, %s6463_s23  ;;  %1170 = vst.msk [vmem:[#allocation3 + $0x8] sm:$0xff] %vm1168_vm4, %v979_v31  ;;  %v3171_v31 = vld [vmem:[#allocation2 + $0xc2] sm:$0xff] }
 0x113   :  { %3299 = vrot.lane.b32.xlu0 %v3165_v35, %s6464_s11 }
 0x114   :  { %v1362_v36 = vpop.permute.xlu1 %1361 }
 0x115   :  { %1554 = vst.msk [vmem:[#allocation3] sm:$0xff] %vm1553_vm5, %v1362_v36  ;;  %v1364_v11 = vpop.permute.xlu0 %1363 }
 0x116   :  { %1764 = vrot.lane.b32.xlu1 %v6973_v58, %s6460_s16  ;;  %1555 = vst.msk [vmem:[#allocation3 + $0x8] sm:$0xff] %vm1553_vm5, %v1364_v11 }
 0x117   :  { %2147 = vrot.lane.b32.xlu0 %v3165_v35, %s6461_s17 }
 0x118   :  { %v1747_v57 = vpop.permute.xlu1 %1746 }
 0x119   :  { %1939 = vst.msk [vmem:[#allocation3] sm:$0xff] %vm1938_vm6, %v1747_v57  ;;  %v1749_v38 = vpop.permute.xlu0 %1748 }
 0x11a   :  { %3301 = vrot.lane.b32.xlu1 %v3166_v37, %s6464_s11  ;;  %1940 = vst.msk [vmem:[#allocation3 + $0x8] sm:$0xff] %vm1938_vm6, %v1749_v38 }
 0x11b   :  { %996 = vrot.lane.b32.xlu0 %v3165_v35, %s6458_s14  ;;  %v2787_v35 = vld [vmem:[#allocation2 + $0xc9] sm:$0xff] }
 0x11c   :  { %v2132_v39 = vpop.permute.xlu1 %2131 }
 0x11d   :  { %2324 = vst.msk [vmem:[#allocation3] sm:$0xff] %vm2323_vm7, %v2132_v39  ;;  %v981_v58 = vpop.permute.xlu0 %980 }
 0x11e   :  { %2149 = vrot.lane.b32.xlu1 %v3166_v37, %s6461_s17  ;;  %1171 = vst.msk [vmem:[#allocation3 + $0x10] sm:$0xff] %vm1168_vm4, %v981_v58 }
 0x11f   :  { %2533 = vrot.lane.b32.xlu0 %v7023_v12, %s6462_s18 }
 0x120   :  { %v2134_v32 = vpop.permute.xlu1 %2133 }
 0x121   :  { %2325 = vst.msk [vmem:[#allocation3 + $0x8] sm:$0xff] %vm2323_vm7, %v2134_v32  ;;  %v2518_v41 = vpop.permute.xlu0 %2517 }
 0x122   :  { %998 = vrot.lane.b32.xlu1 %v3166_v37, %s6458_s14  ;;  %2710 = vst.msk [vmem:[#allocation3] sm:$0xff] %vm2709_vm8, %v2518_v41  ;;  %v3172_v37 = vld [vmem:[#allocation2 + $0xca] sm:$0xff] }
 0x123   :  { %1381 = vrot.lane.b32.xlu0 %v7023_v12, %s6459_s15 }
 0x124   :  { %v983_v43 = vpop.permute.xlu1 %982 }
 0x125   :  { %1172 = vst.msk [vmem:[#allocation3 + $0x18] sm:$0xff] %vm1168_vm4, %v983_v43  ;;  %v1366_v44 = vpop.permute.xlu0 %1365 }
 0x126   :  { %2535 = vrot.lane.b32.xlu1 %v7025_v13, %s6462_s18  ;;  %1556 = vst.msk [vmem:[#allocation3 + $0x10] sm:$0xff] %vm1553_vm5, %v1366_v44 }
 0x127   :  { %2918 = vrot.lane.b32.xlu0 %v6983_v60, %s6463_s23 }
 0x128   :  { %v2520_v45 = vpop.permute.xlu1 %2519 }
 0x129   :  { %2711 = vst.msk [vmem:[#allocation3 + $0x8] sm:$0xff] %vm2709_vm8, %v2520_v45  ;;  %v2903_v47 = vpop.permute.xlu0 %2902 }
 0x12a   :  { %1383 = vrot.lane.b32.xlu1 %v7025_v13, %s6459_s15  ;;  %3095 = vst.msk [vmem:[#allocation3] sm:$0xff] %vm3094_vm9, %v2903_v47  ;;  %v2788_v47 = vld [vmem:[#allocation2 + $0xd9] sm:$0xff] }
 0x12b   :  { %1766 = vrot.lane.b32.xlu0 %v6983_v60, %s6460_s16 }
 0x12c   :  { %v1368_v12 = vpop.permute.xlu1 %1367 }
 0x12d   :  { %1557 = vst.msk [vmem:[#allocation3 + $0x18] sm:$0xff] %vm1553_vm5, %v1368_v12  ;;  %v1751_v49 = vpop.permute.xlu0 %1750 }
 0x12e   :  { %2920 = vrot.lane.b32.xlu1 %v6985_v61, %s6463_s23  ;;  %1941 = vst.msk [vmem:[#allocation3 + $0x10] sm:$0xff] %vm1938_vm6, %v1751_v49 }
 0x12f   :  { %3303 = vrot.lane.b32.xlu0 %v3167_v48, %s6464_s11 }
 0x130   :  { %v2905_v50 = vpop.permute.xlu1 %2904 }
 0x131   :  { %3096 = vst.msk [vmem:[#allocation3 + $0x8] sm:$0xff] %vm3094_vm9, %v2905_v50  ;;  %v3288_v13 = vpop.permute.xlu0 %3287  ;;  %v3173_v50 = vld [vmem:[#allocation2 + $0xda] sm:$0xff] }
 0x132   :  { %1768 = vrot.lane.b32.xlu1 %v1629_v2, %s6460_s16  ;;  %3480 = vst.msk [vmem:[#allocation3] sm:$0xff] %vm3479_vm10, %v3288_v13  ;;  %v2789_v2 = vld [vmem:[#allocation2 + $0xe1] sm:$0xff] }
 0x133   :  { %2151 = vrot.lane.b32.xlu0 %v3167_v48, %s6461_s17 }
 0x134   :  { %v1753_v60 = vpop.permute.xlu1 %1752 }
 0x135   :  { %1942 = vst.msk [vmem:[#allocation3 + $0x18] sm:$0xff] %vm1938_vm6, %v1753_v60  ;;  %v2136_v61 = vpop.permute.xlu0 %2135  ;;  %v3174_v60 = vld [vmem:[#allocation2 + $0xe2] sm:$0xff] }
 0x136   :  { %3305 = vrot.lane.b32.xlu1 %v3168_v51, %s6464_s11  ;;  %2326 = vst.msk [vmem:[#allocation3 + $0x10] sm:$0xff] %vm2323_vm7, %v2136_v61 }
 0x137   :  { %1000 = vrot.lane.b32.xlu0 %v3167_v48, %s6458_s14 }
 0x138   :  { %v3290_v5 = vpop.permute.xlu1 %3289 }
 0x139   :  { %3481 = vst.msk [vmem:[#allocation3 + $0x8] sm:$0xff] %vm3479_vm10, %v3290_v5  ;;  %v985_v52 = vpop.permute.xlu0 %984  ;;  %v3544_v33 = vld [vmem:[#allocation3] sm:$0xff] }
 0x13a   :  { %2153 = vrot.lane.b32.xlu1 %v3168_v51, %s6461_s17  ;;  %1173 = vst.msk [vmem:[#allocation3 + $0x20] sm:$0xff] %vm1168_vm4, %v985_v52  ;;  %6242 = vmatprep.mubr.msk.f32.mxu0 %vm3620_vm11, %v3544_v33 }
 0x13b   :  { %2537 = vrot.lane.b32.xlu0 %v7034_v14, %s6462_s18 }
 0x13c   :  { %v2138_v53 = vpop.permute.xlu1 %2137 }
 0x13d   :  { %2327 = vst.msk [vmem:[#allocation3 + $0x18] sm:$0xff] %vm2323_vm7, %v2138_v53  ;;  %v2522_v54 = vpop.permute.xlu0 %2521 }
 0x13e   :  { %1002 = vrot.lane.b32.xlu1 %v3168_v51, %s6458_s14  ;;  %2712 = vst.msk [vmem:[#allocation3 + $0x10] sm:$0xff] %vm2709_vm8, %v2522_v54 }
 0x13f   :  { %1385 = vrot.lane.b32.xlu0 %v7034_v14, %s6459_s15 }
 0x140   :  { %v987_v40 = vpop.permute.xlu1 %986  ;;  %v3545_v55 = vld [vmem:[#allocation3 + $0x8] sm:$0xff] }
 0x141   :  { %1174 = vst.msk [vmem:[#allocation3 + $0x28] sm:$0xff] %vm1168_vm4, %v987_v40  ;;  %6243 = vmatmul.mubr.msk.f32.vlgmr.msra.gmra.mxu0 %vm3620_vm11, %v3545_v55  ;;  %v1370_v1 = vpop.permute.xlu0 %1369 }
 0x142   :  { %2539 = vrot.lane.b32.xlu1 %v7036_v15, %s6462_s18  ;;  %1558 = vst.msk [vmem:[#allocation3 + $0x20] sm:$0xff] %vm1553_vm5, %v1370_v1  ;;  %v2790_v1 = vld [vmem:[#allocation2 + $0xf1] sm:$0xff] }
 0x143   :  { %2922 = vrot.lane.b32.xlu0 %v2784_v63, %s6463_s23 }
 0x144   :  { %v2524_v3 = vpop.permute.xlu1 %2523 }
 0x145   :  { %2713 = vst.msk [vmem:[#allocation3 + $0x18] sm:$0xff] %vm2709_vm8, %v2524_v3  ;;  %v2907_v7 = vpop.permute.xlu0 %2906 }
 0x146   :  { %1387 = vrot.lane.b32.xlu1 %v7036_v15, %s6459_s15  ;;  %3097 = vst.msk [vmem:[#allocation3 + $0x10] sm:$0xff] %vm3094_vm9, %v2907_v7 }
 0x147   :  { %1770 = vrot.lane.b32.xlu0 %v2784_v63, %s6460_s16 }
 0x148   :  { %v1372_v14 = vpop.permute.xlu1 %1371 }
 0x149   :  { %1559 = vst.msk [vmem:[#allocation3 + $0x28] sm:$0xff] %vm1553_vm5, %v1372_v14  ;;  %v1755_v6 = vpop.permute.xlu0 %1754  ;;  %v2791_v14 = vld [vmem:[#allocation2 + $0xf9] sm:$0xff] }
 0x14a   :  { %2924 = vrot.lane.b32.xlu1 %v2785_v28, %s6463_s23  ;;  %1943 = vst.msk [vmem:[#allocation3 + $0x20] sm:$0xff] %vm1938_vm6, %v1755_v6 }
 0x14b   :  { %3307 = vrot.lane.b32.xlu0 %v3169_v56, %s6464_s11 }
 0x14c   :  { %v2909_v30 = vpop.permute.xlu1 %2908 }
 0x14d   :  { %3098 = vst.msk [vmem:[#allocation3 + $0x18] sm:$0xff] %vm3094_vm9, %v2909_v30  ;;  %v3292_v15 = vpop.permute.xlu0 %3291 }
 0x14e   :  { %1772 = vrot.lane.b32.xlu1 %v2785_v28, %s6460_s16  ;;  %3482 = vst.msk [vmem:[#allocation3 + $0x10] sm:$0xff] %vm3479_vm10, %v3292_v15  ;;  %v3176_v15 = vld [vmem:[#allocation2 + $0xfa] sm:$0xff] }
 0x14f   :  { %2155 = vrot.lane.b32.xlu0 %v3169_v56, %s6461_s17 }
 0x150   :  { %v1757_v8 = vpop.permute.xlu1 %1756 }
 0x151   :  { %1944 = vst.msk [vmem:[#allocation3 + $0x28] sm:$0xff] %vm1938_vm6, %v1757_v8  ;;  %v2140_v10 = vpop.permute.xlu0 %2139 }
 0x152   :  { %3309 = vrot.lane.b32.xlu1 %v3170_v59, %s6464_s11  ;;  %2328 = vst.msk [vmem:[#allocation3 + $0x20] sm:$0xff] %vm2323_vm7, %v2140_v10 }
 0x153   :  { %1004 = vrot.lane.b32.xlu0 %v3169_v56, %s6458_s14  ;;  %v3175_v56 = vld [vmem:[#allocation2 + $0xf2] sm:$0xff] }
 0x154   :  { %v3294_v42 = vpop.permute.xlu1 %3293 }
 0x155   :  { %3483 = vst.msk [vmem:[#allocation3 + $0x18] sm:$0xff] %vm3479_vm10, %v3294_v42  ;;  %v989_v20 = vpop.permute.xlu0 %988  ;;  %v3546_v62 = vld [vmem:[#allocation3 + $0x10] sm:$0xff] }
 0x156   :  { %2157 = vrot.lane.b32.xlu1 %v3170_v59, %s6461_s17  ;;  %1175 = vst.msk [vmem:[#allocation3 + $0x30] sm:$0xff] %vm1168_vm4, %v989_v20  ;;  %6245 = vmatprep.mubr.msk.f32.mxu0 %vm3620_vm11, %v3546_v62 }
 0x157   :  { %2541 = vrot.lane.b32.xlu0 %v7038_v16, %s6462_s18 }
 0x158   :  { %v2142_v46 = vpop.permute.xlu1 %2141 }
 0x159   :  { %2329 = vst.msk [vmem:[#allocation3 + $0x28] sm:$0xff] %vm2323_vm7, %v2142_v46  ;;  %v2526_v25 = vpop.permute.xlu0 %2525 }
 0x15a   :  { %1006 = vrot.lane.b32.xlu1 %v3170_v59, %s6458_s14  ;;  %2714 = vst.msk [vmem:[#allocation3 + $0x20] sm:$0xff] %vm2709_vm8, %v2526_v25 }
 0x15b   :  { %1389 = vrot.lane.b32.xlu0 %v7038_v16, %s6459_s15 }
 0x15c   :  { %v991_v26 = vpop.permute.xlu1 %990  ;;  %v3547_v27 = vld [vmem:[#allocation3 + $0x18] sm:$0xff] }
 0x15d   :  { %1176 = vst.msk [vmem:[#allocation3 + $0x38] sm:$0xff] %vm1168_vm4, %v991_v26  ;;  %6246 = vmatmul.mubr.msk.f32.gmra.mxu0 %vm3620_vm11, %v3547_v27  ;;  %v1374_v29 = vpop.permute.xlu0 %1373  ;;  %v235_v27 = vld [vmem:[%s9557_s0 + $0xf0] sm:$0xff] }
 0x15e   :  { %2543 = vrot.lane.b32.xlu1 %v7047_v17, %s6462_s18  ;;  %1560 = vst.msk [vmem:[#allocation3 + $0x30] sm:$0xff] %vm1553_vm5, %v1374_v29 }
 0x15f   :  { %2926 = vrot.lane.b32.xlu0 %v2786_v0, %s6463_s23  ;;  %301 = vst.msk [vmem:[#allocation2 + $0x181] sm:$0xff] %vm50_vm0, %v235_v27 }
 0x160   :  { %v2528_v34 = vpop.permute.xlu1 %2527 }
 0x161   :  { %2715 = vst.msk [vmem:[#allocation3 + $0x28] sm:$0xff] %vm2709_vm8, %v2528_v34  ;;  %v2911_v9 = vpop.permute.xlu0 %2910  ;;  %v1254_v34 = vld [vmem:[#allocation2 + $0x110] sm:$0xff] }
 0x162   :  { %1391 = vrot.lane.b32.xlu1 %v7047_v17, %s6459_s15  ;;  %3099 = vst.msk [vmem:[#allocation3 + $0x20] sm:$0xff] %vm3094_vm9, %v2911_v9 }
 0x163   :  { %1774 = vrot.lane.b32.xlu0 %v2786_v0, %s6460_s16  ;;  %v2792_v0 = vld [vmem:[#allocation2 + $0x109] sm:$0xff] }
 0x164   :  { %v1376_v16 = vpop.permute.xlu1 %1375 }
 0x165   :  { %1561 = vst.msk [vmem:[#allocation3 + $0x38] sm:$0xff] %vm1553_vm5, %v1376_v16  ;;  %v1759_v36 = vpop.permute.xlu0 %1758 }
 0x166   :  { %2928 = vrot.lane.b32.xlu1 %v2787_v35, %s6463_s23  ;;  %1945 = vst.msk [vmem:[#allocation3 + $0x30] sm:$0xff] %vm1938_vm6, %v1759_v36 }
 0x167   :  { %3311 = vrot.lane.b32.xlu0 %v3171_v31, %s6464_s11 }
 0x168   :  { %v2913_v11 = vpop.permute.xlu1 %2912 }
 0x169   :  { %3100 = vst.msk [vmem:[#allocation3 + $0x28] sm:$0xff] %vm3094_vm9, %v2913_v11  ;;  %v3296_v17 = vpop.permute.xlu0 %3295 }
 0x16a   :  { %1776 = vrot.lane.b32.xlu1 %v2787_v35, %s6460_s16  ;;  %3484 = vst.msk [vmem:[#allocation3 + $0x20] sm:$0xff] %vm3479_vm10, %v3296_v17  ;;  %v2793_v35 = vld [vmem:[#allocation2 + $0x111] sm:$0xff] }
 0x16b   :  { %2159 = vrot.lane.b32.xlu0 %v3171_v31, %s6461_s17 }
 0x16c   :  { %v1761_v57 = vpop.permute.xlu1 %1760 }
 0x16d   :  { %1946 = vst.msk [vmem:[#allocation3 + $0x38] sm:$0xff] %vm1938_vm6, %v1761_v57  ;;  %v2144_v38 = vpop.permute.xlu0 %2143 }
 0x16e   :  { %3313 = vrot.lane.b32.xlu1 %v3172_v37, %s6464_s11  ;;  %2330 = vst.msk [vmem:[#allocation3 + $0x30] sm:$0xff] %vm2323_vm7, %v2144_v38 }
 0x16f   :  { %1008 = vrot.lane.b32.xlu0 %v3171_v31, %s6458_s14  ;;  %v3177_v31 = vld [vmem:[#allocation2 + $0x10a] sm:$0xff] }
 0x170   :  { %v3298_v39 = vpop.permute.xlu1 %3297 }
 0x171   :  { %3485 = vst.msk [vmem:[#allocation3 + $0x28] sm:$0xff] %vm3479_vm10, %v3298_v39  ;;  %v993_v58 = vpop.permute.xlu0 %992  ;;  %v3548_v32 = vld [vmem:[#allocation3 + $0x20] sm:$0xff] }
 0x172   :  { %2161 = vrot.lane.b32.xlu1 %v3172_v37, %s6461_s17  ;;  %1177 = vst.msk [vmem:[#allocation3 + $0x40] sm:$0xff] %vm1168_vm4, %v993_v58  ;;  %6248 = vmatprep.mubr.msk.f32.mxu0 %vm3620_vm11, %v3548_v32  ;;  %v2409_v58 = vld [vmem:[#allocation2 + $0x120] sm:$0xff] }
 0x173   :  { %2545 = vrot.lane.b32.xlu0 %v7049_v18, %s6462_s18 }
 0x174   :  { %v2146_v41 = vpop.permute.xlu1 %2145 }
 0x175   :  { %2331 = vst.msk [vmem:[#allocation3 + $0x38] sm:$0xff] %vm2323_vm7, %v2146_v41  ;;  %v2530_v43 = vpop.permute.xlu0 %2529 }
 0x176   :  { %1010 = vrot.lane.b32.xlu1 %v3172_v37, %s6458_s14  ;;  %2716 = vst.msk [vmem:[#allocation3 + $0x30] sm:$0xff] %vm2709_vm8, %v2530_v43  ;;  %v3178_v37 = vld [vmem:[#allocation2 + $0x112] sm:$0xff] }
 0x177   :  { %1393 = vrot.lane.b32.xlu0 %v7049_v18, %s6459_s15 }
 0x178   :  { %v995_v44 = vpop.permute.xlu1 %994  ;;  %v3549_v45 = vld [vmem:[#allocation3 + $0x28] sm:$0xff] }
 0x179   :  { %1178 = vst.msk [vmem:[#allocation3 + $0x48] sm:$0xff] %vm1168_vm4, %v995_v44  ;;  %6249 = vmatmul.mubr.msk.f32.gmra.mxu0 %vm3620_vm11, %v3549_v45  ;;  %v1378_v12 = vpop.permute.xlu0 %1377  ;;  %v2410_v45 = vld [vmem:[#allocation2 + $0x128] sm:$0xff] }
 0x17a   :  { %2547 = vrot.lane.b32.xlu1 %v7051_v19, %s6462_s18  ;;  %1562 = vst.msk [vmem:[#allocation3 + $0x40] sm:$0xff] %vm1553_vm5, %v1378_v12 }
 0x17b   :  { %2930 = vrot.lane.b32.xlu0 %v2788_v47, %s6463_s23 }
 0x17c   :  { %v2532_v48 = vpop.permute.xlu1 %2531 }
 0x17d   :  { %2717 = vst.msk [vmem:[#allocation3 + $0x38] sm:$0xff] %vm2709_vm8, %v2532_v48  ;;  %v2915_v49 = vpop.permute.xlu0 %2914  ;;  %v2794_v48 = vld [vmem:[#allocation2 + $0x121] sm:$0xff] }
 0x17e   :  { %1395 = vrot.lane.b32.xlu1 %v7051_v19, %s6459_s15  ;;  %3101 = vst.msk [vmem:[#allocation3 + $0x30] sm:$0xff] %vm3094_vm9, %v2915_v49 }
 0x17f   :  { %1778 = vrot.lane.b32.xlu0 %v2788_v47, %s6460_s16 }
 0x180   :  { %v1380_v18 = vpop.permute.xlu1 %1379 }
 0x181   :  { %1563 = vst.msk [vmem:[#allocation3 + $0x48] sm:$0xff] %vm1553_vm5, %v1380_v18  ;;  %v1763_v19 = vpop.permute.xlu0 %1762 }
 0x182   :  { %2932 = vrot.lane.b32.xlu1 %v2789_v2, %s6463_s23  ;;  %1947 = vst.msk [vmem:[#allocation3 + $0x40] sm:$0xff] %vm1938_vm6, %v1763_v19 }
 0x183   :  { %3315 = vrot.lane.b32.xlu0 %v3173_v50, %s6464_s11 }
 0x184   :  { %v2917_v13 = vpop.permute.xlu1 %2916 }
 0x185   :  { %3102 = vst.msk [vmem:[#allocation3 + $0x38] sm:$0xff] %vm3094_vm9, %v2917_v13  ;;  %v3300_v51 = vpop.permute.xlu0 %3299  ;;  %v3179_v13 = vld [vmem:[#allocation2 + $0x122] sm:$0xff] }
 0x186   :  { %1780 = vrot.lane.b32.xlu1 %v2789_v2, %s6460_s16  ;;  %3486 = vst.msk [vmem:[#allocation3 + $0x30] sm:$0xff] %vm3479_vm10, %v3300_v51 }
 0x187   :  { %2163 = vrot.lane.b32.xlu0 %v3173_v50, %s6461_s17 }
 0x188   :  { %v1765_v61 = vpop.permute.xlu1 %1764 }
 0x189   :  { %1948 = vst.msk [vmem:[#allocation3 + $0x48] sm:$0xff] %vm1938_vm6, %v1765_v61  ;;  %v2148_v5 = vpop.permute.xlu0 %2147 }
 0x18a   :  { %3317 = vrot.lane.b32.xlu1 %v3174_v60, %s6464_s11  ;;  %2332 = vst.msk [vmem:[#allocation3 + $0x40] sm:$0xff] %vm2323_vm7, %v2148_v5  ;;  %v3180_v5 = vld [vmem:[#allocation2 + $0x12a] sm:$0xff] }
 0x18b   :  { %1012 = vrot.lane.b32.xlu0 %v3173_v50, %s6458_s14  ;;  %v2795_v50 = vld [vmem:[#allocation2 + $0x129] sm:$0xff] }
 0x18c   :  { %v3302_v52 = vpop.permute.xlu1 %3301 }
 0x18d   :  { %3487 = vst.msk [vmem:[#allocation3 + $0x38] sm:$0xff] %vm3479_vm10, %v3302_v52  ;;  %v997_v33 = vpop.permute.xlu0 %996  ;;  %v3550_v53 = vld [vmem:[#allocation3 + $0x30] sm:$0xff] }
 0x18e   :  { %2165 = vrot.lane.b32.xlu1 %v3174_v60, %s6461_s17  ;;  %1179 = vst.msk [vmem:[#allocation3 + $0x50] sm:$0xff] %vm1168_vm4, %v997_v33  ;;  %6251 = vmatprep.mubr.msk.f32.mxu0 %vm3620_vm11, %v3550_v53 }
 0x18f   :  { %2549 = vrot.lane.b32.xlu0 %v7059_v21, %s6462_s18 }
 0x190   :  { %v2150_v54 = vpop.permute.xlu1 %2149 }
 0x191   :  { %2333 = vst.msk [vmem:[#allocation3 + $0x48] sm:$0xff] %vm2323_vm7, %v2150_v54  ;;  %v2534_v40 = vpop.permute.xlu0 %2533  ;;  %v2411_v54 = vld [vmem:[#allocation2 + $0x138] sm:$0xff] }
 0x192   :  { %1014 = vrot.lane.b32.xlu1 %v3174_v60, %s6458_s14  ;;  %2718 = vst.msk [vmem:[#allocation3 + $0x40] sm:$0xff] %vm2709_vm8, %v2534_v40 }
 0x193   :  { %1397 = vrot.lane.b32.xlu0 %v7059_v21, %s6459_s15 }
 0x194   :  { %v999_v55 = vpop.permute.xlu1 %998  ;;  %v3551_v63 = vld [vmem:[#allocation3 + $0x38] sm:$0xff] }
 0x195   :  { %1180 = vst.msk [vmem:[#allocation3 + $0x58] sm:$0xff] %vm1168_vm4, %v999_v55  ;;  %6252 = vmatmul.mubr.msk.f32.gmra.mxu0 %vm3620_vm11, %v3551_v63  ;;  %v1382_v3 = vpop.permute.xlu0 %1381 }
 0x196   :  { %2551 = vrot.lane.b32.xlu1 %v7061_v22, %s6462_s18  ;;  %1564 = vst.msk [vmem:[#allocation3 + $0x50] sm:$0xff] %vm1553_vm5, %v1382_v3  ;;  %v2412_v3 = vld [vmem:[#allocation2 + $0x140] sm:$0xff] }
 0x197   :  { %2934 = vrot.lane.b32.xlu0 %v2790_v1, %s6463_s23 }
 0x198   :  { %v2536_v7 = vpop.permute.xlu1 %2535 }
 0x199   :  { %2719 = vst.msk [vmem:[#allocation3 + $0x48] sm:$0xff] %vm2709_vm8, %v2536_v7  ;;  %v2919_v28 = vpop.permute.xlu0 %2918 }
 0x19a   :  { %1399 = vrot.lane.b32.xlu1 %v7061_v22, %s6459_s15  ;;  %3103 = vst.msk [vmem:[#allocation3 + $0x40] sm:$0xff] %vm3094_vm9, %v2919_v28 }
 0x19b   :  { %1782 = vrot.lane.b32.xlu0 %v2790_v1, %s6460_s16 }
 0x19c   :  { %v1384_v21 = vpop.permute.xlu1 %1383 }
 0x19d   :  { %1565 = vst.msk [vmem:[#allocation3 + $0x58] sm:$0xff] %vm1553_vm5, %v1384_v21  ;;  %v1767_v6 = vpop.permute.xlu0 %1766 }
 0x19e   :  { %2936 = vrot.lane.b32.xlu1 %v2791_v14, %s6463_s23  ;;  %1949 = vst.msk [vmem:[#allocation3 + $0x50] sm:$0xff] %vm1938_vm6, %v1767_v6 }
 0x19f   :  { %3319 = vrot.lane.b32.xlu0 %v3175_v56, %s6464_s11 }
 0x1a0   :  { %v2921_v30 = vpop.permute.xlu1 %2920 }
 0x1a1   :  { %3104 = vst.msk [vmem:[#allocation3 + $0x48] sm:$0xff] %vm3094_vm9, %v2921_v30  ;;  %v3304_v22 = vpop.permute.xlu0 %3303  ;;  %v2797_v30 = vld [vmem:[#allocation2 + $0x141] sm:$0xff] }
 0x1a2   :  { %1784 = vrot.lane.b32.xlu1 %v2791_v14, %s6460_s16  ;;  %3488 = vst.msk [vmem:[#allocation3 + $0x40] sm:$0xff] %vm3479_vm10, %v3304_v22  ;;  %v2796_v14 = vld [vmem:[#allocation2 + $0x139] sm:$0xff] }
 0x1a3   :  { %2167 = vrot.lane.b32.xlu0 %v3175_v56, %s6461_s17 }
 0x1a4   :  { %v1769_v59 = vpop.permute.xlu1 %1768 }
 0x1a5   :  { %1950 = vst.msk [vmem:[#allocation3 + $0x58] sm:$0xff] %vm1938_vm6, %v1769_v59  ;;  %v2152_v8 = vpop.permute.xlu0 %2151 }
 0x1a6   :  { %3321 = vrot.lane.b32.xlu1 %v3176_v15, %s6464_s11  ;;  %2334 = vst.msk [vmem:[#allocation3 + $0x50] sm:$0xff] %vm2323_vm7, %v2152_v8 }
 0x1a7   :  { %1016 = vrot.lane.b32.xlu0 %v3175_v56, %s6458_s14 }
 0x1a8   :  { %v3306_v10 = vpop.permute.xlu1 %3305 }
 0x1a9   :  { %3489 = vst.msk [vmem:[#allocation3 + $0x48] sm:$0xff] %vm3479_vm10, %v3306_v10  ;;  %v1001_v42 = vpop.permute.xlu0 %1000  ;;  %v3552_v20 = vld [vmem:[#allocation3 + $0x40] sm:$0xff] }
 0x1aa   :  { %2169 = vrot.lane.b32.xlu1 %v3176_v15, %s6461_s17  ;;  %1181 = vst.msk [vmem:[#allocation3 + $0x60] sm:$0xff] %vm1168_vm4, %v1001_v42  ;;  %6254 = vmatprep.mubr.msk.f32.mxu0 %vm3620_vm11, %v3552_v20  ;;  %v3182_v42 = vld [vmem:[#allocation2 + $0x142] sm:$0xff] }
 0x1ab   :  { %2553 = vrot.lane.b32.xlu0 %v7067_v23, %s6462_s18 }
 0x1ac   :  { %v2154_v62 = vpop.permute.xlu1 %2153 }
 0x1ad   :  { %2335 = vst.msk [vmem:[#allocation3 + $0x58] sm:$0xff] %vm2323_vm7, %v2154_v62  ;;  %v2538_v46 = vpop.permute.xlu0 %2537 }
 0x1ae   :  { %1018 = vrot.lane.b32.xlu1 %v3176_v15, %s6458_s14  ;;  %2720 = vst.msk [vmem:[#allocation3 + $0x50] sm:$0xff] %vm2709_vm8, %v2538_v46  ;;  %v3181_v15 = vld [vmem:[#allocation2 + $0x13a] sm:$0xff] }
 0x1af   :  { %1401 = vrot.lane.b32.xlu0 %v7067_v23, %s6459_s15 }
 0x1b0   :  { %v1003_v25 = vpop.permute.xlu1 %1002  ;;  %v3553_v26 = vld [vmem:[#allocation3 + $0x48] sm:$0xff] }
 0x1b1   :  { %1182 = vst.msk [vmem:[#allocation3 + $0x68] sm:$0xff] %vm1168_vm4, %v1003_v25  ;;  %6255 = vmatmul.mubr.msk.f32.gmra.mxu0 %vm3620_vm11, %v3553_v26  ;;  %v1386_v29 = vpop.permute.xlu0 %1385  ;;  %v2413_v25 = vld [vmem:[#allocation2 + $0x150] sm:$0xff] }
 0x1b2   :  { %2555 = vrot.lane.b32.xlu1 %v7069_v24, %s6462_s18  ;;  %1566 = vst.msk [vmem:[#allocation3 + $0x60] sm:$0xff] %vm1553_vm5, %v1386_v29  ;;  %v236_v24 = vld [vmem:[%s9557_s0 + $0xf8] sm:$0xff] }
 0x1b3   :  { %2938 = vrot.lane.b32.xlu0 %v2792_v0, %s6463_s23  ;;  %302 = vst.msk [vmem:[#allocation2 + $0x189] sm:$0xff] %vm50_vm0, %v236_v24 }
 0x1b4   :  { %v2540_v23 = vpop.permute.xlu1 %2539 }
 0x1b5   :  { %2721 = vst.msk [vmem:[#allocation3 + $0x58] sm:$0xff] %vm2709_vm8, %v2540_v23  ;;  %v2923_v9 = vpop.permute.xlu0 %2922 }
 0x1b6   :  { %1403 = vrot.lane.b32.xlu1 %v1254_v34, %s6459_s15  ;;  %3105 = vst.msk [vmem:[#allocation3 + $0x50] sm:$0xff] %vm3094_vm9, %v2923_v9 }
 0x1b7   :  { %1786 = vrot.lane.b32.xlu0 %v2792_v0, %s6460_s16  ;;  %v7654_v0 = vld [vmem:[%s9559_s2] ss:$0 sm:$0xff] }
 0x1b8   :  { %v1388_v16 = vpop.permute.xlu1 %1387 }
 0x1b9   :  { %1567 = vst.msk [vmem:[#allocation3 + $0x68] sm:$0xff] %vm1553_vm5, %v1388_v16  ;;  %v1771_v36 = vpop.permute.xlu0 %1770 }
 0x1ba   :  { %2940 = vrot.lane.b32.xlu1 %v2793_v35, %s6463_s23  ;;  %1951 = vst.msk [vmem:[#allocation3 + $0x60] sm:$0xff] %vm1938_vm6, %v1771_v36 }
 0x1bb   :  { %3323 = vrot.lane.b32.xlu0 %v3177_v31, %s6464_s11 }
 0x1bc   :  { %v2925_v11 = vpop.permute.xlu1 %2924 }
 0x1bd   :  { %3106 = vst.msk [vmem:[#allocation3 + $0x58] sm:$0xff] %vm3094_vm9, %v2925_v11  ;;  %v3308_v17 = vpop.permute.xlu0 %3307  ;;  %v2798_v11 = vld [vmem:[#allocation2 + $0x151] sm:$0xff] }
 0x1be   :  { %1788 = vrot.lane.b32.xlu1 %v2793_v35, %s6460_s16  ;;  %3490 = vst.msk [vmem:[#allocation3 + $0x50] sm:$0xff] %vm3479_vm10, %v3308_v17  ;;  %v2414_v35 = vld [vmem:[#allocation2 + $0x158] sm:$0xff] }
 0x1bf   :  { %2171 = vrot.lane.b32.xlu0 %v3177_v31, %s6461_s17 }
 0x1c0   :  { %v1773_v57 = vpop.permute.xlu1 %1772 }
 0x1c1   :  { %1952 = vst.msk [vmem:[#allocation3 + $0x68] sm:$0xff] %vm1938_vm6, %v1773_v57  ;;  %v2156_v38 = vpop.permute.xlu0 %2155 }
 0x1c2   :  { %3325 = vrot.lane.b32.xlu1 %v3178_v37, %s6464_s11  ;;  %2336 = vst.msk [vmem:[#allocation3 + $0x60] sm:$0xff] %vm2323_vm7, %v2156_v38  ;;  %v2799_v38 = vld [vmem:[#allocation2 + $0x159] sm:$0xff] }
 0x1c3   :  { %1020 = vrot.lane.b32.xlu0 %v3177_v31, %s6458_s14 }
 0x1c4   :  { %v3310_v39 = vpop.permute.xlu1 %3309 }
 0x1c5   :  { %3491 = vst.msk [vmem:[#allocation3 + $0x58] sm:$0xff] %vm3479_vm10, %v3310_v39  ;;  %v1005_v32 = vpop.permute.xlu0 %1004  ;;  %v3554_v41 = vld [vmem:[#allocation3 + $0x50] sm:$0xff] }
 0x1c6   :  { %2173 = vrot.lane.b32.xlu1 %v3178_v37, %s6461_s17  ;;  %1183 = vst.msk [vmem:[#allocation3 + $0x70] sm:$0xff] %vm1168_vm4, %v1005_v32  ;;  %6257 = vmatprep.mubr.msk.f32.mxu0 %vm3620_vm11, %v3554_v41 }
 0x1c7   :  { %2557 = vrot.lane.b32.xlu0 %v2409_v58, %s6462_s18 }
 0x1c8   :  { %v2158_v43 = vpop.permute.xlu1 %2157 }
 0x1c9   :  { %2337 = vst.msk [vmem:[#allocation3 + $0x68] sm:$0xff] %vm2323_vm7, %v2158_v43  ;;  %v2542_v44 = vpop.permute.xlu0 %2541 }
 0x1ca   :  { %1022 = vrot.lane.b32.xlu1 %v3178_v37, %s6458_s14  ;;  %2722 = vst.msk [vmem:[#allocation3 + $0x60] sm:$0xff] %vm2709_vm8, %v2542_v44  ;;  %v3184_v44 = vld [vmem:[#allocation2 + $0x15a] sm:$0xff] }
 0x1cb   :  { %1405 = vrot.lane.b32.xlu0 %v2409_v58, %s6459_s15  ;;  %v3183_v58 = vld [vmem:[#allocation2 + $0x152] sm:$0xff] }
 0x1cc   :  { %v1007_v47 = vpop.permute.xlu1 %1006  ;;  %v3555_v12 = vld [vmem:[#allocation3 + $0x58] sm:$0xff] }
 0x1cd   :  { %1184 = vst.msk [vmem:[#allocation3 + $0x78] sm:$0xff] %vm1168_vm4, %v1007_v47  ;;  %6258 = vmatmul.mubr.msk.f32.gmra.mxu0 %vm3620_vm11, %v3555_v12  ;;  %v1390_v49 = vpop.permute.xlu0 %1389 }
 0x1ce   :  { %2559 = vrot.lane.b32.xlu1 %v2410_v45, %s6462_s18  ;;  %1568 = vst.msk [vmem:[#allocation3 + $0x70] sm:$0xff] %vm1553_vm5, %v1390_v49 }
 0x1cf   :  { %2942 = vrot.lane.b32.xlu0 %v2794_v48, %s6463_s23 }
 0x1d0   :  { %v2544_v2 = vpop.permute.xlu1 %2543 }
 0x1d1   :  { %2723 = vst.msk [vmem:[#allocation3 + $0x68] sm:$0xff] %vm2709_vm8, %v2544_v2  ;;  %v2927_v18 = vpop.permute.xlu0 %2926 }
 0x1d2   :  { %1407 = vrot.lane.b32.xlu1 %v2410_v45, %s6459_s15  ;;  %3107 = vst.msk [vmem:[#allocation3 + $0x60] sm:$0xff] %vm3094_vm9, %v2927_v18 }
 0x1d3   :  { %1790 = vrot.lane.b32.xlu0 %v2794_v48, %s6460_s16  ;;  %v2415_v48 = vld [vmem:[#allocation2 + $0x168] sm:$0xff] }
 0x1d4   :  { %v1392_v19 = vpop.permute.xlu1 %1391 }
 0x1d5   :  { %1569 = vst.msk [vmem:[#allocation3 + $0x78] sm:$0xff] %vm1553_vm5, %v1392_v19  ;;  %v1775_v51 = vpop.permute.xlu0 %1774 }
 0x1d6   :  { %2944 = vrot.lane.b32.xlu1 %v2795_v50, %s6463_s23  ;;  %1953 = vst.msk [vmem:[#allocation3 + $0x70] sm:$0xff] %vm1938_vm6, %v1775_v51 }
 0x1d7   :  { %3327 = vrot.lane.b32.xlu0 %v3179_v13, %s6464_s11 }
 0x1d8   :  { %v2929_v60 = vpop.permute.xlu1 %2928 }
 0x1d9   :  { %3108 = vst.msk [vmem:[#allocation3 + $0x68] sm:$0xff] %vm3094_vm9, %v2929_v60  ;;  %v3312_v61 = vpop.permute.xlu0 %3311  ;;  %v2416_v60 = vld [vmem:[#allocation2 + $0x170] sm:$0xff] }
 0x1da   :  { %1792 = vrot.lane.b32.xlu1 %v2795_v50, %s6460_s16  ;;  %3492 = vst.msk [vmem:[#allocation3 + $0x60] sm:$0xff] %vm3479_vm10, %v3312_v61 }
 0x1db   :  { %2175 = vrot.lane.b32.xlu0 %v3179_v13, %s6461_s17 }
 0x1dc   :  { %v1777_v52 = vpop.permute.xlu1 %1776 }
 0x1dd   :  { %1954 = vst.msk [vmem:[#allocation3 + $0x78] sm:$0xff] %vm1938_vm6, %v1777_v52  ;;  %v2160_v33 = vpop.permute.xlu0 %2159 }
 0x1de   :  { %3329 = vrot.lane.b32.xlu1 %v3180_v5, %s6464_s11  ;;  %2338 = vst.msk [vmem:[#allocation3 + $0x70] sm:$0xff] %vm2323_vm7, %v2160_v33  ;;  %v2800_v33 = vld [vmem:[#allocation2 + $0x169] sm:$0xff] }
 0x1df   :  { %1024 = vrot.lane.b32.xlu0 %v3179_v13, %s6458_s14 }
 0x1e0   :  { %v3314_v53 = vpop.permute.xlu1 %3313 }
 0x1e1   :  { %3493 = vst.msk [vmem:[#allocation3 + $0x68] sm:$0xff] %vm3479_vm10, %v3314_v53  ;;  %v1009_v40 = vpop.permute.xlu0 %1008  ;;  %v3556_v55 = vld [vmem:[#allocation3 + $0x60] sm:$0xff] }
 0x1e2   :  { %2177 = vrot.lane.b32.xlu1 %v3180_v5, %s6461_s17  ;;  %1185 = vst.msk [vmem:[#allocation3 + $0x80] sm:$0xff] %vm1168_vm4, %v1009_v40  ;;  %6260 = vmatprep.mubr.msk.f32.mxu0 %vm3620_vm11, %v3556_v55 }
 0x1e3   :  { %2561 = vrot.lane.b32.xlu0 %v2411_v54, %s6462_s18 }
 0x1e4   :  { %v2162_v63 = vpop.permute.xlu1 %2161 }
 0x1e5   :  { %2339 = vst.msk [vmem:[#allocation3 + $0x78] sm:$0xff] %vm2323_vm7, %v2162_v63  ;;  %v2546_v1 = vpop.permute.xlu0 %2545 }
 0x1e6   :  { %1026 = vrot.lane.b32.xlu1 %v3180_v5, %s6458_s14  ;;  %2724 = vst.msk [vmem:[#allocation3 + $0x70] sm:$0xff] %vm2709_vm8, %v2546_v1  ;;  %v2801_v1 = vld [vmem:[#allocation2 + $0x171] sm:$0xff] }
 0x1e7   :  { %1409 = vrot.lane.b32.xlu0 %v2411_v54, %s6459_s15 }
 0x1e8   :  { %v1011_v7 = vpop.permute.xlu1 %1010  ;;  %v3557_v28 = vld [vmem:[#allocation3 + $0x68] sm:$0xff] }
 0x1e9   :  { %1186 = vst.msk [vmem:[#allocation3 + $0x88] sm:$0xff] %vm1168_vm4, %v1011_v7  ;;  %6261 = vmatmul.mubr.msk.f32.gmra.mxu0 %vm3620_vm11, %v3557_v28  ;;  %v1394_v21 = vpop.permute.xlu0 %1393 }
 0x1ea   :  { %2563 = vrot.lane.b32.xlu1 %v2412_v3, %s6462_s18  ;;  %1570 = vst.msk [vmem:[#allocation3 + $0x80] sm:$0xff] %vm1553_vm5, %v1394_v21 }
 0x1eb   :  { %2946 = vrot.lane.b32.xlu0 %v2796_v14, %s6463_s23 }
 0x1ec   :  { %v2548_v56 = vpop.permute.xlu1 %2547 }
 0x1ed   :  { %2725 = vst.msk [vmem:[#allocation3 + $0x78] sm:$0xff] %vm2709_vm8, %v2548_v56  ;;  %v2931_v6 = vpop.permute.xlu0 %2930  ;;  %v3185_v56 = vld [vmem:[#allocation2 + $0x16a] sm:$0xff] }
 0x1ee   :  { %1411 = vrot.lane.b32.xlu1 %v2412_v3, %s6459_s15  ;;  %3109 = vst.msk [vmem:[#allocation3 + $0x70] sm:$0xff] %vm3094_vm9, %v2931_v6 }
 0x1ef   :  { %1794 = vrot.lane.b32.xlu0 %v2796_v14, %s6460_s16 }
 0x1f0   :  { %v1396_v22 = vpop.permute.xlu1 %1395 }
 0x1f1   :  { %1571 = vst.msk [vmem:[#allocation3 + $0x88] sm:$0xff] %vm1553_vm5, %v1396_v22  ;;  %v1779_v59 = vpop.permute.xlu0 %1778 }
 0x1f2   :  { %2948 = vrot.lane.b32.xlu1 %v2797_v30, %s6463_s23  ;;  %1955 = vst.msk [vmem:[#allocation3 + $0x80] sm:$0xff] %vm1938_vm6, %v1779_v59 }
 0x1f3   :  { %3331 = vrot.lane.b32.xlu0 %v3181_v15, %s6464_s11 }
 0x1f4   :  { %v2933_v8 = vpop.permute.xlu1 %2932 }
 0x1f5   :  { %3110 = vst.msk [vmem:[#allocation3 + $0x78] sm:$0xff] %vm3094_vm9, %v2933_v8  ;;  %v3316_v10 = vpop.permute.xlu0 %3315  ;;  %v7724_v8 = vld [vmem:[%s9561_s4] ss:$0 sm:$0xff] }
 0x1f6   :  { %1796 = vrot.lane.b32.xlu1 %v2797_v30, %s6460_s16  ;;  %3494 = vst.msk [vmem:[#allocation3 + $0x70] sm:$0xff] %vm3479_vm10, %v3316_v10 }
 0x1f7   :  { %2179 = vrot.lane.b32.xlu0 %v3181_v15, %s6461_s17 }
 0x1f8   :  { %v1781_v20 = vpop.permute.xlu1 %1780 }
 0x1f9   :  { %1956 = vst.msk [vmem:[#allocation3 + $0x88] sm:$0xff] %vm1938_vm6, %v1781_v20  ;;  %v2164_v62 = vpop.permute.xlu0 %2163 }
 0x1fa   :  { %3333 = vrot.lane.b32.xlu1 %v3182_v42, %s6464_s11  ;;  %2340 = vst.msk [vmem:[#allocation3 + $0x80] sm:$0xff] %vm2323_vm7, %v2164_v62 }
 0x1fb   :  { %1028 = vrot.lane.b32.xlu0 %v3181_v15, %s6458_s14  ;;  %v7716_v15 = vld [vmem:[%s9560_s3] ss:$0 sm:$0xff] }
 0x1fc   :  { %v3318_v46 = vpop.permute.xlu1 %3317 }
 0x1fd   :  { %3495 = vst.msk [vmem:[#allocation3 + $0x78] sm:$0xff] %vm3479_vm10, %v3318_v46  ;;  %v1013_v26 = vpop.permute.xlu0 %1012  ;;  %v3558_v27 = vld [vmem:[#allocation3 + $0x70] sm:$0xff] }
 0x1fe   :  { %2181 = vrot.lane.b32.xlu1 %v3182_v42, %s6461_s17  ;;  %1187 = vst.msk [vmem:[#allocation3 + $0x90] sm:$0xff] %vm1168_vm4, %v1013_v26  ;;  %6263 = vmatprep.mubr.msk.f32.mxu0 %vm3620_vm11, %v3558_v27  ;;  %v2417_v27 = vld [vmem:[#allocation2 + $0x180] sm:$0xff] }
 0x1ff   :  { %2565 = vrot.lane.b32.xlu0 %v2413_v25, %s6462_s18 }
 0x200   :  { %v2166_v29 = vpop.permute.xlu1 %2165 }
 0x201   :  { %2341 = vst.msk [vmem:[#allocation3 + $0x88] sm:$0xff] %vm2323_vm7, %v2166_v29  ;;  %v6244_v34 = vpop.f32.mrf.mxu0  ;;  %v2550_v24 = vpop.permute.xlu0 %2549 }
 0x202   :  { %v3889_v23 = vadd.f32 %v6244_v34, %v7654_v0  ;;  %1030 = vrot.lane.b32.xlu1 %v3182_v42, %s6458_s14  ;;  %2726 = vst.msk [vmem:[#allocation3 + $0x80] sm:$0xff] %vm2709_vm8, %v2550_v24  ;;  %v3186_v42 = vld [vmem:[#allocation2 + $0x172] sm:$0xff] }
 0x203   :  { %v3883_v9 = vpop.f32.mrf.mxu0  ;;  %1413 = vrot.lane.b32.xlu0 %v2413_v25, %s6459_s15 }
 0x204   :  { %4204 = vst.msk [vmem:[#allocation4 + $0x8] sm:$0xff] %vm160_vm12, %v3889_v23  ;;  %v3884_v16 = vadd.f32 %v7654_v0, %v3883_v9  ;;  %v1015_v31 = vpop.permute.xlu1 %1014  ;;  %v3559_v36 = vld [vmem:[#allocation3 + $0x78] sm:$0xff] }
 0x205   :  { %1188 = vst.msk [vmem:[#allocation3 + $0x98] sm:$0xff] %vm1168_vm4, %v1015_v31  ;;  %6264 = vmatmul.mubr.msk.f32.gmra.mxu0 %vm3620_vm11, %v3559_v36  ;;  %v1398_v17 = vpop.permute.xlu0 %1397  ;;  %v2418_v31 = vld [vmem:[#allocation2 + $0x188] sm:$0xff] }
 0x206   :  { %4203 = vst.msk [vmem:[#allocation4] sm:$0xff] %vm160_vm12, %v3884_v16  ;;  %2567 = vrot.lane.b32.xlu1 %v2414_v35, %s6462_s18 }
 0x207   :  { %1572 = vst.msk [vmem:[#allocation3 + $0x90] sm:$0xff] %vm1553_vm5, %v1398_v17  ;;  %2950 = vrot.lane.b32.xlu0 %v2798_v11, %s6463_s23 }
 0x208   :  { %v2552_v37 = vpop.permute.xlu1 %2551 }
 0x209   :  { %2727 = vst.msk [vmem:[#allocation3 + $0x88] sm:$0xff] %vm2709_vm8, %v2552_v37  ;;  %v2935_v57 = vpop.permute.xlu0 %2934 }
 0x20a   :  { %1415 = vrot.lane.b32.xlu1 %v2414_v35, %s6459_s15  ;;  %3111 = vst.msk [vmem:[#allocation3 + $0x80] sm:$0xff] %vm3094_vm9, %v2935_v57 }
 0x20b   :  { %1798 = vrot.lane.b32.xlu0 %v2798_v11, %s6460_s16 }
 0x20c   :  { %v1400_v39 = vpop.permute.xlu1 %1399 }
 0x20d   :  { %1573 = vst.msk [vmem:[#allocation3 + $0x98] sm:$0xff] %vm1553_vm5, %v1400_v39  ;;  %v1783_v32 = vpop.permute.xlu0 %1782  ;;  %v4267_v40 = vld [vmem:[#allocation4] ss:$2 sm:$0xff]  ;;  %v4331_v55 = vld [vmem:[#allocation4 + $0x1] ss:$2 sm:$0xff] }
 0x20e   :  { %2952 = vrot.lane.b32.xlu1 %v2799_v38, %s6463_s23  ;;  %1957 = vst.msk [vmem:[#allocation3 + $0x90] sm:$0xff] %vm1938_vm6, %v1783_v32  ;;  %v4394_v14 = vmax.f32 %v4267_v40, %v4331_v55  ;;  %v2802_v39 = vld [vmem:[#allocation2 + $0x181] sm:$0xff] }
 0x20f   :  { %3335 = vrot.lane.b32.xlu0 %v3183_v58, %s6464_s11  ;;  %v2420_v55 = vld [vmem:[#allocation2 + $0x1a0] sm:$0xff] }
 0x210   :  { %v2937_v41 = vpop.permute.xlu1 %2936 }
 0x211   :  { %3112 = vst.msk [vmem:[#allocation3 + $0x88] sm:$0xff] %vm3094_vm9, %v2937_v41  ;;  %v3320_v43 = vpop.permute.xlu0 %3319 }
 0x212   :  { %1800 = vrot.lane.b32.xlu1 %v2799_v38, %s6460_s16  ;;  %3496 = vst.msk [vmem:[#allocation3 + $0x80] sm:$0xff] %vm3479_vm10, %v3320_v43  ;;  %v2803_v43 = vld [vmem:[#allocation2 + $0x189] sm:$0xff] }
 0x213   :  { %2183 = vrot.lane.b32.xlu0 %v3183_v58, %s6461_s17 }
 0x214   :  { %v1785_v45 = vpop.permute.xlu1 %1784 }
 0x215   :  { %1958 = vst.msk [vmem:[#allocation3 + $0x98] sm:$0xff] %vm1938_vm6, %v1785_v45  ;;  %v2168_v47 = vpop.permute.xlu0 %2167  ;;  %v3187_v45 = vld [vmem:[#allocation2 + $0x182] sm:$0xff] }
 0x216   :  { %3337 = vrot.lane.b32.xlu1 %v3184_v44, %s6464_s11  ;;  %2342 = vst.msk [vmem:[#allocation3 + $0x90] sm:$0xff] %vm2323_vm7, %v2168_v47 }
 0x217   :  { %1032 = vrot.lane.b32.xlu0 %v3183_v58, %s6458_s14 }
 0x218   :  { %v3322_v12 = vpop.permute.xlu1 %3321 }
 0x219   :  { %3497 = vst.msk [vmem:[#allocation3 + $0x88] sm:$0xff] %vm3479_vm10, %v3322_v12  ;;  %v1017_v49 = vpop.permute.xlu0 %1016  ;;  %v3560_v2 = vld [vmem:[#allocation3 + $0x80] sm:$0xff] }
 0x21a   :  { %2185 = vrot.lane.b32.xlu1 %v3184_v44, %s6461_s17  ;;  %1189 = vst.msk [vmem:[#allocation3 + $0xa0] sm:$0xff] %vm1168_vm4, %v1017_v49  ;;  %6266 = vmatprep.mubr.msk.f32.mxu0 %vm3620_vm11, %v3560_v2  ;;  %v3188_v49 = vld [vmem:[#allocation2 + $0x18a] sm:$0xff] }
 0x21b   :  { %2569 = vrot.lane.b32.xlu0 %v2415_v48, %s6462_s18 }
 0x21c   :  { %v2170_v18 = vpop.permute.xlu1 %2169 }
 0x21d   :  { %2343 = vst.msk [vmem:[#allocation3 + $0x98] sm:$0xff] %vm2323_vm7, %v2170_v18  ;;  %v6247_v50 = vpop.f32.mrf.mxu0  ;;  %v2554_v13 = vpop.permute.xlu0 %2553  ;;  %v880_v18 = vld [vmem:[#allocation2 + $0x1b2] sm:$0xff] }
 0x21e   :  { %v3899_v19 = vadd.f32 %v6247_v50, %v7654_v0  ;;  %1034 = vrot.lane.b32.xlu1 %v3184_v44, %s6458_s14  ;;  %2728 = vst.msk [vmem:[#allocation3 + $0x90] sm:$0xff] %vm2709_vm8, %v2554_v13  ;;  %v2419_v13 = vld [vmem:[#allocation2 + $0x198] sm:$0xff] }
 0x21f   :  { %v3893_v51 = vpop.f32.mrf.mxu0  ;;  %1417 = vrot.lane.b32.xlu0 %v2415_v48, %s6459_s15 }
 0x220   :  { %4206 = vst.msk [vmem:[#allocation4 + $0x18] sm:$0xff] %vm160_vm12, %v3899_v19  ;;  %v3894_v61 = vadd.f32 %v7654_v0, %v3893_v51  ;;  %v1019_v5 = vpop.permute.xlu1 %1018  ;;  %v3561_v52 = vld [vmem:[#allocation3 + $0x88] sm:$0xff] }
 0x221   :  { %1190 = vst.msk [vmem:[#allocation3 + $0xa8] sm:$0xff] %vm1168_vm4, %v1019_v5  ;;  %6267 = vmatmul.mubr.msk.f32.gmra.mxu0 %vm3620_vm11, %v3561_v52  ;;  %v1402_v53 = vpop.permute.xlu0 %1401 }
 0x222   :  { %4205 = vst.msk [vmem:[#allocation4 + $0x10] sm:$0xff] %vm160_vm12, %v3894_v61  ;;  %2571 = vrot.lane.b32.xlu1 %v2416_v60, %s6462_s18  ;;  %v881_v61 = vld [vmem:[#allocation2 + $0x1ba] sm:$0xff] }
 0x223   :  { %1574 = vst.msk [vmem:[#allocation3 + $0xa0] sm:$0xff] %vm1553_vm5, %v1402_v53  ;;  %2954 = vrot.lane.b32.xlu0 %v2800_v33, %s6463_s23  ;;  %v1265_v53 = vld [vmem:[#allocation2 + $0x1c8] sm:$0xff] }
 0x224   :  { %v2556_v54 = vpop.permute.xlu1 %2555 }
 0x225   :  { %2729 = vst.msk [vmem:[#allocation3 + $0x98] sm:$0xff] %vm2709_vm8, %v2556_v54  ;;  %v2939_v63 = vpop.permute.xlu0 %2938 }
 0x226   :  { %1419 = vrot.lane.b32.xlu1 %v2416_v60, %s6459_s15  ;;  %3113 = vst.msk [vmem:[#allocation3 + $0x90] sm:$0xff] %vm3094_vm9, %v2939_v63 }
 0x227   :  { %1802 = vrot.lane.b32.xlu0 %v2800_v33, %s6460_s16 }
 0x228   :  { %v1404_v3 = vpop.permute.xlu1 %1403 }
 0x229   :  { %v4269_v7 = vld [vmem:[#allocation4 + $0x10] ss:$2 sm:$0xff]  ;;  %v4333_v28 = vld [vmem:[#allocation4 + $0x11] ss:$2 sm:$0xff]  ;;  %1575 = vst.msk [vmem:[#allocation3 + $0xa8] sm:$0xff] %vm1553_vm5, %v1404_v3  ;;  %v1787_v6 = vpop.permute.xlu0 %1786 }
 0x22a   :  { %v4395_v21 = vmax.f32 %v4269_v7, %v4333_v28  ;;  %2956 = vrot.lane.b32.xlu1 %v2801_v1, %s6463_s23  ;;  %1959 = vst.msk [vmem:[#allocation3 + $0xa0] sm:$0xff] %vm1938_vm6, %v1787_v6  ;;  %v2804_v7 = vld [vmem:[#allocation2 + $0x199] sm:$0xff] }
 0x22b   :  { %3339 = vrot.lane.b32.xlu0 %v3185_v56, %s6464_s11 }
 0x22c   :  { %v4426_v30 = vmax.f32 %v4394_v14, %v4395_v21  ;;  %v2941_v22 = vpop.permute.xlu1 %2940  ;;  %v1266_v14 = vld [vmem:[#allocation2 + $0x1d0] sm:$0xff] }
 0x22d   :  { %3114 = vst.msk [vmem:[#allocation3 + $0x98] sm:$0xff] %vm3094_vm9, %v2941_v22  ;;  %v3324_v10 = vpop.permute.xlu0 %3323 }
 0x22e   :  { %v4442_v59 = vmax.f32 %v4426_v30, 0.0  ;;  %1804 = vrot.lane.b32.xlu1 %v2801_v1, %s6460_s16  ;;  %3498 = vst.msk [vmem:[#allocation3 + $0x90] sm:$0xff] %vm3479_vm10, %v3324_v10 }
 0x22f   :  { %2187 = vrot.lane.b32.xlu0 %v3185_v56, %s6461_s17 }
 0x230   :  { %v4465_v20 = vmul.f32 %v7716_v15, %v4442_v59  ;;  %v1789_v62 = vpop.permute.xlu1 %1788  ;;  %v2805_v59 = vld [vmem:[#allocation2 + $0x1a1] sm:$0xff] }
 0x231   :  { %1960 = vst.msk [vmem:[#allocation3 + $0xa8] sm:$0xff] %vm1938_vm6, %v1789_v62  ;;  %v2172_v25 = vpop.permute.xlu0 %2171 }
 0x232   :  { %v4488_v46 = vadd.f32 %v7724_v8, %v4465_v20  ;;  %3341 = vrot.lane.b32.xlu1 %v3186_v42, %s6464_s11  ;;  %2344 = vst.msk [vmem:[#allocation3 + $0xa0] sm:$0xff] %vm2323_vm7, %v2172_v25  ;;  %v3189_v25 = vld [vmem:[#allocation2 + $0x19a] sm:$0xff] }
 0x233   :  { %1036 = vrot.lane.b32.xlu0 %v3185_v56, %s6458_s14  ;;  %v1650_v56 = vld [vmem:[#allocation2 + $0x1c9] sm:$0xff] }
 0x234   :  { %v3326_v26 = vpop.permute.xlu1 %3325  ;;  %4505 = vst.msk [vmem:[#allocation5 + $0x11] sm:$0xff] %vm160_vm12, %v4488_v46 }
 0x235   :  { %3499 = vst.msk [vmem:[#allocation3 + $0x98] sm:$0xff] %vm3479_vm10, %v3326_v26  ;;  %v1021_v29 = vpop.permute.xlu0 %1020  ;;  %v3562_v34 = vld [vmem:[#allocation3 + $0x90] sm:$0xff] }
 0x236   :  { %2189 = vrot.lane.b32.xlu1 %v3186_v42, %s6461_s17  ;;  %1191 = vst.msk [vmem:[#allocation3 + $0xb0] sm:$0xff] %vm1168_vm4, %v1021_v29  ;;  %6269 = vmatprep.mubr.msk.f32.mxu0 %vm3620_vm11, %v3562_v34 }
 0x237   :  { %2573 = vrot.lane.b32.xlu0 %v2417_v27, %s6462_s18 }
 0x238   :  { %v2174_v23 = vpop.permute.xlu1 %2173 }
 0x239   :  { %2345 = vst.msk [vmem:[#allocation3 + $0xa8] sm:$0xff] %vm2323_vm7, %v2174_v23  ;;  %v6250_v24 = vpop.f32.mrf.mxu0  ;;  %v2558_v35 = vpop.permute.xlu0 %2557 }
 0x23a   :  { %v3909_v9 = vadd.f32 %v6250_v24, %v7654_v0  ;;  %1038 = vrot.lane.b32.xlu1 %v3186_v42, %s6458_s14  ;;  %2730 = vst.msk [vmem:[#allocation3 + $0xa0] sm:$0xff] %vm2709_vm8, %v2558_v35  ;;  %v2035_v24 = vld [vmem:[#allocation2 + $0x1ca] sm:$0xff]  ;;  %v3190_v35 = vld [vmem:[#allocation2 + $0x1a2] sm:$0xff] }
 0x23b   :  { %v3903_v16 = vpop.f32.mrf.mxu0  ;;  %v7743_v36 = vld [vmem:[#allocation5 + $0x10] sm:$0xff]  ;;  %1421 = vrot.lane.b32.xlu0 %v2417_v27, %s6459_s15 }
 0x23c   :  { %v7745_v11 = vld [vmem:[#allocation5 + $0x12] sm:$0xff]  ;;  %4208 = vst.msk [vmem:[#allocation4 + $0x28] sm:$0xff] %vm160_vm12, %v3909_v9  ;;  %v3904_v17 = vadd.f32 %v7654_v0, %v3903_v16  ;;  %v1023_v37 = vpop.permute.xlu1 %1022  ;;  %4538 = vst.msk [vmem:[#allocation6 + $0x28] sm:$0xff] %vm160_vm12, %v7743_v36 }
 0x23d   :  { %v3563_v57 = vld [vmem:[#allocation3 + $0x98] sm:$0xff]  ;;  %4667 = vst.msk [vmem:[#allocation6 + $0x30] sm:$0xff] %vm160_vm12, %v7745_v11  ;;  %v1406_v58 = vpop.permute.xlu0 %1405 }
 0x23e   :  { %v4778_v38 = vld [vmem:[#allocation5 + $0x11] sm:$0xff]  ;;  %1192 = vst.msk [vmem:[#allocation3 + $0xb8] sm:$0xff] %vm1168_vm4, %v1023_v37  ;;  %6270 = vmatmul.mubr.msk.f32.gmra.mxu0 %vm3620_vm11, %v3563_v57  ;;  %2575 = vrot.lane.b32.xlu1 %v2418_v31, %s6462_s18 }
 0x23f   :  { %4794 = vst.msk [vmem:[#allocation6 + $0x10] sm:$0xff] %vm160_vm12, %v4778_v38  ;;  %4207 = vst.msk [vmem:[#allocation4 + $0x20] sm:$0xff] %vm160_vm12, %v3904_v17  ;;  %2958 = vrot.lane.b32.xlu0 %v2802_v39, %s6463_s23  ;;  %v1651_v27 = vld [vmem:[#allocation2 + $0x1d1] sm:$0xff] }
 0x240   :  { %1576 = vst.msk [vmem:[#allocation3 + $0xb0] sm:$0xff] %vm1553_vm5, %v1406_v58  ;;  %v2560_v32 = vpop.permute.xlu1 %2559  ;;  %v2036_v57 = vld [vmem:[#allocation2 + $0x1d2] sm:$0xff] }
 0x241   :  { %2731 = vst.msk [vmem:[#allocation3 + $0xa8] sm:$0xff] %vm2709_vm8, %v2560_v32  ;;  %v2943_v41 = vpop.permute.xlu0 %2942 }
 0x242   :  { %1423 = vrot.lane.b32.xlu1 %v2418_v31, %s6459_s15  ;;  %3115 = vst.msk [vmem:[#allocation3 + $0xa0] sm:$0xff] %vm3094_vm9, %v2943_v41 }
 0x243   :  { %1806 = vrot.lane.b32.xlu0 %v2802_v39, %s6460_s16  ;;  %v2421_v39 = vld [vmem:[#allocation2 + $0x1e0] sm:$0xff] }
 0x244   :  { %v1408_v44 = vpop.permute.xlu1 %1407 }
 0x245   :  { %1577 = vst.msk [vmem:[#allocation3 + $0xb8] sm:$0xff] %vm1553_vm5, %v1408_v44  ;;  %v1791_v47 = vpop.permute.xlu0 %1790 }
 0x246   :  { %2960 = vrot.lane.b32.xlu1 %v2803_v43, %s6463_s23  ;;  %1961 = vst.msk [vmem:[#allocation3 + $0xb0] sm:$0xff] %vm1938_vm6, %v1791_v47  ;;  %v4271_v6 = vld [vmem:[#allocation4 + $0x20] ss:$2 sm:$0xff]  ;;  %v4335_v30 = vld [vmem:[#allocation4 + $0x21] ss:$2 sm:$0xff] }
 0x247   :  { %3343 = vrot.lane.b32.xlu0 %v3187_v45, %s6464_s11  ;;  %v4396_v62 = vmax.f32 %v4271_v6, %v4335_v30 }
 0x248   :  { %v2945_v12 = vpop.permute.xlu1 %2944 }
 0x249   :  { %3116 = vst.msk [vmem:[#allocation3 + $0xa8] sm:$0xff] %vm3094_vm9, %v2945_v12  ;;  %v3328_v48 = vpop.permute.xlu0 %3327  ;;  %v2422_v12 = vld [vmem:[#allocation2 + $0x1e8] sm:$0xff] }
 0x24a   :  { %1808 = vrot.lane.b32.xlu1 %v2803_v43, %s6460_s16  ;;  %3500 = vst.msk [vmem:[#allocation3 + $0xa0] sm:$0xff] %vm3479_vm10, %v3328_v48 }
 0x24b   :  { %2191 = vrot.lane.b32.xlu0 %v3187_v45, %s6461_s17 }
 0x24c   :  { %v1793_v2 = vpop.permute.xlu1 %1792 }
 0x24d   :  { %1962 = vst.msk [vmem:[#allocation3 + $0xb8] sm:$0xff] %vm1938_vm6, %v1793_v2  ;;  %v2176_v50 = vpop.permute.xlu0 %2175 }
 0x24e   :  { %3345 = vrot.lane.b32.xlu1 %v3188_v49, %s6464_s11  ;;  %2346 = vst.msk [vmem:[#allocation3 + $0xb0] sm:$0xff] %vm2323_vm7, %v2176_v50 }
 0x24f   :  { %1040 = vrot.lane.b32.xlu0 %v880_v18, %s6458_s14 }
 0x250   :  { %v3330_v19 = vpop.permute.xlu1 %3329 }
 0x251   :  { %3501 = vst.msk [vmem:[#allocation3 + $0xa8] sm:$0xff] %vm3479_vm10, %v3330_v19  ;;  %v1025_v51 = vpop.permute.xlu0 %1024  ;;  %v3564_v60 = vld [vmem:[#allocation3 + $0xa0] sm:$0xff] }
 0x252   :  { %2193 = vrot.lane.b32.xlu1 %v3188_v49, %s6461_s17  ;;  %1193 = vst.msk [vmem:[#allocation3 + $0xc0] sm:$0xff] %vm1168_vm4, %v1025_v51  ;;  %6272 = vmatprep.mubr.msk.f32.mxu0 %vm3620_vm11, %v3564_v60  ;;  %v2806_v51 = vld [vmem:[#allocation2 + $0x1e1] sm:$0xff] }
 0x253   :  { %2577 = vrot.lane.b32.xlu0 %v2419_v13, %s6462_s18 }
 0x254   :  { %v2178_v5 = vpop.permute.xlu1 %2177 }
 0x255   :  { %2347 = vst.msk [vmem:[#allocation3 + $0xb8] sm:$0xff] %vm2323_vm7, %v2178_v5  ;;  %v6253_v52 = vpop.f32.mrf.mxu0  ;;  %v2562_v54 = vpop.permute.xlu0 %2561  ;;  %v250_v5 = vld [vmem:[%s9557_s0 + $0x168] sm:$0xff] }
 0x256   :  { %v3919_v33 = vadd.f32 %v6253_v52, %v7654_v0  ;;  %1042 = vrot.lane.b32.xlu1 %v881_v61, %s6458_s14  ;;  %2732 = vst.msk [vmem:[#allocation3 + $0xb0] sm:$0xff] %vm2709_vm8, %v2562_v54  ;;  %v3191_v54 = vld [vmem:[#allocation2 + $0x1e2] sm:$0xff] }
 0x257   :  { %v3913_v40 = vpop.f32.mrf.mxu0  ;;  %1425 = vrot.lane.b32.xlu0 %v1265_v53, %s6459_s15  ;;  %316 = vst.msk [vmem:[#allocation2 + $0x261] sm:$0xff] %vm50_vm0, %v250_v5 }
 0x258   :  { %4210 = vst.msk [vmem:[#allocation4 + $0x38] sm:$0xff] %vm160_vm12, %v3919_v33  ;;  %v3914_v63 = vadd.f32 %v7654_v0, %v3913_v40  ;;  %v1027_v1 = vpop.permute.xlu1 %1026  ;;  %v3565_v3 = vld [vmem:[#allocation3 + $0xa8] sm:$0xff] }
 0x259   :  { %1194 = vst.msk [vmem:[#allocation3 + $0xc8] sm:$0xff] %vm1168_vm4, %v1027_v1  ;;  %6273 = vmatmul.mubr.msk.f32.gmra.mxu0 %vm3620_vm11, %v3565_v3  ;;  %v1410_v28 = vpop.permute.xlu0 %1409  ;;  %v2807_v33 = vld [vmem:[#allocation2 + $0x1e9] sm:$0xff] }
 0x25a   :  { %4209 = vst.msk [vmem:[#allocation4 + $0x30] sm:$0xff] %vm160_vm12, %v3914_v63  ;;  %2579 = vrot.lane.b32.xlu1 %v2420_v55, %s6462_s18  ;;  %v3192_v3 = vld [vmem:[#allocation2 + $0x1ea] sm:$0xff] }
 0x25b   :  { %1578 = vst.msk [vmem:[#allocation3 + $0xc0] sm:$0xff] %vm1553_vm5, %v1410_v28  ;;  %2962 = vrot.lane.b32.xlu0 %v2804_v7, %s6463_s23 }
 0x25c   :  { %v2564_v21 = vpop.permute.xlu1 %2563 }
 0x25d   :  { %2733 = vst.msk [vmem:[#allocation3 + $0xb8] sm:$0xff] %vm2709_vm8, %v2564_v21  ;;  %v2947_v22 = vpop.permute.xlu0 %2946  ;;  %v2423_v21 = vld [vmem:[#allocation2 + $0x1f8] sm:$0xff] }
 0x25e   :  { %1427 = vrot.lane.b32.xlu1 %v1266_v14, %s6459_s15  ;;  %3117 = vst.msk [vmem:[#allocation3 + $0xb0] sm:$0xff] %vm3094_vm9, %v2947_v22  ;;  %v7861_v63 = vld [vmem:[#allocation2 + $0x260] sm:$0xff] }
 0x25f   :  { %1810 = vrot.lane.b32.xlu0 %v1650_v56, %s6460_s16  ;;  %446 = vst.msk [vmem:[#allocation3 + $0x178] sm:$0xff] %vm50_vm0, %v7861_v63 }
 0x260   :  { %v1412_v10 = vpop.permute.xlu1 %1411 }
 0x261   :  { %v4273_v42 = vld [vmem:[#allocation4 + $0x30] ss:$2 sm:$0xff]  ;;  %v4337_v20 = vld [vmem:[#allocation4 + $0x31] ss:$2 sm:$0xff]  ;;  %1579 = vst.msk [vmem:[#allocation3 + $0xc8] sm:$0xff] %vm1553_vm5, %v1412_v10  ;;  %v1795_v26 = vpop.permute.xlu0 %1794 }
 0x262   :  { %v4397_v46 = vmax.f32 %v4273_v42, %v4337_v20  ;;  %2964 = vrot.lane.b32.xlu1 %v2805_v59, %s6463_s23  ;;  %1963 = vst.msk [vmem:[#allocation3 + $0xc0] sm:$0xff] %vm1938_vm6, %v1795_v26  ;;  %v2424_v20 = vld [vmem:[#allocation2 + $0x200] sm:$0xff]  ;;  %v251_v26 = vld [vmem:[%s9557_s0 + $0x170] sm:$0xff] }
 0x263   :  { %3347 = vrot.lane.b32.xlu0 %v3189_v25, %s6464_s11  ;;  %317 = vst.msk [vmem:[#allocation2 + $0x271] sm:$0xff] %vm50_vm0, %v251_v26  ;;  %v254_v26 = vld [vmem:[%s9557_s0 + $0x188] sm:$0xff] }
 0x264   :  { %v4427_v29 = vmax.f32 %v4396_v62, %v4397_v46  ;;  %v2949_v34 = vpop.permute.xlu1 %2948  ;;  %320 = vst.msk [vmem:[#allocation2 + $0x291] sm:$0xff] %vm50_vm0, %v254_v26 }
 0x265   :  { %3118 = vst.msk [vmem:[#allocation3 + $0xb8] sm:$0xff] %vm3094_vm9, %v2949_v34  ;;  %v3332_v9 = vpop.permute.xlu0 %3331 }
 0x266   :  { %v4443_v23 = vmax.f32 %v4427_v29, 0.0  ;;  %1812 = vrot.lane.b32.xlu1 %v1651_v27, %s6460_s16  ;;  %3502 = vst.msk [vmem:[#allocation3 + $0xb0] sm:$0xff] %vm3479_vm10, %v3332_v9  ;;  %v2808_v27 = vld [vmem:[#allocation2 + $0x1f9] sm:$0xff] }
 0x267   :  { %2195 = vrot.lane.b32.xlu0 %v2035_v24, %s6461_s17 }
 0x268   :  { %v4466_v16 = vmul.f32 %v7716_v15, %v4443_v23  ;;  %v1797_v31 = vpop.permute.xlu1 %1796 }
 0x269   :  { %1964 = vst.msk [vmem:[#allocation3 + $0xc8] sm:$0xff] %vm1938_vm6, %v1797_v31  ;;  %v2180_v37 = vpop.permute.xlu0 %2179  ;;  %v252_v31 = vld [vmem:[%s9557_s0 + $0x178] sm:$0xff] }
 0x26a   :  { %v4489_v17 = vadd.f32 %v7724_v8, %v4466_v16  ;;  %3349 = vrot.lane.b32.xlu1 %v3190_v35, %s6464_s11  ;;  %2348 = vst.msk [vmem:[#allocation3 + $0xc0] sm:$0xff] %vm2323_vm7, %v2180_v37  ;;  %v2809_v35 = vld [vmem:[#allocation2 + $0x201] sm:$0xff] }
 0x26b   :  { %1044 = vrot.lane.b32.xlu0 %v2035_v24, %s6458_s14  ;;  %318 = vst.msk [vmem:[#allocation2 + $0x279] sm:$0xff] %vm50_vm0, %v252_v31 }
 0x26c   :  { %v3334_v38 = vpop.permute.xlu1 %3333  ;;  %4506 = vst.msk [vmem:[#allocation5 + $0x21] sm:$0xff] %vm160_vm12, %v4489_v17 }
 0x26d   :  { %3503 = vst.msk [vmem:[#allocation3 + $0xb8] sm:$0xff] %vm3479_vm10, %v3334_v38  ;;  %v1029_v58 = vpop.permute.xlu0 %1028  ;;  %v3566_v32 = vld [vmem:[#allocation3 + $0xb0] sm:$0xff] }
 0x26e   :  { %2197 = vrot.lane.b32.xlu1 %v2036_v57, %s6461_s17  ;;  %1195 = vst.msk [vmem:[#allocation3 + $0xd0] sm:$0xff] %vm1168_vm4, %v1029_v58  ;;  %6275 = vmatprep.mubr.msk.f32.mxu0 %vm3620_vm11, %v3566_v32  ;;  %v3193_v58 = vld [vmem:[#allocation2 + $0x1fa] sm:$0xff] }
 0x26f   :  { %2581 = vrot.lane.b32.xlu0 %v2421_v39, %s6462_s18 }
 0x270   :  { %v2182_v41 = vpop.permute.xlu1 %2181 }
 0x271   :  { %2349 = vst.msk [vmem:[#allocation3 + $0xc8] sm:$0xff] %vm2323_vm7, %v2182_v41  ;;  %v6256_v43 = vpop.f32.mrf.mxu0  ;;  %v2566_v45 = vpop.permute.xlu0 %2565 }
 0x272   :  { %v3929_v44 = vadd.f32 %v6256_v43, %v7654_v0  ;;  %1046 = vrot.lane.b32.xlu1 %v2036_v57, %s6458_s14  ;;  %2734 = vst.msk [vmem:[#allocation3 + $0xc0] sm:$0xff] %vm2709_vm8, %v2566_v45  ;;  %v7902_v57 = vld [vmem:[#allocation2 + $0x270] sm:$0xff] }
 0x273   :  { %v3923_v47 = vpop.f32.mrf.mxu0  ;;  %v7823_v48 = vld [vmem:[#allocation5 + $0x20] sm:$0xff]  ;;  %1429 = vrot.lane.b32.xlu0 %v2421_v39, %s6459_s15  ;;  %447 = vst.msk [vmem:[#allocation3 + $0x180] sm:$0xff] %vm50_vm0, %v7902_v57 }
 0x274   :  { %v7825_v49 = vld [vmem:[#allocation5 + $0x22] sm:$0xff]  ;;  %4212 = vst.msk [vmem:[#allocation4 + $0x48] sm:$0xff] %vm160_vm12, %v3929_v44  ;;  %v3924_v2 = vadd.f32 %v7654_v0, %v3923_v47  ;;  %v1031_v18 = vpop.permute.xlu1 %1030  ;;  %v3567_v50 = vld [vmem:[#allocation3 + $0xb8] sm:$0xff]  ;;  %4539 = vst.msk [vmem:[#allocation6 + $0x50] sm:$0xff] %vm160_vm12, %v7823_v48 }
 0x275   :  { %5051 = vst.msk [vmem:[#allocation6 + $0x20] sm:$0xff] %vm160_vm12, %v7825_v49  ;;  %4668 = vst.msk [vmem:[#allocation6 + $0x58] sm:$0xff] %vm160_vm12, %v7825_v49  ;;  %v7836_v19 = vld [vmem:[#allocation5 + $0x21] sm:$0xff]  ;;  %6276 = vmatmul.mubr.msk.f32.gmra.mxu0 %vm3620_vm11, %v3567_v50  ;;  %v1414_v60 = vpop.permute.xlu0 %1413 }
 0x276   :  { %v4907_v13 = vld [vmem:[#allocation5 + $0x20] sm:$0xff]  ;;  %1196 = vst.msk [vmem:[#allocation3 + $0xd8] sm:$0xff] %vm1168_vm4, %v1031_v18  ;;  %2583 = vrot.lane.b32.xlu1 %v2422_v12, %s6462_s18  ;;  %v7914_v18 = vld [vmem:[#allocation2 + $0x278] sm:$0xff] }
 0x277   :  { %4795 = vst.msk [vmem:[#allocation6 + $0x38] sm:$0xff] %vm160_vm12, %v7836_v19  ;;  %4923 = vst.msk [vmem:[#allocation6 + $0x18] sm:$0xff] %vm160_vm12, %v4907_v13  ;;  %2966 = vrot.lane.b32.xlu0 %v2806_v51, %s6463_s23  ;;  %v3194_v47 = vld [vmem:[#allocation2 + $0x202] sm:$0xff] }
 0x278   :  { %4211 = vst.msk [vmem:[#allocation4 + $0x40] sm:$0xff] %vm160_vm12, %v3924_v2  ;;  %v2568_v61 = vpop.permute.xlu1 %2567 }
 0x279   :  { %1580 = vst.msk [vmem:[#allocation3 + $0xd0] sm:$0xff] %vm1553_vm5, %v1414_v60  ;;  %v2951_v52 = vpop.permute.xlu0 %2950  ;;  %v2425_v60 = vld [vmem:[#allocation2 + $0x210] sm:$0xff] }
 0x27a   :  { %2735 = vst.msk [vmem:[#allocation3 + $0xc8] sm:$0xff] %vm2709_vm8, %v2568_v61  ;;  %1431 = vrot.lane.b32.xlu1 %v2422_v12, %s6459_s15 }
 0x27b   :  { %3119 = vst.msk [vmem:[#allocation3 + $0xc0] sm:$0xff] %vm3094_vm9, %v2951_v52  ;;  %1814 = vrot.lane.b32.xlu0 %v2806_v51, %s6460_s16 }
 0x27c   :  { %v1416_v53 = vpop.permute.xlu1 %1415  ;;  %448 = vst.msk [vmem:[#allocation3 + $0x188] sm:$0xff] %vm50_vm0, %v7914_v18 }
 0x27d   :  { %1581 = vst.msk [vmem:[#allocation3 + $0xd8] sm:$0xff] %vm1553_vm5, %v1416_v53  ;;  %v1799_v40 = vpop.permute.xlu0 %1798 }
 0x27e   :  { %2968 = vrot.lane.b32.xlu1 %v2807_v33, %s6463_s23  ;;  %1965 = vst.msk [vmem:[#allocation3 + $0xd0] sm:$0xff] %vm1938_vm6, %v1799_v40 }
 0x27f   :  { %3351 = vrot.lane.b32.xlu0 %v3191_v54, %s6464_s11  ;;  %v4275_v23 = vld [vmem:[#allocation4 + $0x40] ss:$2 sm:$0xff]  ;;  %v4339_v24 = vld [vmem:[#allocation4 + $0x41] ss:$2 sm:$0xff] }
 0x280   :  { %v2953_v55 = vpop.permute.xlu1 %2952  ;;  %v4398_v38 = vmax.f32 %v4275_v23, %v4339_v24 }
 0x281   :  { %3120 = vst.msk [vmem:[#allocation3 + $0xc8] sm:$0xff] %vm3094_vm9, %v2953_v55  ;;  %v3336_v1 = vpop.permute.xlu0 %3335  ;;  %v2426_v55 = vld [vmem:[#allocation2 + $0x218] sm:$0xff] }
 0x282   :  { %1816 = vrot.lane.b32.xlu1 %v2807_v33, %s6460_s16  ;;  %3504 = vst.msk [vmem:[#allocation3 + $0xc0] sm:$0xff] %vm3479_vm10, %v3336_v1 }
 0x283   :  { %2199 = vrot.lane.b32.xlu0 %v3191_v54, %s6461_s17 }
 0x284   :  { %v1801_v7 = vpop.permute.xlu1 %1800 }
 0x285   :  { %1966 = vst.msk [vmem:[#allocation3 + $0xd8] sm:$0xff] %vm1938_vm6, %v1801_v7  ;;  %v2184_v28 = vpop.permute.xlu0 %2183 }
 0x286   :  { %3353 = vrot.lane.b32.xlu1 %v3192_v3, %s6464_s11  ;;  %2350 = vst.msk [vmem:[#allocation3 + $0xd0] sm:$0xff] %vm2323_vm7, %v2184_v28 }
 0x287   :  { %1048 = vrot.lane.b32.xlu0 %v3191_v54, %s6458_s14 }
 0x288   :  { %v3338_v14 = vpop.permute.xlu1 %3337 }
 0x289   :  { %3505 = vst.msk [vmem:[#allocation3 + $0xc8] sm:$0xff] %vm3479_vm10, %v3338_v14  ;;  %v1033_v56 = vpop.permute.xlu0 %1032  ;;  %v3568_v6 = vld [vmem:[#allocation3 + $0xc0] sm:$0xff] }
 0x28a   :  { %2201 = vrot.lane.b32.xlu1 %v3192_v3, %s6461_s17  ;;  %1197 = vst.msk [vmem:[#allocation3 + $0xe0] sm:$0xff] %vm1168_vm4, %v1033_v56  ;;  %6278 = vmatprep.mubr.msk.f32.mxu0 %vm3620_vm11, %v3568_v6  ;;  %v2810_v6 = vld [vmem:[#allocation2 + $0x211] sm:$0xff] }
 0x28b   :  { %2585 = vrot.lane.b32.xlu0 %v2423_v21, %s6462_s18 }
 0x28c   :  { %v2186_v30 = vpop.permute.xlu1 %2185 }
 0x28d   :  { %2351 = vst.msk [vmem:[#allocation3 + $0xd8] sm:$0xff] %vm2323_vm7, %v2186_v30  ;;  %v6259_v22 = vpop.f32.mrf.mxu0  ;;  %v2570_v10 = vpop.permute.xlu0 %2569 }
 0x28e   :  { %v3939_v59 = vadd.f32 %v6259_v22, %v7654_v0  ;;  %1050 = vrot.lane.b32.xlu1 %v3192_v3, %s6458_s14  ;;  %2736 = vst.msk [vmem:[#allocation3 + $0xd0] sm:$0xff] %vm2709_vm8, %v2570_v10 }
 0x28f   :  { %v3933_v42 = vpop.f32.mrf.mxu0  ;;  %1433 = vrot.lane.b32.xlu0 %v2423_v21, %s6459_s15 }
 0x290   :  { %4214 = vst.msk [vmem:[#allocation4 + $0x58] sm:$0xff] %vm160_vm12, %v3939_v59  ;;  %v3934_v62 = vadd.f32 %v7654_v0, %v3933_v42  ;;  %v1035_v46 = vpop.permute.xlu1 %1034  ;;  %v3569_v25 = vld [vmem:[#allocation3 + $0xc8] sm:$0xff]  ;;  %v253_v59 = vld [vmem:[%s9557_s0 + $0x180] sm:$0xff] }
 0x291   :  { %1198 = vst.msk [vmem:[#allocation3 + $0xe8] sm:$0xff] %vm1168_vm4, %v1035_v46  ;;  %6279 = vmatmul.mubr.msk.f32.gmra.mxu0 %vm3620_vm11, %v3569_v25  ;;  %v1418_v29 = vpop.permute.xlu0 %1417  ;;  %v2811_v42 = vld [vmem:[#allocation2 + $0x219] sm:$0xff] }
 0x292   :  { %4213 = vst.msk [vmem:[#allocation4 + $0x50] sm:$0xff] %vm160_vm12, %v3934_v62  ;;  %2587 = vrot.lane.b32.xlu1 %v2424_v20, %s6462_s18  ;;  %v3195_v62 = vld [vmem:[#allocation2 + $0x212] sm:$0xff] }
 0x293   :  { %1582 = vst.msk [vmem:[#allocation3 + $0xe0] sm:$0xff] %vm1553_vm5, %v1418_v29  ;;  %2970 = vrot.lane.b32.xlu0 %v2808_v27, %s6463_s23 }
 0x294   :  { %v2572_v34 = vpop.permute.xlu1 %2571  ;;  %319 = vst.msk [vmem:[#allocation2 + $0x289] sm:$0xff] %vm50_vm0, %v253_v59 }
 0x295   :  { %2737 = vst.msk [vmem:[#allocation3 + $0xd8] sm:$0xff] %vm2709_vm8, %v2572_v34  ;;  %v2955_v9 = vpop.permute.xlu0 %2954  ;;  %v3196_v34 = vld [vmem:[#allocation2 + $0x21a] sm:$0xff] }
 0x296   :  { %1435 = vrot.lane.b32.xlu1 %v2424_v20, %s6459_s15  ;;  %3121 = vst.msk [vmem:[#allocation3 + $0xd0] sm:$0xff] %vm3094_vm9, %v2955_v9 }
 0x297   :  { %1818 = vrot.lane.b32.xlu0 %v2808_v27, %s6460_s16 }
 0x298   :  { %v1420_v16 = vpop.permute.xlu1 %1419 }
 0x299   :  { %v4277_v17 = vld [vmem:[#allocation4 + $0x50] ss:$2 sm:$0xff]  ;;  %v4341_v37 = vld [vmem:[#allocation4 + $0x51] ss:$2 sm:$0xff]  ;;  %1583 = vst.msk [vmem:[#allocation3 + $0xe8] sm:$0xff] %vm1553_vm5, %v1420_v16  ;;  %v1803_v32 = vpop.permute.xlu0 %1802  ;;  %v2427_v16 = vld [vmem:[#allocation2 + $0x228] sm:$0xff] }
 0x29a   :  { %v4399_v39 = vmax.f32 %v4277_v17, %v4341_v37  ;;  %2972 = vrot.lane.b32.xlu1 %v2809_v35, %s6463_s23  ;;  %1967 = vst.msk [vmem:[#allocation3 + $0xe0] sm:$0xff] %vm1938_vm6, %v1803_v32 }
 0x29b   :  { %3355 = vrot.lane.b32.xlu0 %v3193_v58, %s6464_s11  ;;  %v7974_v27 = vld [vmem:[#allocation2 + $0x288] sm:$0xff] }
 0x29c   :  { %v4428_v41 = vmax.f32 %v4398_v38, %v4399_v39  ;;  %v2957_v43 = vpop.permute.xlu1 %2956  ;;  %449 = vst.msk [vmem:[#allocation3 + $0x190] sm:$0xff] %vm50_vm0, %v7974_v27 }
 0x29d   :  { %3122 = vst.msk [vmem:[#allocation3 + $0xd8] sm:$0xff] %vm3094_vm9, %v2957_v43  ;;  %v3340_v45 = vpop.permute.xlu0 %3339 }
 0x29e   :  { %v4444_v44 = vmax.f32 %v4428_v41, 0.0  ;;  %1820 = vrot.lane.b32.xlu1 %v2809_v35, %s6460_s16  ;;  %3506 = vst.msk [vmem:[#allocation3 + $0xd0] sm:$0xff] %vm3479_vm10, %v3340_v45  ;;  %v7985_v35 = vld [vmem:[#allocation2 + $0x290] sm:$0xff] }
 0x29f   :  { %2203 = vrot.lane.b32.xlu0 %v3193_v58, %s6461_s17  ;;  %450 = vst.msk [vmem:[#allocation3 + $0x198] sm:$0xff] %vm50_vm0, %v7985_v35  ;;  %v2428_v41 = vld [vmem:[#allocation2 + $0x230] sm:$0xff] }
 0x2a0   :  { %v4467_v12 = vmul.f32 %v7716_v15, %v4444_v44  ;;  %v1805_v2 = vpop.permute.xlu1 %1804 }
 0x2a1   :  { %1968 = vst.msk [vmem:[#allocation3 + $0xe8] sm:$0xff] %vm1938_vm6, %v1805_v2  ;;  %v2188_v13 = vpop.permute.xlu0 %2187 }
 0x2a2   :  { %v4490_v50 = vadd.f32 %v7724_v8, %v4467_v12  ;;  %3357 = vrot.lane.b32.xlu1 %v3194_v47, %s6464_s11  ;;  %2352 = vst.msk [vmem:[#allocation3 + $0xe0] sm:$0xff] %vm2323_vm7, %v2188_v13 }
 0x2a3   :  { %1052 = vrot.lane.b32.xlu0 %v3193_v58, %s6458_s14 }
 0x2a4   :  { %v3342_v51 = vpop.permute.xlu1 %3341  ;;  %4507 = vst.msk [vmem:[#allocation5 + $0x31] sm:$0xff] %vm160_vm12, %v4490_v50 }
 0x2a5   :  { %3507 = vst.msk [vmem:[#allocation3 + $0xd8] sm:$0xff] %vm3479_vm10, %v3342_v51  ;;  %v1037_v61 = vpop.permute.xlu0 %1036  ;;  %v3570_v5 = vld [vmem:[#allocation3 + $0xd0] sm:$0xff] }
 0x2a6   :  { %2205 = vrot.lane.b32.xlu1 %v3194_v47, %s6461_s17  ;;  %1199 = vst.msk [vmem:[#allocation3 + $0xf0] sm:$0xff] %vm1168_vm4, %v1037_v61  ;;  %6281 = vmatprep.mubr.msk.f32.mxu0 %vm3620_vm11, %v3570_v5  ;;  %v2813_v51 = vld [vmem:[#allocation2 + $0x231] sm:$0xff] }
 0x2a7   :  { %2589 = vrot.lane.b32.xlu0 %v2425_v60, %s6462_s18 }
 0x2a8   :  { %v2190_v52 = vpop.permute.xlu1 %2189 }
 0x2a9   :  { %2353 = vst.msk [vmem:[#allocation3 + $0xe8] sm:$0xff] %vm2323_vm7, %v2190_v52  ;;  %v6262_v33 = vpop.f32.mrf.mxu0  ;;  %v2574_v54 = vpop.permute.xlu0 %2573 }
 0x2aa   :  { %v3949_v53 = vadd.f32 %v6262_v33, %v7654_v0  ;;  %1054 = vrot.lane.b32.xlu1 %v3194_v47, %s6458_s14  ;;  %2738 = vst.msk [vmem:[#allocation3 + $0xe0] sm:$0xff] %vm2709_vm8, %v2574_v54  ;;  %v2812_v47 = vld [vmem:[#allocation2 + $0x229] sm:$0xff] }
 0x2ab   :  { %v3943_v40 = vpop.f32.mrf.mxu0  ;;  %v7933_v1 = vld [vmem:[#allocation5 + $0x30] sm:$0xff]  ;;  %1437 = vrot.lane.b32.xlu0 %v2425_v60, %s6459_s15 }
 0x2ac   :  { %v7935_v3 = vld [vmem:[#allocation5 + $0x32] sm:$0xff]  ;;  %4216 = vst.msk [vmem:[#allocation4 + $0x68] sm:$0xff] %vm160_vm12, %v3949_v53  ;;  %v3944_v7 = vadd.f32 %v7654_v0, %v3943_v40  ;;  %v1039_v28 = vpop.permute.xlu1 %1038  ;;  %4540 = vst.msk [vmem:[#allocation6 + $0x78] sm:$0xff] %vm160_vm12, %v7933_v1  ;;  %v3197_v53 = vld [vmem:[#allocation2 + $0x22a] sm:$0xff] }
 0x2ad   :  { %v3571_v14 = vld [vmem:[#allocation3 + $0xd8] sm:$0xff]  ;;  %5052 = vst.msk [vmem:[#allocation6 + $0x48] sm:$0xff] %vm160_vm12, %v7935_v3  ;;  %4669 = vst.msk [vmem:[#allocation6 + $0x80] sm:$0xff] %vm160_vm12, %v7935_v3  ;;  %v4908_v56 = vld [vmem:[#allocation5 + $0x30] sm:$0xff]  ;;  %v1422_v30 = vpop.permute.xlu0 %1421 }
 0x2ae   :  { %v7946_v21 = vld [vmem:[#allocation5 + $0x31] sm:$0xff]  ;;  %1200 = vst.msk [vmem:[#allocation3 + $0xf8] sm:$0xff] %vm1168_vm4, %v1039_v28  ;;  %6282 = vmatmul.mubr.msk.f32.gmra.mxu0 %vm3620_vm11, %v3571_v14  ;;  %2591 = vrot.lane.b32.xlu1 %v2426_v55, %s6462_s18 }
 0x2af   :  { %4796 = vst.msk [vmem:[#allocation6 + $0x60] sm:$0xff] %vm160_vm12, %v7946_v21  ;;  %4924 = vst.msk [vmem:[#allocation6 + $0x40] sm:$0xff] %vm160_vm12, %v4908_v56  ;;  %2974 = vrot.lane.b32.xlu0 %v2810_v6, %s6463_s23  ;;  %v255_v54 = vld [vmem:[%s9557_s0 + $0x190] sm:$0xff] }
 0x2b0   :  { %4215 = vst.msk [vmem:[#allocation4 + $0x60] sm:$0xff] %vm160_vm12, %v3944_v7  ;;  %v2576_v22 = vpop.permute.xlu1 %2575  ;;  %v3198_v56 = vld [vmem:[#allocation2 + $0x232] sm:$0xff] }
 0x2b1   :  { %1584 = vst.msk [vmem:[#allocation3 + $0xf0] sm:$0xff] %vm1553_vm5, %v1422_v30  ;;  %v2959_v10 = vpop.permute.xlu0 %2958 }
 0x2b2   :  { %2739 = vst.msk [vmem:[#allocation3 + $0xe8] sm:$0xff] %vm2709_vm8, %v2576_v22  ;;  %1439 = vrot.lane.b32.xlu1 %v2426_v55, %s6459_s15  ;;  %v256_v22 = vld [vmem:[%s9557_s0 + $0x198] sm:$0xff] }
 0x2b3   :  { %3123 = vst.msk [vmem:[#allocation3 + $0xe0] sm:$0xff] %vm3094_vm9, %v2959_v10  ;;  %1822 = vrot.lane.b32.xlu0 %v2810_v6, %s6460_s16 }
 0x2b4   :  { %v1424_v20 = vpop.permute.xlu1 %1423  ;;  %321 = vst.msk [vmem:[#allocation2 + $0x2a1] sm:$0xff] %vm50_vm0, %v255_v54  ;;  %322 = vst.msk [vmem:[#allocation2 + $0x2a9] sm:$0xff] %vm50_vm0, %v256_v22 }
 0x2b5   :  { %1585 = vst.msk [vmem:[#allocation3 + $0xf8] sm:$0xff] %vm1553_vm5, %v1424_v20  ;;  %v1807_v46 = vpop.permute.xlu0 %1806 }
 0x2b6   :  { %2976 = vrot.lane.b32.xlu1 %v2811_v42, %s6463_s23  ;;  %1969 = vst.msk [vmem:[#allocation3 + $0xf0] sm:$0xff] %vm1938_vm6, %v1807_v46 }
 0x2b7   :  { %3359 = vrot.lane.b32.xlu0 %v3195_v62, %s6464_s11  ;;  %v4343_v50 = vld [vmem:[#allocation4 + $0x61] ss:$2 sm:$0xff] }
 0x2b8   :  { %v2961_v25 = vpop.permute.xlu1 %2960 }
 0x2b9   :  { %3124 = vst.msk [vmem:[#allocation3 + $0xe8] sm:$0xff] %vm3094_vm9, %v2961_v25  ;;  %v3344_v29 = vpop.permute.xlu0 %3343 }
 0x2ba   :  { %1824 = vrot.lane.b32.xlu1 %v2811_v42, %s6460_s16  ;;  %3508 = vst.msk [vmem:[#allocation3 + $0xe0] sm:$0xff] %vm3479_vm10, %v3344_v29  ;;  %v8052_v29 = vld [vmem:[%s9559_s2] ss:$0 sm:$0xff] }
 0x2bb   :  { %2207 = vrot.lane.b32.xlu0 %v3195_v62, %s6461_s17  ;;  %v8032_v10 = vld [vmem:[#allocation2 + $0x2a0] sm:$0xff]  ;;  %v8043_v25 = vld [vmem:[#allocation2 + $0x2a8] sm:$0xff] }
 0x2bc   :  { %v1809_v23 = vpop.permute.xlu1 %1808  ;;  %451 = vst.msk [vmem:[#allocation3 + $0x1a0] sm:$0xff] %vm50_vm0, %v8032_v10  ;;  %452 = vst.msk [vmem:[#allocation3 + $0x1a8] sm:$0xff] %vm50_vm0, %v8043_v25 }
 0x2bd   :  { %1970 = vst.msk [vmem:[#allocation3 + $0xf8] sm:$0xff] %vm1938_vm6, %v1809_v23  ;;  %v2192_v24 = vpop.permute.xlu0 %2191 }
 0x2be   :  { %3361 = vrot.lane.b32.xlu1 %v3196_v34, %s6464_s11  ;;  %2354 = vst.msk [vmem:[#allocation3 + $0xf0] sm:$0xff] %vm2323_vm7, %v2192_v24 }
 0x2bf   :  { %1056 = vrot.lane.b32.xlu0 %v3195_v62, %s6458_s14 }
 0x2c0   :  { %v3346_v9 = vpop.permute.xlu1 %3345 }
 0x2c1   :  { %3509 = vst.msk [vmem:[#allocation3 + $0xe8] sm:$0xff] %vm3479_vm10, %v3346_v9  ;;  %v1041_v31 = vpop.permute.xlu0 %1040  ;;  %v3572_v17 = vld [vmem:[#allocation3 + $0xe0] sm:$0xff]  ;;  %v2430_v9 = vld [vmem:[#allocation2 + $0x248] sm:$0xff] }
 0x2c2   :  { %2209 = vrot.lane.b32.xlu1 %v3196_v34, %s6461_s17  ;;  %1201 = vst.msk [vmem:[#allocation3 + $0x100] sm:$0xff] %vm1168_vm4, %v1041_v31  ;;  %6284 = vmatprep.mubr.msk.f32.mxu0 %vm3620_vm11, %v3572_v17 }
 0x2c3   :  { %2593 = vrot.lane.b32.xlu0 %v2427_v16, %s6462_s18 }
 0x2c4   :  { %v2194_v37 = vpop.permute.xlu1 %2193 }
 0x2c5   :  { %2355 = vst.msk [vmem:[#allocation3 + $0xf8] sm:$0xff] %vm2323_vm7, %v2194_v37  ;;  %v6265_v38 = vpop.f32.mrf.mxu0  ;;  %v2578_v58 = vpop.permute.xlu0 %2577 }
 0x2c6   :  { %v3959_v39 = vadd.f32 %v6265_v38, %v7654_v0  ;;  %1058 = vrot.lane.b32.xlu1 %v3196_v34, %s6458_s14  ;;  %2740 = vst.msk [vmem:[#allocation3 + $0xf0] sm:$0xff] %vm2709_vm8, %v2578_v58 }
 0x2c7   :  { %v3953_v32 = vpop.f32.mrf.mxu0  ;;  %1441 = vrot.lane.b32.xlu0 %v2427_v16, %s6459_s15 }
 0x2c8   :  { %4218 = vst.msk [vmem:[#allocation4 + $0x78] sm:$0xff] %vm160_vm12, %v3959_v39  ;;  %v3954_v43 = vadd.f32 %v7654_v0, %v3953_v32  ;;  %v1043_v44 = vpop.permute.xlu1 %1042  ;;  %v3573_v45 = vld [vmem:[#allocation3 + $0xe8] sm:$0xff] }
 0x2c9   :  { %1202 = vst.msk [vmem:[#allocation3 + $0x108] sm:$0xff] %vm1168_vm4, %v1043_v44  ;;  %6285 = vmatmul.mubr.msk.f32.gmra.mxu0 %vm3620_vm11, %v3573_v45  ;;  %v1426_v12 = vpop.permute.xlu0 %1425  ;;  %v4279_v0 = vld [vmem:[#allocation4 + $0x60] ss:$2 sm:$0xff] }
 0x2ca   :  { %4217 = vst.msk [vmem:[#allocation4 + $0x70] sm:$0xff] %vm160_vm12, %v3954_v43  ;;  %2595 = vrot.lane.b32.xlu1 %v2428_v41, %s6462_s18  ;;  %v4400_v52 = vmax.f32 %v4279_v0, %v4343_v50  ;;  %v2814_v32 = vld [vmem:[#allocation2 + $0x241] sm:$0xff]  ;;  %v2815_v45 = vld [vmem:[#allocation2 + $0x249] sm:$0xff] }
 0x2cb   :  { %1586 = vst.msk [vmem:[#allocation3 + $0x100] sm:$0xff] %vm1553_vm5, %v1426_v12  ;;  %2978 = vrot.lane.b32.xlu0 %v2812_v47, %s6463_s23  ;;  %v3199_v12 = vld [vmem:[#allocation2 + $0x242] sm:$0xff] }
 0x2cc   :  { %v2580_v2 = vpop.permute.xlu1 %2579  ;;  %v257_v50 = vld [vmem:[%s9557_s0 + $0x1a0] sm:$0xff] }
 0x2cd   :  { %2741 = vst.msk [vmem:[#allocation3 + $0xf8] sm:$0xff] %vm2709_vm8, %v2580_v2  ;;  %v2963_v13 = vpop.permute.xlu0 %2962 }
 0x2ce   :  { %1443 = vrot.lane.b32.xlu1 %v2428_v41, %s6459_s15  ;;  %3125 = vst.msk [vmem:[#allocation3 + $0xf0] sm:$0xff] %vm3094_vm9, %v2963_v13 }
 0x2cf   :  { %1826 = vrot.lane.b32.xlu0 %v2812_v47, %s6460_s16  ;;  %323 = vst.msk [vmem:[#allocation2 + $0x2b9] sm:$0xff] %vm50_vm0, %v257_v50 }
 0x2d0   :  { %v1428_v60 = vpop.permute.xlu1 %1427 }
 0x2d1   :  { %v4281_v61 = vld [vmem:[#allocation4 + $0x70] ss:$2 sm:$0xff]  ;;  %v4345_v5 = vld [vmem:[#allocation4 + $0x71] ss:$2 sm:$0xff]  ;;  %1587 = vst.msk [vmem:[#allocation3 + $0x108] sm:$0xff] %vm1553_vm5, %v1428_v60  ;;  %v1811_v40 = vpop.permute.xlu0 %1810 }
 0x2d2   :  { %v4401_v33 = vmax.f32 %v4281_v61, %v4345_v5  ;;  %2980 = vrot.lane.b32.xlu1 %v2813_v51, %s6463_s23  ;;  %1971 = vst.msk [vmem:[#allocation3 + $0x100] sm:$0xff] %vm1938_vm6, %v1811_v40 }
 0x2d3   :  { %3363 = vrot.lane.b32.xlu0 %v3197_v53, %s6464_s11 }
 0x2d4   :  { %v4429_v55 = vmax.f32 %v4400_v52, %v4401_v33  ;;  %v2965_v7 = vpop.permute.xlu1 %2964  ;;  %v258_v52 = vld [vmem:[%s9557_s0 + $0x1a8] sm:$0xff] }
 0x2d5   :  { %3126 = vst.msk [vmem:[#allocation3 + $0xf8] sm:$0xff] %vm3094_vm9, %v2965_v7  ;;  %v3348_v14 = vpop.permute.xlu0 %3347 }
 0x2d6   :  { %v4445_v28 = vmax.f32 %v4429_v55, 0.0  ;;  %1828 = vrot.lane.b32.xlu1 %v2813_v51, %s6460_s16  ;;  %3510 = vst.msk [vmem:[#allocation3 + $0xf0] sm:$0xff] %vm3479_vm10, %v3348_v14  ;;  %v3200_v51 = vld [vmem:[#allocation2 + $0x24a] sm:$0xff]  ;;  %v8105_v33 = vld [vmem:[#allocation2 + $0x2b8] sm:$0xff] }
 0x2d7   :  { %2211 = vrot.lane.b32.xlu0 %v3197_v53, %s6461_s17  ;;  %324 = vst.msk [vmem:[#allocation2 + $0x2c1] sm:$0xff] %vm50_vm0, %v258_v52  ;;  %453 = vst.msk [vmem:[#allocation3 + $0x1b0] sm:$0xff] %vm50_vm0, %v8105_v33 }
 0x2d8   :  { %v4468_v6 = vmul.f32 %v7716_v15, %v4445_v28  ;;  %v1813_v30 = vpop.permute.xlu1 %1812 }
 0x2d9   :  { %1972 = vst.msk [vmem:[#allocation3 + $0x108] sm:$0xff] %vm1938_vm6, %v1813_v30  ;;  %v2196_v15 = vpop.permute.xlu0 %2195 }
 0x2da   :  { %v4491_v59 = vadd.f32 %v7724_v8, %v4468_v6  ;;  %3365 = vrot.lane.b32.xlu1 %v3198_v56, %s6464_s11  ;;  %2356 = vst.msk [vmem:[#allocation3 + $0x100] sm:$0xff] %vm2323_vm7, %v2196_v15  ;;  %v2429_v8 = vld [vmem:[#allocation2 + $0x240] sm:$0xff] }
 0x2db   :  { %1060 = vrot.lane.b32.xlu0 %v3197_v53, %s6458_s14  ;;  %v2431_v53 = vld [vmem:[#allocation2 + $0x258] sm:$0xff] }
 0x2dc   :  { %v3350_v42 = vpop.permute.xlu1 %3349  ;;  %4508 = vst.msk [vmem:[#allocation5 + $0x41] sm:$0xff] %vm160_vm12, %v4491_v59  ;;  %v2816_v15 = vld [vmem:[#allocation2 + $0x259] sm:$0xff] }
 0x2dd   :  { %3511 = vst.msk [vmem:[#allocation3 + $0xf8] sm:$0xff] %vm3479_vm10, %v3350_v42  ;;  %v1045_v20 = vpop.permute.xlu0 %1044  ;;  %v3574_v62 = vld [vmem:[#allocation3 + $0xf0] sm:$0xff] }
 0x2de   :  { %2213 = vrot.lane.b32.xlu1 %v3198_v56, %s6461_s17  ;;  %1203 = vst.msk [vmem:[#allocation3 + $0x110] sm:$0xff] %vm1168_vm4, %v1045_v20  ;;  %6287 = vmatprep.mubr.msk.f32.mxu0 %vm3620_vm11, %v3574_v62  ;;  %v8120_v59 = vld [vmem:[#allocation2 + $0x2c0] sm:$0xff] }
 0x2df   :  { %2597 = vrot.lane.b32.xlu0 %v2429_v8, %s6462_s18  ;;  %454 = vst.msk [vmem:[#allocation3 + $0x1b8] sm:$0xff] %vm50_vm0, %v8120_v59 }
 0x2e0   :  { %v2198_v46 = vpop.permute.xlu1 %2197 }
 0x2e1   :  { %2357 = vst.msk [vmem:[#allocation3 + $0x108] sm:$0xff] %vm2323_vm7, %v2198_v46  ;;  %v6268_v26 = vpop.f32.mrf.mxu0  ;;  %v2582_v23 = vpop.permute.xlu0 %2581 }
 0x2e2   :  { %v3969_v34 = vadd.f32 %v8052_v29, %v6268_v26  ;;  %1062 = vrot.lane.b32.xlu1 %v3198_v56, %s6458_s14  ;;  %2742 = vst.msk [vmem:[#allocation3 + $0x100] sm:$0xff] %vm2709_vm8, %v2582_v23  ;;  %v2817_v26 = vld [vmem:[#allocation2 + $0x261] sm:$0xff] }
 0x2e3   :  { %v3963_v24 = vpop.f32.mrf.mxu0  ;;  %v8056_v16 = vld [vmem:[#allocation5 + $0x40] sm:$0xff]  ;;  %1445 = vrot.lane.b32.xlu0 %v2429_v8, %s6459_s15 }
 0x2e4   :  { %v8058_v31 = vld [vmem:[#allocation5 + $0x42] sm:$0xff]  ;;  %4220 = vst.msk [vmem:[#allocation4 + $0x88] sm:$0xff] %vm160_vm12, %v3969_v34  ;;  %v3964_v17 = vadd.f32 %v8052_v29, %v3963_v24  ;;  %v1047_v37 = vpop.permute.xlu1 %1046  ;;  %v3575_v38 = vld [vmem:[#allocation3 + $0xf8] sm:$0xff]  ;;  %4541 = vst.msk [vmem:[#allocation6 + $0xa0] sm:$0xff] %vm160_vm12, %v8056_v16 }
 0x2e5   :  { %5053 = vst.msk [vmem:[#allocation6 + $0x70] sm:$0xff] %vm160_vm12, %v8058_v31  ;;  %4670 = vst.msk [vmem:[#allocation6 + $0xa8] sm:$0xff] %vm160_vm12, %v8058_v31  ;;  %v8069_v39 = vld [vmem:[#allocation5 + $0x41] sm:$0xff]  ;;  %6288 = vmatmul.mubr.msk.f32.gmra.mxu0 %vm3620_vm11, %v3575_v38  ;;  %v1430_v41 = vpop.permute.xlu0 %1429 }
 0x2e6   :  { %v4909_v58 = vld [vmem:[#allocation5 + $0x40] sm:$0xff]  ;;  %1204 = vst.msk [vmem:[#allocation3 + $0x118] sm:$0xff] %vm1168_vm4, %v1047_v37  ;;  %2599 = vrot.lane.b32.xlu1 %v2430_v9, %s6462_s18 }
 0x2e7   :  { %4797 = vst.msk [vmem:[#allocation6 + $0x88] sm:$0xff] %vm160_vm12, %v8069_v39  ;;  %4925 = vst.msk [vmem:[#allocation6 + $0x68] sm:$0xff] %vm160_vm12, %v4909_v58  ;;  %2982 = vrot.lane.b32.xlu0 %v2814_v32, %s6463_s23  ;;  %v3201_v37 = vld [vmem:[#allocation2 + $0x25a] sm:$0xff] }
 0x2e8   :  { %4219 = vst.msk [vmem:[#allocation4 + $0x80] sm:$0xff] %vm160_vm12, %v3964_v17  ;;  %v2584_v43 = vpop.permute.xlu1 %2583 }
 0x2e9   :  { %1588 = vst.msk [vmem:[#allocation3 + $0x110] sm:$0xff] %vm1553_vm5, %v1430_v41  ;;  %v2967_v44 = vpop.permute.xlu0 %2966 }
 0x2ea   :  { %2743 = vst.msk [vmem:[#allocation3 + $0x108] sm:$0xff] %vm2709_vm8, %v2584_v43  ;;  %1447 = vrot.lane.b32.xlu1 %v2430_v9, %s6459_s15  ;;  %v3202_v43 = vld [vmem:[#allocation2 + $0x262] sm:$0xff] }
 0x2eb   :  { %3127 = vst.msk [vmem:[#allocation3 + $0x100] sm:$0xff] %vm3094_vm9, %v2967_v44  ;;  %1830 = vrot.lane.b32.xlu0 %v2814_v32, %s6460_s16  ;;  %v8146_v44 = vld [vmem:[%s9560_s3] ss:$0 sm:$0xff] }
 0x2ec   :  { %v1432_v47 = vpop.permute.xlu1 %1431 }
 0x2ed   :  { %1589 = vst.msk [vmem:[#allocation3 + $0x118] sm:$0xff] %vm1553_vm5, %v1432_v47  ;;  %v1815_v2 = vpop.permute.xlu0 %1814 }
 0x2ee   :  { %2984 = vrot.lane.b32.xlu1 %v2815_v45, %s6463_s23  ;;  %1973 = vst.msk [vmem:[#allocation3 + $0x110] sm:$0xff] %vm1938_vm6, %v1815_v2  ;;  %v8158_v2 = vld [vmem:[%s9561_s4] ss:$0 sm:$0xff] }
 0x2ef   :  { %3367 = vrot.lane.b32.xlu0 %v3199_v12, %s6464_s11  ;;  %v4283_v20 = vld [vmem:[#allocation4 + $0x80] ss:$2 sm:$0xff]  ;;  %v4347_v62 = vld [vmem:[#allocation4 + $0x81] ss:$2 sm:$0xff] }
 0x2f0   :  { %v2969_v0 = vpop.permute.xlu1 %2968  ;;  %v4402_v9 = vmax.f32 %v4283_v20, %v4347_v62 }
 0x2f1   :  { %3128 = vst.msk [vmem:[#allocation3 + $0x108] sm:$0xff] %vm3094_vm9, %v2969_v0  ;;  %v3352_v13 = vpop.permute.xlu0 %3351 }
 0x2f2   :  { %1832 = vrot.lane.b32.xlu1 %v2815_v45, %s6460_s16  ;;  %3512 = vst.msk [vmem:[#allocation3 + $0x100] sm:$0xff] %vm3479_vm10, %v3352_v13 }
 0x2f3   :  { %2215 = vrot.lane.b32.xlu0 %v3199_v12, %s6461_s17 }
 0x2f4   :  { %v1817_v60 = vpop.permute.xlu1 %1816 }
 0x2f5   :  { %1974 = vst.msk [vmem:[#allocation3 + $0x118] sm:$0xff] %vm1938_vm6, %v1817_v60  ;;  %v2200_v61 = vpop.permute.xlu0 %2199 }
 0x2f6   :  { %3369 = vrot.lane.b32.xlu1 %v3200_v51, %s6464_s11  ;;  %2358 = vst.msk [vmem:[#allocation3 + $0x110] sm:$0xff] %vm2323_vm7, %v2200_v61 }
 0x2f7   :  { %1064 = vrot.lane.b32.xlu0 %v3199_v12, %s6458_s14  ;;  %v259_v12 = vld [vmem:[%s9557_s0 + $0x1b0] sm:$0xff] }
 0x2f8   :  { %v3354_v5 = vpop.permute.xlu1 %3353  ;;  %325 = vst.msk [vmem:[#allocation2 + $0x2d1] sm:$0xff] %vm50_vm0, %v259_v12 }
 0x2f9   :  { %3513 = vst.msk [vmem:[#allocation3 + $0x108] sm:$0xff] %vm3479_vm10, %v3354_v5  ;;  %v1049_v54 = vpop.permute.xlu0 %1048  ;;  %v3576_v40 = vld [vmem:[#allocation3 + $0x100] sm:$0xff]  ;;  %v260_v5 = vld [vmem:[%s9557_s0 + $0x1b8] sm:$0xff] }
 0x2fa   :  { %2217 = vrot.lane.b32.xlu1 %v3200_v51, %s6461_s17  ;;  %1205 = vst.msk [vmem:[#allocation3 + $0x120] sm:$0xff] %vm1168_vm4, %v1049_v54  ;;  %6290 = vmatprep.mubr.msk.f32.mxu0 %vm3620_vm11, %v3576_v40 }
 0x2fb   :  { %2601 = vrot.lane.b32.xlu0 %v2431_v53, %s6462_s18  ;;  %326 = vst.msk [vmem:[#allocation2 + $0x2d9] sm:$0xff] %vm50_vm0, %v260_v5 }
 0x2fc   :  { %v2202_v55 = vpop.permute.xlu1 %2201 }
 0x2fd   :  { %2359 = vst.msk [vmem:[#allocation3 + $0x118] sm:$0xff] %vm2323_vm7, %v2202_v55  ;;  %v2586_v14 = vpop.permute.xlu0 %2585 }
 0x2fe   :  { %v6271_v7 = vpop.f32.mrf.mxu0  ;;  %1066 = vrot.lane.b32.xlu1 %v3200_v51, %s6458_s14  ;;  %2744 = vst.msk [vmem:[#allocation3 + $0x110] sm:$0xff] %vm2709_vm8, %v2586_v14 }
 0x2ff   :  { %v3979_v28 = vadd.f32 %v8052_v29, %v6271_v7  ;;  %1449 = vrot.lane.b32.xlu0 %v2431_v53, %s6459_s15  ;;  %v8175_v53 = vld [vmem:[#allocation2 + $0x2d0] sm:$0xff] }
 0x300   :  { %v3973_v56 = vpop.f32.mrf.mxu0  ;;  %v1051_v30 = vpop.permute.xlu1 %1050  ;;  %v3577_v22 = vld [vmem:[#allocation3 + $0x108] sm:$0xff]  ;;  %455 = vst.msk [vmem:[#allocation3 + $0x1c0] sm:$0xff] %vm50_vm0, %v8175_v53 }
 0x301   :  { %4222 = vst.msk [vmem:[#allocation4 + $0x98] sm:$0xff] %vm160_vm12, %v3979_v28  ;;  %v3974_v6 = vadd.f32 %v8052_v29, %v3973_v56  ;;  %6291 = vmatmul.mubr.msk.f32.gmra.mxu0 %vm3620_vm11, %v3577_v22  ;;  %v1434_v42 = vpop.permute.xlu0 %1433 }
 0x302   :  { %1206 = vst.msk [vmem:[#allocation3 + $0x128] sm:$0xff] %vm1168_vm4, %v1051_v30  ;;  %2603 = vrot.lane.b32.xlu1 %v7861_v63, %s6462_s18  ;;  %v8208_v20 = vld [vmem:[#allocation2 + $0x2d8] sm:$0xff] }
 0x303   :  { %4221 = vst.msk [vmem:[#allocation4 + $0x90] sm:$0xff] %vm160_vm12, %v3974_v6  ;;  %2986 = vrot.lane.b32.xlu0 %v2816_v15, %s6463_s23 }
 0x304   :  { %1590 = vst.msk [vmem:[#allocation3 + $0x120] sm:$0xff] %vm1553_vm5, %v1434_v42  ;;  %v2588_v8 = vpop.permute.xlu1 %2587  ;;  %v2818_v42 = vld [vmem:[#allocation2 + $0x271] sm:$0xff] }
 0x305   :  { %2745 = vst.msk [vmem:[#allocation3 + $0x118] sm:$0xff] %vm2709_vm8, %v2588_v8  ;;  %v2971_v46 = vpop.permute.xlu0 %2970 }
 0x306   :  { %1451 = vrot.lane.b32.xlu1 %v7861_v63, %s6459_s15  ;;  %3129 = vst.msk [vmem:[#allocation3 + $0x110] sm:$0xff] %vm3094_vm9, %v2971_v46  ;;  %v2819_v46 = vld [vmem:[#allocation2 + $0x279] sm:$0xff] }
 0x307   :  { %1834 = vrot.lane.b32.xlu0 %v2816_v15, %s6460_s16  ;;  %456 = vst.msk [vmem:[#allocation3 + $0x1c8] sm:$0xff] %vm50_vm0, %v8208_v20 }
 0x308   :  { %v1436_v34 = vpop.permute.xlu1 %1435 }
 0x309   :  { %1591 = vst.msk [vmem:[#allocation3 + $0x128] sm:$0xff] %vm1553_vm5, %v1436_v34  ;;  %v1819_v38 = vpop.permute.xlu0 %1818  ;;  %v3203_v34 = vld [vmem:[#allocation2 + $0x272] sm:$0xff] }
 0x30a   :  { %v4285_v23 = vld [vmem:[#allocation4 + $0x90] ss:$2 sm:$0xff]  ;;  %v4349_v24 = vld [vmem:[#allocation4 + $0x91] ss:$2 sm:$0xff]  ;;  %2988 = vrot.lane.b32.xlu1 %v2817_v26, %s6463_s23  ;;  %1975 = vst.msk [vmem:[#allocation3 + $0x120] sm:$0xff] %vm1938_vm6, %v1819_v38  ;;  %v261_v38 = vld [vmem:[%s9557_s0 + $0x1c0] sm:$0xff] }
 0x30b   :  { %v4403_v17 = vmax.f32 %v4285_v23, %v4349_v24  ;;  %3371 = vrot.lane.b32.xlu0 %v3201_v37, %s6464_s11  ;;  %327 = vst.msk [vmem:[#allocation2 + $0x2e9] sm:$0xff] %vm50_vm0, %v261_v38 }
 0x30c   :  { %v2973_v58 = vpop.permute.xlu1 %2972 }
 0x30d   :  { %v4430_v63 = vmax.f32 %v4402_v9, %v4403_v17  ;;  %3130 = vst.msk [vmem:[#allocation3 + $0x118] sm:$0xff] %vm3094_vm9, %v2973_v58  ;;  %v3356_v41 = vpop.permute.xlu0 %3355  ;;  %v3204_v17 = vld [vmem:[#allocation2 + $0x27a] sm:$0xff] }
 0x30e   :  { %1836 = vrot.lane.b32.xlu1 %v2817_v26, %s6460_s16  ;;  %3514 = vst.msk [vmem:[#allocation3 + $0x110] sm:$0xff] %vm3479_vm10, %v3356_v41 }
 0x30f   :  { %v4446_v32 = vmax.f32 %v4430_v63, 0.0  ;;  %2219 = vrot.lane.b32.xlu0 %v3201_v37, %s6461_s17 }
 0x310   :  { %v1821_v47 = vpop.permute.xlu1 %1820 }
 0x311   :  { %v4469_v45 = vmul.f32 %v8146_v44, %v4446_v32  ;;  %1976 = vst.msk [vmem:[#allocation3 + $0x128] sm:$0xff] %vm1938_vm6, %v1821_v47  ;;  %v2204_v50 = vpop.permute.xlu0 %2203 }
 0x312   :  { %3373 = vrot.lane.b32.xlu1 %v3202_v43, %s6464_s11  ;;  %2360 = vst.msk [vmem:[#allocation3 + $0x120] sm:$0xff] %vm2323_vm7, %v2204_v50 }
 0x313   :  { %v4492_v0 = vadd.f32 %v8158_v2, %v4469_v45  ;;  %685 = vrot.lane.b32.xlu0 %v2817_v26, %s6457_s13 }
 0x314   :  { %v3358_v13 = vpop.permute.xlu1 %3357 }
 0x315   :  { %4509 = vst.msk [vmem:[#allocation5 + $0x51] sm:$0xff] %vm160_vm12, %v4492_v0  ;;  %v1053_v51 = vpop.permute.xlu0 %1052  ;;  %v3578_v60 = vld [vmem:[#allocation3 + $0x110] sm:$0xff] }
 0x316   :  { %3515 = vst.msk [vmem:[#allocation3 + $0x118] sm:$0xff] %vm3479_vm10, %v3358_v13  ;;  %1068 = vrot.lane.b32.xlu1 %v3201_v37, %s6458_s14  ;;  %6293 = vmatprep.mubr.msk.f32.mxu0 %vm3620_vm11, %v3578_v60  ;;  %v262_v13 = vld [vmem:[%s9557_s0 + $0x1c8] sm:$0xff] }
 0x317   :  { %1207 = vst.msk [vmem:[#allocation3 + $0x130] sm:$0xff] %vm1168_vm4, %v1053_v51  ;;  %2221 = vrot.lane.b32.xlu0 %v3202_v43, %s6461_s17  ;;  %v8252_v51 = vld [vmem:[#allocation2 + $0x2e8] sm:$0xff] }
 0x318   :  { %v2206_v61 = vpop.permute.xlu1 %2205  ;;  %328 = vst.msk [vmem:[#allocation2 + $0x2f1] sm:$0xff] %vm50_vm0, %v262_v13  ;;  %457 = vst.msk [vmem:[#allocation3 + $0x1d0] sm:$0xff] %vm50_vm0, %v8252_v51 }
 0x319   :  { %2361 = vst.msk [vmem:[#allocation3 + $0x128] sm:$0xff] %vm2323_vm7, %v2206_v61  ;;  %v6274_v52 = vpop.f32.mrf.mxu0  ;;  %v2590_v40 = vpop.permute.xlu0 %2589 }
 0x31a   :  { %v3989_v54 = vadd.f32 %v8052_v29, %v6274_v52  ;;  %2605 = vrot.lane.b32.xlu1 %v7902_v57, %s6462_s18  ;;  %2746 = vst.msk [vmem:[#allocation3 + $0x120] sm:$0xff] %vm2709_vm8, %v2590_v40  ;;  %v2820_v40 = vld [vmem:[#allocation2 + $0x289] sm:$0xff] }
 0x31b   :  { %v3983_v55 = vpop.f32.mrf.mxu0  ;;  %1070 = vrot.lane.b32.xlu0 %v3202_v43, %s6458_s14 }
 0x31c   :  { %v8183_v7 = vld [vmem:[#allocation5 + $0x50] sm:$0xff]  ;;  %4224 = vst.msk [vmem:[#allocation4 + $0xa8] sm:$0xff] %vm160_vm12, %v3989_v54  ;;  %v3984_v14 = vadd.f32 %v8052_v29, %v3983_v55  ;;  %v1055_v56 = vpop.permute.xlu1 %1054 }
 0x31d   :  { %v8185_v28 = vld [vmem:[#allocation5 + $0x52] sm:$0xff]  ;;  %4542 = vst.msk [vmem:[#allocation6 + $0xc8] sm:$0xff] %vm160_vm12, %v8183_v7  ;;  %v1438_v15 = vpop.permute.xlu0 %1437 }
 0x31e   :  { %v3579_v6 = vld [vmem:[#allocation3 + $0x118] sm:$0xff]  ;;  %5054 = vst.msk [vmem:[#allocation6 + $0x98] sm:$0xff] %vm160_vm12, %v8185_v28  ;;  %4671 = vst.msk [vmem:[#allocation6 + $0xd0] sm:$0xff] %vm160_vm12, %v8185_v28  ;;  %v4910_v22 = vld [vmem:[#allocation5 + $0x50] sm:$0xff]  ;;  %1453 = vrot.lane.b32.xlu1 %v7902_v57, %s6459_s15 }
 0x31f   :  { %v8196_v30 = vld [vmem:[#allocation5 + $0x51] sm:$0xff]  ;;  %1208 = vst.msk [vmem:[#allocation3 + $0x138] sm:$0xff] %vm1168_vm4, %v1055_v56  ;;  %6294 = vmatmul.mubr.msk.f32.gmra.mxu0 %vm3620_vm11, %v3579_v6  ;;  %2607 = vrot.lane.b32.xlu0 %v7914_v18, %s6462_s18 }
 0x320   :  { %4798 = vst.msk [vmem:[#allocation6 + $0xb0] sm:$0xff] %vm160_vm12, %v8196_v30  ;;  %4926 = vst.msk [vmem:[#allocation6 + $0x90] sm:$0xff] %vm160_vm12, %v4910_v22  ;;  %v2592_v8 = vpop.permute.xlu1 %2591 }
 0x321   :  { %4223 = vst.msk [vmem:[#allocation4 + $0xa0] sm:$0xff] %vm160_vm12, %v3984_v14  ;;  %v2975_v62 = vpop.permute.xlu0 %2974  ;;  %v8266_v14 = vld [vmem:[#allocation2 + $0x2f0] sm:$0xff] }
 0x322   :  { %1592 = vst.msk [vmem:[#allocation3 + $0x130] sm:$0xff] %vm1553_vm5, %v1438_v15  ;;  %2990 = vrot.lane.b32.xlu1 %v2818_v42, %s6463_s23 }
 0x323   :  { %2747 = vst.msk [vmem:[#allocation3 + $0x128] sm:$0xff] %vm2709_vm8, %v2592_v8  ;;  %1455 = vrot.lane.b32.xlu0 %v7914_v18, %s6459_s15 }
 0x324   :  { %3131 = vst.msk [vmem:[#allocation3 + $0x120] sm:$0xff] %vm3094_vm9, %v2975_v62  ;;  %v1440_v57 = vpop.permute.xlu1 %1439 }
 0x325   :  { %1593 = vst.msk [vmem:[#allocation3 + $0x138] sm:$0xff] %vm1553_vm5, %v1440_v57  ;;  %v1823_v26 = vpop.permute.xlu0 %1822  ;;  %v2821_v57 = vld [vmem:[#allocation2 + $0x291] sm:$0xff] }
 0x326   :  { %1838 = vrot.lane.b32.xlu1 %v2818_v42, %s6460_s16  ;;  %1977 = vst.msk [vmem:[#allocation3 + $0x130] sm:$0xff] %vm1938_vm6, %v1823_v26  ;;  %v3205_v26 = vld [vmem:[#allocation2 + $0x28a] sm:$0xff] }
 0x327   :  { %2992 = vrot.lane.b32.xlu0 %v2819_v46, %s6463_s23  ;;  %458 = vst.msk [vmem:[#allocation3 + $0x1d8] sm:$0xff] %vm50_vm0, %v8266_v14 }
 0x328   :  { %v2977_v23 = vpop.permute.xlu1 %2976  ;;  %v4287_v5 = vld [vmem:[#allocation4 + $0xa0] ss:$2 sm:$0xff]  ;;  %v4351_v52 = vld [vmem:[#allocation4 + $0xa1] ss:$2 sm:$0xff] }
 0x329   :  { %3132 = vst.msk [vmem:[#allocation3 + $0x128] sm:$0xff] %vm3094_vm9, %v2977_v23  ;;  %v3360_v24 = vpop.permute.xlu0 %3359 }
 0x32a   :  { %3375 = vrot.lane.b32.xlu1 %v3203_v34, %s6464_s11  ;;  %3516 = vst.msk [vmem:[#allocation3 + $0x120] sm:$0xff] %vm3479_vm10, %v3360_v24 }
 0x32b   :  { %687 = vrot.lane.b32.xlu0 %v2818_v42, %s6457_s13 }
 0x32c   :  { %v1825_v9 = vpop.permute.xlu1 %1824 }
 0x32d   :  { %1978 = vst.msk [vmem:[#allocation3 + $0x138] sm:$0xff] %vm1938_vm6, %v1825_v9  ;;  %v2208_v18 = vpop.permute.xlu0 %2207 }
 0x32e   :  { %1840 = vrot.lane.b32.xlu1 %v2819_v46, %s6460_s16  ;;  %2362 = vst.msk [vmem:[#allocation3 + $0x130] sm:$0xff] %vm2323_vm7, %v2208_v18 }
 0x32f   :  { %2223 = vrot.lane.b32.xlu0 %v3203_v34, %s6461_s17 }
 0x330   :  { %v3362_v37 = vpop.permute.xlu1 %3361 }
 0x331   :  { %3517 = vst.msk [vmem:[#allocation3 + $0x128] sm:$0xff] %vm3479_vm10, %v3362_v37  ;;  %v1057_v63 = vpop.permute.xlu0 %1056  ;;  %v3580_v58 = vld [vmem:[#allocation3 + $0x120] sm:$0xff]  ;;  %v3206_v37 = vld [vmem:[#allocation2 + $0x292] sm:$0xff] }
 0x332   :  { %3377 = vrot.lane.b32.xlu1 %v3204_v17, %s6464_s11  ;;  %1209 = vst.msk [vmem:[#allocation3 + $0x140] sm:$0xff] %vm1168_vm4, %v1057_v63  ;;  %6296 = vmatprep.mubr.msk.f32.mxu0 %vm3620_vm11, %v3580_v58  ;;  %v263_v58 = vld [vmem:[%s9557_s0 + $0x1d0] sm:$0xff] }
 0x333   :  { %689 = vrot.lane.b32.xlu0 %v2819_v46, %s6457_s13  ;;  %329 = vst.msk [vmem:[#allocation2 + $0x301] sm:$0xff] %vm50_vm0, %v263_v58 }
 0x334   :  { %v2210_v32 = vpop.permute.xlu1 %2209 }
 0x335   :  { %2363 = vst.msk [vmem:[#allocation3 + $0x138] sm:$0xff] %vm2323_vm7, %v2210_v32  ;;  %v6277_v41 = vpop.f32.mrf.mxu0  ;;  %v2594_v45 = vpop.permute.xlu0 %2593 }
 0x336   :  { %v3999_v43 = vadd.f32 %v8052_v29, %v6277_v41  ;;  %1072 = vrot.lane.b32.xlu1 %v3203_v34, %s6458_s14  ;;  %2748 = vst.msk [vmem:[#allocation3 + $0x130] sm:$0xff] %vm2709_vm8, %v2594_v45 }
 0x337   :  { %v3993_v47 = vpop.f32.mrf.mxu0  ;;  %2225 = vrot.lane.b32.xlu0 %v3204_v17, %s6461_s17 }
 0x338   :  { %4226 = vst.msk [vmem:[#allocation4 + $0xb8] sm:$0xff] %vm160_vm12, %v3999_v43  ;;  %v3994_v12 = vadd.f32 %v8052_v29, %v3993_v47  ;;  %v1059_v0 = vpop.permute.xlu1 %1058  ;;  %v3581_v50 = vld [vmem:[#allocation3 + $0x128] sm:$0xff] }
 0x339   :  { %1210 = vst.msk [vmem:[#allocation3 + $0x148] sm:$0xff] %vm1168_vm4, %v1059_v0  ;;  %6297 = vmatmul.mubr.msk.f32.gmra.mxu0 %vm3620_vm11, %v3581_v50  ;;  %v1442_v60 = vpop.permute.xlu0 %1441 }
 0x33a   :  { %4225 = vst.msk [vmem:[#allocation4 + $0xb0] sm:$0xff] %vm160_vm12, %v3994_v12  ;;  %2609 = vrot.lane.b32.xlu1 %v7974_v27, %s6462_s18 }
 0x33b   :  { %1594 = vst.msk [vmem:[#allocation3 + $0x140] sm:$0xff] %vm1553_vm5, %v1442_v60  ;;  %1074 = vrot.lane.b32.xlu0 %v3204_v17, %s6458_s14 }
 0x33c   :  { %v2596_v61 = vpop.permute.xlu1 %2595 }
 0x33d   :  { %2749 = vst.msk [vmem:[#allocation3 + $0x138] sm:$0xff] %vm2709_vm8, %v2596_v61  ;;  %v2979_v54 = vpop.permute.xlu0 %2978 }
 0x33e   :  { %1457 = vrot.lane.b32.xlu1 %v7974_v27, %s6459_s15  ;;  %3133 = vst.msk [vmem:[#allocation3 + $0x130] sm:$0xff] %vm3094_vm9, %v2979_v54  ;;  %v4404_v27 = vmax.f32 %v4287_v5, %v4351_v52  ;;  %v264_v52 = vld [vmem:[%s9557_s0 + $0x1d8] sm:$0xff]  ;;  %v8329_v54 = vld [vmem:[#allocation2 + $0x300] sm:$0xff] }
 0x33f   :  { %2611 = vrot.lane.b32.xlu0 %v7985_v35, %s6462_s18  ;;  %330 = vst.msk [vmem:[#allocation2 + $0x309] sm:$0xff] %vm50_vm0, %v264_v52  ;;  %459 = vst.msk [vmem:[#allocation3 + $0x1e0] sm:$0xff] %vm50_vm0, %v8329_v54 }
 0x340   :  { %v1444_v55 = vpop.permute.xlu1 %1443 }
 0x341   :  { %v4289_v56 = vld [vmem:[#allocation4 + $0xb0] ss:$2 sm:$0xff]  ;;  %v4353_v6 = vld [vmem:[#allocation4 + $0xb1] ss:$2 sm:$0xff]  ;;  %1595 = vst.msk [vmem:[#allocation3 + $0x148] sm:$0xff] %vm1553_vm5, %v1444_v55  ;;  %v1827_v15 = vpop.permute.xlu0 %1826 }
 0x342   :  { %v4405_v22 = vmax.f32 %v4289_v56, %v4353_v6  ;;  %2994 = vrot.lane.b32.xlu1 %v2820_v40, %s6463_s23  ;;  %1979 = vst.msk [vmem:[#allocation3 + $0x140] sm:$0xff] %vm1938_vm6, %v1827_v15  ;;  %v2822_v6 = vld [vmem:[#allocation2 + $0x2a1] sm:$0xff] }
 0x343   :  { %1459 = vrot.lane.b32.xlu0 %v7985_v35, %s6459_s15 }
 0x344   :  { %v4431_v42 = vmax.f32 %v4404_v27, %v4405_v22  ;;  %v2981_v8 = vpop.permute.xlu1 %2980 }
 0x345   :  { %3134 = vst.msk [vmem:[#allocation3 + $0x138] sm:$0xff] %vm3094_vm9, %v2981_v8  ;;  %v3364_v46 = vpop.permute.xlu0 %3363 }
 0x346   :  { %v4447_v62 = vmax.f32 %v4431_v42, 0.0  ;;  %1842 = vrot.lane.b32.xlu1 %v2820_v40, %s6460_s16  ;;  %3518 = vst.msk [vmem:[#allocation3 + $0x130] sm:$0xff] %vm3479_vm10, %v3364_v46  ;;  %v8342_v22 = vld [vmem:[#allocation2 + $0x308] sm:$0xff] }
 0x347   :  { %2996 = vrot.lane.b32.xlu0 %v2821_v57, %s6463_s23  ;;  %460 = vst.msk [vmem:[#allocation3 + $0x1e8] sm:$0xff] %vm50_vm0, %v8342_v22  ;;  %v2823_v42 = vld [vmem:[#allocation2 + $0x2a9] sm:$0xff] }
 0x348   :  { %v4470_v34 = vmul.f32 %v8146_v44, %v4447_v62  ;;  %v1829_v23 = vpop.permute.xlu1 %1828  ;;  %v3207_v62 = vld [vmem:[#allocation2 + $0x2a2] sm:$0xff] }
 0x349   :  { %1980 = vst.msk [vmem:[#allocation3 + $0x148] sm:$0xff] %vm1938_vm6, %v1829_v23  ;;  %v2212_v35 = vpop.permute.xlu0 %2211 }
 0x34a   :  { %v4493_v24 = vadd.f32 %v8158_v2, %v4470_v34  ;;  %3379 = vrot.lane.b32.xlu1 %v3205_v26, %s6464_s11  ;;  %2364 = vst.msk [vmem:[#allocation3 + $0x140] sm:$0xff] %vm2323_vm7, %v2212_v35 }
 0x34b   :  { %691 = vrot.lane.b32.xlu0 %v2820_v40, %s6457_s13 }
 0x34c   :  { %v3366_v9 = vpop.permute.xlu1 %3365  ;;  %4510 = vst.msk [vmem:[#allocation5 + $0x61] sm:$0xff] %vm160_vm12, %v4493_v24 }
 0x34d   :  { %3519 = vst.msk [vmem:[#allocation3 + $0x138] sm:$0xff] %vm3479_vm10, %v3366_v9  ;;  %v1061_v18 = vpop.permute.xlu0 %1060  ;;  %v3582_v17 = vld [vmem:[#allocation3 + $0x130] sm:$0xff] }
 0x34e   :  { %1844 = vrot.lane.b32.xlu1 %v2821_v57, %s6460_s16  ;;  %1211 = vst.msk [vmem:[#allocation3 + $0x150] sm:$0xff] %vm1168_vm4, %v1061_v18  ;;  %6299 = vmatprep.mubr.msk.f32.mxu0 %vm3620_vm11, %v3582_v17  ;;  %v3208_v9 = vld [vmem:[#allocation2 + $0x2aa] sm:$0xff] }
 0x34f   :  { %2227 = vrot.lane.b32.xlu0 %v3205_v26, %s6461_s17 }
 0x350   :  { %v2214_v38 = vpop.permute.xlu1 %2213 }
 0x351   :  { %2365 = vst.msk [vmem:[#allocation3 + $0x148] sm:$0xff] %vm2323_vm7, %v2214_v38  ;;  %v6280_v63 = vpop.f32.mrf.mxu0  ;;  %v2598_v41 = vpop.permute.xlu0 %2597  ;;  %v265_v38 = vld [vmem:[%s9557_s0 + $0x1e0] sm:$0xff] }
 0x352   :  { %v4009_v32 = vadd.f32 %v8052_v29, %v6280_v63  ;;  %3381 = vrot.lane.b32.xlu1 %v3206_v37, %s6464_s11  ;;  %2750 = vst.msk [vmem:[#allocation3 + $0x140] sm:$0xff] %vm2709_vm8, %v2598_v41 }
 0x353   :  { %v4003_v43 = vpop.f32.mrf.mxu0  ;;  %v8300_v45 = vld [vmem:[#allocation5 + $0x60] sm:$0xff]  ;;  %693 = vrot.lane.b32.xlu0 %v2821_v57, %s6457_s13  ;;  %331 = vst.msk [vmem:[#allocation2 + $0x319] sm:$0xff] %vm50_vm0, %v265_v38 }
 0x354   :  { %v8302_v47 = vld [vmem:[#allocation5 + $0x62] sm:$0xff]  ;;  %4228 = vst.msk [vmem:[#allocation4 + $0xc8] sm:$0xff] %vm160_vm12, %v4009_v32  ;;  %v4004_v12 = vadd.f32 %v8052_v29, %v4003_v43  ;;  %v1063_v0 = vpop.permute.xlu1 %1062  ;;  %v3583_v50 = vld [vmem:[#allocation3 + $0x138] sm:$0xff]  ;;  %4543 = vst.msk [vmem:[#allocation6 + $0xf0] sm:$0xff] %vm160_vm12, %v8300_v45 }
 0x355   :  { %5055 = vst.msk [vmem:[#allocation6 + $0xc0] sm:$0xff] %vm160_vm12, %v8302_v47  ;;  %4672 = vst.msk [vmem:[#allocation6 + $0xf8] sm:$0xff] %vm160_vm12, %v8302_v47  ;;  %v8313_v13 = vld [vmem:[#allocation5 + $0x61] sm:$0xff]  ;;  %6300 = vmatmul.mubr.msk.f32.gmra.mxu0 %vm3620_vm11, %v3583_v50  ;;  %v1446_v61 = vpop.permute.xlu0 %1445 }
 0x356   :  { %v4911_v60 = vld [vmem:[#allocation5 + $0x60] sm:$0xff]  ;;  %1212 = vst.msk [vmem:[#allocation3 + $0x158] sm:$0xff] %vm1168_vm4, %v1063_v0  ;;  %1076 = vrot.lane.b32.xlu1 %v3205_v26, %s6458_s14  ;;  %v266_v0 = vld [vmem:[%s9557_s0 + $0x1e8] sm:$0xff] }
 0x357   :  { %4799 = vst.msk [vmem:[#allocation6 + $0xd8] sm:$0xff] %vm160_vm12, %v8313_v13  ;;  %4927 = vst.msk [vmem:[#allocation6 + $0xb8] sm:$0xff] %vm160_vm12, %v4911_v60  ;;  %2229 = vrot.lane.b32.xlu0 %v3206_v37, %s6461_s17 }
 0x358   :  { %4227 = vst.msk [vmem:[#allocation4 + $0xc0] sm:$0xff] %vm160_vm12, %v4004_v12  ;;  %v2600_v5 = vpop.permute.xlu1 %2599 }
 0x359   :  { %1596 = vst.msk [vmem:[#allocation3 + $0x150] sm:$0xff] %vm1553_vm5, %v1446_v61  ;;  %v2983_v40 = vpop.permute.xlu0 %2982 }
 0x35a   :  { %2751 = vst.msk [vmem:[#allocation3 + $0x148] sm:$0xff] %vm2709_vm8, %v2600_v5  ;;  %2613 = vrot.lane.b32.xlu1 %v8032_v10, %s6462_s18  ;;  %v8387_v61 = vld [vmem:[#allocation2 + $0x318] sm:$0xff] }
 0x35b   :  { %3135 = vst.msk [vmem:[#allocation3 + $0x140] sm:$0xff] %vm3094_vm9, %v2983_v40  ;;  %1078 = vrot.lane.b32.xlu0 %v3206_v37, %s6458_s14 }
 0x35c   :  { %v1448_v55 = vpop.permute.xlu1 %1447  ;;  %332 = vst.msk [vmem:[#allocation2 + $0x321] sm:$0xff] %vm50_vm0, %v266_v0  ;;  %461 = vst.msk [vmem:[#allocation3 + $0x1f0] sm:$0xff] %vm50_vm0, %v8387_v61  ;;  %v267_v0 = vld [vmem:[%s9557_s0 + $0x1f0] sm:$0xff] }
 0x35d   :  { %1597 = vst.msk [vmem:[#allocation3 + $0x158] sm:$0xff] %vm1553_vm5, %v1448_v55  ;;  %v1831_v56 = vpop.permute.xlu0 %1830 }
 0x35e   :  { %1461 = vrot.lane.b32.xlu1 %v8032_v10, %s6459_s15  ;;  %1981 = vst.msk [vmem:[#allocation3 + $0x150] sm:$0xff] %vm1938_vm6, %v1831_v56 }
 0x35f   :  { %2615 = vrot.lane.b32.xlu0 %v8043_v25, %s6462_s18  ;;  %v4291_v32 = vld [vmem:[#allocation4 + $0xc0] ss:$2 sm:$0xff]  ;;  %v4355_v41 = vld [vmem:[#allocation4 + $0xc1] ss:$2 sm:$0xff]  ;;  %333 = vst.msk [vmem:[#allocation2 + $0x331] sm:$0xff] %vm50_vm0, %v267_v0 }
 0x360   :  { %v2985_v27 = vpop.permute.xlu1 %2984  ;;  %v4406_v5 = vmax.f32 %v4291_v32, %v4355_v41 }
 0x361   :  { %3136 = vst.msk [vmem:[#allocation3 + $0x148] sm:$0xff] %vm3094_vm9, %v2985_v27  ;;  %v3368_v15 = vpop.permute.xlu0 %3367 }
 0x362   :  { %2998 = vrot.lane.b32.xlu1 %v2822_v6, %s6463_s23  ;;  %3520 = vst.msk [vmem:[#allocation3 + $0x140] sm:$0xff] %vm3479_vm10, %v3368_v15  ;;  %v2824_v15 = vld [vmem:[#allocation2 + $0x2b9] sm:$0xff] }
 0x363   :  { %1463 = vrot.lane.b32.xlu0 %v8043_v25, %s6459_s15 }
 0x364   :  { %v1833_v10 = vpop.permute.xlu1 %1832 }
 0x365   :  { %1982 = vst.msk [vmem:[#allocation3 + $0x158] sm:$0xff] %vm1938_vm6, %v1833_v10  ;;  %v2216_v8 = vpop.permute.xlu0 %2215 }
 0x366   :  { %1846 = vrot.lane.b32.xlu1 %v2822_v6, %s6460_s16  ;;  %2366 = vst.msk [vmem:[#allocation3 + $0x150] sm:$0xff] %vm2323_vm7, %v2216_v8  ;;  %v8401_v8 = vld [vmem:[#allocation2 + $0x320] sm:$0xff] }
 0x367   :  { %3000 = vrot.lane.b32.xlu0 %v2823_v42, %s6463_s23  ;;  %462 = vst.msk [vmem:[#allocation3 + $0x1f8] sm:$0xff] %vm50_vm0, %v8401_v8 }
 0x368   :  { %v3370_v57 = vpop.permute.xlu1 %3369 }
 0x369   :  { %3521 = vst.msk [vmem:[#allocation3 + $0x148] sm:$0xff] %vm3479_vm10, %v3370_v57  ;;  %v1065_v46 = vpop.permute.xlu0 %1064  ;;  %v3584_v26 = vld [vmem:[#allocation3 + $0x140] sm:$0xff] }
 0x36a   :  { %3383 = vrot.lane.b32.xlu1 %v3207_v62, %s6464_s11  ;;  %1213 = vst.msk [vmem:[#allocation3 + $0x160] sm:$0xff] %vm1168_vm4, %v1065_v46  ;;  %6302 = vmatprep.mubr.msk.f32.mxu0 %vm3620_vm11, %v3584_v26  ;;  %v2825_v46 = vld [vmem:[#allocation2 + $0x2c1] sm:$0xff] }
 0x36b   :  { %695 = vrot.lane.b32.xlu0 %v2822_v6, %s6457_s13 }
 0x36c   :  { %v2218_v34 = vpop.permute.xlu1 %2217 }
 0x36d   :  { %2367 = vst.msk [vmem:[#allocation3 + $0x158] sm:$0xff] %vm2323_vm7, %v2218_v34  ;;  %v2602_v24 = vpop.permute.xlu0 %2601 }
 0x36e   :  { %v6283_v25 = vpop.f32.mrf.mxu0  ;;  %1848 = vrot.lane.b32.xlu1 %v2823_v42, %s6460_s16  ;;  %2752 = vst.msk [vmem:[#allocation3 + $0x150] sm:$0xff] %vm2709_vm8, %v2602_v24 }
 0x36f   :  { %v4019_v23 = vadd.f32 %v8052_v29, %v6283_v25  ;;  %2231 = vrot.lane.b32.xlu0 %v3207_v62, %s6461_s17  ;;  %v3209_v25 = vld [vmem:[#allocation2 + $0x2ba] sm:$0xff] }
 0x370   :  { %v4013_v35 = vpop.f32.mrf.mxu0  ;;  %v1067_v17 = vpop.permute.xlu1 %1066  ;;  %v3585_v37 = vld [vmem:[#allocation3 + $0x148] sm:$0xff] }
 0x371   :  { %4230 = vst.msk [vmem:[#allocation4 + $0xd8] sm:$0xff] %vm160_vm12, %v4019_v23  ;;  %v4014_v18 = vadd.f32 %v8052_v29, %v4013_v35  ;;  %6303 = vmatmul.mubr.msk.f32.gmra.mxu0 %vm3620_vm11, %v3585_v37  ;;  %v1450_v63 = vpop.permute.xlu0 %1449 }
 0x372   :  { %1214 = vst.msk [vmem:[#allocation3 + $0x168] sm:$0xff] %vm1168_vm4, %v1067_v17  ;;  %3385 = vrot.lane.b32.xlu1 %v3208_v9, %s6464_s11 }
 0x373   :  { %4229 = vst.msk [vmem:[#allocation4 + $0xd0] sm:$0xff] %vm160_vm12, %v4014_v18  ;;  %697 = vrot.lane.b32.xlu0 %v2823_v42, %s6457_s13 }
 0x374   :  { %1598 = vst.msk [vmem:[#allocation3 + $0x160] sm:$0xff] %vm1553_vm5, %v1450_v63  ;;  %v2604_v58 = vpop.permute.xlu1 %2603 }
 0x375   :  { %2753 = vst.msk [vmem:[#allocation3 + $0x158] sm:$0xff] %vm2709_vm8, %v2604_v58  ;;  %v2987_v43 = vpop.permute.xlu0 %2986 }
 0x376   :  { %1080 = vrot.lane.b32.xlu1 %v3207_v62, %s6458_s14  ;;  %3137 = vst.msk [vmem:[#allocation3 + $0x150] sm:$0xff] %vm3094_vm9, %v2987_v43  ;;  %v3210_v43 = vld [vmem:[#allocation2 + $0x2c2] sm:$0xff] }
 0x377   :  { %2233 = vrot.lane.b32.xlu0 %v3208_v9, %s6461_s17 }
 0x378   :  { %v1452_v12 = vpop.permute.xlu1 %1451 }
 0x379   :  { %1599 = vst.msk [vmem:[#allocation3 + $0x168] sm:$0xff] %vm1553_vm5, %v1452_v12  ;;  %v1835_v40 = vpop.permute.xlu0 %1834 }
 0x37a   :  { %v4293_v50 = vld [vmem:[#allocation4 + $0xd0] ss:$2 sm:$0xff]  ;;  %v4357_v60 = vld [vmem:[#allocation4 + $0xd1] ss:$2 sm:$0xff]  ;;  %2617 = vrot.lane.b32.xlu1 %v8105_v33, %s6462_s18  ;;  %1983 = vst.msk [vmem:[#allocation3 + $0x160] sm:$0xff] %vm1938_vm6, %v1835_v40 }
 0x37b   :  { %v4407_v52 = vmax.f32 %v4293_v50, %v4357_v60  ;;  %1082 = vrot.lane.b32.xlu0 %v3208_v9, %s6458_s14  ;;  %v268_v40 = vld [vmem:[%s9557_s0 + $0x1f8] sm:$0xff] }
 0x37c   :  { %v2989_v56 = vpop.permute.xlu1 %2988  ;;  %334 = vst.msk [vmem:[#allocation2 + $0x339] sm:$0xff] %vm50_vm0, %v268_v40  ;;  %vm5828_vm0 = vcmask 254976  }
 0x37d   :  { %v4432_v55 = vmax.f32 %v4406_v5, %v4407_v52  ;;  %3138 = vst.msk [vmem:[#allocation3 + $0x158] sm:$0xff] %vm3094_vm9, %v2989_v56  ;;  %v3372_v27 = vpop.permute.xlu0 %3371 }
 0x37e   :  { %1465 = vrot.lane.b32.xlu1 %v8105_v33, %s6459_s15  ;;  %3522 = vst.msk [vmem:[#allocation3 + $0x150] sm:$0xff] %vm3479_vm10, %v3372_v27  ;;  %v2826_v27 = vld [vmem:[#allocation2 + $0x2d1] sm:$0xff] }
 0x37f   :  { %v4448_v6 = vmax.f32 %v4432_v55, 0.0  ;;  %2619 = vrot.lane.b32.xlu0 %v8120_v59, %s6462_s18 }
 0x380   :  { %v1837_v42 = vpop.permute.xlu1 %1836 }
 0x381   :  { %v4471_v10 = vmul.f32 %v8146_v44, %v4448_v6  ;;  %1984 = vst.msk [vmem:[#allocation3 + $0x168] sm:$0xff] %vm1938_vm6, %v1837_v42  ;;  %v2220_v33 = vpop.permute.xlu0 %2219 }
 0x382   :  { %3002 = vrot.lane.b32.xlu1 %v2824_v15, %s6463_s23  ;;  %2368 = vst.msk [vmem:[#allocation3 + $0x160] sm:$0xff] %vm2323_vm7, %v2220_v33 }
 0x383   :  { %v4494_v62 = vadd.f32 %v8158_v2, %v4471_v10  ;;  %1467 = vrot.lane.b32.xlu0 %v8120_v59, %s6459_s15 }
 0x384   :  { %v3374_v57 = vpop.permute.xlu1 %3373 }
 0x385   :  { %4511 = vst.msk [vmem:[#allocation5 + $0x71] sm:$0xff] %vm160_vm12, %v4494_v62  ;;  %v686_v26 = vpop.permute.xlu0 %685  ;;  %v3586_v34 = vld [vmem:[#allocation3 + $0x150] sm:$0xff] }
 0x386   :  { %3523 = vst.msk [vmem:[#allocation3 + $0x158] sm:$0xff] %vm3479_vm10, %v3374_v57  ;;  %1850 = vrot.lane.b32.xlu1 %v2824_v15, %s6460_s16  ;;  %6305 = vmatprep.mubr.msk.f32.mxu0 %vm3620_vm11, %v3586_v34  ;;  %v2827_v57 = vld [vmem:[#allocation2 + $0x2d9] sm:$0xff] }
 0x387   :  { %831 = vst.msk [vmem:[#allocation3 + $0x178] sm:$0xff] %vm783_vm2, %v686_v26  ;;  %3004 = vrot.lane.b32.xlu0 %v2825_v46, %s6463_s23  ;;  %v3211_v34 = vld [vmem:[#allocation2 + $0x2d2] sm:$0xff] }
 0x388   :  { %v1069_v23 = vpop.permute.xlu1 %1068 }
 0x389   :  { %1215 = vst.msk [vmem:[#allocation3 + $0x170] sm:$0xff] %vm1168_vm4, %v1069_v23  ;;  %v6286_v24 = vpop.f32.mrf.mxu0  ;;  %v2222_v59 = vpop.permute.xlu0 %2221 }
 0x38a   :  { %v4029_v35 = vadd.f32 %v8052_v29, %v6286_v24  ;;  %3387 = vrot.lane.b32.xlu1 %v3209_v25, %s6464_s11  ;;  %2369 = vst.msk [vmem:[#allocation3 + $0x168] sm:$0xff] %vm2323_vm7, %v2222_v59 }
 0x38b   :  { %v4023_v9 = vpop.f32.mrf.mxu0  ;;  %699 = vrot.lane.b32.xlu0 %v2824_v15, %s6457_s13 }
 0x38c   :  { %v8422_v18 = vld [vmem:[#allocation5 + $0x70] sm:$0xff]  ;;  %4232 = vst.msk [vmem:[#allocation4 + $0xe8] sm:$0xff] %vm160_vm12, %v4029_v35  ;;  %v4024_v37 = vadd.f32 %v8052_v29, %v4023_v9  ;;  %v2606_v38 = vpop.permute.xlu1 %2605 }
 0x38d   :  { %v8424_v17 = vld [vmem:[#allocation5 + $0x72] sm:$0xff]  ;;  %4544 = vst.msk [vmem:[#allocation6 + $0x118] sm:$0xff] %vm160_vm12, %v8422_v18  ;;  %v1071_v41 = vpop.permute.xlu0 %1070 }
 0x38e   :  { %v3587_v63 = vld [vmem:[#allocation3 + $0x158] sm:$0xff]  ;;  %5056 = vst.msk [vmem:[#allocation6 + $0xe8] sm:$0xff] %vm160_vm12, %v8424_v17  ;;  %4673 = vst.msk [vmem:[#allocation6 + $0x120] sm:$0xff] %vm160_vm12, %v8424_v17  ;;  %v4912_v32 = vld [vmem:[#allocation5 + $0x70] sm:$0xff]  ;;  %1852 = vrot.lane.b32.xlu1 %v2825_v46, %s6460_s16 }
 0x38f   :  { %v8435_v58 = vld [vmem:[#allocation5 + $0x71] sm:$0xff]  ;;  %2754 = vst.msk [vmem:[#allocation3 + $0x160] sm:$0xff] %vm2709_vm8, %v2606_v38  ;;  %6306 = vmatmul.mubr.msk.f32.gmra.mxu0 %vm3620_vm11, %v3587_v63  ;;  %2235 = vrot.lane.b32.xlu0 %v3209_v25, %s6461_s17  ;;  %v3212_v38 = vld [vmem:[#allocation2 + $0x2da] sm:$0xff] }
 0x390   :  { %4800 = vst.msk [vmem:[#allocation6 + $0x100] sm:$0xff] %vm160_vm12, %v8435_v58  ;;  %4928 = vst.msk [vmem:[#allocation6 + $0xe0] sm:$0xff] %vm160_vm12, %v4912_v32  ;;  %v1454_v12 = vpop.permute.xlu1 %1453 }
 0x391   :  { %4231 = vst.msk [vmem:[#allocation4 + $0xe0] sm:$0xff] %vm160_vm12, %v4024_v37  ;;  %v2608_v50 = vpop.permute.xlu0 %2607 }
 0x392   :  { %1216 = vst.msk [vmem:[#allocation3 + $0x178] sm:$0xff] %vm1168_vm4, %v1071_v41  ;;  %3389 = vrot.lane.b32.xlu1 %v3210_v43, %s6464_s11 }
 0x393   :  { %1600 = vst.msk [vmem:[#allocation3 + $0x170] sm:$0xff] %vm1553_vm5, %v1454_v12  ;;  %701 = vrot.lane.b32.xlu0 %v2825_v46, %s6457_s13 }
 0x394   :  { %2755 = vst.msk [vmem:[#allocation3 + $0x168] sm:$0xff] %vm2709_vm8, %v2608_v50  ;;  %v2991_v60 = vpop.permute.xlu1 %2990 }
 0x395   :  { %3139 = vst.msk [vmem:[#allocation3 + $0x160] sm:$0xff] %vm3094_vm9, %v2991_v60  ;;  %v1456_v5 = vpop.permute.xlu0 %1455 }
 0x396   :  { %1084 = vrot.lane.b32.xlu1 %v3209_v25, %s6458_s14  ;;  %1601 = vst.msk [vmem:[#allocation3 + $0x178] sm:$0xff] %vm1553_vm5, %v1456_v5  ;;  %v8488_v25 = vld [vmem:[%s9559_s2] ss:$0 sm:$0xff] }
 0x397   :  { %2237 = vrot.lane.b32.xlu0 %v3210_v43, %s6461_s17 }
 0x398   :  { %v1839_v52 = vpop.permute.xlu1 %1838  ;;  %v4295_v59 = vld [vmem:[#allocation4 + $0xe0] ss:$2 sm:$0xff]  ;;  %v4359_v9 = vld [vmem:[#allocation4 + $0xe1] ss:$2 sm:$0xff] }
 0x399   :  { %1985 = vst.msk [vmem:[#allocation3 + $0x170] sm:$0xff] %vm1938_vm6, %v1839_v52  ;;  %v2993_v55 = vpop.permute.xlu0 %2992 }
 0x39a   :  { %2621 = vrot.lane.b32.xlu1 %v8175_v53, %s6462_s18  ;;  %3140 = vst.msk [vmem:[#allocation3 + $0x168] sm:$0xff] %vm3094_vm9, %v2993_v55 }
 0x39b   :  { %1086 = vrot.lane.b32.xlu0 %v3210_v43, %s6458_s14  ;;  %v4408_v43 = vmax.f32 %v4295_v59, %v4359_v9 }
 0x39c   :  { %v3376_v56 = vpop.permute.xlu1 %3375 }
 0x39d   :  { %3524 = vst.msk [vmem:[#allocation3 + $0x160] sm:$0xff] %vm3479_vm10, %v3376_v56  ;;  %v688_v6 = vpop.permute.xlu0 %687 }
 0x39e   :  { %1469 = vrot.lane.b32.xlu1 %v8175_v53, %s6459_s15  ;;  %832 = vst.msk [vmem:[#allocation3 + $0x180] sm:$0xff] %vm783_vm2, %v688_v6 }
 0x39f   :  { %2623 = vrot.lane.b32.xlu0 %v8208_v20, %s6462_s18 }
 0x3a0   :  { %v1841_v15 = vpop.permute.xlu1 %1840 }
 0x3a1   :  { %1986 = vst.msk [vmem:[#allocation3 + $0x178] sm:$0xff] %vm1938_vm6, %v1841_v15  ;;  %v2224_v10 = vpop.permute.xlu0 %2223  ;;  %v2828_v15 = vld [vmem:[#allocation2 + $0x2e9] sm:$0xff] }
 0x3a2   :  { %3006 = vrot.lane.b32.xlu1 %v2826_v27, %s6463_s23  ;;  %2370 = vst.msk [vmem:[#allocation3 + $0x170] sm:$0xff] %vm2323_vm7, %v2224_v10 }
 0x3a3   :  { %1471 = vrot.lane.b32.xlu0 %v8208_v20, %s6459_s15 }
 0x3a4   :  { %v3378_v42 = vpop.permute.xlu1 %3377  ;;  %v3588_v62 = vld [vmem:[#allocation3 + $0x160] sm:$0xff] }
 0x3a5   :  { %3525 = vst.msk [vmem:[#allocation3 + $0x168] sm:$0xff] %vm3479_vm10, %v3378_v42  ;;  %v6289_v53 = vpop.f32.mrf.mxu0  ;;  %6308 = vmatprep.mubr.msk.f32.mxu0 %vm3620_vm11, %v3588_v62  ;;  %v690_v46 = vpop.permute.xlu0 %689 }
 0x3a6   :  { %v4039_v33 = vadd.f32 %v8052_v29, %v6289_v53  ;;  %1854 = vrot.lane.b32.xlu1 %v2826_v27, %s6460_s16  ;;  %833 = vst.msk [vmem:[#allocation3 + $0x188] sm:$0xff] %vm783_vm2, %v690_v46 }
 0x3a7   :  { %v4033_v26 = vpop.f32.mrf.mxu0  ;;  %3008 = vrot.lane.b32.xlu0 %v2827_v57, %s6463_s23 }
 0x3a8   :  { %4234 = vst.msk [vmem:[#allocation4 + $0xf8] sm:$0xff] %vm160_vm12, %v4039_v33  ;;  %v4034_v20 = vadd.f32 %v8488_v25, %v4033_v26  ;;  %v1073_v23 = vpop.permute.xlu1 %1072 }
 0x3a9   :  { %1217 = vst.msk [vmem:[#allocation3 + $0x180] sm:$0xff] %vm1168_vm4, %v1073_v23  ;;  %v2226_v29 = vpop.permute.xlu0 %2225 }
 0x3aa   :  { %4233 = vst.msk [vmem:[#allocation4 + $0xf0] sm:$0xff] %vm160_vm12, %v4034_v20  ;;  %3391 = vrot.lane.b32.xlu1 %v3211_v34, %s6464_s11  ;;  %v2829_v20 = vld [vmem:[#allocation2 + $0x2f1] sm:$0xff] }
 0x3ab   :  { %2371 = vst.msk [vmem:[#allocation3 + $0x178] sm:$0xff] %vm2323_vm7, %v2226_v29  ;;  %703 = vrot.lane.b32.xlu0 %v2826_v27, %s6457_s13  ;;  %v3213_v29 = vld [vmem:[#allocation2 + $0x2ea] sm:$0xff] }
 0x3ac   :  { %v2610_v24 = vpop.permute.xlu1 %2609  ;;  %v3589_v35 = vld [vmem:[#allocation3 + $0x168] sm:$0xff] }
 0x3ad   :  { %2756 = vst.msk [vmem:[#allocation3 + $0x170] sm:$0xff] %vm2709_vm8, %v2610_v24  ;;  %6309 = vmatmul.mubr.msk.f32.gmra.mxu0 %vm3620_vm11, %v3589_v35  ;;  %v1075_v37 = vpop.permute.xlu0 %1074 }
 0x3ae   :  { %1856 = vrot.lane.b32.xlu1 %v2827_v57, %s6460_s16  ;;  %1218 = vst.msk [vmem:[#allocation3 + $0x188] sm:$0xff] %vm1168_vm4, %v1075_v37  ;;  %v3214_v37 = vld [vmem:[#allocation2 + $0x2f2] sm:$0xff] }
 0x3af   :  { %2239 = vrot.lane.b32.xlu0 %v3211_v34, %s6461_s17 }
 0x3b0   :  { %v1458_v63 = vpop.permute.xlu1 %1457 }
 0x3b1   :  { %v4297_v32 = vld [vmem:[#allocation4 + $0xf0] ss:$2 sm:$0xff]  ;;  %v4361_v41 = vld [vmem:[#allocation4 + $0xf1] ss:$2 sm:$0xff]  ;;  %1602 = vst.msk [vmem:[#allocation3 + $0x180] sm:$0xff] %vm1553_vm5, %v1458_v63  ;;  %v2612_v0 = vpop.permute.xlu0 %2611 }
 0x3b2   :  { %v4409_v12 = vmax.f32 %v4297_v32, %v4361_v41  ;;  %3393 = vrot.lane.b32.xlu1 %v3212_v38, %s6464_s11  ;;  %2757 = vst.msk [vmem:[#allocation3 + $0x178] sm:$0xff] %vm2709_vm8, %v2612_v0 }
 0x3b3   :  { %705 = vrot.lane.b32.xlu0 %v2827_v57, %s6457_s13 }
 0x3b4   :  { %v4433_v50 = vmax.f32 %v4408_v43, %v4409_v12  ;;  %v2995_v60 = vpop.permute.xlu1 %2994 }
 0x3b5   :  { %3141 = vst.msk [vmem:[#allocation3 + $0x170] sm:$0xff] %vm3094_vm9, %v2995_v60  ;;  %v1460_v52 = vpop.permute.xlu0 %1459 }
 0x3b6   :  { %v4449_v5 = vmax.f32 %v4433_v50, 0.0  ;;  %1088 = vrot.lane.b32.xlu1 %v3211_v34, %s6458_s14  ;;  %1603 = vst.msk [vmem:[#allocation3 + $0x188] sm:$0xff] %vm1553_vm5, %v1460_v52 }
 0x3b7   :  { %2241 = vrot.lane.b32.xlu0 %v3212_v38, %s6461_s17 }
 0x3b8   :  { %v4472_v40 = vmul.f32 %v8146_v44, %v4449_v5  ;;  %v1843_v55 = vpop.permute.xlu1 %1842 }
 0x3b9   :  { %1987 = vst.msk [vmem:[#allocation3 + $0x180] sm:$0xff] %vm1938_vm6, %v1843_v55  ;;  %v2997_v6 = vpop.permute.xlu0 %2996 }
 0x3ba   :  { %v4495_v56 = vadd.f32 %v8158_v2, %v4472_v40  ;;  %2625 = vrot.lane.b32.xlu1 %v8252_v51, %s6462_s18  ;;  %3142 = vst.msk [vmem:[#allocation3 + $0x178] sm:$0xff] %vm3094_vm9, %v2997_v6  ;;  %v2830_v40 = vld [vmem:[#allocation2 + $0x301] sm:$0xff] }
 0x3bb   :  { %1090 = vrot.lane.b32.xlu0 %v3212_v38, %s6458_s14 }
 0x3bc   :  { %v3380_v27 = vpop.permute.xlu1 %3379  ;;  %4512 = vst.msk [vmem:[#allocation5 + $0x81] sm:$0xff] %vm160_vm12, %v4495_v56 }
 0x3bd   :  { %3526 = vst.msk [vmem:[#allocation3 + $0x170] sm:$0xff] %vm3479_vm10, %v3380_v27  ;;  %v692_v44 = vpop.permute.xlu0 %691 }
 0x3be   :  { %1473 = vrot.lane.b32.xlu1 %v8252_v51, %s6459_s15  ;;  %834 = vst.msk [vmem:[#allocation3 + $0x190] sm:$0xff] %vm783_vm2, %v692_v44  ;;  %v2831_v44 = vld [vmem:[#allocation2 + $0x309] sm:$0xff] }
 0x3bf   :  { %2627 = vrot.lane.b32.xlu0 %v8266_v14, %s6462_s18 }
 0x3c0   :  { %v1845_v2 = vpop.permute.xlu1 %1844 }
 0x3c1   :  { %1988 = vst.msk [vmem:[#allocation3 + $0x188] sm:$0xff] %vm1938_vm6, %v1845_v2  ;;  %v6292_v10 = vpop.f32.mrf.mxu0  ;;  %v2228_v62 = vpop.permute.xlu0 %2227 }
 0x3c2   :  { %v4049_v42 = vadd.f32 %v8488_v25, %v6292_v10  ;;  %3010 = vrot.lane.b32.xlu1 %v2828_v15, %s6463_s23  ;;  %2372 = vst.msk [vmem:[#allocation3 + $0x180] sm:$0xff] %vm2323_vm7, %v2228_v62 }
 0x3c3   :  { %v4043_v53 = vpop.f32.mrf.mxu0  ;;  %v8527_v33 = vld [vmem:[#allocation5 + $0x82] sm:$0xff]  ;;  %1475 = vrot.lane.b32.xlu0 %v8266_v14, %s6459_s15 }
 0x3c4   :  { %v8529_v51 = vld [vmem:[#allocation5 + $0x81] sm:$0xff]  ;;  %4236 = vst.msk [vmem:[#allocation4 + $0x108] sm:$0xff] %vm160_vm12, %v4049_v42  ;;  %v4044_v57 = vadd.f32 %v8488_v25, %v4043_v53  ;;  %v3382_v46 = vpop.permute.xlu1 %3381  ;;  %v3590_v26 = vld [vmem:[#allocation3 + $0x170] sm:$0xff]  ;;  %5057 = vst.msk [vmem:[#allocation6 + $0x110] sm:$0xff] %vm160_vm12, %v8527_v33 }
 0x3c5   :  { %4801 = vst.msk [vmem:[#allocation6 + $0x128] sm:$0xff] %vm160_vm12, %v8529_v51  ;;  %v4913_v34 = vld [vmem:[#allocation5 + $0x80] sm:$0xff]  ;;  %6311 = vmatprep.mubr.msk.f32.mxu0 %vm3620_vm11, %v3590_v26  ;;  %v694_v23 = vpop.permute.xlu0 %693 }
 0x3c6   :  { %3527 = vst.msk [vmem:[#allocation3 + $0x178] sm:$0xff] %vm3479_vm10, %v3382_v46  ;;  %1858 = vrot.lane.b32.xlu1 %v2828_v15, %s6460_s16  ;;  %v3215_v42 = vld [vmem:[#allocation2 + $0x302] sm:$0xff] }
 0x3c7   :  { %4929 = vst.msk [vmem:[#allocation6 + $0x108] sm:$0xff] %vm160_vm12, %v4913_v34  ;;  %4235 = vst.msk [vmem:[#allocation4 + $0x100] sm:$0xff] %vm160_vm12, %v4044_v57  ;;  %3012 = vrot.lane.b32.xlu0 %v2829_v20, %s6463_s23 }
 0x3c8   :  { %835 = vst.msk [vmem:[#allocation3 + $0x198] sm:$0xff] %vm783_vm2, %v694_v23  ;;  %v1077_v24 = vpop.permute.xlu1 %1076 }
 0x3c9   :  { %1219 = vst.msk [vmem:[#allocation3 + $0x190] sm:$0xff] %vm1168_vm4, %v1077_v24  ;;  %v2230_v14 = vpop.permute.xlu0 %2229 }
 0x3ca   :  { %3395 = vrot.lane.b32.xlu1 %v3213_v29, %s6464_s11  ;;  %2373 = vst.msk [vmem:[#allocation3 + $0x188] sm:$0xff] %vm2323_vm7, %v2230_v14  ;;  %v3216_v14 = vld [vmem:[#allocation2 + $0x30a] sm:$0xff] }
 0x3cb   :  { %707 = vrot.lane.b32.xlu0 %v2828_v15, %s6457_s13 }
 0x3cc   :  { %v2614_v35 = vpop.permute.xlu1 %2613 }
 0x3cd   :  { %v3591_v59 = vld [vmem:[#allocation3 + $0x178] sm:$0xff]  ;;  %2758 = vst.msk [vmem:[#allocation3 + $0x180] sm:$0xff] %vm2709_vm8, %v2614_v35  ;;  %v1079_v9 = vpop.permute.xlu0 %1078  ;;  %v8599_v35 = vld [vmem:[%s9560_s3] ss:$0 sm:$0xff] }
 0x3ce   :  { %6312 = vmatmul.mubr.msk.f32.gmra.mxu0 %vm3620_vm11, %v3591_v59  ;;  %1860 = vrot.lane.b32.xlu1 %v2829_v20, %s6460_s16  ;;  %1220 = vst.msk [vmem:[#allocation3 + $0x198] sm:$0xff] %vm1168_vm4, %v1079_v9  ;;  %v4299_v15 = vld [vmem:[#allocation4 + $0x100] ss:$2 sm:$0xff]  ;;  %v4363_v2 = vld [vmem:[#allocation4 + $0x101] ss:$2 sm:$0xff] }
 0x3cf   :  { %2243 = vrot.lane.b32.xlu0 %v3213_v29, %s6461_s17  ;;  %v4410_v46 = vmax.f32 %v4299_v15, %v4363_v2 }
 0x3d0   :  { %v1462_v38 = vpop.permute.xlu1 %1461 }
 0x3d1   :  { %1604 = vst.msk [vmem:[#allocation3 + $0x190] sm:$0xff] %vm1553_vm5, %v1462_v38  ;;  %v2616_v63 = vpop.permute.xlu0 %2615 }
 0x3d2   :  { %3397 = vrot.lane.b32.xlu1 %v3214_v37, %s6464_s11  ;;  %2759 = vst.msk [vmem:[#allocation3 + $0x188] sm:$0xff] %vm2709_vm8, %v2616_v63 }
 0x3d3   :  { %709 = vrot.lane.b32.xlu0 %v2829_v20, %s6457_s13 }
 0x3d4   :  { %v2999_v32 = vpop.permute.xlu1 %2998 }
 0x3d5   :  { %3143 = vst.msk [vmem:[#allocation3 + $0x180] sm:$0xff] %vm3094_vm9, %v2999_v32  ;;  %v1464_v41 = vpop.permute.xlu0 %1463 }
 0x3d6   :  { %1092 = vrot.lane.b32.xlu1 %v3213_v29, %s6458_s14  ;;  %1605 = vst.msk [vmem:[#allocation3 + $0x198] sm:$0xff] %vm1553_vm5, %v1464_v41 }
 0x3d7   :  { %2245 = vrot.lane.b32.xlu0 %v3214_v37, %s6461_s17 }
 0x3d8   :  { %v1847_v43 = vpop.permute.xlu1 %1846 }
 0x3d9   :  { %1989 = vst.msk [vmem:[#allocation3 + $0x190] sm:$0xff] %vm1938_vm6, %v1847_v43  ;;  %v3001_v12 = vpop.permute.xlu0 %3000 }
 0x3da   :  { %2629 = vrot.lane.b32.xlu1 %v8329_v54, %s6462_s18  ;;  %3144 = vst.msk [vmem:[#allocation3 + $0x188] sm:$0xff] %vm3094_vm9, %v3001_v12 }
 0x3db   :  { %1094 = vrot.lane.b32.xlu0 %v3214_v37, %s6458_s14  ;;  %v8608_v37 = vld [vmem:[%s9561_s4] ss:$0 sm:$0xff] }
 0x3dc   :  { %v3384_v0 = vpop.permute.xlu1 %3383 }
 0x3dd   :  { %3528 = vst.msk [vmem:[#allocation3 + $0x180] sm:$0xff] %vm3479_vm10, %v3384_v0  ;;  %v696_v5 = vpop.permute.xlu0 %695 }
 0x3de   :  { %1477 = vrot.lane.b32.xlu1 %v8329_v54, %s6459_s15  ;;  %836 = vst.msk [vmem:[#allocation3 + $0x1a0] sm:$0xff] %vm783_vm2, %v696_v5 }
 0x3df   :  { %v6295_v50 = vpop.f32.mrf.mxu0  ;;  %2631 = vrot.lane.b32.xlu0 %v8342_v22, %s6462_s18 }
 0x3e0   :  { %v4059_v60 = vadd.f32 %v8488_v25, %v6295_v50  ;;  %v1849_v56 = vpop.permute.xlu1 %1848 }
 0x3e1   :  { %v4053_v52 = vpop.f32.mrf.mxu0  ;;  %1990 = vst.msk [vmem:[#allocation3 + $0x198] sm:$0xff] %vm1938_vm6, %v1849_v56  ;;  %v2232_v54 = vpop.permute.xlu0 %2231 }
 0x3e2   :  { %4238 = vst.msk [vmem:[#allocation4 + $0x118] sm:$0xff] %vm160_vm12, %v4059_v60  ;;  %v4054_v55 = vadd.f32 %v8488_v25, %v4053_v52  ;;  %3014 = vrot.lane.b32.xlu1 %v2830_v40, %s6463_s23 }
 0x3e3   :  { %2374 = vst.msk [vmem:[#allocation3 + $0x190] sm:$0xff] %vm2323_vm7, %v2232_v54  ;;  %1479 = vrot.lane.b32.xlu0 %v8342_v22, %s6459_s15 }
 0x3e4   :  { %4237 = vst.msk [vmem:[#allocation4 + $0x110] sm:$0xff] %vm160_vm12, %v4054_v55  ;;  %v3386_v6 = vpop.permute.xlu1 %3385  ;;  %v3592_v27 = vld [vmem:[#allocation3 + $0x180] sm:$0xff] }
 0x3e5   :  { %3529 = vst.msk [vmem:[#allocation3 + $0x188] sm:$0xff] %vm3479_vm10, %v3386_v6  ;;  %6314 = vmatprep.mubr.msk.f32.mxu0 %vm3620_vm11, %v3592_v27  ;;  %v698_v10 = vpop.permute.xlu0 %697  ;;  %v2832_v6 = vld [vmem:[#allocation2 + $0x319] sm:$0xff] }
 0x3e6   :  { %1862 = vrot.lane.b32.xlu1 %v2830_v40, %s6460_s16  ;;  %837 = vst.msk [vmem:[#allocation3 + $0x1a8] sm:$0xff] %vm783_vm2, %v698_v10 }
 0x3e7   :  { %3016 = vrot.lane.b32.xlu0 %v2831_v44, %s6463_s23 }
 0x3e8   :  { %v1081_v62 = vpop.permute.xlu1 %1080 }
 0x3e9   :  { %1221 = vst.msk [vmem:[#allocation3 + $0x1a0] sm:$0xff] %vm1168_vm4, %v1081_v62  ;;  %v2234_v26 = vpop.permute.xlu0 %2233 }
 0x3ea   :  { %3399 = vrot.lane.b32.xlu1 %v3215_v42, %s6464_s11  ;;  %2375 = vst.msk [vmem:[#allocation3 + $0x198] sm:$0xff] %vm2323_vm7, %v2234_v26 }
 0x3eb   :  { %v4301_v53 = vld [vmem:[#allocation4 + $0x110] ss:$2 sm:$0xff]  ;;  %v4365_v57 = vld [vmem:[#allocation4 + $0x111] ss:$2 sm:$0xff]  ;;  %711 = vrot.lane.b32.xlu0 %v2830_v40, %s6457_s13 }
 0x3ec   :  { %v4411_v22 = vmax.f32 %v4301_v53, %v4365_v57  ;;  %v2618_v20 = vpop.permute.xlu1 %2617  ;;  %v3593_v23 = vld [vmem:[#allocation3 + $0x188] sm:$0xff] }
 0x3ed   :  { %2760 = vst.msk [vmem:[#allocation3 + $0x190] sm:$0xff] %vm2709_vm8, %v2618_v20  ;;  %6315 = vmatmul.mubr.msk.f32.gmra.mxu0 %vm3620_vm11, %v3593_v23  ;;  %v1083_v24 = vpop.permute.xlu0 %1082 }
 0x3ee   :  { %v4434_v34 = vmax.f32 %v4410_v46, %v4411_v22  ;;  %1864 = vrot.lane.b32.xlu1 %v2831_v44, %s6460_s16  ;;  %1222 = vst.msk [vmem:[#allocation3 + $0x1a8] sm:$0xff] %vm1168_vm4, %v1083_v24  ;;  %v3218_v22 = vld [vmem:[#allocation2 + $0x322] sm:$0xff] }
 0x3ef   :  { %2247 = vrot.lane.b32.xlu0 %v3215_v42, %s6461_s17 }
 0x3f0   :  { %v4450_v29 = vmax.f32 %v4434_v34, 0.0  ;;  %v1466_v9 = vpop.permute.xlu1 %1465 }
 0x3f1   :  { %1606 = vst.msk [vmem:[#allocation3 + $0x1a0] sm:$0xff] %vm1553_vm5, %v1466_v9  ;;  %v2620_v63 = vpop.permute.xlu0 %2619 }
 0x3f2   :  { %v4473_v59 = vmul.f32 %v8599_v35, %v4450_v29  ;;  %3401 = vrot.lane.b32.xlu1 %v3216_v14, %s6464_s11  ;;  %2761 = vst.msk [vmem:[#allocation3 + $0x198] sm:$0xff] %vm2709_vm8, %v2620_v63 }
 0x3f3   :  { %713 = vrot.lane.b32.xlu0 %v2831_v44, %s6457_s13 }
 0x3f4   :  { %v4496_v38 = vadd.f32 %v8608_v37, %v4473_v59  ;;  %v3003_v32 = vpop.permute.xlu1 %3002  ;;  %v2449_v59 = vld [vmem:[#allocation2 + $0x330] sm:$0xff] }
 0x3f5   :  { %3145 = vst.msk [vmem:[#allocation3 + $0x190] sm:$0xff] %vm3094_vm9, %v3003_v32  ;;  %v1468_v41 = vpop.permute.xlu0 %1467 }
 0x3f6   :  { %4513 = vst.msk [vmem:[#allocation5 + $0xb1] sm:$0xff] %vm160_vm12, %v4496_v38  ;;  %1096 = vrot.lane.b32.xlu1 %v3215_v42, %s6458_s14  ;;  %v3217_v42 = vld [vmem:[#allocation2 + $0x31a] sm:$0xff] }
 0x3f7   :  { %1607 = vst.msk [vmem:[#allocation3 + $0x1a8] sm:$0xff] %vm1553_vm5, %v1468_v41  ;;  %2249 = vrot.lane.b32.xlu0 %v3216_v14, %s6461_s17  ;;  %v5178_v41 = vld [vmem:[%s9562_s5 + $0xf8] sm:$0xff] }
 0x3f8   :  { %v1851_v43 = vpop.permute.xlu1 %1850  ;;  %6031 = vmatprep.subr.mxu1 %v5178_v41 }
 0x3f9   :  { %1991 = vst.msk [vmem:[#allocation3 + $0x1a0] sm:$0xff] %vm1938_vm6, %v1851_v43  ;;  %v6298_v12 = vpop.f32.mrf.mxu0  ;;  %v3005_v50 = vpop.permute.xlu0 %3004  ;;  %v5162_v43 = vld [vmem:[%s9562_s5 + $0x78] sm:$0xff] }
 0x3fa   :  { %v4069_v0 = vadd.f32 %v8488_v25, %v6298_v12  ;;  %2633 = vrot.lane.b32.xlu1 %v8387_v61, %s6462_s18  ;;  %3146 = vst.msk [vmem:[#allocation3 + $0x198] sm:$0xff] %vm3094_vm9, %v3005_v50  ;;  %v2450_v12 = vld [vmem:[#allocation2 + $0x338] sm:$0xff]  ;;  %6032 = vmatpush3.msra.mxu1 %v5162_v43  ;;  %v5177_v50 = vld [vmem:[%s9562_s5 + $0xf0] sm:$0xff]  ;;  %v5155_v43 = vld [vmem:[%s9562_s5 + $0x40] sm:$0xff] }
 0x3fb   :  { %v4063_v60 = vpop.f32.mrf.mxu0  ;;  %1098 = vrot.lane.b32.xlu0 %v3216_v14, %s6458_s14  ;;  %6033 = vmatprep.subr.mxu1 %v5177_v50  ;;  %v5170_v50 = vld [vmem:[%s9562_s5 + $0xb8] sm:$0xff] }
 0x3fc   :  { %4240 = vst.msk [vmem:[#allocation4 + $0x128] sm:$0xff] %vm160_vm12, %v4069_v0  ;;  %v4064_v40 = vadd.f32 %v8488_v25, %v4063_v60  ;;  %v3388_v55 = vpop.permute.xlu1 %3387  ;;  %v2834_v0 = vld [vmem:[#allocation2 + $0x331] sm:$0xff] }
 0x3fd   :  { %v8623_v5 = vld [vmem:[#allocation5 + $0xb0] sm:$0xff]  ;;  %3530 = vst.msk [vmem:[#allocation3 + $0x190] sm:$0xff] %vm3479_vm10, %v3388_v55  ;;  %v700_v54 = vpop.permute.xlu0 %699 }
 0x3fe   :  { %v8625_v52 = vld [vmem:[#allocation5 + $0xb2] sm:$0xff]  ;;  %4546 = vst.msk [vmem:[#allocation6 + $0x168] sm:$0xff] %vm160_vm12, %v8623_v5  ;;  %4239 = vst.msk [vmem:[#allocation4 + $0x120] sm:$0xff] %vm160_vm12, %v4064_v40  ;;  %1481 = vrot.lane.b32.xlu1 %v8387_v61, %s6459_s15  ;;  %v2833_v61 = vld [vmem:[#allocation2 + $0x321] sm:$0xff] }
 0x3ff   :  { %4675 = vst.msk [vmem:[#allocation6 + $0x170] sm:$0xff] %vm160_vm12, %v8625_v52  ;;  %v4786_v56 = vld [vmem:[#allocation5 + $0xb1] sm:$0xff]  ;;  %2635 = vrot.lane.b32.xlu0 %v8401_v8, %s6462_s18 }
 0x400   :  { %4802 = vst.msk [vmem:[#allocation6 + $0x150] sm:$0xff] %vm160_vm12, %v4786_v56  ;;  %v1853_v27 = vpop.permute.xlu1 %1852  ;;  %v5161_v56 = vld [vmem:[%s9562_s5 + $0x70] sm:$0xff] }
 0x401   :  { %838 = vst.msk [vmem:[#allocation3 + $0x1b0] sm:$0xff] %vm783_vm2, %v700_v54  ;;  %v2236_v44 = vpop.permute.xlu0 %2235  ;;  %6034 = vmatpush3.msra.mxu1 %v5161_v56 }
 0x402   :  { %1992 = vst.msk [vmem:[#allocation3 + $0x1a8] sm:$0xff] %vm1938_vm6, %v1853_v27  ;;  %3018 = vrot.lane.b32.xlu1 %v2832_v6, %s6463_s23 }
 0x403   :  { %2376 = vst.msk [vmem:[#allocation3 + $0x1a0] sm:$0xff] %vm2323_vm7, %v2236_v44  ;;  %1483 = vrot.lane.b32.xlu0 %v8401_v8, %s6459_s15 }
 0x404   :  { %v3390_v15 = vpop.permute.xlu1 %3389  ;;  %v3594_v2 = vld [vmem:[#allocation3 + $0x190] sm:$0xff] }
 0x405   :  { %3531 = vst.msk [vmem:[#allocation3 + $0x198] sm:$0xff] %vm3479_vm10, %v3390_v15  ;;  %6317 = vmatprep.mubr.msk.f32.mxu0 %vm3620_vm11, %v3594_v2  ;;  %v702_v10 = vpop.permute.xlu0 %701  ;;  %v4303_v60 = vld [vmem:[#allocation4 + $0x120] ss:$2 sm:$0xff]  ;;  %v4367_v40 = vld [vmem:[#allocation4 + $0x121] ss:$2 sm:$0xff] }
 0x406   :  { %1866 = vrot.lane.b32.xlu1 %v2832_v6, %s6460_s16  ;;  %839 = vst.msk [vmem:[#allocation3 + $0x1b8] sm:$0xff] %vm783_vm2, %v702_v10  ;;  %v5160_v15 = vld [vmem:[%s9562_s5 + $0x68] sm:$0xff]  ;;  %v4412_v2 = vmax.f32 %v4303_v60, %v4367_v40  ;;  %v5175_v10 = vld [vmem:[%s9562_s5 + $0xe0] sm:$0xff]  ;;  %v5218_v60 = vld [vmem:[%s9562_s5 + $0x238] sm:$0xff] }
 0x407   :  { %3020 = vrot.lane.b32.xlu0 %v2833_v61, %s6463_s23  ;;  %v3220_v40 = vld [vmem:[#allocation2 + $0x33a] sm:$0xff]  ;;  %6338 = vmatprep.subr.mxu0 %v5218_v60 }
 0x408   :  { %v1085_v62 = vpop.permute.xlu1 %1084  ;;  %6339 = vmatpush3.msra.mxu0 %v5218_v60  ;;  %v5213_v60 = vld [vmem:[%s9562_s5 + $0x210] sm:$0xff] }
 0x409   :  { %1223 = vst.msk [vmem:[#allocation3 + $0x1b0] sm:$0xff] %vm1168_vm4, %v1085_v62  ;;  %v2238_v53 = vpop.permute.xlu0 %2237  ;;  %v5159_v62 = vld [vmem:[%s9562_s5 + $0x60] sm:$0xff] }
 0x40a   :  { %3403 = vrot.lane.b32.xlu1 %v3217_v42, %s6464_s11  ;;  %2377 = vst.msk [vmem:[#allocation3 + $0x1a8] sm:$0xff] %vm2323_vm7, %v2238_v53 }
 0x40b   :  { %715 = vrot.lane.b32.xlu0 %v2832_v6, %s6457_s13  ;;  %v5176_v6 = vld [vmem:[%s9562_s5 + $0xe8] sm:$0xff] }
 0x40c   :  { %v2622_v8 = vpop.permute.xlu1 %2621  ;;  %v3595_v57 = vld [vmem:[#allocation3 + $0x198] sm:$0xff]  ;;  %6035 = vmatprep.subr.mxu1 %v5176_v6  ;;  %v5217_v6 = vld [vmem:[%s9562_s5 + $0x230] sm:$0xff] }
 0x40d   :  { %2762 = vst.msk [vmem:[#allocation3 + $0x1a0] sm:$0xff] %vm2709_vm8, %v2622_v8  ;;  %6318 = vmatmul.mubr.msk.f32.gmra.mxu0 %vm3620_vm11, %v3595_v57  ;;  %v1087_v46 = vpop.permute.xlu0 %1086  ;;  %6036 = vmatpush3.msra.mxu1 %v5160_v15 }
 0x40e   :  { %1868 = vrot.lane.b32.xlu1 %v2833_v61, %s6460_s16  ;;  %1224 = vst.msk [vmem:[#allocation3 + $0x1b8] sm:$0xff] %vm1168_vm4, %v1087_v46  ;;  %6037 = vmatprep.subr.mxu1 %v5175_v10  ;;  %v5174_v46 = vld [vmem:[%s9562_s5 + $0xd8] sm:$0xff] }
 0x40f   :  { %2251 = vrot.lane.b32.xlu0 %v3217_v42, %s6461_s17  ;;  %6038 = vmatpush3.msra.mxu1 %v5159_v62  ;;  %v5152_v62 = vld [vmem:[%s9562_s5 + $0x28] sm:$0xff] }
 0x410   :  { %v1470_v26 = vpop.permute.xlu1 %1469  ;;  %6039 = vmatprep.subr.mxu1 %v5174_v46  ;;  %6340 = vmatprep.subr.mxu0 %v5217_v6 }
 0x411   :  { %1608 = vst.msk [vmem:[#allocation3 + $0x1b0] sm:$0xff] %vm1553_vm5, %v1470_v26  ;;  %v2624_v34 = vpop.permute.xlu0 %2623  ;;  %v5173_v26 = vld [vmem:[%s9562_s5 + $0xd0] sm:$0xff]  ;;  %6341 = vmatpush3.msra.mxu0 %v5217_v6 }
 0x412   :  { %3405 = vrot.lane.b32.xlu1 %v3218_v22, %s6464_s11  ;;  %2763 = vst.msk [vmem:[#allocation3 + $0x1a8] sm:$0xff] %vm2709_vm8, %v2624_v34 }
 0x413   :  { %717 = vrot.lane.b32.xlu0 %v2833_v61, %s6457_s13 }
 0x414   :  { %v3007_v20 = vpop.permute.xlu1 %3006 }
 0x415   :  { %3147 = vst.msk [vmem:[#allocation3 + $0x1a0] sm:$0xff] %vm3094_vm9, %v3007_v20  ;;  %v6301_v23 = vpop.f32.mrf.mxu0  ;;  %v1472_v24 = vpop.permute.xlu0 %1471  ;;  %v2835_v20 = vld [vmem:[#allocation2 + $0x339] sm:$0xff] }
 0x416   :  { %v4079_v29 = vadd.f32 %v8488_v25, %v6301_v23  ;;  %1100 = vrot.lane.b32.xlu1 %v3217_v42, %s6458_s14  ;;  %1609 = vst.msk [vmem:[#allocation3 + $0x1b8] sm:$0xff] %vm1553_vm5, %v1472_v24  ;;  %v5157_v24 = vld [vmem:[%s9562_s5 + $0x50] sm:$0xff] }
 0x417   :  { %v4073_v14 = vpop.f32.mrf.mxu0  ;;  %2253 = vrot.lane.b32.xlu0 %v3218_v22, %s6461_s17 }
 0x418   :  { %4242 = vst.msk [vmem:[#allocation4 + $0x138] sm:$0xff] %vm160_vm12, %v4079_v29  ;;  %v4074_v9 = vadd.f32 %v8488_v25, %v4073_v14  ;;  %v1855_v38 = vpop.permute.xlu1 %1854  ;;  %v3219_v29 = vld [vmem:[#allocation2 + $0x332] sm:$0xff] }
 0x419   :  { %1993 = vst.msk [vmem:[#allocation3 + $0x1b0] sm:$0xff] %vm1938_vm6, %v1855_v38  ;;  %v3009_v63 = vpop.permute.xlu0 %3008  ;;  %v5156_v38 = vld [vmem:[%s9562_s5 + $0x48] sm:$0xff] }
 0x41a   :  { %4241 = vst.msk [vmem:[#allocation4 + $0x130] sm:$0xff] %vm160_vm12, %v4074_v9  ;;  %2637 = vrot.lane.b32.xlu1 %v2449_v59, %s6462_s18  ;;  %v5172_v9 = vld [vmem:[%s9562_s5 + $0xc8] sm:$0xff] }
 0x41b   :  { %3148 = vst.msk [vmem:[#allocation3 + $0x1a8] sm:$0xff] %vm3094_vm9, %v3009_v63  ;;  %1102 = vrot.lane.b32.xlu0 %v3218_v22, %s6458_s14  ;;  %v5158_v22 = vld [vmem:[%s9562_s5 + $0x58] sm:$0xff]  ;;  %v5171_v63 = vld [vmem:[%s9562_s5 + $0xc0] sm:$0xff]  ;;  %s6467_s14 = smov [#allocation9]  }
 0x41c   :  { %v3392_v32 = vpop.permute.xlu1 %3391  ;;  %6040 = vmatpush3.msra.mxu1 %v5158_v22  ;;  %s5868_s1 = sshll.u32 %s6467_s14, 4  ;;  %s5869_s1 = int_to_ptr.vmem [resolvable:$true] %s5868_s1 }
 0x41d   :  { %3532 = vst.msk [vmem:[#allocation3 + $0x1a0] sm:$0xff] %vm3479_vm10, %v3392_v32  ;;  %v704_v55 = vpop.permute.xlu0 %703  ;;  %6041 = vmatprep.subr.mxu1 %v5173_v26  ;;  %p6439_p1 = scmp.lt.s32.totalorder %s5869_s1, %s5869_s1 }
 0x41e   :  { %1485 = vrot.lane.b32.xlu1 %v2449_v59, %s6459_s15  ;;  %840 = vst.msk [vmem:[#allocation3 + $0x1c0] sm:$0xff] %vm783_vm2, %v704_v55  ;;  %6042 = vmatpush3.msra.mxu1 %v5157_v24  ;;  %v5154_v55 = vld [vmem:[%s9562_s5 + $0x38] sm:$0xff]  ;;  %v5151_v24 = vld [vmem:[%s9562_s5 + $0x20] sm:$0xff] }
 0x41f   :  { %2639 = vrot.lane.b32.xlu0 %v2450_v12, %s6462_s18  ;;  %6043 = vmatprep.subr.mxu1 %v5172_v9 }
 0x420   :  { %v1857_v54 = vpop.permute.xlu1 %1856  ;;  %6044 = vmatpush3.msra.mxu1 %v5156_v38 }
 0x421   :  { %v4305_v27 = vld [vmem:[#allocation4 + $0x130] ss:$2 sm:$0xff]  ;;  %v4369_v44 = vld [vmem:[#allocation4 + $0x131] ss:$2 sm:$0xff]  ;;  %1994 = vst.msk [vmem:[#allocation3 + $0x1b8] sm:$0xff] %vm1938_vm6, %v1857_v54  ;;  %v2240_v42 = vpop.permute.xlu0 %2239  ;;  %6045 = vmatprep.subr.mxu1 %v5171_v63 }
 0x422   :  { %v4413_v61 = vmax.f32 %v4305_v27, %v4369_v44  ;;  %3022 = vrot.lane.b32.xlu1 %v2834_v0, %s6463_s23  ;;  %2378 = vst.msk [vmem:[#allocation3 + $0x1b0] sm:$0xff] %vm2323_vm7, %v2240_v42  ;;  %6046 = vmatpush3.msra.mxu1 %v5155_v43  ;;  %v5169_v54 = vld [vmem:[%s9562_s5 + $0xb0] sm:$0xff]  ;;  %v2451_v42 = vld [vmem:[#allocation2 + $0x348] sm:$0xff] }
 0x423   :  { %1487 = vrot.lane.b32.xlu0 %v2450_v12, %s6459_s15  ;;  %6047 = vmatprep.subr.mxu1 %v5170_v50  ;;  %v5153_v44 = vld [vmem:[%s9562_s5 + $0x30] sm:$0xff] }
 0x424   :  { %v4435_v53 = vmax.f32 %v4412_v2, %v4413_v61  ;;  %v3394_v8 = vpop.permute.xlu1 %3393  ;;  %v3596_v57 = vld [vmem:[#allocation3 + $0x1a0] sm:$0xff]  ;;  %6048 = vmatpush3.msra.mxu1 %v5154_v55  ;;  %v5168_v2 = vld [vmem:[%s9562_s5 + $0xa8] sm:$0xff]  ;;  %v5165_v50 = vld [vmem:[%s9562_s5 + $0x90] sm:$0xff] }
 0x425   :  { %3533 = vst.msk [vmem:[#allocation3 + $0x1a8] sm:$0xff] %vm3479_vm10, %v3394_v8  ;;  %6320 = vmatprep.mubr.msk.f32.mxu0 %vm3620_vm11, %v3596_v57  ;;  %v706_v23 = vpop.permute.xlu0 %705  ;;  %6049 = vmatprep.subr.mxu1 %v5169_v54  ;;  %v5216_v61 = vld [vmem:[%s9562_s5 + $0x228] sm:$0xff]  ;;  %v2452_v57 = vld [vmem:[#allocation2 + $0x350] sm:$0xff] }
 0x426   :  { %v4451_v34 = vmax.f32 %v4435_v53, 0.0  ;;  %1870 = vrot.lane.b32.xlu1 %v2834_v0, %s6460_s16  ;;  %841 = vst.msk [vmem:[#allocation3 + $0x1c8] sm:$0xff] %vm783_vm2, %v706_v23  ;;  %6050 = vmatpush3.msra.mxu1 %v5153_v44  ;;  %v4650_v23 = vld [vmem:[#allocation5 + $0x2] sm:$0xff]  ;;  %v5149_v55 = vld [vmem:[%s9562_s5 + $0x10] sm:$0xff] }
 0x427   :  { %3024 = vrot.lane.b32.xlu0 %v2835_v20, %s6463_s23  ;;  %6051 = vmatprep.subr.mxu1 %v5168_v2  ;;  %4666 = vst.msk [vmem:[#allocation6 + $0x8] sm:$0xff] %vm160_vm12, %v4650_v23  ;;  %v3222_v54 = vld [vmem:[#allocation2 + $0x352] sm:$0xff]  ;;  %v5212_v44 = vld [vmem:[%s9562_s5 + $0x208] sm:$0xff]  ;;  %v5163_v2 = vld [vmem:[%s9562_s5 + $0x80] sm:$0xff] }
 0x428   :  { %v4474_v14 = vmul.f32 %v8599_v35, %v4451_v34  ;;  %v1089_v59 = vpop.permute.xlu1 %1088  ;;  %6342 = vmatprep.subr.mxu0 %v5216_v61  ;;  %v5167_v34 = vld [vmem:[%s9562_s5 + $0xa0] sm:$0xff]  ;;  %6052 = vmatpush3.msra.mxu1 %v5152_v62 }
 0x429   :  { %1225 = vst.msk [vmem:[#allocation3 + $0x1c0] sm:$0xff] %vm1168_vm4, %v1089_v59  ;;  %v2242_v41 = vpop.permute.xlu0 %2241  ;;  %6343 = vmatpush3.msra.mxu0 %v5216_v61  ;;  %v5166_v59 = vld [vmem:[%s9562_s5 + $0x98] sm:$0xff]  ;;  %6053 = vmatprep.subr.mxu1 %v5167_v34  ;;  %v4555_v23 = vld [vmem:[#allocation5 + $0x21] sm:$0xff] }
 0x42a   :  { %v4497_v32 = vadd.f32 %v8608_v37, %v4474_v14  ;;  %3407 = vrot.lane.b32.xlu1 %v3219_v29, %s6464_s11  ;;  %2379 = vst.msk [vmem:[#allocation3 + $0x1b8] sm:$0xff] %vm2323_vm7, %v2242_v41  ;;  %v4521_v14 = vld [vmem:[#allocation5] sm:$0xff]  ;;  %v5214_v41 = vld [vmem:[%s9562_s5 + $0x218] sm:$0xff]  ;;  %6054 = vmatpush3.msra.mxu1 %v5151_v24 }
 0x42b   :  { %1872 = vrot.lane.b32.xlu0 %v2835_v20, %s6460_s16  ;;  %v5215_v20 = vld [vmem:[%s9562_s5 + $0x220] sm:$0xff]  ;;  %4537 = vst.msk [vmem:[#allocation6] sm:$0xff] %vm160_vm12, %v4521_v14  ;;  %6055 = vmatprep.subr.mxu1 %v5166_v59  ;;  %v4556_v59 = vld [vmem:[#allocation5 + $0x31] sm:$0xff] }
 0x42c   :  { %v2626_v12 = vpop.permute.xlu1 %2625  ;;  %v3597_v0 = vld [vmem:[#allocation3 + $0x1a8] sm:$0xff]  ;;  %4514 = vst.msk [vmem:[#allocation5 + $0xc1] sm:$0xff] %vm160_vm12, %v4497_v32  ;;  %v2837_v32 = vld [vmem:[#allocation2 + $0x351] sm:$0xff]  ;;  %6344 = vmatprep.subr.mxu0 %v5215_v20 }
 0x42d   :  { %2764 = vst.msk [vmem:[#allocation3 + $0x1b0] sm:$0xff] %vm2709_vm8, %v2626_v12  ;;  %6321 = vmatmul.mubr.msk.f32.gmra.mxu0 %vm3620_vm11, %v3597_v0  ;;  %v1091_v56 = vpop.permute.xlu0 %1090  ;;  %v5150_v0 = vld [vmem:[%s9562_s5 + $0x18] sm:$0xff] }
 0x42e   :  { %2255 = vrot.lane.b32.xlu1 %v3219_v29, %s6461_s17  ;;  %1226 = vst.msk [vmem:[#allocation3 + $0x1c8] sm:$0xff] %vm1168_vm4, %v1091_v56  ;;  %v2836_v29 = vld [vmem:[#allocation2 + $0x349] sm:$0xff]  ;;  %6345 = vmatpush3.msra.mxu0 %v5215_v20 }
 0x42f   :  { %3409 = vrot.lane.b32.xlu0 %v3220_v40, %s6464_s11  ;;  %6346 = vmatprep.subr.mxu0 %v5214_v41 }
 0x430   :  { %v1474_v27 = vpop.permute.xlu1 %1473  ;;  %6056 = vmatpush3.msra.mxu1 %v5150_v0  ;;  %6347 = vmatpush3.msra.mxu0 %v5214_v41 }
 0x431   :  { %1610 = vst.msk [vmem:[#allocation3 + $0x1c0] sm:$0xff] %vm1553_vm5, %v1474_v27  ;;  %v6304_v15 = vpop.f32.mrf.mxu0  ;;  %v2628_v53 = vpop.permute.xlu0 %2627  ;;  %6057 = vmatprep.subr.mxu1 %v5165_v50  ;;  %6348 = vmatprep.subr.mxu0 %v5213_v60  ;;  %v5164_v27 = vld [vmem:[%s9562_s5 + $0x88] sm:$0xff] }
 0x432   :  { %v4089_v10 = vadd.f32 %v8488_v25, %v6304_v15  ;;  %2257 = vrot.lane.b32.xlu1 %v3220_v40, %s6461_s17  ;;  %2765 = vst.msk [vmem:[#allocation3 + $0x1b8] sm:$0xff] %vm2709_vm8, %v2628_v53  ;;  %v3221_v40 = vld [vmem:[#allocation2 + $0x34a] sm:$0xff]  ;;  %6058 = vmatpush3.msra.mxu1 %v5149_v55  ;;  %v5147_v53 = vld [vmem:[%s9562_s5] sm:$0xff] }
 0x433   :  { %v4083_v8 = vpop.f32.mrf.mxu0  ;;  %v8781_v46 = vld [vmem:[#allocation5 + $0xc0] sm:$0xff]  ;;  %2641 = vrot.lane.b32.xlu0 %v2451_v42, %s6462_s18  ;;  %v5148_v15 = vld [vmem:[%s9562_s5 + $0x8] sm:$0xff]  ;;  %6349 = vmatpush3.msra.mxu0 %v5213_v60 }
 0x434   :  { %4244 = vst.msk [vmem:[#allocation4 + $0x148] sm:$0xff] %vm160_vm12, %v4089_v10  ;;  %v4084_v22 = vadd.f32 %v8488_v25, %v4083_v8  ;;  %v3011_v26 = vpop.permute.xlu1 %3010  ;;  %4547 = vst.msk [vmem:[#allocation6 + $0x190] sm:$0xff] %vm160_vm12, %v8781_v46  ;;  %v8806_v9 = vld [vmem:[#allocation5 + $0xc2] sm:$0xff]  ;;  %6059 = vmatprep.subr.mxu1 %v5164_v27  ;;  %6350 = vmatprep.subr.mxu0 %v5212_v44  ;;  %v5042_v8 = vld [vmem:[#allocation5 + $0x92] sm:$0xff] }
 0x435   :  { %3149 = vst.msk [vmem:[#allocation3 + $0x1b0] sm:$0xff] %vm3094_vm9, %v3011_v26  ;;  %v8808_v38 = vld [vmem:[#allocation5 + $0xc1] sm:$0xff]  ;;  %v1476_v63 = vpop.permute.xlu0 %1475  ;;  %6060 = vmatpush3.msra.mxu1 %v5148_v15  ;;  %6351 = vmatpush3.msra.mxu0 %v5212_v44 }
 0x436   :  { %4243 = vst.msk [vmem:[#allocation4 + $0x140] sm:$0xff] %vm160_vm12, %v4084_v22  ;;  %2643 = vrot.lane.b32.xlu1 %v2452_v57, %s6462_s18  ;;  %5059 = vst.msk [vmem:[#allocation6 + $0x160] sm:$0xff] %vm160_vm12, %v8806_v9  ;;  %v4915_v43 = vld [vmem:[#allocation5 + $0xc0] sm:$0xff]  ;;  %6061 = vmatprep.subr.mxu1 %v5163_v2 }
 0x437   :  { %4676 = vst.msk [vmem:[#allocation6 + $0x198] sm:$0xff] %vm160_vm12, %v8806_v9  ;;  %4803 = vst.msk [vmem:[#allocation6 + $0x178] sm:$0xff] %vm160_vm12, %v8808_v38  ;;  %3026 = vrot.lane.b32.xlu0 %v2836_v29, %s6463_s23  ;;  %v4553_v10 = vld [vmem:[#allocation5 + $0x1] sm:$0xff]  ;;  %6062 = vmatpush3.msra.mxu1 %v5147_v53 }
 0x438   :  { %1611 = vst.msk [vmem:[#allocation3 + $0x1c8] sm:$0xff] %vm1553_vm5, %v1476_v63  ;;  %v1859_v12 = vpop.permute.xlu1 %1858  ;;  %v5211_v42 = vld [vmem:[%s9562_s5 + $0x200] sm:$0xff] }
 0x439   :  { %4931 = vst.msk [vmem:[#allocation6 + $0x158] sm:$0xff] %vm160_vm12, %v4915_v43  ;;  %v3013_v56 = vpop.permute.xlu0 %3012  ;;  %6352 = vmatprep.subr.mxu0 %v5211_v42  ;;  %5058 = vst.msk [vmem:[#allocation6 + $0x138] sm:$0xff] %vm160_vm12, %v5042_v8  ;;  %v4658_v50 = vld [vmem:[#allocation5 + $0xa2] sm:$0xff] }
 0x43a   :  { %1995 = vst.msk [vmem:[#allocation3 + $0x1c0] sm:$0xff] %vm1938_vm6, %v1859_v12  ;;  %3028 = vrot.lane.b32.xlu1 %v2837_v32, %s6463_s23  ;;  %6353 = vmatpush3.msra.mxu0 %v5211_v42  ;;  %v4560_v42 = vld [vmem:[#allocation5 + $0x71] sm:$0xff]  ;;  %v4561_v53 = vld [vmem:[#allocation5 + $0xa1] sm:$0xff] }
 0x43b   :  { %3150 = vst.msk [vmem:[#allocation3 + $0x1b8] sm:$0xff] %vm3094_vm9, %v3013_v56  ;;  %3411 = vrot.lane.b32.xlu0 %v3221_v40, %s6464_s11 }
 0x43c   :  { %v3396_v6 = vpop.permute.xlu1 %3395  ;;  %4674 = vst.msk [vmem:[#allocation6 + $0x148] sm:$0xff] %vm160_vm12, %v4658_v50 }
 0x43d   :  { %3534 = vst.msk [vmem:[#allocation3 + $0x1b0] sm:$0xff] %vm3479_vm10, %v3396_v6  ;;  %v708_v61 = vpop.permute.xlu0 %707  ;;  %v4307_v60 = vld [vmem:[#allocation4 + $0x140] ss:$2 sm:$0xff]  ;;  %v4371_v40 = vld [vmem:[#allocation4 + $0x141] ss:$2 sm:$0xff] }
 0x43e   :  { %3413 = vrot.lane.b32.xlu1 %v3222_v54, %s6464_s11  ;;  %842 = vst.msk [vmem:[#allocation3 + $0x1d0] sm:$0xff] %vm783_vm2, %v708_v61  ;;  %v4414_v27 = vmax.f32 %v4307_v60, %v4371_v40 }
 0x43f   :  { %4714 = vrot.lane.b32.xlu0 %v7743_v36, %s6465_s28  ;;  %v4554_v36 = vld [vmem:[#allocation5 + $0x11] sm:$0xff] }
 0x440   :  { %v1861_v62 = vpop.permute.xlu1 %1860 }
 0x441   :  { %1996 = vst.msk [vmem:[#allocation3 + $0x1c8] sm:$0xff] %vm1938_vm6, %v1861_v62  ;;  %v2244_v57 = vpop.permute.xlu0 %2243 }
 0x442   :  { %4585 = vrot.lane.b32.xlu1 %v4553_v10, %s6465_s28  ;;  %2380 = vst.msk [vmem:[#allocation3 + $0x1c0] sm:$0xff] %vm2323_vm7, %v2244_v57  ;;  %v4689_v10 = vld [vmem:[#allocation5 + $0x80] sm:$0xff] }
 0x443   :  { %4716 = vrot.lane.b32.xlu0 %v7823_v48, %s6465_s28 }
 0x444   :  { %v3398_v22 = vpop.permute.xlu1 %3397  ;;  %v3598_v26 = vld [vmem:[#allocation3 + $0x1b0] sm:$0xff] }
 0x445   :  { %3535 = vst.msk [vmem:[#allocation3 + $0x1b8] sm:$0xff] %vm3479_vm10, %v3398_v22  ;;  %6323 = vmatprep.mubr.msk.f32.mxu0 %vm3620_vm11, %v3598_v26  ;;  %v710_v34 = vpop.permute.xlu0 %709 }
 0x446   :  { %4587 = vrot.lane.b32.xlu1 %v4554_v36, %s6465_s28  ;;  %843 = vst.msk [vmem:[#allocation3 + $0x1d8] sm:$0xff] %vm783_vm2, %v710_v34 }
 0x447   :  { %4718 = vrot.lane.b32.xlu0 %v7933_v1, %s6465_s28 }
 0x448   :  { %v1093_v20 = vpop.permute.xlu1 %1092 }
 0x449   :  { %1227 = vst.msk [vmem:[#allocation3 + $0x1d0] sm:$0xff] %vm1168_vm4, %v1093_v20  ;;  %v2246_v29 = vpop.permute.xlu0 %2245  ;;  %v4562_v20 = vld [vmem:[#allocation5 + $0xb1] sm:$0xff] }
 0x44a   :  { %4589 = vrot.lane.b32.xlu1 %v4555_v23, %s6465_s28  ;;  %2381 = vst.msk [vmem:[#allocation3 + $0x1c8] sm:$0xff] %vm2323_vm7, %v2246_v29  ;;  %v4563_v29 = vld [vmem:[#allocation5 + $0xc1] sm:$0xff] }
 0x44b   :  { %4720 = vrot.lane.b32.xlu0 %v8056_v16, %s6465_s28  ;;  %v4557_v16 = vld [vmem:[#allocation5 + $0x41] sm:$0xff] }
 0x44c   :  { %v2630_v24 = vpop.permute.xlu1 %2629  ;;  %v3599_v48 = vld [vmem:[#allocation3 + $0x1b8] sm:$0xff] }
 0x44d   :  { %2766 = vst.msk [vmem:[#allocation3 + $0x1c0] sm:$0xff] %vm2709_vm8, %v2630_v24  ;;  %6324 = vmatmul.mubr.msk.f32.gmra.mxu0 %vm3620_vm11, %v3599_v48  ;;  %v1095_v1 = vpop.permute.xlu0 %1094 }
 0x44e   :  { %4591 = vrot.lane.b32.xlu1 %v4556_v59, %s6465_s28  ;;  %1228 = vst.msk [vmem:[#allocation3 + $0x1d8] sm:$0xff] %vm1168_vm4, %v1095_v1 }
 0x44f   :  { %v6307_v14 = vpop.f32.mrf.mxu0  ;;  %4722 = vrot.lane.b32.xlu0 %v8183_v7, %s6465_s28  ;;  %v4529_v7 = vld [vmem:[#allocation5 + $0xa0] sm:$0xff] }
 0x450   :  { %v4099_v63 = vadd.f32 %v8488_v25, %v6307_v14  ;;  %v1478_v43 = vpop.permute.xlu1 %1477  ;;  %4545 = vst.msk [vmem:[#allocation6 + $0x140] sm:$0xff] %vm160_vm12, %v4529_v7 }
 0x451   :  { %v4093_v32 = vpop.f32.mrf.mxu0  ;;  %1612 = vst.msk [vmem:[#allocation3 + $0x1d0] sm:$0xff] %vm1553_vm5, %v1478_v43  ;;  %v2632_v12 = vpop.permute.xlu0 %2631  ;;  %v8942_v43 = vld [vmem:[%s9559_s2] ss:$0 sm:$0xff] }
 0x452   :  { %4246 = vst.msk [vmem:[#allocation4 + $0x158] sm:$0xff] %vm160_vm12, %v4099_v63  ;;  %v4094_v41 = vadd.f32 %v8488_v25, %v4093_v32  ;;  %4593 = vrot.lane.b32.xlu1 %v4557_v16, %s6465_s28  ;;  %v4558_v25 = vld [vmem:[#allocation5 + $0x51] sm:$0xff] }
 0x453   :  { %2767 = vst.msk [vmem:[#allocation3 + $0x1c8] sm:$0xff] %vm2709_vm8, %v2632_v12  ;;  %4724 = vrot.lane.b32.xlu0 %v8300_v45, %s6465_s28  ;;  %v4559_v45 = vld [vmem:[#allocation5 + $0x61] sm:$0xff] }
 0x454   :  { %4245 = vst.msk [vmem:[#allocation4 + $0x150] sm:$0xff] %vm160_vm12, %v4094_v41  ;;  %v3015_v0 = vpop.permute.xlu1 %3014 }
 0x455   :  { %3151 = vst.msk [vmem:[#allocation3 + $0x1c0] sm:$0xff] %vm3094_vm9, %v3015_v0  ;;  %v1480_v55 = vpop.permute.xlu0 %1479 }
 0x456   :  { %4595 = vrot.lane.b32.xlu1 %v4558_v25, %s6465_s28  ;;  %1613 = vst.msk [vmem:[#allocation3 + $0x1d8] sm:$0xff] %vm1553_vm5, %v1480_v55 }
 0x457   :  { %4726 = vrot.lane.b32.xlu0 %v8422_v18, %s6465_s28 }
 0x458   :  { %v1863_v56 = vpop.permute.xlu1 %1862 }
 0x459   :  { %1997 = vst.msk [vmem:[#allocation3 + $0x1d0] sm:$0xff] %vm1938_vm6, %v1863_v56  ;;  %v3017_v15 = vpop.permute.xlu0 %3016 }
 0x45a   :  { %4597 = vrot.lane.b32.xlu1 %v4559_v45, %s6465_s28  ;;  %3152 = vst.msk [vmem:[#allocation3 + $0x1c8] sm:$0xff] %vm3094_vm9, %v3017_v15 }
 0x45b   :  { %v4309_v54 = vld [vmem:[#allocation4 + $0x150] ss:$2 sm:$0xff]  ;;  %v4373_v6 = vld [vmem:[#allocation4 + $0x151] ss:$2 sm:$0xff]  ;;  %4728 = vrot.lane.b32.xlu0 %v4689_v10, %s6465_s28 }
 0x45c   :  { %v4415_v44 = vmax.f32 %v4309_v54, %v4373_v6  ;;  %v3400_v61 = vpop.permute.xlu1 %3399 }
 0x45d   :  { %3536 = vst.msk [vmem:[#allocation3 + $0x1c0] sm:$0xff] %vm3479_vm10, %v3400_v61  ;;  %v712_v18 = vpop.permute.xlu0 %711 }
 0x45e   :  { %v4436_v2 = vmax.f32 %v4414_v27, %v4415_v44  ;;  %4599 = vrot.lane.b32.xlu1 %v4560_v42, %s6465_s28  ;;  %844 = vst.msk [vmem:[#allocation3 + $0x1e0] sm:$0xff] %vm783_vm2, %v712_v18 }
 0x45f   :  { %4730 = vrot.lane.b32.xlu0 %v8623_v5, %s6465_s28 }
 0x460   :  { %v4452_v62 = vmax.f32 %v4436_v2, 0.0  ;;  %v1865_v57 = vpop.permute.xlu1 %1864 }
 0x461   :  { %1998 = vst.msk [vmem:[#allocation3 + $0x1d8] sm:$0xff] %vm1938_vm6, %v1865_v57  ;;  %v2248_v26 = vpop.permute.xlu0 %2247 }
 0x462   :  { %v4475_v8 = vmul.f32 %v8599_v35, %v4452_v62  ;;  %4601 = vrot.lane.b32.xlu1 %v4561_v53, %s6465_s28  ;;  %2382 = vst.msk [vmem:[#allocation3 + $0x1d0] sm:$0xff] %vm2323_vm7, %v2248_v26 }
 0x463   :  { %4732 = vrot.lane.b32.xlu0 %v8781_v46, %s6465_s28 }
 0x464   :  { %v4498_v22 = vadd.f32 %v8608_v37, %v4475_v8  ;;  %v3402_v36 = vpop.permute.xlu1 %3401  ;;  %v3600_v34 = vld [vmem:[#allocation3 + $0x1c0] sm:$0xff] }
 0x465   :  { %3537 = vst.msk [vmem:[#allocation3 + $0x1c8] sm:$0xff] %vm3479_vm10, %v3402_v36  ;;  %6326 = vmatprep.mubr.msk.f32.mxu0 %vm3620_vm11, %v3600_v34  ;;  %v714_v5 = vpop.permute.xlu0 %713 }
 0x466   :  { %4515 = vst.msk [vmem:[#allocation5 + $0xd1] sm:$0xff] %vm160_vm12, %v4498_v22  ;;  %4603 = vrot.lane.b32.xlu1 %v4562_v20, %s6465_s28 }
 0x467   :  { %845 = vst.msk [vmem:[#allocation3 + $0x1e8] sm:$0xff] %vm783_vm2, %v714_v5 }
 0x468   :  { %v1097_v23 = vpop.permute.xlu1 %1096 }
 0x469   :  { %1229 = vst.msk [vmem:[#allocation3 + $0x1e0] sm:$0xff] %vm1168_vm4, %v1097_v23  ;;  %v2250_v24 = vpop.permute.xlu0 %2249 }
 0x46a   :  { %4605 = vrot.lane.b32.xlu1 %v4563_v29, %s6465_s28  ;;  %2383 = vst.msk [vmem:[#allocation3 + $0x1d8] sm:$0xff] %vm2323_vm7, %v2250_v24 }
 0x46c   :  { %v2634_v59 = vpop.permute.xlu1 %2633  ;;  %v3601_v46 = vld [vmem:[#allocation3 + $0x1c8] sm:$0xff] }
 0x46d   :  { %v4692_v48 = vld [vmem:[#allocation5 + $0xd0] sm:$0xff]  ;;  %2768 = vst.msk [vmem:[#allocation3 + $0x1d0] sm:$0xff] %vm2709_vm8, %v2634_v59  ;;  %v6310_v32 = vpop.f32.mrf.mxu0  ;;  %6327 = vmatmul.mubr.msk.f32.gmra.mxu0 %vm3620_vm11, %v3601_v46  ;;  %v1099_v12 = vpop.permute.xlu0 %1098 }
 0x46e   :  { %v8923_v14 = vld [vmem:[#allocation5 + $0xd2] sm:$0xff]  ;;  %4734 = vrot.lane.b32.xlu0 %v4692_v48, %s6465_s28  ;;  %4548 = vst.msk [vmem:[#allocation6 + $0x1b8] sm:$0xff] %vm160_vm12, %v4692_v48  ;;  %v4109_v16 = vadd.f32 %v8942_v43, %v6310_v32 }
 0x46f   :  { %5060 = vst.msk [vmem:[#allocation6 + $0x188] sm:$0xff] %vm160_vm12, %v8923_v14  ;;  %4677 = vst.msk [vmem:[#allocation6 + $0x1c0] sm:$0xff] %vm160_vm12, %v8923_v14  ;;  %v8932_v63 = vld [vmem:[#allocation5 + $0xd1] sm:$0xff]  ;;  %v4103_v0 = vpop.f32.mrf.mxu0 }
 0x470   :  { %v4916_v1 = vld [vmem:[#allocation5 + $0xd0] sm:$0xff]  ;;  %4804 = vst.msk [vmem:[#allocation6 + $0x1a0] sm:$0xff] %vm160_vm12, %v8932_v63  ;;  %4248 = vst.msk [vmem:[#allocation4 + $0x168] sm:$0xff] %vm160_vm12, %v4109_v16  ;;  %v4104_v25 = vadd.f32 %v8942_v43, %v4103_v0  ;;  %v1482_v50 = vpop.permute.xlu1 %1481 }
 0x471   :  { %v4564_v41 = vld [vmem:[#allocation5 + $0xd1] sm:$0xff]  ;;  %4932 = vst.msk [vmem:[#allocation6 + $0x180] sm:$0xff] %vm160_vm12, %v4916_v1  ;;  %v2636_v7 = vpop.permute.xlu0 %2635 }
 0x472   :  { %4607 = vrot.lane.b32.xlu1 %v4564_v41, %s6465_s28  ;;  %1230 = vst.msk [vmem:[#allocation3 + $0x1e8] sm:$0xff] %vm1168_vm4, %v1099_v12 }
 0x473   :  { %1614 = vst.msk [vmem:[#allocation3 + $0x1e0] sm:$0xff] %vm1553_vm5, %v1482_v50 }
 0x474   :  { %4247 = vst.msk [vmem:[#allocation4 + $0x160] sm:$0xff] %vm160_vm12, %v4104_v25  ;;  %v3019_v60 = vpop.permute.xlu1 %3018 }
 0x475   :  { %2769 = vst.msk [vmem:[#allocation3 + $0x1d8] sm:$0xff] %vm2709_vm8, %v2636_v7  ;;  %v1484_v40 = vpop.permute.xlu0 %1483 }
 0x476   :  { %3153 = vst.msk [vmem:[#allocation3 + $0x1d0] sm:$0xff] %vm3094_vm9, %v3019_v60 }
 0x477   :  { %1615 = vst.msk [vmem:[#allocation3 + $0x1e8] sm:$0xff] %vm1553_vm5, %v1484_v40 }
 0x478   :  { %v1867_v55 = vpop.permute.xlu1 %1866 }
 0x479   :  { %1999 = vst.msk [vmem:[#allocation3 + $0x1e0] sm:$0xff] %vm1938_vm6, %v1867_v55  ;;  %v3021_v56 = vpop.permute.xlu0 %3020 }
 0x47a   :  { %3154 = vst.msk [vmem:[#allocation3 + $0x1d8] sm:$0xff] %vm3094_vm9, %v3021_v56 }
 0x47b   :  { %v4311_v20 = vld [vmem:[#allocation4 + $0x160] ss:$2 sm:$0xff]  ;;  %v4375_v5 = vld [vmem:[#allocation4 + $0x161] ss:$2 sm:$0xff] }
 0x47c   :  { %v3404_v54 = vpop.permute.xlu1 %3403  ;;  %v4416_v59 = vmax.f32 %v4311_v20, %v4375_v5 }
 0x47d   :  { %3538 = vst.msk [vmem:[#allocation3 + $0x1d0] sm:$0xff] %vm3479_vm10, %v3404_v54  ;;  %v716_v6 = vpop.permute.xlu0 %715 }
 0x47e   :  { %846 = vst.msk [vmem:[#allocation3 + $0x1f0] sm:$0xff] %vm783_vm2, %v716_v6 }
 0x480   :  { %v1869_v45 = vpop.permute.xlu1 %1868 }
 0x481   :  { %2000 = vst.msk [vmem:[#allocation3 + $0x1e8] sm:$0xff] %vm1938_vm6, %v1869_v45  ;;  %v2252_v27 = vpop.permute.xlu0 %2251 }
 0x482   :  { %2384 = vst.msk [vmem:[#allocation3 + $0x1e0] sm:$0xff] %vm2323_vm7, %v2252_v27 }
 0x484   :  { %v3406_v44 = vpop.permute.xlu1 %3405  ;;  %v3602_v15 = vld [vmem:[#allocation3 + $0x1d0] sm:$0xff] }
 0x485   :  { %3539 = vst.msk [vmem:[#allocation3 + $0x1d8] sm:$0xff] %vm3479_vm10, %v3406_v44  ;;  %6329 = vmatprep.mubr.msk.f32.mxu0 %vm3620_vm11, %v3602_v15  ;;  %v718_v2 = vpop.permute.xlu0 %717 }
 0x486   :  { %847 = vst.msk [vmem:[#allocation3 + $0x1f8] sm:$0xff] %vm783_vm2, %v718_v2 }
 0x488   :  { %v1101_v61 = vpop.permute.xlu1 %1100 }
 0x489   :  { %1231 = vst.msk [vmem:[#allocation3 + $0x1f0] sm:$0xff] %vm1168_vm4, %v1101_v61  ;;  %v2254_v10 = vpop.permute.xlu0 %2253 }
 0x48a   :  { %2385 = vst.msk [vmem:[#allocation3 + $0x1e8] sm:$0xff] %vm2323_vm7, %v2254_v10 }
 0x48c   :  { %v2638_v42 = vpop.permute.xlu1 %2637  ;;  %v3603_v62 = vld [vmem:[#allocation3 + $0x1d8] sm:$0xff] }
 0x48d   :  { %2770 = vst.msk [vmem:[#allocation3 + $0x1e0] sm:$0xff] %vm2709_vm8, %v2638_v42  ;;  %6330 = vmatmul.mubr.msk.f32.gmra.mxu0 %vm3620_vm11, %v3603_v62  ;;  %v1103_v8 = vpop.permute.xlu0 %1102 }
 0x48e   :  { %v6313_v18 = vpop.f32.mrf.mxu0  ;;  %1232 = vst.msk [vmem:[#allocation3 + $0x1f8] sm:$0xff] %vm1168_vm4, %v1103_v8 }
 0x48f   :  { %v4119_v53 = vadd.f32 %v8942_v43, %v6313_v18 }
 0x490   :  { %v4113_v57 = vpop.f32.mrf.mxu0  ;;  %v1486_v26 = vpop.permute.xlu1 %1485 }
 0x491   :  { %4250 = vst.msk [vmem:[#allocation4 + $0x178] sm:$0xff] %vm160_vm12, %v4119_v53  ;;  %v4114_v22 = vadd.f32 %v8942_v43, %v4113_v57  ;;  %v2640_v36 = vpop.permute.xlu0 %2639 }
 0x492   :  { %1616 = vst.msk [vmem:[#allocation3 + $0x1f0] sm:$0xff] %vm1553_vm5, %v1486_v26 }
 0x493   :  { %4249 = vst.msk [vmem:[#allocation4 + $0x170] sm:$0xff] %vm160_vm12, %v4114_v22 }
 0x494   :  { %2771 = vst.msk [vmem:[#allocation3 + $0x1e8] sm:$0xff] %vm2709_vm8, %v2640_v36  ;;  %v3023_v34 = vpop.permute.xlu1 %3022 }
 0x495   :  { %3155 = vst.msk [vmem:[#allocation3 + $0x1e0] sm:$0xff] %vm3094_vm9, %v3023_v34  ;;  %v1488_v23 = vpop.permute.xlu0 %1487  ;;  %v5071_v34 = vld [vmem:[#allocation6 + $0x20] sm:$0xff] }
 0x496   :  { %1617 = vst.msk [vmem:[#allocation3 + $0x1f8] sm:$0xff] %vm1553_vm5, %v1488_v23 }
 0x498   :  { %v1871_v29 = vpop.permute.xlu1 %1870 }
 0x499   :  { %2001 = vst.msk [vmem:[#allocation3 + $0x1f0] sm:$0xff] %vm1938_vm6, %v1871_v29  ;;  %v3025_v1 = vpop.permute.xlu0 %3024 }
 0x49a   :  { %v4313_v24 = vld [vmem:[#allocation4 + $0x170] ss:$2 sm:$0xff]  ;;  %v4377_v48 = vld [vmem:[#allocation4 + $0x171] ss:$2 sm:$0xff]  ;;  %3156 = vst.msk [vmem:[#allocation3 + $0x1e8] sm:$0xff] %vm3094_vm9, %v3025_v1 }
 0x49b   :  { %v4417_v46 = vmax.f32 %v4313_v24, %v4377_v48  ;;  %v5076_v24 = vld [vmem:[#allocation6 + $0x48] sm:$0xff]  ;;  %v5081_v48 = vld [vmem:[#allocation6 + $0x70] sm:$0xff] }
 0x49c   :  { %v3408_v41 = vpop.permute.xlu1 %3407 }
 0x49d   :  { %v4437_v32 = vmax.f32 %v4416_v59, %v4417_v46  ;;  %3540 = vst.msk [vmem:[#allocation3 + $0x1e0] sm:$0xff] %vm3479_vm10, %v3408_v41  ;;  %v1873_v12 = vpop.permute.xlu0 %1872  ;;  %v5086_v41 = vld [vmem:[#allocation6 + $0x98] sm:$0xff] }
 0x49e   :  { %2002 = vst.msk [vmem:[#allocation3 + $0x1f8] sm:$0xff] %vm1938_vm6, %v1873_v12 }
 0x49f   :  { %v4453_v16 = vmax.f32 %v4437_v32, 0.0 }
 0x4a0   :  { %v2256_v25 = vpop.permute.xlu1 %2255 }
 0x4a1   :  { %v4476_v0 = vmul.f32 %v8599_v35, %v4453_v16  ;;  %2386 = vst.msk [vmem:[#allocation3 + $0x1f0] sm:$0xff] %vm2323_vm7, %v2256_v25  ;;  %v3410_v7 = vpop.permute.xlu0 %3409  ;;  %v5091_v16 = vld [vmem:[#allocation6 + $0xc0] sm:$0xff] }
 0x4a2   :  { %3541 = vst.msk [vmem:[#allocation3 + $0x1e8] sm:$0xff] %vm3479_vm10, %v3410_v7  ;;  %v5096_v7 = vld [vmem:[#allocation6 + $0xe8] sm:$0xff] }
 0x4a3   :  { %v4499_v50 = vadd.f32 %v8608_v37, %v4476_v0 }
 0x4a4   :  { %v2258_v60 = vpop.permute.xlu1 %2257  ;;  %v3604_v40 = vld [vmem:[#allocation3 + $0x1e0] sm:$0xff] }
 0x4a5   :  { %4516 = vst.msk [vmem:[#allocation5 + $0xe1] sm:$0xff] %vm160_vm12, %v4499_v50  ;;  %6332 = vmatprep.mubr.msk.f32.mxu0 %vm3620_vm11, %v3604_v40  ;;  %v2642_v55 = vpop.permute.xlu0 %2641  ;;  %v5106_v40 = vld [vmem:[#allocation6 + $0x138] sm:$0xff] }
 0x4a6   :  { %2387 = vst.msk [vmem:[#allocation3 + $0x1f8] sm:$0xff] %vm2323_vm7, %v2258_v60  ;;  %v5101_v60 = vld [vmem:[#allocation6 + $0x110] sm:$0xff] }
 0x4a7   :  { %2772 = vst.msk [vmem:[#allocation3 + $0x1f0] sm:$0xff] %vm2709_vm8, %v2642_v55 }
 0x4a8   :  { %v2644_v35 = vpop.permute.xlu1 %2643 }
 0x4a9   :  { %2773 = vst.msk [vmem:[#allocation3 + $0x1f8] sm:$0xff] %vm2709_vm8, %v2644_v35  ;;  %v3027_v56 = vpop.permute.xlu0 %3026  ;;  %v3605_v54 = vld [vmem:[#allocation3 + $0x1e8] sm:$0xff] }
 0x4aa   :  { %3157 = vst.msk [vmem:[#allocation3 + $0x1f0] sm:$0xff] %vm3094_vm9, %v3027_v56  ;;  %6333 = vmatmul.mubr.msk.f32.gmra.mxu0 %vm3620_vm11, %v3605_v54 }
 0x4ac   :  { %v4693_v37 = vld [vmem:[#allocation5 + $0xe0] sm:$0xff]  ;;  %v3029_v45 = vpop.permute.xlu1 %3028 }
 0x4ad   :  { %v4565_v6 = vld [vmem:[#allocation5 + $0xe1] sm:$0xff]  ;;  %4736 = vrot.lane.b32.xlu0 %v4693_v37, %s6465_s28  ;;  %4549 = vst.msk [vmem:[#allocation6 + $0x1e0] sm:$0xff] %vm160_vm12, %v4693_v37  ;;  %v6316_v2 = vpop.f32.mrf.mxu0  ;;  %v3412_v10 = vpop.permute.xlu0 %3411 }
 0x4ae   :  { %v8992_v27 = vld [vmem:[#allocation5 + $0xe2] sm:$0xff]  ;;  %3158 = vst.msk [vmem:[#allocation3 + $0x1f8] sm:$0xff] %vm3094_vm9, %v3029_v45  ;;  %4609 = vrot.lane.b32.xlu1 %v4565_v6, %s6465_s28  ;;  %v4129_v61 = vadd.f32 %v8942_v43, %v6316_v2 }
 0x4af   :  { %v8995_v44 = vld [vmem:[#allocation5 + $0xe1] sm:$0xff]  ;;  %5061 = vst.msk [vmem:[#allocation6 + $0x1b0] sm:$0xff] %vm160_vm12, %v8992_v27  ;;  %4678 = vst.msk [vmem:[#allocation6 + $0x1e8] sm:$0xff] %vm160_vm12, %v8992_v27  ;;  %v4123_v42 = vpop.f32.mrf.mxu0 }
 0x4b0   :  { %v4917_v15 = vld [vmem:[#allocation5 + $0xe0] sm:$0xff]  ;;  %4805 = vst.msk [vmem:[#allocation6 + $0x1c8] sm:$0xff] %vm160_vm12, %v8995_v44  ;;  %4252 = vst.msk [vmem:[#allocation4 + $0x188] sm:$0xff] %vm160_vm12, %v4129_v61  ;;  %v4124_v62 = vadd.f32 %v8942_v43, %v4123_v42  ;;  %v3414_v18 = vpop.permute.xlu1 %3413  ;;  %v5116_v61 = vld [vmem:[#allocation6 + $0x188] sm:$0xff] }
 0x4b1   :  { %4933 = vst.msk [vmem:[#allocation6 + $0x1a8] sm:$0xff] %vm160_vm12, %v4917_v15  ;;  %v4715_v53 = vpop.permute.xlu0 %4714  ;;  %v5111_v37 = vld [vmem:[#allocation6 + $0x160] sm:$0xff] }
 0x4b2   :  { %3542 = vst.msk [vmem:[#allocation3 + $0x1f0] sm:$0xff] %vm3479_vm10, %v3412_v10  ;;  %3543 = vst.msk [vmem:[#allocation3 + $0x1f8] sm:$0xff] %vm3479_vm10, %v3414_v18 }
 0x4b3   :  { %4251 = vst.msk [vmem:[#allocation4 + $0x180] sm:$0xff] %vm160_vm12, %v4124_v62 }
 0x4b4   :  { %4762 = vst.msk [vmem:[#allocation6 + $0x8] sm:$0xff] %vm4633_vm14, %v4715_v53  ;;  %v4586_v8 = vpop.permute.xlu1 %4585 }
 0x4b5   :  { %4634 = vst.msk [vmem:[#allocation6] sm:$0xff] %vm4633_vm14, %v4586_v8  ;;  %v4717_v57 = vpop.permute.xlu0 %4716 }
 0x4b6   :  { %4763 = vst.msk [vmem:[#allocation6 + $0x30] sm:$0xff] %vm4633_vm14, %v4717_v57  ;;  %v5121_v42 = vld [vmem:[#allocation6 + $0x1b0] sm:$0xff] }
 0x4b8   :  { %v4588_v26 = vpop.permute.xlu1 %4587 }
 0x4b9   :  { %v3606_v22 = vld [vmem:[#allocation3 + $0x1f0] sm:$0xff]  ;;  %v3607_v36 = vld [vmem:[#allocation3 + $0x1f8] sm:$0xff]  ;;  %4635 = vst.msk [vmem:[#allocation6 + $0x28] sm:$0xff] %vm4633_vm14, %v4588_v26  ;;  %v4719_v20 = vpop.permute.xlu0 %4718 }
 0x4ba   :  { %6335 = vmatprep.mubr.msk.f32.mxu0 %vm3620_vm11, %v3606_v22  ;;  %4764 = vst.msk [vmem:[#allocation6 + $0x58] sm:$0xff] %vm4633_vm14, %v4719_v20 }
 0x4bb   :  { %6336 = vmatmul.mubr.msk.f32.gmra.mxu0 %vm3620_vm11, %v3607_v36  ;;  %v5068_v5 = vld [vmem:[#allocation6 + $0x8] sm:$0xff] }
 0x4bc   :  { %6354 = vmatprep.mubr.msk.f32.mxu0 %vm160_vm12, %v5071_v34  ;;  %5338 = vmatprep.mubr.f32.mxu1 %v5068_v5  ;;  %v4590_v23 = vpop.permute.xlu1 %4589  ;;  %v5067_v29 = vld [vmem:[#allocation6] sm:$0xff] }
 0x4bd   :  { %4636 = vst.msk [vmem:[#allocation6 + $0x50] sm:$0xff] %vm4633_vm14, %v4590_v23  ;;  %5339 = vmatmul.mubr.f32.vlgmr.msra.gmra.mxu1 %v5067_v29  ;;  %v4721_v59 = vpop.permute.xlu0 %4720  ;;  %v5073_v46 = vld [vmem:[#allocation6 + $0x30] sm:$0xff]  ;;  %v4315_v23 = vld [vmem:[#allocation4 + $0x180] ss:$2 sm:$0xff]  ;;  %v4379_v29 = vld [vmem:[#allocation4 + $0x181] ss:$2 sm:$0xff] }
 0x4be   :  { %4765 = vst.msk [vmem:[#allocation6 + $0x80] sm:$0xff] %vm4633_vm14, %v4721_v59  ;;  %5343 = vmatprep.mubr.f32.mxu1 %v5073_v46 }
 0x4bf   :  { %6355 = vmatmul.mubr.msk.f32.vlgmr.msra.gmra.mxu0 %vm160_vm12, %v5076_v24 }
 0x4c0   :  { %6357 = vmatprep.mubr.msk.f32.mxu0 %vm160_vm12, %v5081_v48  ;;  %v4592_v1 = vpop.permute.xlu1 %4591  ;;  %v5072_v32 = vld [vmem:[#allocation6 + $0x28] sm:$0xff] }
 0x4c1   :  { %4637 = vst.msk [vmem:[#allocation6 + $0x78] sm:$0xff] %vm4633_vm14, %v4592_v1  ;;  %5344 = vmatmul.mubr.f32.gmra.mxu1 %v5072_v32  ;;  %v4723_v12 = vpop.permute.xlu0 %4722  ;;  %v5078_v0 = vld [vmem:[#allocation6 + $0x58] sm:$0xff] }
 0x4c2   :  { %4766 = vst.msk [vmem:[#allocation6 + $0xa8] sm:$0xff] %vm4633_vm14, %v4723_v12  ;;  %5348 = vmatprep.mubr.f32.mxu1 %v5078_v0 }
 0x4c3   :  { %6358 = vmatmul.mubr.msk.f32.gmra.mxu0 %vm160_vm12, %v5086_v41  ;;  %v4418_v41 = vmax.f32 %v4315_v23, %v4379_v29 }
 0x4c4   :  { %6360 = vmatprep.mubr.msk.f32.mxu0 %vm160_vm12, %v5091_v16  ;;  %v4594_v25 = vpop.permute.xlu1 %4593  ;;  %v5077_v50 = vld [vmem:[#allocation6 + $0x50] sm:$0xff] }
 0x4c5   :  { %4638 = vst.msk [vmem:[#allocation6 + $0xa0] sm:$0xff] %vm4633_vm14, %v4594_v25  ;;  %5349 = vmatmul.mubr.f32.gmra.mxu1 %v5077_v50  ;;  %v4725_v55 = vpop.permute.xlu0 %4724  ;;  %v5083_v35 = vld [vmem:[#allocation6 + $0x80] sm:$0xff] }
 0x4c6   :  { %4767 = vst.msk [vmem:[#allocation6 + $0xd0] sm:$0xff] %vm4633_vm14, %v4725_v55  ;;  %5353 = vmatprep.mubr.f32.mxu1 %v5083_v35  ;;  %v9054_v55 = vld [vmem:[%s9560_s3] ss:$0 sm:$0xff]  ;;  %s6434_s3 = scalar_lea.vmem %s5869_s1, 16 }
 0x4c7   :  { %6361 = vmatmul.mubr.msk.f32.gmra.mxu0 %vm160_vm12, %v5096_v7  ;;  %p6435_p0 = scmp.ne.s32.totalorder %s5869_s1, %s6434_s3 }
 0x4c8   :  { %6363 = vmatprep.mubr.msk.f32.mxu0 %vm160_vm12, %v5101_v60  ;;  %v4596_v56 = vpop.permute.xlu1 %4595  ;;  %v5082_v54 = vld [vmem:[#allocation6 + $0x78] sm:$0xff] }
 0x4c9   :  { %4639 = vst.msk [vmem:[#allocation6 + $0xc8] sm:$0xff] %vm4633_vm14, %v4596_v56  ;;  %5354 = vmatmul.mubr.f32.gmra.mxu1 %v5082_v54  ;;  %v4727_v6 = vpop.permute.xlu0 %4726  ;;  %v5088_v45 = vld [vmem:[#allocation6 + $0xa8] sm:$0xff] }
 0x4ca   :  { %4768 = vst.msk [vmem:[#allocation6 + $0xf8] sm:$0xff] %vm4633_vm14, %v4727_v6  ;;  %5358 = vmatprep.mubr.f32.mxu1 %v5088_v45 }
 0x4cb   :  { %6364 = vmatmul.mubr.msk.f32.gmra.mxu0 %vm160_vm12, %v5106_v40 }
 0x4cc   :  { %6366 = vmatprep.mubr.msk.f32.mxu0 %vm160_vm12, %v5111_v37  ;;  %v4598_v15 = vpop.permute.xlu1 %4597  ;;  %v5087_v2 = vld [vmem:[#allocation6 + $0xa0] sm:$0xff] }
 0x4cd   :  { %4640 = vst.msk [vmem:[#allocation6 + $0xf0] sm:$0xff] %vm4633_vm14, %v4598_v15  ;;  %v6319_v10 = vpop.f32.mrf.mxu0  ;;  %5359 = vmatmul.mubr.f32.gmra.mxu1 %v5087_v2  ;;  %v4729_v53 = vpop.permute.xlu0 %4728  ;;  %v5093_v8 = vld [vmem:[#allocation6 + $0xd0] sm:$0xff]  ;;  %v9061_v37 = vld [vmem:[%s9561_s4] ss:$0 sm:$0xff] }
 0x4ce   :  { %v4139_v62 = vadd.f32 %v8942_v43, %v6319_v10  ;;  %4769 = vst.msk [vmem:[#allocation6 + $0x120] sm:$0xff] %vm4633_vm14, %v4729_v53  ;;  %5363 = vmatprep.mubr.f32.mxu1 %v5093_v8 }
 0x4cf   :  { %6367 = vmatmul.mubr.msk.f32.gmra.mxu0 %vm160_vm12, %v5116_v61  ;;  %v4133_v18 = vpop.f32.mrf.mxu0 }
 0x4d0   :  { %6369 = vmatprep.mubr.msk.f32.mxu0 %vm160_vm12, %v5121_v42  ;;  %4254 = vst.msk [vmem:[#allocation4 + $0x198] sm:$0xff] %vm160_vm12, %v4139_v62  ;;  %v4134_v57 = vadd.f32 %v8942_v43, %v4133_v18  ;;  %v4600_v22 = vpop.permute.xlu1 %4599  ;;  %v5092_v26 = vld [vmem:[#allocation6 + $0xc8] sm:$0xff] }
 0x4d1   :  { %4641 = vst.msk [vmem:[#allocation6 + $0x118] sm:$0xff] %vm4633_vm14, %v4600_v22  ;;  %5364 = vmatmul.mubr.f32.gmra.mxu1 %v5092_v26  ;;  %v4731_v36 = vpop.permute.xlu0 %4730  ;;  %v5098_v34 = vld [vmem:[#allocation6 + $0xf8] sm:$0xff] }
 0x4d2   :  { %4253 = vst.msk [vmem:[#allocation4 + $0x190] sm:$0xff] %vm160_vm12, %v4134_v57  ;;  %5368 = vmatprep.mubr.f32.mxu1 %v5098_v34 }
 0x4d3   :  { %4770 = vst.msk [vmem:[#allocation6 + $0x148] sm:$0xff] %vm4633_vm14, %v4731_v36 }
 0x4d4   :  { %v4602_v20 = vpop.permute.xlu1 %4601  ;;  %v5097_v5 = vld [vmem:[#allocation6 + $0xf0] sm:$0xff] }
 0x4d5   :  { %4642 = vst.msk [vmem:[#allocation6 + $0x140] sm:$0xff] %vm4633_vm14, %v4602_v20  ;;  %5369 = vmatmul.mubr.f32.gmra.mxu1 %v5097_v5  ;;  %v4733_v24 = vpop.permute.xlu0 %4732  ;;  %v5103_v48 = vld [vmem:[#allocation6 + $0x120] sm:$0xff] }
 0x4d6   :  { %4771 = vst.msk [vmem:[#allocation6 + $0x170] sm:$0xff] %vm4633_vm14, %v4733_v24  ;;  %5373 = vmatprep.mubr.f32.mxu1 %v5103_v48 }
 0x4d8   :  { %v4604_v59 = vpop.permute.xlu1 %4603  ;;  %v5102_v46 = vld [vmem:[#allocation6 + $0x118] sm:$0xff] }
 0x4d9   :  { %v4317_v1 = vld [vmem:[#allocation4 + $0x190] ss:$2 sm:$0xff]  ;;  %v4381_v32 = vld [vmem:[#allocation4 + $0x191] ss:$2 sm:$0xff]  ;;  %4643 = vst.msk [vmem:[#allocation6 + $0x168] sm:$0xff] %vm4633_vm14, %v4604_v59  ;;  %5374 = vmatmul.mubr.f32.gmra.mxu1 %v5102_v46 }
 0x4da   :  { %v4419_v16 = vmax.f32 %v4317_v1, %v4381_v32  ;;  %v5108_v12 = vld [vmem:[#allocation6 + $0x148] sm:$0xff] }
 0x4db   :  { %5378 = vmatprep.mubr.f32.mxu1 %v5108_v12 }
 0x4dc   :  { %v4438_v0 = vmax.f32 %v4418_v41, %v4419_v16  ;;  %v4606_v25 = vpop.permute.xlu1 %4605  ;;  %v5107_v50 = vld [vmem:[#allocation6 + $0x140] sm:$0xff] }
 0x4dd   :  { %4644 = vst.msk [vmem:[#allocation6 + $0x190] sm:$0xff] %vm4633_vm14, %v4606_v25  ;;  %5379 = vmatmul.mubr.f32.gmra.mxu1 %v5107_v50  ;;  %v5113_v40 = vld [vmem:[#allocation6 + $0x170] sm:$0xff] }
 0x4de   :  { %v4454_v7 = vmax.f32 %v4438_v0, 0.0  ;;  %5383 = vmatprep.mubr.f32.mxu1 %v5113_v40 }
 0x4e0   :  { %v4735_v60 = vpop.permute.xlu0 %4734  ;;  %v4477_v35 = vmul.f32 %v9054_v55, %v4454_v7  ;;  %v5112_v54 = vld [vmem:[#allocation6 + $0x168] sm:$0xff] }
 0x4e1   :  { %4772 = vst.msk [vmem:[#allocation6 + $0x198] sm:$0xff] %vm4633_vm14, %v4735_v60  ;;  %5384 = vmatmul.mubr.f32.gmra.mxu1 %v5112_v54 }
 0x4e2   :  { %v4500_v6 = vadd.f32 %v9061_v37, %v4477_v35 }
 0x4e4   :  { %v4608_v56 = vpop.permute.xlu1 %4607  ;;  %4517 = vst.msk [vmem:[#allocation5 + $0xf1] sm:$0xff] %vm160_vm12, %v4500_v6  ;;  %v5117_v15 = vld [vmem:[#allocation6 + $0x190] sm:$0xff] }
 0x4e5   :  { %4645 = vst.msk [vmem:[#allocation6 + $0x1b8] sm:$0xff] %vm4633_vm14, %v4608_v56 }
 0x4e8   :  { %v5118_v45 = vld [vmem:[#allocation6 + $0x198] sm:$0xff] }
 0x4e9   :  { %5388 = vmatprep.mubr.f32.mxu1 %v5118_v45 }
 0x4ea   :  { %5389 = vmatmul.mubr.f32.gmra.mxu1 %v5117_v15 }
 0x4eb   :  { %v4694_v2 = vld [vmem:[#allocation5 + $0xf0] sm:$0xff] }
 0x4ec   :  { %v9065_v61 = vld [vmem:[#allocation5 + $0xf1] sm:$0xff]  ;;  %4738 = vrot.lane.b32.xlu0 %v4694_v2, %s6465_s28  ;;  %4550 = vst.msk [vmem:[#allocation6 + $0x208] sm:$0xff] %vm160_vm12, %v4694_v2  ;;  %4934 = vst.msk [vmem:[#allocation6 + $0x1d0] sm:$0xff] %vm160_vm12, %v4694_v2 }
 0x4ed   :  { %v9067_v10 = vld [vmem:[#allocation5 + $0xf2] sm:$0xff]  ;;  %4611 = vrot.lane.b32.xlu1 %v9065_v61, %s6465_s28  ;;  %4806 = vst.msk [vmem:[#allocation6 + $0x1f0] sm:$0xff] %vm160_vm12, %v9065_v61  ;;  %v6322_v42 = vpop.f32.mrf.mxu0 }
 0x4ee   :  { %5062 = vst.msk [vmem:[#allocation6 + $0x1d8] sm:$0xff] %vm160_vm12, %v9067_v10  ;;  %4679 = vst.msk [vmem:[#allocation6 + $0x210] sm:$0xff] %vm160_vm12, %v9067_v10  ;;  %v4149_v62 = vadd.f32 %v8942_v43, %v6322_v42  ;;  %v5122_v12 = vld [vmem:[#allocation6 + $0x1b8] sm:$0xff] }
 0x4ef   :  { %v4143_v18 = vpop.f32.mrf.mxu0 }
 0x4f0   :  { %4256 = vst.msk [vmem:[#allocation4 + $0x1a8] sm:$0xff] %vm160_vm12, %v4149_v62  ;;  %v4144_v53 = vadd.f32 %v8942_v43, %v4143_v18 }
 0x4f2   :  { %4255 = vst.msk [vmem:[#allocation4 + $0x1a0] sm:$0xff] %vm160_vm12, %v4144_v53 }
 0x4f5   :  { %v5126_v8 = vld [vmem:[#allocation6 + $0x1d8] sm:$0xff] }
 0x4f6   :  { %6370 = vmatmul.mubr.msk.f32.gmra.mxu0 %vm160_vm12, %v5126_v8 }
 0x4f9   :  { %v4319_v34 = vld [vmem:[#allocation4 + $0x1a0] ss:$2 sm:$0xff]  ;;  %v4383_v20 = vld [vmem:[#allocation4 + $0x1a1] ss:$2 sm:$0xff] }
 0x4fa   :  { %v4420_v29 = vmax.f32 %v4319_v34, %v4383_v20 }
 0x50d   :  { %v6325_v57 = vpop.f32.mrf.mxu0 }
 0x50e   :  { %v4159_v22 = vadd.f32 %v8942_v43, %v6325_v57 }
 0x50f   :  { %v4153_v26 = vpop.f32.mrf.mxu0 }
 0x510   :  { %4258 = vst.msk [vmem:[#allocation4 + $0x1b8] sm:$0xff] %vm160_vm12, %v4159_v22  ;;  %v4154_v36 = vadd.f32 %v8942_v43, %v4153_v26 }
 0x512   :  { %4257 = vst.msk [vmem:[#allocation4 + $0x1b0] sm:$0xff] %vm160_vm12, %v4154_v36 }
 0x519   :  { %v4321_v5 = vld [vmem:[#allocation4 + $0x1b0] ss:$2 sm:$0xff]  ;;  %v4385_v23 = vld [vmem:[#allocation4 + $0x1b1] ss:$2 sm:$0xff] }
 0x51a   :  { %v4421_v24 = vmax.f32 %v4321_v5, %v4385_v23 }
 0x51c   :  { %v4439_v48 = vmax.f32 %v4420_v29, %v4421_v24 }
 0x51e   :  { %v4455_v59 = vmax.f32 %v4439_v48, 0.0 }
 0x51f   :  { %v4737_v46 = vpop.permute.xlu0 %4736 }
 0x520   :  { %4773 = vst.msk [vmem:[#allocation6 + $0x1c0] sm:$0xff] %vm4633_vm14, %v4737_v46  ;;  %v4610_v1 = vpop.permute.xlu1 %4609  ;;  %v4478_v32 = vmul.f32 %v9054_v55, %v4455_v59 }
 0x521   :  { %4646 = vst.msk [vmem:[#allocation6 + $0x1e0] sm:$0xff] %vm4633_vm14, %v4610_v1 }
 0x522   :  { %v4501_v41 = vadd.f32 %v9061_v37, %v4478_v32 }
 0x524   :  { %4518 = vst.msk [vmem:[#allocation5 + $0x101] sm:$0xff] %vm160_vm12, %v4501_v41 }
 0x527   :  { %v5123_v16 = vld [vmem:[#allocation6 + $0x1c0] sm:$0xff] }
 0x528   :  { %5393 = vmatprep.mubr.f32.mxu1 %v5123_v16  ;;  %v5127_v23 = vld [vmem:[#allocation6 + $0x1e0] sm:$0xff]  ;;  %v5210_v16 = vld [vmem:[%s9562_s5 + $0x1f8] sm:$0xff] }
 0x529   :  { %5394 = vmatmul.mubr.f32.gmra.mxu1 %v5122_v12  ;;  %v5194_v12 = vld [vmem:[%s9562_s5 + $0x178] sm:$0xff]  ;;  %6111 = vmatprep.subr.mxu1 %v5210_v16 }
 0x52a   :  { %6112 = vmatpush3.msra.mxu1 %v5194_v12 }
 0x52b   :  { %v4695_v0 = vld [vmem:[#allocation5 + $0x100] sm:$0xff] }
 0x52c   :  { %v9094_v25 = vld [vmem:[#allocation5 + $0x101] sm:$0xff]  ;;  %4740 = vrot.lane.b32.xlu0 %v4695_v0, %s6465_s28  ;;  %4551 = vst.msk [vmem:[#allocation6 + $0x230] sm:$0xff] %vm160_vm12, %v4695_v0  ;;  %4935 = vst.msk [vmem:[#allocation6 + $0x1f8] sm:$0xff] %vm160_vm12, %v4695_v0 }
 0x52d   :  { %v9096_v50 = vld [vmem:[#allocation5 + $0x102] sm:$0xff]  ;;  %4613 = vrot.lane.b32.xlu1 %v9094_v25, %s6465_s28  ;;  %4807 = vst.msk [vmem:[#allocation6 + $0x218] sm:$0xff] %vm160_vm12, %v9094_v25  ;;  %v6328_v7 = vpop.f32.mrf.mxu0 }
 0x52e   :  { %5063 = vst.msk [vmem:[#allocation6 + $0x200] sm:$0xff] %vm160_vm12, %v9096_v50  ;;  %4680 = vst.msk [vmem:[#allocation6 + $0x238] sm:$0xff] %vm160_vm12, %v9096_v50  ;;  %v4169_v60 = vadd.f32 %v8942_v43, %v6328_v7 }
 0x52f   :  { %v4163_v40 = vpop.f32.mrf.mxu0 }
 0x530   :  { %4260 = vst.msk [vmem:[#allocation4 + $0x1c8] sm:$0xff] %vm160_vm12, %v4169_v60  ;;  %v4164_v35 = vadd.f32 %v8942_v43, %v4163_v40  ;;  %v5193_v60 = vld [vmem:[%s9562_s5 + $0x170] sm:$0xff]  ;;  %v5208_v40 = vld [vmem:[%s9562_s5 + $0x1e8] sm:$0xff] }
 0x532   :  { %4259 = vst.msk [vmem:[#allocation4 + $0x1c0] sm:$0xff] %vm160_vm12, %v4164_v35  ;;  %v5192_v35 = vld [vmem:[%s9562_s5 + $0x168] sm:$0xff] }
 0x535   :  { %v5131_v56 = vld [vmem:[#allocation6 + $0x200] sm:$0xff] }
 0x536   :  { %6372 = vmatprep.mubr.msk.f32.mxu0 %vm160_vm12, %v5131_v56  ;;  %v5207_v56 = vld [vmem:[%s9562_s5 + $0x1e0] sm:$0xff] }
 0x539   :  { %v4323_v2 = vld [vmem:[#allocation4 + $0x1c0] ss:$2 sm:$0xff]  ;;  %v4387_v42 = vld [vmem:[#allocation4 + $0x1c1] ss:$2 sm:$0xff] }
 0x53a   :  { %v4422_v53 = vmax.f32 %v4323_v2, %v4387_v42  ;;  %v5205_v2 = vld [vmem:[%s9562_s5 + $0x1d0] sm:$0xff] }
 0x54d   :  { %v6331_v54 = vpop.f32.mrf.mxu0 }
 0x54e   :  { %v4179_v6 = vadd.f32 %v8942_v43, %v6331_v54 }
 0x54f   :  { %v4173_v45 = vpop.f32.mrf.mxu0 }
 0x550   :  { %4262 = vst.msk [vmem:[#allocation4 + $0x1d8] sm:$0xff] %vm160_vm12, %v4179_v6  ;;  %v4174_v15 = vadd.f32 %v8942_v43, %v4173_v45  ;;  %v5191_v45 = vld [vmem:[%s9562_s5 + $0x160] sm:$0xff] }
 0x552   :  { %4261 = vst.msk [vmem:[#allocation4 + $0x1d0] sm:$0xff] %vm160_vm12, %v4174_v15 }
 0x559   :  { %v4325_v62 = vld [vmem:[#allocation4 + $0x1d0] ss:$2 sm:$0xff]  ;;  %v4389_v18 = vld [vmem:[#allocation4 + $0x1d1] ss:$2 sm:$0xff] }
 0x55a   :  { %v4423_v8 = vmax.f32 %v4325_v62, %v4389_v18 }
 0x55c   :  { %v4440_v57 = vmax.f32 %v4422_v53, %v4423_v8  ;;  %v5189_v8 = vld [vmem:[%s9562_s5 + $0x150] sm:$0xff] }
 0x55e   :  { %v4456_v22 = vmax.f32 %v4440_v57, 0.0  ;;  %v4739_v26 = vpop.permute.xlu0 %4738  ;;  %v5188_v57 = vld [vmem:[%s9562_s5 + $0x148] sm:$0xff] }
 0x55f   :  { %v4612_v36 = vpop.permute.xlu1 %4611  ;;  %4774 = vst.msk [vmem:[#allocation6 + $0x1e8] sm:$0xff] %vm4633_vm14, %v4739_v26  ;;  %v5203_v26 = vld [vmem:[%s9562_s5 + $0x1c0] sm:$0xff] }
 0x560   :  { %4647 = vst.msk [vmem:[#allocation6 + $0x208] sm:$0xff] %vm4633_vm14, %v4612_v36  ;;  %v4479_v34 = vmul.f32 %v9054_v55, %v4456_v22 }
 0x562   :  { %v4502_v20 = vadd.f32 %v9061_v37, %v4479_v34 }
 0x564   :  { %4519 = vst.msk [vmem:[#allocation5 + $0x111] sm:$0xff] %vm160_vm12, %v4502_v20 }
 0x566   :  { %v5128_v5 = vld [vmem:[#allocation6 + $0x1e8] sm:$0xff] }
 0x567   :  { %5398 = vmatprep.mubr.f32.mxu1 %v5128_v5 }
 0x568   :  { %5399 = vmatmul.mubr.f32.gmra.mxu1 %v5127_v23 }
 0x56a   :  { %v6334_v59 = vpop.f32.mrf.mxu0 }
 0x56b   :  { %v4696_v29 = vld [vmem:[#allocation5 + $0x110] sm:$0xff]  ;;  %v4189_v46 = vadd.f32 %v8942_v43, %v6334_v59  ;;  %v5187_v59 = vld [vmem:[%s9562_s5 + $0x140] sm:$0xff] }
 0x56c   :  { %v9123_v24 = vld [vmem:[#allocation5 + $0x111] sm:$0xff]  ;;  %4742 = vrot.lane.b32.xlu0 %v4696_v29, %s6465_s28  ;;  %4552 = vst.msk [vmem:[#allocation6 + $0x258] sm:$0xff] %vm160_vm12, %v4696_v29  ;;  %4936 = vst.msk [vmem:[#allocation6 + $0x220] sm:$0xff] %vm160_vm12, %v4696_v29  ;;  %v4183_v1 = vpop.f32.mrf.mxu0 }
 0x56d   :  { %v9125_v48 = vld [vmem:[#allocation5 + $0x112] sm:$0xff]  ;;  %4615 = vrot.lane.b32.xlu1 %v9123_v24, %s6465_s28  ;;  %4808 = vst.msk [vmem:[#allocation6 + $0x240] sm:$0xff] %vm160_vm12, %v9123_v24  ;;  %4264 = vst.msk [vmem:[#allocation4 + $0x1e8] sm:$0xff] %vm160_vm12, %v4189_v46  ;;  %v4184_v32 = vadd.f32 %v8942_v43, %v4183_v1 }
 0x56e   :  { %5064 = vst.msk [vmem:[#allocation6 + $0x228] sm:$0xff] %vm160_vm12, %v9125_v48  ;;  %4681 = vst.msk [vmem:[#allocation6 + $0x260] sm:$0xff] %vm160_vm12, %v9125_v48  ;;  %v5186_v46 = vld [vmem:[%s9562_s5 + $0x138] sm:$0xff] }
 0x56f   :  { %4263 = vst.msk [vmem:[#allocation4 + $0x1e0] sm:$0xff] %vm160_vm12, %v4184_v32 }
 0x571   :  { %4842 = vrot.lane.b32.xlu1 %v7745_v11, %s6465_s28  ;;  %v5209_v11 = vld [vmem:[%s9562_s5 + $0x1f0] sm:$0xff] }
 0x572   :  { %6113 = vmatprep.subr.mxu1 %v5209_v11 }
 0x573   :  { %6114 = vmatpush3.msra.mxu1 %v5193_v60 }
 0x574   :  { %6115 = vmatprep.subr.mxu1 %v5208_v40  ;;  %v5199_v40 = vld [vmem:[%s9562_s5 + $0x1a0] sm:$0xff] }
 0x575   :  { %v5136_v41 = vld [vmem:[#allocation6 + $0x228] sm:$0xff]  ;;  %4844 = vrot.lane.b32.xlu1 %v7825_v49, %s6465_s28  ;;  %6116 = vmatpush3.msra.mxu1 %v5192_v35 }
 0x576   :  { %6373 = vmatmul.mubr.msk.f32.gmra.mxu0 %vm160_vm12, %v5136_v41  ;;  %6117 = vmatprep.subr.mxu1 %v5207_v56  ;;  %v4327_v62 = vld [vmem:[#allocation4 + $0x1e0] ss:$2 sm:$0xff]  ;;  %v4391_v18 = vld [vmem:[#allocation4 + $0x1e1] ss:$2 sm:$0xff]  ;;  %v5201_v41 = vld [vmem:[%s9562_s5 + $0x1b0] sm:$0xff] }
 0x577   :  { %6118 = vmatpush3.msra.mxu1 %v5191_v45  ;;  %v4424_v5 = vmax.f32 %v4327_v62, %v4391_v18  ;;  %v5195_v18 = vld [vmem:[%s9562_s5 + $0x180] sm:$0xff] }
 0x579   :  { %4846 = vrot.lane.b32.xlu1 %v7935_v3, %s6465_s28 }
 0x57b   :  { %v6337_v0 = vpop.f32.mrf.mxu0 }
 0x57c   :  { %v4199_v49 = vadd.f32 %v8942_v43, %v6337_v0  ;;  %v5185_v0 = vld [vmem:[%s9562_s5 + $0x130] sm:$0xff] }
 0x57d   :  { %v4193_v7 = vpop.f32.mrf.mxu0  ;;  %4848 = vrot.lane.b32.xlu1 %v8058_v31, %s6465_s28  ;;  %v6063_v54 = vpop.f32.mrf.mxu1  ;;  %v5206_v31 = vld [vmem:[%s9562_s5 + $0x1d8] sm:$0xff] }
 0x57e   :  { %4266 = vst.msk [vmem:[#allocation4 + $0x1f8] sm:$0xff] %vm160_vm12, %v4199_v49  ;;  %v4194_v3 = vadd.f32 %v8942_v43, %v4193_v7  ;;  %v5190_v43 = vld [vmem:[%s9562_s5 + $0x158] sm:$0xff]  ;;  %6119 = vmatprep.subr.mxu1 %v5206_v31  ;;  %v5200_v49 = vld [vmem:[%s9562_s5 + $0x1a8] sm:$0xff] }
 0x57f   :  { %v6064_v6 = vpop.f32.mrf.mxu1  ;;  %6120 = vmatpush3.msra.mxu1 %v5190_v43 }
 0x580   :  { %4265 = vst.msk [vmem:[#allocation4 + $0x1f0] sm:$0xff] %vm160_vm12, %v4194_v3  ;;  %v9185_v15 = vadd.f32 %v6064_v6, %v6063_v54  ;;  %6121 = vmatprep.subr.mxu1 %v5205_v2  ;;  %v5182_v54 = vld [vmem:[%s9562_s5 + $0x118] sm:$0xff]  ;;  %v5181_v2 = vld [vmem:[%s9562_s5 + $0x110] sm:$0xff] }
 0x581   :  { %4850 = vrot.lane.b32.xlu1 %v8185_v28, %s6465_s28  ;;  %v6066_v42 = vpop.f32.mrf.mxu1  ;;  %v5204_v28 = vld [vmem:[%s9562_s5 + $0x1c8] sm:$0xff]  ;;  %6122 = vmatpush3.msra.mxu1 %v5189_v8 }
 0x582   :  { %6123 = vmatprep.subr.mxu1 %v5204_v28 }
 0x583   :  { %v6067_v53 = vpop.f32.mrf.mxu1  ;;  %6124 = vmatpush3.msra.mxu1 %v5188_v57 }
 0x584   :  { %v9201_v22 = vadd.f32 %v6067_v53, %v6066_v42  ;;  %6125 = vmatprep.subr.mxu1 %v5203_v26  ;;  %v5180_v42 = vld [vmem:[%s9562_s5 + $0x108] sm:$0xff]  ;;  %v5179_v26 = vld [vmem:[%s9562_s5 + $0x100] sm:$0xff] }
 0x585   :  { %4852 = vrot.lane.b32.xlu1 %v8302_v47, %s6465_s28  ;;  %v6069_v20 = vpop.f32.mrf.mxu1  ;;  %v5202_v47 = vld [vmem:[%s9562_s5 + $0x1b8] sm:$0xff]  ;;  %6126 = vmatpush3.msra.mxu1 %v5187_v59 }
 0x586   :  { %6127 = vmatprep.subr.mxu1 %v5202_v47 }
 0x587   :  { %v4329_v36 = vld [vmem:[#allocation4 + $0x1f0] ss:$2 sm:$0xff]  ;;  %v4393_v34 = vld [vmem:[#allocation4 + $0x1f1] ss:$2 sm:$0xff]  ;;  %v6070_v29 = vpop.f32.mrf.mxu1  ;;  %6128 = vmatpush3.msra.mxu1 %v5186_v46 }
 0x588   :  { %v4425_v23 = vmax.f32 %v4329_v36, %v4393_v34  ;;  %v9217_v32 = vadd.f32 %v6070_v29, %v6069_v20  ;;  %6129 = vmatprep.subr.mxu1 %v5201_v41  ;;  %v5132_v41 = vld [vmem:[#allocation6 + $0x208] sm:$0xff] }
 0x589   :  { %4854 = vrot.lane.b32.xlu1 %v8424_v17, %s6465_s28  ;;  %v6072_v16 = vpop.f32.mrf.mxu1  ;;  %v5184_v17 = vld [vmem:[%s9562_s5 + $0x128] sm:$0xff]  ;;  %6130 = vmatpush3.msra.mxu1 %v5185_v0 }
 0x58a   :  { %v4441_v1 = vmax.f32 %v4424_v5, %v4425_v23  ;;  %6131 = vmatprep.subr.mxu1 %v5200_v49 }
 0x58b   :  { %v6073_v11 = vpop.f32.mrf.mxu1  ;;  %6132 = vmatpush3.msra.mxu1 %v5184_v17 }
 0x58c   :  { %v4457_v12 = vmax.f32 %v4441_v1, 0.0  ;;  %v9234_v60 = vadd.f32 %v6073_v11, %v6072_v16  ;;  %6133 = vmatprep.subr.mxu1 %v5199_v40  ;;  %v4914_v16 = vld [vmem:[#allocation5 + $0x90] sm:$0xff] }
 0x58d   :  { %4856 = vrot.lane.b32.xlu1 %v8527_v33, %s6465_s28  ;;  %v6075_v35 = vpop.f32.mrf.mxu1  ;;  %v5198_v33 = vld [vmem:[%s9562_s5 + $0x198] sm:$0xff]  ;;  %4930 = vst.msk [vmem:[#allocation6 + $0x130] sm:$0xff] %vm160_vm12, %v4914_v16 }
 0x58e   :  { %v4480_v7 = vmul.f32 %v9054_v55, %v4457_v12  ;;  %v5183_v55 = vld [vmem:[%s9562_s5 + $0x120] sm:$0xff] }
 0x58f   :  { %v6076_v56 = vpop.f32.mrf.mxu1  ;;  %6134 = vmatpush3.msra.mxu1 %v5183_v55 }
 0x590   :  { %v4503_v3 = vadd.f32 %v9061_v37, %v4480_v7  ;;  %v9252_v6 = vadd.f32 %v6076_v56, %v6075_v35  ;;  %v5197_v37 = vld [vmem:[%s9562_s5 + $0x190] sm:$0xff]  ;;  %6135 = vmatprep.subr.mxu1 %v5198_v33 }
 0x591   :  { %4858 = vrot.lane.b32.xlu1 %v8625_v52, %s6465_s28  ;;  %v6078_v45 = vpop.f32.mrf.mxu1  ;;  %6136 = vmatpush3.msra.mxu1 %v5182_v54  ;;  %v5196_v52 = vld [vmem:[%s9562_s5 + $0x188] sm:$0xff] }
 0x592   :  { %4520 = vst.msk [vmem:[#allocation5 + $0x121] sm:$0xff] %vm160_vm12, %v4503_v3  ;;  %6137 = vmatprep.subr.mxu1 %v5197_v37 }
 0x593   :  { %v6079_v31 = vpop.f32.mrf.mxu1  ;;  %6138 = vmatpush3.msra.mxu1 %v5181_v2 }
 0x594   :  { %v9259_v43 = vadd.f32 %v6079_v31, %v6078_v45  ;;  %6139 = vmatprep.subr.mxu1 %v5196_v52 }
 0x595   :  { %4860 = vrot.lane.b32.xlu1 %v8806_v9, %s6465_s28  ;;  %v6081_v62 = vpop.f32.mrf.mxu1  ;;  %6140 = vmatpush3.msra.mxu1 %v5180_v42 }
 0x596   :  { %6141 = vmatprep.subr.mxu1 %v5195_v18 }
 0x597   :  { %v6082_v9 = vpop.f32.mrf.mxu1  ;;  %6142 = vmatpush3.msra.mxu1 %v5179_v26 }
 0x598   :  { %v9275_v57 = vadd.f32 %v6082_v9, %v6081_v62  ;;  %6378 = vmatprep.subr.mxu1 %v9570_v4 }
 0x599   :  { %v4697_v53 = vld [vmem:[#allocation5 + $0x120] sm:$0xff]  ;;  %4862 = vrot.lane.b32.xlu1 %v8923_v14, %s6465_s28  ;;  %v6084_v36 = vpop.f32.mrf.mxu1 }
 0x59a   :  { %v5049_v8 = vld [vmem:[#allocation5 + $0x122] sm:$0xff]  ;;  %4744 = vrot.lane.b32.xlu0 %v4697_v53, %s6465_s28  ;;  %4937 = vst.msk [vmem:[#allocation6 + $0x248] sm:$0xff] %vm160_vm12, %v4697_v53 }
 0x59b   :  { %v4953_v28 = vld [vmem:[#allocation5 + $0x121] sm:$0xff]  ;;  %5065 = vst.msk [vmem:[#allocation6 + $0x250] sm:$0xff] %vm160_vm12, %v5049_v8  ;;  %v6085_v34 = vpop.f32.mrf.mxu1 }
 0x59c   :  { %4809 = vst.msk [vmem:[#allocation6 + $0x268] sm:$0xff] %vm160_vm12, %v4953_v28  ;;  %v9287_v20 = vadd.f32 %v6085_v34, %v6084_v36 }
 0x59d   :  { %4864 = vrot.lane.b32.xlu1 %v8992_v27, %s6465_s28  ;;  %v6087_v14 = vpop.f32.mrf.mxu1 }
 0x59e   :  { %4971 = vrot.lane.b32.xlu0 %v7836_v19, %s6465_s28  ;;  %v4741_v5 = vpop.permute.xlu0 %4740 }
 0x59f   :  { %v4614_v23 = vpop.permute.xlu1 %4613  ;;  %4775 = vst.msk [vmem:[#allocation6 + $0x210] sm:$0xff] %vm4633_vm14, %v4741_v5  ;;  %v6088_v29 = vpop.f32.mrf.mxu1 }
 0x5a0   :  { %4648 = vst.msk [vmem:[#allocation6 + $0x230] sm:$0xff] %vm4633_vm14, %v4614_v23  ;;  %v9295_v47 = vadd.f32 %v6088_v29, %v6087_v14 }
 0x5a1   :  { %4866 = vrot.lane.b32.xlu1 %v9067_v10, %s6465_s28  ;;  %v6090_v19 = vpop.f32.mrf.mxu1 }
 0x5a2   :  { %v5141_v59 = vld [vmem:[#allocation6 + $0x250] sm:$0xff]  ;;  %4973 = vrot.lane.b32.xlu0 %v7946_v21, %s6465_s28 }
 0x5a3   :  { %6375 = vmatprep.mubr.msk.f32.mxu0 %vm160_vm12, %v5141_v59  ;;  %v6091_v27 = vpop.f32.mrf.mxu1 }
 0x5a4   :  { %v9302_v46 = vadd.f32 %v6091_v27, %v6090_v19 }
 0x5a5   :  { %4868 = vrot.lane.b32.xlu1 %v9096_v50, %s6465_s28 }
 0x5a6   :  { %4975 = vrot.lane.b32.xlu0 %v8069_v39, %s6465_s28  ;;  %v5133_v1 = vld [vmem:[#allocation6 + $0x210] sm:$0xff] }
 0x5a7   :  { %5403 = vmatprep.mubr.f32.mxu1 %v5133_v1  ;;  %v4946_v39 = vld [vmem:[#allocation5 + $0x91] sm:$0xff] }
 0x5a8   :  { %5404 = vmatmul.mubr.f32.gmra.mxu1 %v5132_v41  ;;  %v5137_v50 = vld [vmem:[#allocation6 + $0x230] sm:$0xff] }
 0x5a9   :  { %4870 = vrot.lane.b32.xlu1 %v9125_v48, %s6465_s28 }
 0x5aa   :  { %4977 = vrot.lane.b32.xlu0 %v8196_v30, %s6465_s28  ;;  %v6093_v21 = vpop.f32.mrf.mxu1  ;;  %v4922_v30 = vld [vmem:[#allocation5 + $0x130] sm:$0xff] }
 0x5ab   :  { %4938 = vst.msk [vmem:[#allocation6 + $0x270] sm:$0xff] %vm160_vm12, %v4922_v30 }
 0x5ac   :  { %v6094_v10 = vpop.f32.mrf.mxu1 }
 0x5ad   :  { %v9313_v12 = vadd.f32 %v6094_v10, %v6093_v21  ;;  %4872 = vrot.lane.b32.xlu1 %v5049_v8, %s6465_s28 }
 0x5ae   :  { %4979 = vrot.lane.b32.xlu0 %v8313_v13, %s6465_s28  ;;  %v5050_v13 = vld [vmem:[#allocation5 + $0x132] sm:$0xff] }
 0x5af   :  { %5066 = vst.msk [vmem:[#allocation6 + $0x278] sm:$0xff] %vm160_vm12, %v5050_v13 }
 0x5b2   :  { %4981 = vrot.lane.b32.xlu0 %v8435_v58, %s6465_s28  ;;  %v4954_v58 = vld [vmem:[#allocation5 + $0x131] sm:$0xff] }
 0x5b6   :  { %4983 = vrot.lane.b32.xlu0 %v8529_v51, %s6465_s28  ;;  %v5146_v51 = vld [vmem:[#allocation6 + $0x278] sm:$0xff] }
 0x5b7   :  { %6376 = vmatmul.mubr.msk.f32.gmra.mxu0 %vm160_vm12, %v5146_v51 }
 0x5ba   :  { %4985 = vrot.lane.b32.xlu0 %v4946_v39, %s6465_s28 }
 0x5be   :  { %4987 = vrot.lane.b32.xlu0 %v8808_v38, %s6465_s28 }
 0x5c2   :  { %4989 = vrot.lane.b32.xlu0 %v8932_v63, %s6465_s28 }
 0x5c6   :  { %4991 = vrot.lane.b32.xlu0 %v8995_v44, %s6465_s28 }
 0x5ca   :  { %4993 = vrot.lane.b32.xlu0 %v9065_v61, %s6465_s28 }
 0x5ce   :  { %4995 = vrot.lane.b32.xlu0 %v9094_v25, %s6465_s28 }
 0x5d2   :  { %4997 = vrot.lane.b32.xlu0 %v9123_v24, %s6465_s28 }
 0x5d6   :  { %4999 = vrot.lane.b32.xlu0 %v4953_v28, %s6465_s28 }
 0x5da   :  { %5001 = vrot.lane.b32.xlu0 %v4954_v58, %s6465_s28 }
 0x5de   :  { %v4743_v38 = vpop.permute.xlu0 %4742 }
 0x5df   :  { %v4616_v63 = vpop.permute.xlu1 %4615  ;;  %4776 = vst.msk [vmem:[#allocation6 + $0x238] sm:$0xff] %vm4633_vm14, %v4743_v38 }
 0x5e0   :  { %4649 = vst.msk [vmem:[#allocation6 + $0x258] sm:$0xff] %vm4633_vm14, %v4616_v63 }
 0x5e3   :  { %v4843_v44 = vpop.permute.xlu1 %4842 }
 0x5e4   :  { %4890 = vst.msk [vmem:[#allocation6 + $0x10] sm:$0xff] %vm4633_vm14, %v4843_v44 }
 0x5e6   :  { %v5138_v25 = vld [vmem:[#allocation6 + $0x238] sm:$0xff] }
 0x5e7   :  { %v4845_v61 = vpop.permute.xlu1 %4844  ;;  %5408 = vmatprep.mubr.f32.mxu1 %v5138_v25  ;;  %v5142_v52 = vld [vmem:[#allocation6 + $0x258] sm:$0xff] }
 0x5e8   :  { %4891 = vst.msk [vmem:[#allocation6 + $0x38] sm:$0xff] %vm4633_vm14, %v4845_v61  ;;  %5409 = vmatmul.mubr.f32.gmra.mxu1 %v5137_v50 }
 0x5e9   :  { %v6096_v24 = vpop.f32.mrf.mxu1 }
 0x5eb   :  { %v4847_v48 = vpop.permute.xlu1 %4846  ;;  %v6097_v11 = vpop.f32.mrf.mxu1  ;;  %v5069_v9 = vld [vmem:[#allocation6 + $0x10] sm:$0xff] }
 0x5ec   :  { %4892 = vst.msk [vmem:[#allocation6 + $0x60] sm:$0xff] %vm4633_vm14, %v4847_v48  ;;  %v9345_v0 = vadd.f32 %v6097_v11, %v6096_v24 }
 0x5ef   :  { %v4849_v49 = vpop.permute.xlu1 %4848  ;;  %v5074_v26 = vld [vmem:[#allocation6 + $0x38] sm:$0xff] }
 0x5f0   :  { %4893 = vst.msk [vmem:[#allocation6 + $0x88] sm:$0xff] %vm4633_vm14, %v4849_v49 }
 0x5f3   :  { %v4851_v17 = vpop.permute.xlu1 %4850  ;;  %v5079_v5 = vld [vmem:[#allocation6 + $0x60] sm:$0xff] }
 0x5f4   :  { %4894 = vst.msk [vmem:[#allocation6 + $0xb0] sm:$0xff] %vm4633_vm14, %v4851_v17 }
 0x5f7   :  { %v4853_v7 = vpop.permute.xlu1 %4852  ;;  %v5084_v59 = vld [vmem:[#allocation6 + $0x88] sm:$0xff] }
 0x5f8   :  { %4895 = vst.msk [vmem:[#allocation6 + $0xd8] sm:$0xff] %vm4633_vm14, %v4853_v7 }
 0x5fb   :  { %v4855_v40 = vpop.permute.xlu1 %4854  ;;  %v5089_v1 = vld [vmem:[#allocation6 + $0xb0] sm:$0xff] }
 0x5fc   :  { %4896 = vst.msk [vmem:[#allocation6 + $0x100] sm:$0xff] %vm4633_vm14, %v4855_v40 }
 0x5ff   :  { %v4857_v35 = vpop.permute.xlu1 %4856  ;;  %v5094_v30 = vld [vmem:[#allocation6 + $0xd8] sm:$0xff] }
 0x600   :  { %4897 = vst.msk [vmem:[#allocation6 + $0x128] sm:$0xff] %vm4633_vm14, %v4857_v35 }
 0x603   :  { %v4859_v3 = vpop.permute.xlu1 %4858  ;;  %v5099_v51 = vld [vmem:[#allocation6 + $0x100] sm:$0xff] }
 0x604   :  { %4898 = vst.msk [vmem:[#allocation6 + $0x150] sm:$0xff] %vm4633_vm14, %v4859_v3 }
 0x607   :  { %v4861_v56 = vpop.permute.xlu1 %4860  ;;  %v5104_v44 = vld [vmem:[#allocation6 + $0x128] sm:$0xff] }
 0x608   :  { %4899 = vst.msk [vmem:[#allocation6 + $0x178] sm:$0xff] %vm4633_vm14, %v4861_v56 }
 0x60b   :  { %v4863_v33 = vpop.permute.xlu1 %4862  ;;  %v5109_v50 = vld [vmem:[#allocation6 + $0x150] sm:$0xff] }
 0x60c   :  { %v4745_v55 = vpop.permute.xlu0 %4744  ;;  %4900 = vst.msk [vmem:[#allocation6 + $0x1a0] sm:$0xff] %vm4633_vm14, %v4863_v33 }
 0x60d   :  { %4777 = vst.msk [vmem:[#allocation6 + $0x260] sm:$0xff] %vm4633_vm14, %v4745_v55 }
 0x60f   :  { %v4865_v37 = vpop.permute.xlu1 %4864  ;;  %v5114_v11 = vld [vmem:[#allocation6 + $0x178] sm:$0xff] }
 0x610   :  { %v4972_v54 = vpop.permute.xlu0 %4971  ;;  %4901 = vst.msk [vmem:[#allocation6 + $0x1c8] sm:$0xff] %vm4633_vm14, %v4865_v37 }
 0x611   :  { %5019 = vst.msk [vmem:[#allocation6 + $0x18] sm:$0xff] %vm4633_vm14, %v4972_v54 }
 0x613   :  { %v4867_v2 = vpop.permute.xlu1 %4866  ;;  %v5119_v7 = vld [vmem:[#allocation6 + $0x1a0] sm:$0xff] }
 0x614   :  { %v4974_v45 = vpop.permute.xlu0 %4973  ;;  %v5143_v31 = vld [vmem:[#allocation6 + $0x260] sm:$0xff]  ;;  %4902 = vst.msk [vmem:[#allocation6 + $0x1f0] sm:$0xff] %vm4633_vm14, %v4867_v2 }
 0x615   :  { %5020 = vst.msk [vmem:[#allocation6 + $0x40] sm:$0xff] %vm4633_vm14, %v4974_v45  ;;  %5413 = vmatprep.mubr.f32.mxu1 %v5143_v31 }
 0x616   :  { %5414 = vmatmul.mubr.f32.gmra.mxu1 %v5142_v52 }
 0x617   :  { %v4869_v18 = vpop.permute.xlu1 %4868  ;;  %v5124_v3 = vld [vmem:[#allocation6 + $0x1c8] sm:$0xff] }
 0x618   :  { %v4976_v42 = vpop.permute.xlu0 %4975  ;;  %v5070_v62 = vld [vmem:[#allocation6 + $0x18] sm:$0xff]  ;;  %4903 = vst.msk [vmem:[#allocation6 + $0x218] sm:$0xff] %vm4633_vm14, %v4869_v18 }
 0x619   :  { %5021 = vst.msk [vmem:[#allocation6 + $0x68] sm:$0xff] %vm4633_vm14, %v4976_v42  ;;  %5483 = vmatprep.mubr.f32.mxu1 %v5070_v62 }
 0x61a   :  { %5484 = vmatmul.mubr.f32.vlgmr.msra.gmra.mxu1 %v5069_v9 }
 0x61b   :  { %v4871_v28 = vpop.permute.xlu1 %4870  ;;  %v5129_v33 = vld [vmem:[#allocation6 + $0x1f0] sm:$0xff] }
 0x61c   :  { %v4978_v53 = vpop.permute.xlu0 %4977  ;;  %v5075_v8 = vld [vmem:[#allocation6 + $0x40] sm:$0xff]  ;;  %4904 = vst.msk [vmem:[#allocation6 + $0x240] sm:$0xff] %vm4633_vm14, %v4871_v28 }
 0x61d   :  { %5022 = vst.msk [vmem:[#allocation6 + $0x90] sm:$0xff] %vm4633_vm14, %v4978_v53  ;;  %5488 = vmatprep.mubr.f32.mxu1 %v5075_v8 }
 0x61e   :  { %5489 = vmatmul.mubr.f32.gmra.mxu1 %v5074_v26 }
 0x61f   :  { %v4873_v14 = vpop.permute.xlu1 %4872  ;;  %v5134_v45 = vld [vmem:[#allocation6 + $0x218] sm:$0xff] }
 0x620   :  { %v4980_v36 = vpop.permute.xlu0 %4979  ;;  %v5080_v34 = vld [vmem:[#allocation6 + $0x68] sm:$0xff]  ;;  %4905 = vst.msk [vmem:[#allocation6 + $0x268] sm:$0xff] %vm4633_vm14, %v4873_v14  ;;  %v9391_v14 = vld [vmem:[%s9563_s6] ss:$0 sm:$0xff] }
 0x621   :  { %5023 = vst.msk [vmem:[#allocation6 + $0xb8] sm:$0xff] %vm4633_vm14, %v4980_v36  ;;  %5493 = vmatprep.mubr.f32.mxu1 %v5080_v34 }
 0x622   :  { %5494 = vmatmul.mubr.f32.gmra.mxu1 %v5079_v5 }
 0x623   :  { %v5139_v2 = vld [vmem:[#allocation6 + $0x240] sm:$0xff] }
 0x624   :  { %v4982_v23 = vpop.permute.xlu0 %4981  ;;  %v5085_v29 = vld [vmem:[#allocation6 + $0x90] sm:$0xff] }
 0x625   :  { %5024 = vst.msk [vmem:[#allocation6 + $0xe0] sm:$0xff] %vm4633_vm14, %v4982_v23  ;;  %5498 = vmatprep.mubr.f32.mxu1 %v5085_v29  ;;  %v5341_v23 = vadd.f32 %v9185_v15, %v9391_v14 }
 0x626   :  { %5499 = vmatmul.mubr.f32.gmra.mxu1 %v5084_v59 }
 0x627   :  { %v5144_v42 = vld [vmem:[#allocation6 + $0x268] sm:$0xff] }
 0x628   :  { %v4984_v19 = vpop.permute.xlu0 %4983  ;;  %v5090_v27 = vld [vmem:[#allocation6 + $0xb8] sm:$0xff]  ;;  %v6099_v41 = vpop.f32.mrf.mxu1 }
 0x629   :  { %5025 = vst.msk [vmem:[#allocation6 + $0x108] sm:$0xff] %vm4633_vm14, %v4984_v19  ;;  %5503 = vmatprep.mubr.f32.mxu1 %v5090_v27 }
 0x62a   :  { %5504 = vmatmul.mubr.f32.gmra.mxu1 %v5089_v1  ;;  %v6100_v16 = vpop.f32.mrf.mxu1  ;;  %v5346_v1 = vadd.f32 %v9201_v22, %v9391_v14  ;;  %v5356_v22 = vadd.f32 %v9234_v60, %v9391_v14 }
 0x62b   :  { %v9369_v39 = vadd.f32 %v6100_v16, %v6099_v41 }
 0x62c   :  { %v4986_v21 = vpop.permute.xlu0 %4985  ;;  %v5095_v10 = vld [vmem:[#allocation6 + $0xe0] sm:$0xff] }
 0x62d   :  { %5026 = vst.msk [vmem:[#allocation6 + $0x130] sm:$0xff] %vm4633_vm14, %v4986_v21  ;;  %5508 = vmatprep.mubr.f32.mxu1 %v5095_v10  ;;  %v9399_v21 = vpop.f32.mrf.mxu0 }
 0x62e   :  { %5509 = vmatmul.mubr.f32.gmra.mxu1 %v5094_v30  ;;  %9573 = vst [vmem:[#allocation13_spill] sm:$0xff] %v9399_v21 }
 0x62f   :  { %v9405_v15 = vpop.f32.mrf.mxu0 }
 0x630   :  { %v4988_v13 = vpop.permute.xlu0 %4987  ;;  %v5100_v58 = vld [vmem:[#allocation6 + $0x108] sm:$0xff]  ;;  %9574 = vst [vmem:[#allocation14_spill] sm:$0xff] %v9405_v15 }
 0x631   :  { %5027 = vst.msk [vmem:[#allocation6 + $0x158] sm:$0xff] %vm4633_vm14, %v4988_v13  ;;  %5513 = vmatprep.mubr.f32.mxu1 %v5100_v58  ;;  %v5351_v13 = vadd.f32 %v9217_v32, %v9391_v14  ;;  %v5361_v32 = vadd.f32 %v9252_v6, %v9391_v14 }
 0x632   :  { %5514 = vmatmul.mubr.f32.gmra.mxu1 %v5099_v51 }
 0x634   :  { %v4990_v38 = vpop.permute.xlu0 %4989  ;;  %v5105_v63 = vld [vmem:[#allocation6 + $0x130] sm:$0xff] }
 0x635   :  { %5028 = vst.msk [vmem:[#allocation6 + $0x180] sm:$0xff] %vm4633_vm14, %v4990_v38  ;;  %5518 = vmatprep.mubr.f32.mxu1 %v5105_v63 }
 0x636   :  { %5519 = vmatmul.mubr.f32.gmra.mxu1 %v5104_v44 }
 0x638   :  { %v4992_v61 = vpop.permute.xlu0 %4991  ;;  %v5110_v25 = vld [vmem:[#allocation6 + $0x158] sm:$0xff] }
 0x639   :  { %5029 = vst.msk [vmem:[#allocation6 + $0x1a8] sm:$0xff] %vm4633_vm14, %v4992_v61  ;;  %5523 = vmatprep.mubr.f32.mxu1 %v5110_v25  ;;  %v9411_v61 = vpop.f32.mrf.mxu0 }
 0x63a   :  { %5524 = vmatmul.mubr.f32.gmra.mxu1 %v5109_v50 }
 0x63c   :  { %v4994_v24 = vpop.permute.xlu0 %4993  ;;  %v5115_v48 = vld [vmem:[#allocation6 + $0x180] sm:$0xff] }
 0x63d   :  { %5030 = vst.msk [vmem:[#allocation6 + $0x1d0] sm:$0xff] %vm4633_vm14, %v4994_v24  ;;  %5528 = vmatprep.mubr.f32.mxu1 %v5115_v48 }
 0x63e   :  { %5529 = vmatmul.mubr.f32.gmra.mxu1 %v5114_v11  ;;  %v9417_v11 = vpop.f32.mrf.mxu0 }
 0x640   :  { %v4996_v49 = vpop.permute.xlu0 %4995  ;;  %v5120_v17 = vld [vmem:[#allocation6 + $0x1a8] sm:$0xff]  ;;  %v9425_v60 = vpop.f32.mrf.mxu0 }
 0x641   :  { %5031 = vst.msk [vmem:[#allocation6 + $0x1f8] sm:$0xff] %vm4633_vm14, %v4996_v49  ;;  %5533 = vmatprep.mubr.f32.mxu1 %v5120_v17 }
 0x642   :  { %5534 = vmatmul.mubr.f32.gmra.mxu1 %v5119_v7 }
 0x644   :  { %v4998_v40 = vpop.permute.xlu0 %4997  ;;  %v5125_v35 = vld [vmem:[#allocation6 + $0x1d0] sm:$0xff] }
 0x645   :  { %5032 = vst.msk [vmem:[#allocation6 + $0x220] sm:$0xff] %vm4633_vm14, %v4998_v40  ;;  %5538 = vmatprep.mubr.f32.mxu1 %v5125_v35 }
 0x646   :  { %5539 = vmatmul.mubr.f32.gmra.mxu1 %v5124_v3  ;;  %v9431_v3 = vpop.f32.mrf.mxu0 }
 0x648   :  { %v5000_v56 = vpop.permute.xlu0 %4999  ;;  %v5130_v55 = vld [vmem:[#allocation6 + $0x1f8] sm:$0xff]  ;;  %v9433_v6 = vpop.f32.mrf.mxu0 }
 0x649   :  { %5033 = vst.msk [vmem:[#allocation6 + $0x248] sm:$0xff] %vm4633_vm14, %v5000_v56  ;;  %5543 = vmatprep.mubr.f32.mxu1 %v5130_v55 }
 0x64a   :  { %5544 = vmatmul.mubr.f32.gmra.mxu1 %v5129_v33 }
 0x64c   :  { %v5002_v54 = vpop.permute.xlu0 %5001  ;;  %v5135_v37 = vld [vmem:[#allocation6 + $0x220] sm:$0xff] }
 0x64d   :  { %5034 = vst.msk [vmem:[#allocation6 + $0x270] sm:$0xff] %vm4633_vm14, %v5002_v54  ;;  %5548 = vmatprep.mubr.f32.mxu1 %v5135_v37  ;;  %v9435_v37 = vpop.f32.mrf.mxu0 }
 0x64e   :  { %5549 = vmatmul.mubr.f32.gmra.mxu1 %v5134_v45 }
 0x650   :  { %v5140_v31 = vld [vmem:[#allocation6 + $0x248] sm:$0xff] }
 0x651   :  { %5553 = vmatprep.mubr.f32.mxu1 %v5140_v31 }
 0x652   :  { %5554 = vmatmul.mubr.f32.gmra.mxu1 %v5139_v2  ;;  %v9437_v2 = vpop.f32.mrf.mxu0 }
 0x654   :  { %v5145_v52 = vld [vmem:[#allocation6 + $0x270] sm:$0xff] }
 0x655   :  { %5558 = vmatprep.mubr.f32.mxu1 %v5145_v52 }
 0x656   :  { %5559 = vmatmul.mubr.f32.gmra.mxu1 %v5144_v42 }
 0x657   :  { %6410 = vmatprep.mubr.msk.f32.mxu1 %vm6466_vm15, %v9570_v4 }
 0x668   :  { %v6102_v62 = vpop.f32.mrf.mxu1 }
 0x66a   :  { %v6103_v18 = vpop.f32.mrf.mxu1 }
 0x66b   :  { %v9379_v9 = vadd.f32 %v6103_v18, %v6102_v62  ;;  %v9439_v62 = vpop.f32.mrf.mxu0 }
 0x6a8   :  { %v6105_v53 = vpop.f32.mrf.mxu1 }
 0x6aa   :  { %v6106_v8 = vpop.f32.mrf.mxu1 }
 0x6ab   :  { %v9381_v28 = vadd.f32 %v6106_v8, %v6105_v53  ;;  %v6371_v53 = vpop.f32.mrf.mxu0 }
 0x6d6   :  { %v9384_v26 = vpop.f32.mrf.mxu1 }
 0x6d8   :  { %v9386_v36 = vpop.f32.mrf.mxu1 }
 0x6da   :  { %v6143_v34 = vpop.f32.mrf.mxu1 }
 0x6dc   :  { %v6144_v5 = vpop.f32.mrf.mxu1 }
 0x6dd   :  { %v6145_v29 = vadd.f32 %v6144_v5, %v6143_v34  ;;  %v5680_v5 = vpop.f32.mrf.mxu0 }
 0x6de   :  { %v6146_v59 = vpop.f32.mrf.mxu1 }
 0x6df   :  { %v9395_v19 = vadd.f32 %v6145_v29, %v5341_v23  ;;  %v6374_v29 = vpop.f32.mrf.mxu0 }
 0x6e0   :  { %v6147_v27 = vpop.f32.mrf.mxu1 }
 0x6e1   :  { %9572 = vst [vmem:[#allocation12_spill] sm:$0xff] %v9395_v19  ;;  %v6148_v41 = vadd.f32 %v6147_v27, %v6146_v59 }
 0x6e2   :  { %v6149_v16 = vpop.f32.mrf.mxu1 }
 0x6e3   :  { %v9401_v10 = vadd.f32 %v6148_v41, %v5346_v1  ;;  %v5690_v1 = vpop.f32.mrf.mxu0 }
 0x6e4   :  { %v6150_v30 = vpop.f32.mrf.mxu1 }
 0x6e5   :  { %v6151_v58 = vadd.f32 %v6150_v30, %v6149_v16  ;;  %v6377_v30 = vpop.f32.mrf.mxu0 }
 0x6e6   :  { %v6152_v51 = vpop.f32.mrf.mxu1 }
 0x6e7   :  { %v9407_v38 = vadd.f32 %v6151_v58, %v5351_v13  ;;  %v5411_v13 = vadd.f32 %v9381_v28, %v9391_v14  ;;  %v6110_v58 = vadd.f32 %v9386_v36, %v9384_v26  ;;  %v5700_v4 = vpop.f32.mrf.mxu0  ;;  %v5396_v26 = vadd.f32 %v9345_v0, %v9391_v14 }
 0x6e8   :  { %v6153_v63 = vpop.f32.mrf.mxu1 }
 0x6e9   :  { %v6154_v44 = vadd.f32 %v6153_v63, %v6152_v51  ;;  %v5416_v15 = vadd.f32 %v6110_v58, %v9391_v14 }
 0x6ea   :  { %v6155_v25 = vpop.f32.mrf.mxu1 }
 0x6eb   :  { %v9413_v50 = vadd.f32 %v6154_v44, %v5356_v22  ;;  %v5406_v44 = vadd.f32 %v9379_v9, %v9391_v14  ;;  %v5391_v9 = vadd.f32 %v9313_v12, %v9391_v14 }
 0x6ec   :  { %v6156_v24 = vpop.f32.mrf.mxu1 }
 0x6ed   :  { %v6157_v48 = vadd.f32 %v6156_v24, %v6155_v25 }
 0x6ee   :  { %v9419_v49 = vpop.f32.mrf.mxu1 }
 0x6ef   :  { %v9421_v17 = vadd.f32 %v6157_v48, %v5361_v32  ;;  %v5401_v32 = vadd.f32 %v9369_v39, %v9391_v14 }
 0x6f0   :  { %v9423_v7 = vpop.f32.mrf.mxu1 }
 0x6f2   :  { %v9427_v40 = vpop.f32.mrf.mxu1 }
 0x6f4   :  { %v9429_v35 = vpop.f32.mrf.mxu1 }
 0x6f6   :  { %v6164_v56 = vpop.f32.mrf.mxu1 }
 0x6f8   :  { %v6165_v55 = vpop.f32.mrf.mxu1 }
 0x6f9   :  { %v6166_v12 = vadd.f32 %v6165_v55, %v6164_v56 }
 0x6fa   :  { %v6167_v33 = vpop.f32.mrf.mxu1 }
 0x6fc   :  { %v6168_v54 = vpop.f32.mrf.mxu1 }
 0x6fe   :  { %v6170_v45 = vpop.f32.mrf.mxu1 }
 0x700   :  { %v6171_v31 = vpop.f32.mrf.mxu1 }
 0x702   :  { %v6173_v52 = vpop.f32.mrf.mxu1 }
 0x704   :  { %v6174_v42 = vpop.f32.mrf.mxu1 }
 0x705   :  { %v6175_v36 = vadd.f32 %v6174_v42, %v6173_v52 }
 0x706   :  { %v6176_v18 = vpop.f32.mrf.mxu1 }
 0x707   :  { %v5536_v0 = vadd.f32 %v6175_v36, %v5391_v9 }
 0x708   :  { %v6177_v8 = vpop.f32.mrf.mxu1 }
 0x709   :  { %v6178_v19 = vadd.f32 %v6177_v8, %v6176_v18  ;;  %v6169_v18 = vadd.f32 %v6168_v54, %v6167_v33  ;;  %v5740_v8 = vld [vmem:[%s9564_s7 + $0x78] sm:$0xff]  ;;  %v5376_v54 = vadd.f32 %v9287_v20, %v9391_v14  ;;  %v5681_v56 = vadd.f32 %v5680_v5, %v5536_v0  ;;  %v5737_v20 = vld [vmem:[%s9564_s7 + $0x60] sm:$0xff] }
 0x70a   :  { %v6179_v34 = vpop.f32.mrf.mxu1 }
 0x70c   :  { %v6180_v23 = vpop.f32.mrf.mxu1 }
 0x70d   :  { %v6181_v25 = vadd.f32 %v6180_v23, %v6179_v34  ;;  %v6172_v34 = vadd.f32 %v6171_v31, %v6170_v45  ;;  %v5541_v23 = vadd.f32 %v6178_v19, %v5396_v26  ;;  %v5739_v19 = vld [vmem:[%s9564_s7 + $0x70] sm:$0xff]  ;;  %v6163_v31 = vadd.f32 %v9429_v35, %v9427_v40  ;;  %v5733_v26 = vld [vmem:[%s9564_s7 + $0x40] sm:$0xff] }
 0x70e   :  { %v6182_v59 = vpop.f32.mrf.mxu1  ;;  %v9575_v40 = vmov 0.0   ;;  %v5521_v35 = vadd.f32 %v6166_v12, %v5376_v54  ;;  %v5727_v12 = vld [vmem:[%s9564_s7 + $0x10] sm:$0xff] }
 0x70f   :  { %v5686_v45 = vadd.f32 %v6371_v53, %v5541_v23  ;;  %v5371_v53 = vadd.f32 %v9275_v57, %v9391_v14  ;;  %v5736_v57 = vld [vmem:[%s9564_s7 + $0x58] sm:$0xff] }
 0x710   :  { %v6183_v27 = vpop.f32.mrf.mxu1 }
 0x711   :  { %v6184_v51 = vadd.f32 %v6183_v27, %v6182_v59  ;;  %v5546_v59 = vadd.f32 %v6181_v25, %v5401_v32  ;;  %v5734_v32 = vld [vmem:[%s9564_s7 + $0x48] sm:$0xff] }
 0x712   :  { %v6185_v41 = vpop.f32.mrf.mxu1 }
 0x713   :  { %v5551_v28 = vadd.f32 %v6184_v51, %v5406_v44  ;;  %v5691_v52 = vadd.f32 %v5690_v1, %v5546_v59  ;;  %v5720_v51 = vmax.f32 %v5686_v45, 0.0 }
 0x714   :  { %v6186_v16 = vpop.f32.mrf.mxu1 }
 0x715   :  { %v6187_v63 = vadd.f32 %v6186_v16, %v6185_v41  ;;  %v5696_v39 = vadd.f32 %v6374_v29, %v5551_v28  ;;  %v5738_v29 = vld [vmem:[%s9564_s7 + $0x68] sm:$0xff]  ;;  %v5721_v55 = vmax.f32 %v5691_v52, 0.0  ;;  %v5728_v52 = vld [vmem:[%s9564_s7 + $0x18] sm:$0xff] }
 0x716   :  { %v6188_v22 = vpop.f32.mrf.mxu1 }
 0x717   :  { %v5556_v24 = vadd.f32 %v6187_v63, %v5411_v13  ;;  %v5386_v13 = vadd.f32 %v9302_v46, %v9391_v14  ;;  %v5722_v46 = vmax.f32 %v5696_v39, 0.0  ;;  %v5366_v63 = vadd.f32 %v9259_v43, %v9391_v14 }
 0x718   :  { %v6189_v48 = vpop.f32.mrf.mxu1  ;;  %v5753_v44 = vmul.f32 %v5737_v20, %v5721_v55  ;;  %v5666_v43 = vadd.f32 %v9433_v6, %v5521_v35 }
 0x719   :  { %v6190_v21 = vadd.f32 %v6189_v48, %v6188_v22  ;;  %v5701_v41 = vadd.f32 %v5700_v4, %v5556_v24  ;;  %v5381_v4 = vadd.f32 %v9295_v47, %v9391_v14  ;;  %v5754_v5 = vmul.f32 %v5738_v29, %v5722_v46  ;;  %v5757_v29 = vld [vmem:[%s9565_s8] sm:$0x3] }
 0x71a   :  { %v5719_v22 = vmax.f32 %v5681_v56, 0.0  ;;  %v5752_v24 = vmul.f32 %v5736_v57, %v5720_v51  ;;  %v5716_v36 = vmax.f32 %v5666_v43, 0.0 }
 0x71b   :  { %v5561_v27 = vadd.f32 %v6190_v21, %v5416_v15  ;;  %v5723_v21 = vmax.f32 %v5701_v41, 0.0  ;;  %v5531_v15 = vadd.f32 %v6172_v34, %v5386_v13  ;;  %v5526_v47 = vadd.f32 %v6169_v18, %v5381_v4  ;;  %v5731_v34 = vld [vmem:[%s9564_s7 + $0x30] sm:$0xff]  ;;  %v5729_v18 = vld [vmem:[%s9564_s7 + $0x20] sm:$0xff] }
 0x71d   :  { %v5706_v16 = vadd.f32 %v6377_v30, %v5561_v27  ;;  %v5755_v1 = vmul.f32 %v5739_v19, %v5723_v21  ;;  %v6160_v30 = vadd.f32 %v9423_v7, %v9419_v49  ;;  %v5676_v58 = vadd.f32 %v9437_v2, %v5531_v15  ;;  %v5735_v2 = vld [vmem:[%s9564_s7 + $0x50] sm:$0xff]  ;;  %v5732_v27 = vld [vmem:[%s9564_s7 + $0x38] sm:$0xff]  ;;  %v5726_v15 = vld [vmem:[%s9564_s7 + $0x8] sm:$0xff] }
 0x71e   :  { %v5516_v49 = vadd.f32 %v6163_v31, %v5371_v53  ;;  %v5671_v7 = vadd.f32 %v9439_v62, %v5526_v47  ;;  %v5751_v28 = vmul.f32 %v5735_v2, %v5719_v22  ;;  %v5748_v39 = vmul.f32 %v5732_v27, %v5716_v36 }
 0x71f   :  { %v5724_v42 = vmax.f32 %v5706_v16, 0.0  ;;  %v5511_v25 = vadd.f32 %v6160_v30, %v5366_v63  ;;  %v5718_v14 = vmax.f32 %v5676_v58, 0.0  ;;  %v5730_v16 = vld [vmem:[%s9564_s7 + $0x28] sm:$0xff]  ;;  %v5842_v53 = vlaneseq  ;;  %v5961_v30 = vld [vmem:[#allocation7] ss:$0 sm:$0xff] }
 0x720   :  { %v5661_v62 = vadd.f32 %v9435_v37, %v5516_v49  ;;  %v5717_v48 = vmax.f32 %v5671_v7, 0.0  ;;  %v5651_v37 = vadd.f32 %v9431_v3, %v9421_v17  ;;  %v5641_v17 = vadd.f32 %v9417_v11, %v9407_v38  ;;  %v9577_v38 = vld [vmem:[#allocation12_spill] sm:$0xff]  ;;  %v9578_v11 = vld [vmem:[#allocation14_spill] sm:$0xff] }
 0x721   :  { %v5756_v33 = vmul.f32 %v5740_v8, %v5724_v42  ;;  %v5656_v6 = vadd.f32 %v9425_v60, %v5511_v25  ;;  %v5750_v59 = vmul.f32 %v5734_v32, %v5718_v14  ;;  %v5646_v60 = vadd.f32 %v9411_v61, %v9413_v50  ;;  %v9576_v61 = vld [vmem:[#allocation13_spill] sm:$0xff] }
 0x722   :  { %v5715_v41 = vmax.f32 %v5661_v62, 0.0  ;;  %v5749_v9 = vmul.f32 %v5733_v26, %v5717_v48  ;;  %v5713_v3 = vmax.f32 %v5651_v37, 0.0  ;;  %v5636_v50 = vadd.f32 %v9576_v61, %v9401_v10 }
 0x723   :  { %6379 = vmatpush3.msra.mxu1 %v5756_v33  ;;  %v5714_v23 = vmax.f32 %v5656_v6, 0.0  ;;  %v5712_v8 = vmax.f32 %v5646_v60, 0.0  ;;  %v5631_v42 = vadd.f32 %v9578_v11, %v9577_v38  ;;  %v5711_v21 = vmax.f32 %v5641_v17, 0.0  ;;  %v5725_v33 = vld [vmem:[%s9564_s7] sm:$0xff] }
 0x724   :  { %6380 = vmatprep.subr.mxu1 %v9575_v40  ;;  %v5747_v13 = vmul.f32 %v5731_v34, %v5715_v41  ;;  %v5745_v4 = vmul.f32 %v5729_v18, %v5713_v3  ;;  %v5710_v10 = vmax.f32 %v5636_v50, 0.0  ;;  %v5843_v20 = vshrl.u32 %v5842_v53, 7 }
 0x725   :  { %6381 = vmatpush3.msra.mxu1 %v5755_v1  ;;  %v5746_v0 = vmul.f32 %v5730_v16, %v5714_v23  ;;  %v5744_v19 = vmul.f32 %v5728_v52, %v5712_v8  ;;  %v5709_v45 = vmax.f32 %v5631_v42, 0.0  ;;  %v5743_v46 = vmul.f32 %v5727_v12, %v5711_v21  ;;  %v202_v1 = vld [vmem:[#allocation8] sm:$0x1] }
 0x726   :  { %6382 = vmatprep.subr.mxu1 %v9575_v40  ;;  %v5742_v54 = vmul.f32 %v5726_v15, %v5710_v10  ;;  %204 = vst.msk [vmem:[#allocation9] sm:$0x1] %vm203_vm1, %v202_v1  ;;  %vm5846_vm2 = vcmp.lt.s32.totalorder %v5843_v20, 2 }
 0x727   :  { %6383 = vmatpush3.msra.mxu1 %v5754_v5  ;;  %v5741_v31 = vmul.f32 %v5725_v33, %v5709_v45 }
 0x728   :  { %6384 = vmatprep.subr.mxu1 %v9575_v40 }
 0x729   :  { %6385 = vmatpush3.msra.mxu1 %v5753_v44 }
 0x72a   :  { %6386 = vmatprep.subr.mxu1 %v9575_v40 }
 0x72b   :  { %6387 = vmatpush3.msra.mxu1 %v5752_v24 }
 0x72c   :  { %6388 = vmatprep.subr.mxu1 %v9575_v40 }
 0x72d   :  { %6389 = vmatpush3.msra.mxu1 %v5751_v28  ;;  %v5848_v25 = vld [vmem:[#allocation9] sm:$0x1] }
 0x72e   :  { %6390 = vmatprep.subr.mxu1 %v9575_v40 }
 0x72f   :  { %6391 = vmatpush3.msra.mxu1 %v5750_v59 }
 0x730   :  { %6392 = vmatprep.subr.mxu1 %v9575_v40 }
 0x731   :  { %6393 = vmatpush3.msra.mxu1 %v5749_v9 }
 0x732   :  { %6394 = vmatprep.subr.mxu1 %v9575_v40 }
 0x733   :  { %6395 = vmatpush3.msra.mxu1 %v5748_v39 }
 0x734   :  { %6396 = vmatprep.subr.mxu1 %v9575_v40 }
 0x735   :  { %6397 = vmatpush3.msra.mxu1 %v5747_v13 }
 0x736   :  { %6398 = vmatprep.subr.mxu1 %v9575_v40 }
 0x737   :  { %6399 = vmatpush3.msra.mxu1 %v5746_v0 }
 0x738   :  { %6400 = vmatprep.subr.mxu1 %v9575_v40 }
 0x739   :  { %6401 = vmatpush3.msra.mxu1 %v5745_v4 }
 0x73a   :  { %6402 = vmatprep.subr.mxu1 %v9575_v40 }
 0x73b   :  { %6403 = vmatpush3.msra.mxu1 %v5744_v19 }
 0x73c   :  { %6404 = vmatprep.subr.mxu1 %v9575_v40 }
 0x73d   :  { %6405 = vmatpush3.msra.mxu1 %v5743_v46 }
 0x73e   :  { %6406 = vmatprep.subr.mxu1 %v9575_v40 }
 0x73f   :  { %6407 = vmatpush3.msra.mxu1 %v5742_v54 }
 0x740   :  { %6408 = vmatprep.subr.mxu1 %v9575_v40  ;;  %v5849_v40 = vld [vmem:[%s9567_s10] sm:$0x3]  ;;  %s6438_s10 = scalar_lea.vmem %s5869_s1, 32 }
 0x741   :  { %6409 = vmatpush3.msra.mxu1 %v5741_v31  ;;  %p6440_p2 = scmp.lt.s32.totalorder %s6438_s10, %s6434_s3 }
 0x742   :  { %6411 = vmatmul.mubr.f32.vlgmr.msra.gmra.mxu1 %v5757_v29 }
 0x743   :  { %p6441_p3 = por %p6440_p2, %p6439_p1 }
 0x745   :  { %p6442_p4 = pnand %p6441_p3, %p6435_p0 }
 0x802   :  { %v5824_v47 = vpop.f32.mrf.mxu1 }
 0x803   :  { %v5829_v56 = vsel %vm5828_vm0, %v5824_v47, 0.0 }
 0x804   :  { %5830 = vadd.xlane.f32.xlu0 %v5829_v56  ;;  %v6412_v55 = vpop.f32.mrf.mxu1 }
 0x88d   :  { %v5831_v35 = vpop.xlane.xlu0 %5830 }
 0x88e   :  { %v5839_v58 = vadd.f32 %v5961_v30, %v5831_v35 }
 0x890   :  { %v5840_v51 = vmax.f32 %v5839_v58, 0.0 }
 0x892   :  { %v5847_v5 = vsel %vm5846_vm2, %v5840_v51, 0.0 }
 0x893   :  { %v5850_v63 = vmul.f32 %v5849_v40, %v5847_v5 }
 0x895   :  { %v5852_v57 = vsel %vm5851_vm3, %v5850_v63, 0.0 }
 0x896   :  { %v5853_v49 = vrot.slane %v5852_v57, 4 }
 0x898   :  { %v5854_v7 = vadd.f32 %v5853_v49, %v5852_v57 }
 0x89a   :  { %v5855_v22 = vrot.slane %v5854_v7, 2 }
 0x89c   :  { %v5856_v44 = vadd.f32 %v5855_v22, %v5854_v7 }
 0x89e   :  { %v5857_v2 = vrot.slane %v5856_v44, 1 }
 0x8a0   :  { %v5858_v43 = vadd.f32 %v5857_v2, %v5856_v44 }
 0x8a2   :  { %v5859_v14 = vadd.f32 %v5858_v43, %v5848_v25 }
 0x8a4   :  { %5861 = vst.msk [vmem:[#allocation9] sm:$0x1] %vm203_vm1, %v5859_v14 }
 0x8a5   :  { %6445 = shalt.err (!%p6442_p4)
}
 0x8a6   :  { %5871 = dma.vmem_to_hbm [thread:$0]  %s5869_s1, 16, %s9568_s12, [#allocation10]  }
 0x8a7   :  { %6454 = dma.done.wait [#allocation10], 16  }
 0x8a8   :  { %6455 = vsyncadd [#allocation10], 4294967280 }
 0x8a9   :  { %5875 = vsyncpa [#allocation10], 1 }

</bundles_post_ra>
